<compile_context>
chip_gen: v6e
topology: v6e:2x2x1
jax: 0.10.0
libtpu: 0.0.40
codegen_flags: <defaults>
</compile_context>

<pallas_src>
import functools

import numpy as np
import jax
import jax.numpy as jnp
from jax import lax
from jax.experimental import pallas as pl
from jax.experimental.pallas import tpu as pltpu

LANE = 128


# ----------------------------------------------------------------------------
# Pallas kernel: one grid step == one image.
# ----------------------------------------------------------------------------
def _sk_kernel(cfg, *refs):
    nb, H, W, pmax, ks = cfg
    HW = H * W
    it = iter(refs)
    x_ref   = next(it)                        # (Hp, Wp, Cp) zero-padded input slab
    wtaps   = [next(it) for _ in range(nb)]   # (k_i*k_i, Cp, Cp) per-tap grouped-conv weights
    scales  = [next(it) for _ in range(nb)]   # (1, Cp) folded BN scale
    shifts  = [next(it) for _ in range(nb)]   # (1, Cp) folded BN shift (incl. conv bias)
    fcwT    = next(it)                        # (Cp, L)
    fcb     = next(it)                        # (1, L)
    fwT_cat = next(it)                        # (L, nb*C) concatenated second-level FC weights
    fb_cat  = next(it)                        # (1, nb*C) concatenated second-level FC biases
    sels    = [next(it) for _ in range(nb)]   # (nb*C, Cp) one-hot slice/placement matrices
    o_ref   = next(it)                        # (HW, Cp)

    hi = lax.Precision.HIGHEST
    cp = o_ref.shape[-1]

    # residual = central HxW window of the padded slab
    resid = x_ref[pmax:pmax + H, pmax:pmax + W, :].reshape(HW, cp)

    # per-branch grouped conv (tap-wise shifted-window matmuls) + folded BN + ReLU
    feats = []
    for i in range(nb):
        k = ks[i]
        off = pmax - (i + 1)                  # branch i uses padding p = i + 1
        acc = jnp.zeros((HW, cp), jnp.float32)
        for kh in range(k):
            for kw in range(k):
                tap = x_ref[off + kh:off + kh + H, off + kw:off + kw + W, :]
                acc = acc + jnp.dot(tap.reshape(HW, cp), wtaps[i][kh * k + kw],
                                    preferred_element_type=jnp.float32)
        feats.append(jnp.maximum(acc * scales[i][...] + shifts[i][...], 0.0))

    # U = sum(features); S = per-image global average pool -> (1, Cp)
    u = feats[0]
    for i in range(1, nb):
        u = u + feats[i]
    s = jnp.mean(u, axis=0, keepdims=True)

    # Z = fc(S) -> (1, L); concatenated attention logits -> (1, nb*C); softmax
    z = jnp.dot(s, fcwT[...], preferred_element_type=jnp.float32, precision=hi) + fcb[...]
    att = jnp.dot(z, fwT_cat[...], preferred_element_type=jnp.float32,
                  precision=hi) + fb_cat[...]
    att = att - jnp.max(att, axis=-1, keepdims=True)
    e = jnp.exp(att)
    att = e / jnp.sum(e, axis=-1, keepdims=True)

    # fuse: out = residual + sum_i att[:, i:i+C] * feats[i]   (faithful off-by-i
    # slice placed into lanes [0, C) of a Cp-wide vector by the one-hot matmul)
    out = resid
    for i in range(nb):
        a_i = jnp.dot(att, sels[i][...], preferred_element_type=jnp.float32,
                      precision=hi)           # (1, Cp)
        out = out + a_i * feats[i]

    o_ref[...] = jnp.maximum(out, 0.0)


# ----------------------------------------------------------------------------
# Wrapper: layout glue + parameter preprocessing (no hot-path compute).
# ----------------------------------------------------------------------------
def sk_module_pallas(x_nchw, params, num_branchs, sk_groups):
    n, c, h, w = x_nchw.shape
    nb = num_branchs
    g = sk_groups
    cg = c // g
    eps = 1e-5

    pmax = nb                                  # largest branch padding (p = nb)
    cp = ((c + LANE - 1) // LANE) * LANE       # lane-dense channel dim
    hp = h + 2 * pmax
    wp_raw = w + 2 * pmax
    wp = ((wp_raw + 7) // 8) * 8               # sublane-friendly padded width

    x_nhwc = jnp.transpose(x_nchw, (0, 2, 3, 1)).astype(jnp.float32)
    x_pad = jnp.pad(x_nhwc, ((0, 0),
                             (pmax, pmax),
                             (pmax, pmax + (wp - wp_raw)),
                             (0, cp - c)))     # (N, Hp, Wp, Cp)

    wtaps, scales, shifts, ks = [], [], [], []
    for i in range(nb):
        k = 2 * i + 3
        ks.append(k)
        w_np = np.asarray(params["conv_w"][i], dtype=np.float32)   # (C, C/G, k, k)
        wt = np.zeros((k * k, cp, cp), np.float32)
        for o in range(c):
            grp = o // cg
            for cl in range(cg):
                cin = grp * cg + cl
                wt[:, cin, o] = w_np[o, cl].reshape(k * k)
        wtaps.append(jnp.asarray(wt))

        gamma = np.asarray(params["bn_gamma"][i], np.float32)
        beta = np.asarray(params["bn_beta"][i], np.float32)
        mean = np.asarray(params["bn_mean"][i], np.float32)
        var = np.asarray(params["bn_var"][i], np.float32)
        bias = np.asarray(params["conv_b"][i], np.float32)
        sc = gamma / np.sqrt(var + eps)
        sh = (bias - mean) * sc + beta
        sc_p = np.zeros((1, cp), np.float32); sc_p[0, :c] = sc
        sh_p = np.zeros((1, cp), np.float32); sh_p[0, :c] = sh
        scales.append(jnp.asarray(sc_p))
        shifts.append(jnp.asarray(sh_p))

    L = np.asarray(params["fc_w"]).shape[0]
    fcwT_p = np.zeros((cp, L), np.float32)
    fcwT_p[:c, :] = np.asarray(params["fc_w"], np.float32).T
    fcb_p = np.asarray(params["fc_b"], np.float32).reshape(1, L)

    fwT_cat = np.concatenate(
        [np.asarray(params["fcs_w"][i], np.float32).T for i in range(nb)], axis=1)   # (L, nb*C)
    fb_cat = np.concatenate(
        [np.asarray(params["fcs_b"][i], np.float32).reshape(1, c) for i in range(nb)], axis=1)

    sels = []
    for i in range(nb):
        sm = np.zeros((nb * c, cp), np.float32)
        sm[i + np.arange(c), np.arange(c)] = 1.0    # a_i = att[:, i:i+C] in lanes [0, C)
        sels.append(jnp.asarray(sm))

    inputs = ([x_pad] + wtaps + scales + shifts
              + [jnp.asarray(fcwT_p), jnp.asarray(fcb_p),
                 jnp.asarray(fwT_cat), jnp.asarray(fb_cat)]
              + sels)

    in_specs = [pl.BlockSpec((None, hp, wp, cp), lambda b: (b, 0, 0, 0))]
    for i in range(nb):
        in_specs.append(pl.BlockSpec((ks[i] * ks[i], cp, cp), lambda b: (0, 0, 0)))
    for _ in range(2 * nb):
        in_specs.append(pl.BlockSpec((1, cp), lambda b: (0, 0)))
    in_specs.append(pl.BlockSpec((cp, L), lambda b: (0, 0)))
    in_specs.append(pl.BlockSpec((1, L), lambda b: (0, 0)))
    in_specs.append(pl.BlockSpec((L, nb * c), lambda b: (0, 0)))
    in_specs.append(pl.BlockSpec((1, nb * c), lambda b: (0, 0)))
    for _ in range(nb):
        in_specs.append(pl.BlockSpec((nb * c, cp), lambda b: (0, 0)))

    out_specs = pl.BlockSpec((None, h * w, cp), lambda b: (b, 0, 0))

    kernel = functools.partial(_sk_kernel, (nb, h, w, pmax, tuple(ks)))
    out_flat = pl.pallas_call(
        kernel,
        out_shape=jax.ShapeDtypeStruct((n, h * w, cp), jnp.float32),
        grid=(n,),
        in_specs=in_specs,
        out_specs=out_specs,
        compiler_params=pltpu.CompilerParams(
            dimension_semantics=("parallel",),
            vmem_limit_bytes=32 * 1024 * 1024),
    )(*inputs)

    out = out_flat.reshape(n, h, w, cp)[:, :, :, :c]
    return jnp.transpose(out, (0, 3, 1, 2))    # back to NCHW


# ----------------------------------------------------------------------------
# Pure-JAX reference (independent path: lax.conv with groups) for sanity check.
# ----------------------------------------------------------------------------
def sk_module_reference(x, params, num_branchs, sk_groups):
    n, c, h, w = x.shape
    eps = 1e-5
    feats = []
    for i in range(num_branchs):
        p = i + 1
        y = lax.conv_general_dilated(
            x, params["conv_w"][i], window_strides=(1, 1),
            padding=[(p, p), (p, p)],
            dimension_numbers=("NCHW", "OIHW", "NCHW"),
            feature_group_count=sk_groups)
        y = y + params["conv_b"][i][None, :, None, None]
        sc = params["bn_gamma"][i] / jnp.sqrt(params["bn_var"][i] + eps)
        y = (y - params["bn_mean"][i][None, :, None, None]) * sc[None, :, None, None] \
            + params["bn_beta"][i][None, :, None, None]
        feats.append(jnp.maximum(y, 0.0))
    u = sum(feats)
    s = jnp.mean(u, axis=(2, 3))                                   # (N, C)
    z = s @ params["fc_w"].T + params["fc_b"]                      # (N, L)
    vecs = [z @ params["fcs_w"][i].T + params["fcs_b"][i] for i in range(num_branchs)]
    att = jnp.concatenate(vecs, axis=1)
    att = jax.nn.softmax(att, axis=1)
    out = sum(att[:, i:i + c, None, None] * feats[i] for i in range(num_branchs))
    out = out + x
    return jnp.maximum(out, 0.0)


# ----------------------------------------------------------------------------
if __name__ == "__main__":
    planes, sk_groups, num_branchs, ratio, min_len = 8, 2, 2, 2, 4
    N, H, W = 2, 8, 8
    vector_len = max(planes // ratio, min_len)

    key = jax.random.PRNGKey(0)
    keys = iter(jax.random.split(key, 64))

    params = {
        "conv_w": [], "conv_b": [],
        "bn_gamma": [], "bn_beta": [], "bn_mean": [], "bn_var": [],
        "fcs_w": [], "fcs_b": [],
    }
    for i in range(num_branchs):
        k = 2 * i + 3
        params["conv_w"].append(
            0.1 * jax.random.normal(next(keys), (planes, planes // sk_groups, k, k), jnp.float32))
        params["conv_b"].append(0.1 * jax.random.normal(next(keys), (planes,), jnp.float32))
        params["bn_gamma"].append(1.0 + 0.1 * jax.random.normal(next(keys), (planes,), jnp.float32))
        params["bn_beta"].append(0.1 * jax.random.normal(next(keys), (planes,), jnp.float32))
        params["bn_mean"].append(0.1 * jax.random.normal(next(keys), (planes,), jnp.float32))
        params["bn_var"].append(0.5 + 0.1 * jnp.abs(jax.random.normal(next(keys), (planes,), jnp.float32)))
        params["fcs_w"].append(0.1 * jax.random.normal(next(keys), (planes, vector_len), jnp.float32))
        params["fcs_b"].append(0.1 * jax.random.normal(next(keys), (planes,), jnp.float32))
    params["fc_w"] = 0.1 * jax.random.normal(next(keys), (vector_len, planes), jnp.float32)
    params["fc_b"] = 0.1 * jax.random.normal(next(keys), (vector_len,), jnp.float32)

    x = jax.random.normal(next(keys), (N, planes, H, W), jnp.float32)

    out = sk_module_pallas(x, params, num_branchs, sk_groups)
    out = jax.block_until_ready(out)

    ref = jax.block_until_ready(sk_module_reference(x, params, num_branchs, sk_groups))
    np.testing.assert_allclose(np.asarray(out), np.asarray(ref), rtol=2e-2, atol=3e-3)

    print("KERNEL_OK")
</pallas_src>

<mosaic_0001>
module attributes {stable_mosaic.version = 11 : i64} {
  func.func @_sk_kernel(%arg0: i32, %arg1: memref<1x12x16x128xf32, #tpu.memory_space<vmem>>, %arg2: memref<9x128x128xf32, #tpu.memory_space<vmem>>, %arg3: memref<25x128x128xf32, #tpu.memory_space<vmem>>, %arg4: memref<1x128xf32, #tpu.memory_space<vmem>>, %arg5: memref<1x128xf32, #tpu.memory_space<vmem>>, %arg6: memref<1x128xf32, #tpu.memory_space<vmem>>, %arg7: memref<1x128xf32, #tpu.memory_space<vmem>>, %arg8: memref<128x4xf32, #tpu.memory_space<vmem>>, %arg9: memref<1x4xf32, #tpu.memory_space<vmem>>, %arg10: memref<4x16xf32, #tpu.memory_space<vmem>>, %arg11: memref<1x16xf32, #tpu.memory_space<vmem>>, %arg12: memref<16x128xf32, #tpu.memory_space<vmem>>, %arg13: memref<16x128xf32, #tpu.memory_space<vmem>>, %arg14: memref<1x64x128xf32, #tpu.memory_space<vmem>>) attributes {dimension_semantics = [#tpu.dimension_semantics<parallel>], iteration_bounds = array<i64: 2>, scalar_prefetch = 0 : i64, scratch_operands = 0 : i64, tpu.core_type = #tpu.core_type<tc>, window_params = [{transform_indices = @transform_0, window_bounds = array<i64: 1, 12, 16, 128>}, {pipeline_mode = #tpu.pipeline_mode<synchronous>, transform_indices = @transform_1, window_bounds = array<i64: 9, 128, 128>}, {pipeline_mode = #tpu.pipeline_mode<synchronous>, transform_indices = @transform_2, window_bounds = array<i64: 25, 128, 128>}, {pipeline_mode = #tpu.pipeline_mode<synchronous>, transform_indices = @transform_3, window_bounds = array<i64: 1, 128>}, {pipeline_mode = #tpu.pipeline_mode<synchronous>, transform_indices = @transform_4, window_bounds = array<i64: 1, 128>}, {pipeline_mode = #tpu.pipeline_mode<synchronous>, transform_indices = @transform_5, window_bounds = array<i64: 1, 128>}, {pipeline_mode = #tpu.pipeline_mode<synchronous>, transform_indices = @transform_6, window_bounds = array<i64: 1, 128>}, {pipeline_mode = #tpu.pipeline_mode<synchronous>, transform_indices = @transform_7, window_bounds = array<i64: 128, 4>}, {pipeline_mode = #tpu.pipeline_mode<synchronous>, transform_indices = @transform_8, window_bounds = array<i64: 1, 4>}, {pipeline_mode = #tpu.pipeline_mode<synchronous>, transform_indices = @transform_9, window_bounds = array<i64: 4, 16>}, {pipeline_mode = #tpu.pipeline_mode<synchronous>, transform_indices = @transform_10, window_bounds = array<i64: 1, 16>}, {pipeline_mode = #tpu.pipeline_mode<synchronous>, transform_indices = @transform_11, window_bounds = array<i64: 16, 128>}, {pipeline_mode = #tpu.pipeline_mode<synchronous>, transform_indices = @transform_12, window_bounds = array<i64: 16, 128>}, {transform_indices = @transform_13, window_bounds = array<i64: 1, 64, 128>}]} {
    %c0 = arith.constant 0 : index
    %c2 = arith.constant 2 : index
    %c2_0 = arith.constant 2 : index
    %c0_1 = arith.constant 0 : index
    %0 = vector.load %arg1[%c0, %c2, %c2_0, %c0_1] : memref<1x12x16x128xf32, #tpu.memory_space<vmem>>, vector<1x8x8x128xf32>
    %1 = vector.shape_cast %0 : vector<1x8x8x128xf32> to vector<8x8x128xf32>
    %2 = vector.shape_cast %1 : vector<8x8x128xf32> to vector<64x128xf32>
    %cst = arith.constant 0.000000e+00 : f32
    %3 = vector.broadcast %cst : f32 to vector<64x128xf32>
    %c0_2 = arith.constant 0 : index
    %c1 = arith.constant 1 : index
    %c1_3 = arith.constant 1 : index
    %c0_4 = arith.constant 0 : index
    %4 = vector.load %arg1[%c0_2, %c1, %c1_3, %c0_4] : memref<1x12x16x128xf32, #tpu.memory_space<vmem>>, vector<1x8x8x128xf32>
    %5 = vector.shape_cast %4 : vector<1x8x8x128xf32> to vector<8x8x128xf32>
    %6 = vector.shape_cast %5 : vector<8x8x128xf32> to vector<64x128xf32>
    %c0_5 = arith.constant 0 : index
    %c0_6 = arith.constant 0 : index
    %c0_7 = arith.constant 0 : index
    %7 = vector.load %arg2[%c0_5, %c0_6, %c0_7] : memref<9x128x128xf32, #tpu.memory_space<vmem>>, vector<1x128x128xf32>
    %8 = vector.shape_cast %7 : vector<1x128x128xf32> to vector<128x128xf32>
    %cst_8 = arith.constant dense<0.000000e+00> : vector<64x128xf32>
    %9 = tpu.matmul %6, %8, %cst_8 {dimension_numbers = #tpu.dot_dimension_numbers<[1], [0], [0], [1], [0, 0, 1, 1], [], []>} : vector<64x128xf32>, vector<128x128xf32>, vector<64x128xf32> -> vector<64x128xf32>
    %10 = arith.addf %3, %9 : vector<64x128xf32>
    %c0_9 = arith.constant 0 : index
    %c1_10 = arith.constant 1 : index
    %c2_11 = arith.constant 2 : index
    %c0_12 = arith.constant 0 : index
    %11 = vector.load %arg1[%c0_9, %c1_10, %c2_11, %c0_12] : memref<1x12x16x128xf32, #tpu.memory_space<vmem>>, vector<1x8x8x128xf32>
    %12 = vector.shape_cast %11 : vector<1x8x8x128xf32> to vector<8x8x128xf32>
    %13 = vector.shape_cast %12 : vector<8x8x128xf32> to vector<64x128xf32>
    %c1_13 = arith.constant 1 : index
    %c0_14 = arith.constant 0 : index
    %c0_15 = arith.constant 0 : index
    %14 = vector.load %arg2[%c1_13, %c0_14, %c0_15] : memref<9x128x128xf32, #tpu.memory_space<vmem>>, vector<1x128x128xf32>
    %15 = vector.shape_cast %14 : vector<1x128x128xf32> to vector<128x128xf32>
    %cst_16 = arith.constant dense<0.000000e+00> : vector<64x128xf32>
    %16 = tpu.matmul %13, %15, %cst_16 {dimension_numbers = #tpu.dot_dimension_numbers<[1], [0], [0], [1], [0, 0, 1, 1], [], []>} : vector<64x128xf32>, vector<128x128xf32>, vector<64x128xf32> -> vector<64x128xf32>
    %17 = arith.addf %10, %16 : vector<64x128xf32>
    %c0_17 = arith.constant 0 : index
    %c1_18 = arith.constant 1 : index
    %c3 = arith.constant 3 : index
    %c0_19 = arith.constant 0 : index
    %18 = vector.load %arg1[%c0_17, %c1_18, %c3, %c0_19] : memref<1x12x16x128xf32, #tpu.memory_space<vmem>>, vector<1x8x8x128xf32>
    %19 = vector.shape_cast %18 : vector<1x8x8x128xf32> to vector<8x8x128xf32>
    %20 = vector.shape_cast %19 : vector<8x8x128xf32> to vector<64x128xf32>
    %c2_20 = arith.constant 2 : index
    %c0_21 = arith.constant 0 : index
    %c0_22 = arith.constant 0 : index
    %21 = vector.load %arg2[%c2_20, %c0_21, %c0_22] : memref<9x128x128xf32, #tpu.memory_space<vmem>>, vector<1x128x128xf32>
    %22 = vector.shape_cast %21 : vector<1x128x128xf32> to vector<128x128xf32>
    %cst_23 = arith.constant dense<0.000000e+00> : vector<64x128xf32>
    %23 = tpu.matmul %20, %22, %cst_23 {dimension_numbers = #tpu.dot_dimension_numbers<[1], [0], [0], [1], [0, 0, 1, 1], [], []>} : vector<64x128xf32>, vector<128x128xf32>, vector<64x128xf32> -> vector<64x128xf32>
    %24 = arith.addf %17, %23 : vector<64x128xf32>
    %c0_24 = arith.constant 0 : index
    %c2_25 = arith.constant 2 : index
    %c1_26 = arith.constant 1 : index
    %c0_27 = arith.constant 0 : index
    %25 = vector.load %arg1[%c0_24, %c2_25, %c1_26, %c0_27] : memref<1x12x16x128xf32, #tpu.memory_space<vmem>>, vector<1x8x8x128xf32>
    %26 = vector.shape_cast %25 : vector<1x8x8x128xf32> to vector<8x8x128xf32>
    %27 = vector.shape_cast %26 : vector<8x8x128xf32> to vector<64x128xf32>
    %c3_28 = arith.constant 3 : index
    %c0_29 = arith.constant 0 : index
    %c0_30 = arith.constant 0 : index
    %28 = vector.load %arg2[%c3_28, %c0_29, %c0_30] : memref<9x128x128xf32, #tpu.memory_space<vmem>>, vector<1x128x128xf32>
    %29 = vector.shape_cast %28 : vector<1x128x128xf32> to vector<128x128xf32>
    %cst_31 = arith.constant dense<0.000000e+00> : vector<64x128xf32>
    %30 = tpu.matmul %27, %29, %cst_31 {dimension_numbers = #tpu.dot_dimension_numbers<[1], [0], [0], [1], [0, 0, 1, 1], [], []>} : vector<64x128xf32>, vector<128x128xf32>, vector<64x128xf32> -> vector<64x128xf32>
    %31 = arith.addf %24, %30 : vector<64x128xf32>
    %c0_32 = arith.constant 0 : index
    %c2_33 = arith.constant 2 : index
    %c2_34 = arith.constant 2 : index
    %c0_35 = arith.constant 0 : index
    %32 = vector.load %arg1[%c0_32, %c2_33, %c2_34, %c0_35] : memref<1x12x16x128xf32, #tpu.memory_space<vmem>>, vector<1x8x8x128xf32>
    %33 = vector.shape_cast %32 : vector<1x8x8x128xf32> to vector<8x8x128xf32>
    %34 = vector.shape_cast %33 : vector<8x8x128xf32> to vector<64x128xf32>
    %c4 = arith.constant 4 : index
    %c0_36 = arith.constant 0 : index
    %c0_37 = arith.constant 0 : index
    %35 = vector.load %arg2[%c4, %c0_36, %c0_37] : memref<9x128x128xf32, #tpu.memory_space<vmem>>, vector<1x128x128xf32>
    %36 = vector.shape_cast %35 : vector<1x128x128xf32> to vector<128x128xf32>
    %cst_38 = arith.constant dense<0.000000e+00> : vector<64x128xf32>
    %37 = tpu.matmul %34, %36, %cst_38 {dimension_numbers = #tpu.dot_dimension_numbers<[1], [0], [0], [1], [0, 0, 1, 1], [], []>} : vector<64x128xf32>, vector<128x128xf32>, vector<64x128xf32> -> vector<64x128xf32>
    %38 = arith.addf %31, %37 : vector<64x128xf32>
    %c0_39 = arith.constant 0 : index
    %c2_40 = arith.constant 2 : index
    %c3_41 = arith.constant 3 : index
    %c0_42 = arith.constant 0 : index
    %39 = vector.load %arg1[%c0_39, %c2_40, %c3_41, %c0_42] : memref<1x12x16x128xf32, #tpu.memory_space<vmem>>, vector<1x8x8x128xf32>
    %40 = vector.shape_cast %39 : vector<1x8x8x128xf32> to vector<8x8x128xf32>
    %41 = vector.shape_cast %40 : vector<8x8x128xf32> to vector<64x128xf32>
    %c5 = arith.constant 5 : index
    %c0_43 = arith.constant 0 : index
    %c0_44 = arith.constant 0 : index
    %42 = vector.load %arg2[%c5, %c0_43, %c0_44] : memref<9x128x128xf32, #tpu.memory_space<vmem>>, vector<1x128x128xf32>
    %43 = vector.shape_cast %42 : vector<1x128x128xf32> to vector<128x128xf32>
    %cst_45 = arith.constant dense<0.000000e+00> : vector<64x128xf32>
    %44 = tpu.matmul %41, %43, %cst_45 {dimension_numbers = #tpu.dot_dimension_numbers<[1], [0], [0], [1], [0, 0, 1, 1], [], []>} : vector<64x128xf32>, vector<128x128xf32>, vector<64x128xf32> -> vector<64x128xf32>
    %45 = arith.addf %38, %44 : vector<64x128xf32>
    %c0_46 = arith.constant 0 : index
    %c3_47 = arith.constant 3 : index
    %c1_48 = arith.constant 1 : index
    %c0_49 = arith.constant 0 : index
    %46 = vector.load %arg1[%c0_46, %c3_47, %c1_48, %c0_49] : memref<1x12x16x128xf32, #tpu.memory_space<vmem>>, vector<1x8x8x128xf32>
    %47 = vector.shape_cast %46 : vector<1x8x8x128xf32> to vector<8x8x128xf32>
    %48 = vector.shape_cast %47 : vector<8x8x128xf32> to vector<64x128xf32>
    %c6 = arith.constant 6 : index
    %c0_50 = arith.constant 0 : index
    %c0_51 = arith.constant 0 : index
    %49 = vector.load %arg2[%c6, %c0_50, %c0_51] : memref<9x128x128xf32, #tpu.memory_space<vmem>>, vector<1x128x128xf32>
    %50 = vector.shape_cast %49 : vector<1x128x128xf32> to vector<128x128xf32>
    %cst_52 = arith.constant dense<0.000000e+00> : vector<64x128xf32>
    %51 = tpu.matmul %48, %50, %cst_52 {dimension_numbers = #tpu.dot_dimension_numbers<[1], [0], [0], [1], [0, 0, 1, 1], [], []>} : vector<64x128xf32>, vector<128x128xf32>, vector<64x128xf32> -> vector<64x128xf32>
    %52 = arith.addf %45, %51 : vector<64x128xf32>
    %c0_53 = arith.constant 0 : index
    %c3_54 = arith.constant 3 : index
    %c2_55 = arith.constant 2 : index
    %c0_56 = arith.constant 0 : index
    %53 = vector.load %arg1[%c0_53, %c3_54, %c2_55, %c0_56] : memref<1x12x16x128xf32, #tpu.memory_space<vmem>>, vector<1x8x8x128xf32>
    %54 = vector.shape_cast %53 : vector<1x8x8x128xf32> to vector<8x8x128xf32>
    %55 = vector.shape_cast %54 : vector<8x8x128xf32> to vector<64x128xf32>
    %c7 = arith.constant 7 : index
    %c0_57 = arith.constant 0 : index
    %c0_58 = arith.constant 0 : index
    %56 = vector.load %arg2[%c7, %c0_57, %c0_58] : memref<9x128x128xf32, #tpu.memory_space<vmem>>, vector<1x128x128xf32>
    %57 = vector.shape_cast %56 : vector<1x128x128xf32> to vector<128x128xf32>
    %cst_59 = arith.constant dense<0.000000e+00> : vector<64x128xf32>
    %58 = tpu.matmul %55, %57, %cst_59 {dimension_numbers = #tpu.dot_dimension_numbers<[1], [0], [0], [1], [0, 0, 1, 1], [], []>} : vector<64x128xf32>, vector<128x128xf32>, vector<64x128xf32> -> vector<64x128xf32>
    %59 = arith.addf %52, %58 : vector<64x128xf32>
    %c0_60 = arith.constant 0 : index
    %c3_61 = arith.constant 3 : index
    %c3_62 = arith.constant 3 : index
    %c0_63 = arith.constant 0 : index
    %60 = vector.load %arg1[%c0_60, %c3_61, %c3_62, %c0_63] : memref<1x12x16x128xf32, #tpu.memory_space<vmem>>, vector<1x8x8x128xf32>
    %61 = vector.shape_cast %60 : vector<1x8x8x128xf32> to vector<8x8x128xf32>
    %62 = vector.shape_cast %61 : vector<8x8x128xf32> to vector<64x128xf32>
    %c8 = arith.constant 8 : index
    %c0_64 = arith.constant 0 : index
    %c0_65 = arith.constant 0 : index
    %63 = vector.load %arg2[%c8, %c0_64, %c0_65] : memref<9x128x128xf32, #tpu.memory_space<vmem>>, vector<1x128x128xf32>
    %64 = vector.shape_cast %63 : vector<1x128x128xf32> to vector<128x128xf32>
    %cst_66 = arith.constant dense<0.000000e+00> : vector<64x128xf32>
    %65 = tpu.matmul %62, %64, %cst_66 {dimension_numbers = #tpu.dot_dimension_numbers<[1], [0], [0], [1], [0, 0, 1, 1], [], []>} : vector<64x128xf32>, vector<128x128xf32>, vector<64x128xf32> -> vector<64x128xf32>
    %66 = arith.addf %59, %65 : vector<64x128xf32>
    %c0_67 = arith.constant 0 : index
    %c0_68 = arith.constant 0 : index
    %67 = vector.load %arg4[%c0_67, %c0_68] : memref<1x128xf32, #tpu.memory_space<vmem>>, vector<1x128xf32>
    %68 = vector.broadcast %67 : vector<1x128xf32> to vector<64x128xf32>
    %69 = arith.mulf %66, %68 : vector<64x128xf32>
    %c0_69 = arith.constant 0 : index
    %c0_70 = arith.constant 0 : index
    %70 = vector.load %arg6[%c0_69, %c0_70] : memref<1x128xf32, #tpu.memory_space<vmem>>, vector<1x128xf32>
    %71 = vector.broadcast %70 : vector<1x128xf32> to vector<64x128xf32>
    %72 = arith.addf %69, %71 : vector<64x128xf32>
    %cst_71 = arith.constant 0.000000e+00 : f32
    %73 = vector.broadcast %cst_71 : f32 to vector<64x128xf32>
    %74 = arith.maximumf %72, %73 : vector<64x128xf32>
    %cst_72 = arith.constant 0.000000e+00 : f32
    %75 = vector.broadcast %cst_72 : f32 to vector<64x128xf32>
    %c0_73 = arith.constant 0 : index
    %c0_74 = arith.constant 0 : index
    %c0_75 = arith.constant 0 : index
    %c0_76 = arith.constant 0 : index
    %76 = vector.load %arg1[%c0_73, %c0_74, %c0_75, %c0_76] : memref<1x12x16x128xf32, #tpu.memory_space<vmem>>, vector<1x8x8x128xf32>
    %77 = vector.shape_cast %76 : vector<1x8x8x128xf32> to vector<8x8x128xf32>
    %78 = vector.shape_cast %77 : vector<8x8x128xf32> to vector<64x128xf32>
    %c0_77 = arith.constant 0 : index
    %c0_78 = arith.constant 0 : index
    %c0_79 = arith.constant 0 : index
    %79 = vector.load %arg3[%c0_77, %c0_78, %c0_79] : memref<25x128x128xf32, #tpu.memory_space<vmem>>, vector<1x128x128xf32>
    %80 = vector.shape_cast %79 : vector<1x128x128xf32> to vector<128x128xf32>
    %cst_80 = arith.constant dense<0.000000e+00> : vector<64x128xf32>
    %81 = tpu.matmul %78, %80, %cst_80 {dimension_numbers = #tpu.dot_dimension_numbers<[1], [0], [0], [1], [0, 0, 1, 1], [], []>} : vector<64x128xf32>, vector<128x128xf32>, vector<64x128xf32> -> vector<64x128xf32>
    %82 = arith.addf %75, %81 : vector<64x128xf32>
    %c0_81 = arith.constant 0 : index
    %c0_82 = arith.constant 0 : index
    %c1_83 = arith.constant 1 : index
    %c0_84 = arith.constant 0 : index
    %83 = vector.load %arg1[%c0_81, %c0_82, %c1_83, %c0_84] : memref<1x12x16x128xf32, #tpu.memory_space<vmem>>, vector<1x8x8x128xf32>
    %84 = vector.shape_cast %83 : vector<1x8x8x128xf32> to vector<8x8x128xf32>
    %85 = vector.shape_cast %84 : vector<8x8x128xf32> to vector<64x128xf32>
    %c1_85 = arith.constant 1 : index
    %c0_86 = arith.constant 0 : index
    %c0_87 = arith.constant 0 : index
    %86 = vector.load %arg3[%c1_85, %c0_86, %c0_87] : memref<25x128x128xf32, #tpu.memory_space<vmem>>, vector<1x128x128xf32>
    %87 = vector.shape_cast %86 : vector<1x128x128xf32> to vector<128x128xf32>
    %cst_88 = arith.constant dense<0.000000e+00> : vector<64x128xf32>
    %88 = tpu.matmul %85, %87, %cst_88 {dimension_numbers = #tpu.dot_dimension_numbers<[1], [0], [0], [1], [0, 0, 1, 1], [], []>} : vector<64x128xf32>, vector<128x128xf32>, vector<64x128xf32> -> vector<64x128xf32>
    %89 = arith.addf %82, %88 : vector<64x128xf32>
    %c0_89 = arith.constant 0 : index
    %c0_90 = arith.constant 0 : index
    %c2_91 = arith.constant 2 : index
    %c0_92 = arith.constant 0 : index
    %90 = vector.load %arg1[%c0_89, %c0_90, %c2_91, %c0_92] : memref<1x12x16x128xf32, #tpu.memory_space<vmem>>, vector<1x8x8x128xf32>
    %91 = vector.shape_cast %90 : vector<1x8x8x128xf32> to vector<8x8x128xf32>
    %92 = vector.shape_cast %91 : vector<8x8x128xf32> to vector<64x128xf32>
    %c2_93 = arith.constant 2 : index
    %c0_94 = arith.constant 0 : index
    %c0_95 = arith.constant 0 : index
    %93 = vector.load %arg3[%c2_93, %c0_94, %c0_95] : memref<25x128x128xf32, #tpu.memory_space<vmem>>, vector<1x128x128xf32>
    %94 = vector.shape_cast %93 : vector<1x128x128xf32> to vector<128x128xf32>
    %cst_96 = arith.constant dense<0.000000e+00> : vector<64x128xf32>
    %95 = tpu.matmul %92, %94, %cst_96 {dimension_numbers = #tpu.dot_dimension_numbers<[1], [0], [0], [1], [0, 0, 1, 1], [], []>} : vector<64x128xf32>, vector<128x128xf32>, vector<64x128xf32> -> vector<64x128xf32>
    %96 = arith.addf %89, %95 : vector<64x128xf32>
    %c0_97 = arith.constant 0 : index
    %c0_98 = arith.constant 0 : index
    %c3_99 = arith.constant 3 : index
    %c0_100 = arith.constant 0 : index
    %97 = vector.load %arg1[%c0_97, %c0_98, %c3_99, %c0_100] : memref<1x12x16x128xf32, #tpu.memory_space<vmem>>, vector<1x8x8x128xf32>
    %98 = vector.shape_cast %97 : vector<1x8x8x128xf32> to vector<8x8x128xf32>
    %99 = vector.shape_cast %98 : vector<8x8x128xf32> to vector<64x128xf32>
    %c3_101 = arith.constant 3 : index
    %c0_102 = arith.constant 0 : index
    %c0_103 = arith.constant 0 : index
    %100 = vector.load %arg3[%c3_101, %c0_102, %c0_103] : memref<25x128x128xf32, #tpu.memory_space<vmem>>, vector<1x128x128xf32>
    %101 = vector.shape_cast %100 : vector<1x128x128xf32> to vector<128x128xf32>
    %cst_104 = arith.constant dense<0.000000e+00> : vector<64x128xf32>
    %102 = tpu.matmul %99, %101, %cst_104 {dimension_numbers = #tpu.dot_dimension_numbers<[1], [0], [0], [1], [0, 0, 1, 1], [], []>} : vector<64x128xf32>, vector<128x128xf32>, vector<64x128xf32> -> vector<64x128xf32>
    %103 = arith.addf %96, %102 : vector<64x128xf32>
    %c0_105 = arith.constant 0 : index
    %c0_106 = arith.constant 0 : index
    %c4_107 = arith.constant 4 : index
    %c0_108 = arith.constant 0 : index
    %104 = vector.load %arg1[%c0_105, %c0_106, %c4_107, %c0_108] : memref<1x12x16x128xf32, #tpu.memory_space<vmem>>, vector<1x8x8x128xf32>
    %105 = vector.shape_cast %104 : vector<1x8x8x128xf32> to vector<8x8x128xf32>
    %106 = vector.shape_cast %105 : vector<8x8x128xf32> to vector<64x128xf32>
    %c4_109 = arith.constant 4 : index
    %c0_110 = arith.constant 0 : index
    %c0_111 = arith.constant 0 : index
    %107 = vector.load %arg3[%c4_109, %c0_110, %c0_111] : memref<25x128x128xf32, #tpu.memory_space<vmem>>, vector<1x128x128xf32>
    %108 = vector.shape_cast %107 : vector<1x128x128xf32> to vector<128x128xf32>
    %cst_112 = arith.constant dense<0.000000e+00> : vector<64x128xf32>
    %109 = tpu.matmul %106, %108, %cst_112 {dimension_numbers = #tpu.dot_dimension_numbers<[1], [0], [0], [1], [0, 0, 1, 1], [], []>} : vector<64x128xf32>, vector<128x128xf32>, vector<64x128xf32> -> vector<64x128xf32>
    %110 = arith.addf %103, %109 : vector<64x128xf32>
    %c0_113 = arith.constant 0 : index
    %c1_114 = arith.constant 1 : index
    %c0_115 = arith.constant 0 : index
    %c0_116 = arith.constant 0 : index
    %111 = vector.load %arg1[%c0_113, %c1_114, %c0_115, %c0_116] : memref<1x12x16x128xf32, #tpu.memory_space<vmem>>, vector<1x8x8x128xf32>
    %112 = vector.shape_cast %111 : vector<1x8x8x128xf32> to vector<8x8x128xf32>
    %113 = vector.shape_cast %112 : vector<8x8x128xf32> to vector<64x128xf32>
    %c5_117 = arith.constant 5 : index
    %c0_118 = arith.constant 0 : index
    %c0_119 = arith.constant 0 : index
    %114 = vector.load %arg3[%c5_117, %c0_118, %c0_119] : memref<25x128x128xf32, #tpu.memory_space<vmem>>, vector<1x128x128xf32>
    %115 = vector.shape_cast %114 : vector<1x128x128xf32> to vector<128x128xf32>
    %cst_120 = arith.constant dense<0.000000e+00> : vector<64x128xf32>
    %116 = tpu.matmul %113, %115, %cst_120 {dimension_numbers = #tpu.dot_dimension_numbers<[1], [0], [0], [1], [0, 0, 1, 1], [], []>} : vector<64x128xf32>, vector<128x128xf32>, vector<64x128xf32> -> vector<64x128xf32>
    %117 = arith.addf %110, %116 : vector<64x128xf32>
    %c0_121 = arith.constant 0 : index
    %c1_122 = arith.constant 1 : index
    %c1_123 = arith.constant 1 : index
    %c0_124 = arith.constant 0 : index
    %118 = vector.load %arg1[%c0_121, %c1_122, %c1_123, %c0_124] : memref<1x12x16x128xf32, #tpu.memory_space<vmem>>, vector<1x8x8x128xf32>
    %119 = vector.shape_cast %118 : vector<1x8x8x128xf32> to vector<8x8x128xf32>
    %120 = vector.shape_cast %119 : vector<8x8x128xf32> to vector<64x128xf32>
    %c6_125 = arith.constant 6 : index
    %c0_126 = arith.constant 0 : index
    %c0_127 = arith.constant 0 : index
    %121 = vector.load %arg3[%c6_125, %c0_126, %c0_127] : memref<25x128x128xf32, #tpu.memory_space<vmem>>, vector<1x128x128xf32>
    %122 = vector.shape_cast %121 : vector<1x128x128xf32> to vector<128x128xf32>
    %cst_128 = arith.constant dense<0.000000e+00> : vector<64x128xf32>
    %123 = tpu.matmul %120, %122, %cst_128 {dimension_numbers = #tpu.dot_dimension_numbers<[1], [0], [0], [1], [0, 0, 1, 1], [], []>} : vector<64x128xf32>, vector<128x128xf32>, vector<64x128xf32> -> vector<64x128xf32>
    %124 = arith.addf %117, %123 : vector<64x128xf32>
    %c0_129 = arith.constant 0 : index
    %c1_130 = arith.constant 1 : index
    %c2_131 = arith.constant 2 : index
    %c0_132 = arith.constant 0 : index
    %125 = vector.load %arg1[%c0_129, %c1_130, %c2_131, %c0_132] : memref<1x12x16x128xf32, #tpu.memory_space<vmem>>, vector<1x8x8x128xf32>
    %126 = vector.shape_cast %125 : vector<1x8x8x128xf32> to vector<8x8x128xf32>
    %127 = vector.shape_cast %126 : vector<8x8x128xf32> to vector<64x128xf32>
    %c7_133 = arith.constant 7 : index
    %c0_134 = arith.constant 0 : index
    %c0_135 = arith.constant 0 : index
    %128 = vector.load %arg3[%c7_133, %c0_134, %c0_135] : memref<25x128x128xf32, #tpu.memory_space<vmem>>, vector<1x128x128xf32>
    %129 = vector.shape_cast %128 : vector<1x128x128xf32> to vector<128x128xf32>
    %cst_136 = arith.constant dense<0.000000e+00> : vector<64x128xf32>
    %130 = tpu.matmul %127, %129, %cst_136 {dimension_numbers = #tpu.dot_dimension_numbers<[1], [0], [0], [1], [0, 0, 1, 1], [], []>} : vector<64x128xf32>, vector<128x128xf32>, vector<64x128xf32> -> vector<64x128xf32>
    %131 = arith.addf %124, %130 : vector<64x128xf32>
    %c0_137 = arith.constant 0 : index
    %c1_138 = arith.constant 1 : index
    %c3_139 = arith.constant 3 : index
    %c0_140 = arith.constant 0 : index
    %132 = vector.load %arg1[%c0_137, %c1_138, %c3_139, %c0_140] : memref<1x12x16x128xf32, #tpu.memory_space<vmem>>, vector<1x8x8x128xf32>
    %133 = vector.shape_cast %132 : vector<1x8x8x128xf32> to vector<8x8x128xf32>
    %134 = vector.shape_cast %133 : vector<8x8x128xf32> to vector<64x128xf32>
    %c8_141 = arith.constant 8 : index
    %c0_142 = arith.constant 0 : index
    %c0_143 = arith.constant 0 : index
    %135 = vector.load %arg3[%c8_141, %c0_142, %c0_143] : memref<25x128x128xf32, #tpu.memory_space<vmem>>, vector<1x128x128xf32>
    %136 = vector.shape_cast %135 : vector<1x128x128xf32> to vector<128x128xf32>
    %cst_144 = arith.constant dense<0.000000e+00> : vector<64x128xf32>
    %137 = tpu.matmul %134, %136, %cst_144 {dimension_numbers = #tpu.dot_dimension_numbers<[1], [0], [0], [1], [0, 0, 1, 1], [], []>} : vector<64x128xf32>, vector<128x128xf32>, vector<64x128xf32> -> vector<64x128xf32>
    %138 = arith.addf %131, %137 : vector<64x128xf32>
    %c0_145 = arith.constant 0 : index
    %c1_146 = arith.constant 1 : index
    %c4_147 = arith.constant 4 : index
    %c0_148 = arith.constant 0 : index
    %139 = vector.load %arg1[%c0_145, %c1_146, %c4_147, %c0_148] : memref<1x12x16x128xf32, #tpu.memory_space<vmem>>, vector<1x8x8x128xf32>
    %140 = vector.shape_cast %139 : vector<1x8x8x128xf32> to vector<8x8x128xf32>
    %141 = vector.shape_cast %140 : vector<8x8x128xf32> to vector<64x128xf32>
    %c9 = arith.constant 9 : index
    %c0_149 = arith.constant 0 : index
    %c0_150 = arith.constant 0 : index
    %142 = vector.load %arg3[%c9, %c0_149, %c0_150] : memref<25x128x128xf32, #tpu.memory_space<vmem>>, vector<1x128x128xf32>
    %143 = vector.shape_cast %142 : vector<1x128x128xf32> to vector<128x128xf32>
    %cst_151 = arith.constant dense<0.000000e+00> : vector<64x128xf32>
    %144 = tpu.matmul %141, %143, %cst_151 {dimension_numbers = #tpu.dot_dimension_numbers<[1], [0], [0], [1], [0, 0, 1, 1], [], []>} : vector<64x128xf32>, vector<128x128xf32>, vector<64x128xf32> -> vector<64x128xf32>
    %145 = arith.addf %138, %144 : vector<64x128xf32>
    %c0_152 = arith.constant 0 : index
    %c2_153 = arith.constant 2 : index
    %c0_154 = arith.constant 0 : index
    %c0_155 = arith.constant 0 : index
    %146 = vector.load %arg1[%c0_152, %c2_153, %c0_154, %c0_155] : memref<1x12x16x128xf32, #tpu.memory_space<vmem>>, vector<1x8x8x128xf32>
    %147 = vector.shape_cast %146 : vector<1x8x8x128xf32> to vector<8x8x128xf32>
    %148 = vector.shape_cast %147 : vector<8x8x128xf32> to vector<64x128xf32>
    %c10 = arith.constant 10 : index
    %c0_156 = arith.constant 0 : index
    %c0_157 = arith.constant 0 : index
    %149 = vector.load %arg3[%c10, %c0_156, %c0_157] : memref<25x128x128xf32, #tpu.memory_space<vmem>>, vector<1x128x128xf32>
    %150 = vector.shape_cast %149 : vector<1x128x128xf32> to vector<128x128xf32>
    %cst_158 = arith.constant dense<0.000000e+00> : vector<64x128xf32>
    %151 = tpu.matmul %148, %150, %cst_158 {dimension_numbers = #tpu.dot_dimension_numbers<[1], [0], [0], [1], [0, 0, 1, 1], [], []>} : vector<64x128xf32>, vector<128x128xf32>, vector<64x128xf32> -> vector<64x128xf32>
    %152 = arith.addf %145, %151 : vector<64x128xf32>
    %c0_159 = arith.constant 0 : index
    %c2_160 = arith.constant 2 : index
    %c1_161 = arith.constant 1 : index
    %c0_162 = arith.constant 0 : index
    %153 = vector.load %arg1[%c0_159, %c2_160, %c1_161, %c0_162] : memref<1x12x16x128xf32, #tpu.memory_space<vmem>>, vector<1x8x8x128xf32>
    %154 = vector.shape_cast %153 : vector<1x8x8x128xf32> to vector<8x8x128xf32>
    %155 = vector.shape_cast %154 : vector<8x8x128xf32> to vector<64x128xf32>
    %c11 = arith.constant 11 : index
    %c0_163 = arith.constant 0 : index
    %c0_164 = arith.constant 0 : index
    %156 = vector.load %arg3[%c11, %c0_163, %c0_164] : memref<25x128x128xf32, #tpu.memory_space<vmem>>, vector<1x128x128xf32>
    %157 = vector.shape_cast %156 : vector<1x128x128xf32> to vector<128x128xf32>
    %cst_165 = arith.constant dense<0.000000e+00> : vector<64x128xf32>
    %158 = tpu.matmul %155, %157, %cst_165 {dimension_numbers = #tpu.dot_dimension_numbers<[1], [0], [0], [1], [0, 0, 1, 1], [], []>} : vector<64x128xf32>, vector<128x128xf32>, vector<64x128xf32> -> vector<64x128xf32>
    %159 = arith.addf %152, %158 : vector<64x128xf32>
    %c0_166 = arith.constant 0 : index
    %c2_167 = arith.constant 2 : index
    %c2_168 = arith.constant 2 : index
    %c0_169 = arith.constant 0 : index
    %160 = vector.load %arg1[%c0_166, %c2_167, %c2_168, %c0_169] : memref<1x12x16x128xf32, #tpu.memory_space<vmem>>, vector<1x8x8x128xf32>
    %161 = vector.shape_cast %160 : vector<1x8x8x128xf32> to vector<8x8x128xf32>
    %162 = vector.shape_cast %161 : vector<8x8x128xf32> to vector<64x128xf32>
    %c12 = arith.constant 12 : index
    %c0_170 = arith.constant 0 : index
    %c0_171 = arith.constant 0 : index
    %163 = vector.load %arg3[%c12, %c0_170, %c0_171] : memref<25x128x128xf32, #tpu.memory_space<vmem>>, vector<1x128x128xf32>
    %164 = vector.shape_cast %163 : vector<1x128x128xf32> to vector<128x128xf32>
    %cst_172 = arith.constant dense<0.000000e+00> : vector<64x128xf32>
    %165 = tpu.matmul %162, %164, %cst_172 {dimension_numbers = #tpu.dot_dimension_numbers<[1], [0], [0], [1], [0, 0, 1, 1], [], []>} : vector<64x128xf32>, vector<128x128xf32>, vector<64x128xf32> -> vector<64x128xf32>
    %166 = arith.addf %159, %165 : vector<64x128xf32>
    %c0_173 = arith.constant 0 : index
    %c2_174 = arith.constant 2 : index
    %c3_175 = arith.constant 3 : index
    %c0_176 = arith.constant 0 : index
    %167 = vector.load %arg1[%c0_173, %c2_174, %c3_175, %c0_176] : memref<1x12x16x128xf32, #tpu.memory_space<vmem>>, vector<1x8x8x128xf32>
    %168 = vector.shape_cast %167 : vector<1x8x8x128xf32> to vector<8x8x128xf32>
    %169 = vector.shape_cast %168 : vector<8x8x128xf32> to vector<64x128xf32>
    %c13 = arith.constant 13 : index
    %c0_177 = arith.constant 0 : index
    %c0_178 = arith.constant 0 : index
    %170 = vector.load %arg3[%c13, %c0_177, %c0_178] : memref<25x128x128xf32, #tpu.memory_space<vmem>>, vector<1x128x128xf32>
    %171 = vector.shape_cast %170 : vector<1x128x128xf32> to vector<128x128xf32>
    %cst_179 = arith.constant dense<0.000000e+00> : vector<64x128xf32>
    %172 = tpu.matmul %169, %171, %cst_179 {dimension_numbers = #tpu.dot_dimension_numbers<[1], [0], [0], [1], [0, 0, 1, 1], [], []>} : vector<64x128xf32>, vector<128x128xf32>, vector<64x128xf32> -> vector<64x128xf32>
    %173 = arith.addf %166, %172 : vector<64x128xf32>
    %c0_180 = arith.constant 0 : index
    %c2_181 = arith.constant 2 : index
    %c4_182 = arith.constant 4 : index
    %c0_183 = arith.constant 0 : index
    %174 = vector.load %arg1[%c0_180, %c2_181, %c4_182, %c0_183] : memref<1x12x16x128xf32, #tpu.memory_space<vmem>>, vector<1x8x8x128xf32>
    %175 = vector.shape_cast %174 : vector<1x8x8x128xf32> to vector<8x8x128xf32>
    %176 = vector.shape_cast %175 : vector<8x8x128xf32> to vector<64x128xf32>
    %c14 = arith.constant 14 : index
    %c0_184 = arith.constant 0 : index
    %c0_185 = arith.constant 0 : index
    %177 = vector.load %arg3[%c14, %c0_184, %c0_185] : memref<25x128x128xf32, #tpu.memory_space<vmem>>, vector<1x128x128xf32>
    %178 = vector.shape_cast %177 : vector<1x128x128xf32> to vector<128x128xf32>
    %cst_186 = arith.constant dense<0.000000e+00> : vector<64x128xf32>
    %179 = tpu.matmul %176, %178, %cst_186 {dimension_numbers = #tpu.dot_dimension_numbers<[1], [0], [0], [1], [0, 0, 1, 1], [], []>} : vector<64x128xf32>, vector<128x128xf32>, vector<64x128xf32> -> vector<64x128xf32>
    %180 = arith.addf %173, %179 : vector<64x128xf32>
    %c0_187 = arith.constant 0 : index
    %c3_188 = arith.constant 3 : index
    %c0_189 = arith.constant 0 : index
    %c0_190 = arith.constant 0 : index
    %181 = vector.load %arg1[%c0_187, %c3_188, %c0_189, %c0_190] : memref<1x12x16x128xf32, #tpu.memory_space<vmem>>, vector<1x8x8x128xf32>
    %182 = vector.shape_cast %181 : vector<1x8x8x128xf32> to vector<8x8x128xf32>
    %183 = vector.shape_cast %182 : vector<8x8x128xf32> to vector<64x128xf32>
    %c15 = arith.constant 15 : index
    %c0_191 = arith.constant 0 : index
    %c0_192 = arith.constant 0 : index
    %184 = vector.load %arg3[%c15, %c0_191, %c0_192] : memref<25x128x128xf32, #tpu.memory_space<vmem>>, vector<1x128x128xf32>
    %185 = vector.shape_cast %184 : vector<1x128x128xf32> to vector<128x128xf32>
    %cst_193 = arith.constant dense<0.000000e+00> : vector<64x128xf32>
    %186 = tpu.matmul %183, %185, %cst_193 {dimension_numbers = #tpu.dot_dimension_numbers<[1], [0], [0], [1], [0, 0, 1, 1], [], []>} : vector<64x128xf32>, vector<128x128xf32>, vector<64x128xf32> -> vector<64x128xf32>
    %187 = arith.addf %180, %186 : vector<64x128xf32>
    %c0_194 = arith.constant 0 : index
    %c3_195 = arith.constant 3 : index
    %c1_196 = arith.constant 1 : index
    %c0_197 = arith.constant 0 : index
    %188 = vector.load %arg1[%c0_194, %c3_195, %c1_196, %c0_197] : memref<1x12x16x128xf32, #tpu.memory_space<vmem>>, vector<1x8x8x128xf32>
    %189 = vector.shape_cast %188 : vector<1x8x8x128xf32> to vector<8x8x128xf32>
    %190 = vector.shape_cast %189 : vector<8x8x128xf32> to vector<64x128xf32>
    %c16 = arith.constant 16 : index
    %c0_198 = arith.constant 0 : index
    %c0_199 = arith.constant 0 : index
    %191 = vector.load %arg3[%c16, %c0_198, %c0_199] : memref<25x128x128xf32, #tpu.memory_space<vmem>>, vector<1x128x128xf32>
    %192 = vector.shape_cast %191 : vector<1x128x128xf32> to vector<128x128xf32>
    %cst_200 = arith.constant dense<0.000000e+00> : vector<64x128xf32>
    %193 = tpu.matmul %190, %192, %cst_200 {dimension_numbers = #tpu.dot_dimension_numbers<[1], [0], [0], [1], [0, 0, 1, 1], [], []>} : vector<64x128xf32>, vector<128x128xf32>, vector<64x128xf32> -> vector<64x128xf32>
    %194 = arith.addf %187, %193 : vector<64x128xf32>
    %c0_201 = arith.constant 0 : index
    %c3_202 = arith.constant 3 : index
    %c2_203 = arith.constant 2 : index
    %c0_204 = arith.constant 0 : index
    %195 = vector.load %arg1[%c0_201, %c3_202, %c2_203, %c0_204] : memref<1x12x16x128xf32, #tpu.memory_space<vmem>>, vector<1x8x8x128xf32>
    %196 = vector.shape_cast %195 : vector<1x8x8x128xf32> to vector<8x8x128xf32>
    %197 = vector.shape_cast %196 : vector<8x8x128xf32> to vector<64x128xf32>
    %c17 = arith.constant 17 : index
    %c0_205 = arith.constant 0 : index
    %c0_206 = arith.constant 0 : index
    %198 = vector.load %arg3[%c17, %c0_205, %c0_206] : memref<25x128x128xf32, #tpu.memory_space<vmem>>, vector<1x128x128xf32>
    %199 = vector.shape_cast %198 : vector<1x128x128xf32> to vector<128x128xf32>
    %cst_207 = arith.constant dense<0.000000e+00> : vector<64x128xf32>
    %200 = tpu.matmul %197, %199, %cst_207 {dimension_numbers = #tpu.dot_dimension_numbers<[1], [0], [0], [1], [0, 0, 1, 1], [], []>} : vector<64x128xf32>, vector<128x128xf32>, vector<64x128xf32> -> vector<64x128xf32>
    %201 = arith.addf %194, %200 : vector<64x128xf32>
    %c0_208 = arith.constant 0 : index
    %c3_209 = arith.constant 3 : index
    %c3_210 = arith.constant 3 : index
    %c0_211 = arith.constant 0 : index
    %202 = vector.load %arg1[%c0_208, %c3_209, %c3_210, %c0_211] : memref<1x12x16x128xf32, #tpu.memory_space<vmem>>, vector<1x8x8x128xf32>
    %203 = vector.shape_cast %202 : vector<1x8x8x128xf32> to vector<8x8x128xf32>
    %204 = vector.shape_cast %203 : vector<8x8x128xf32> to vector<64x128xf32>
    %c18 = arith.constant 18 : index
    %c0_212 = arith.constant 0 : index
    %c0_213 = arith.constant 0 : index
    %205 = vector.load %arg3[%c18, %c0_212, %c0_213] : memref<25x128x128xf32, #tpu.memory_space<vmem>>, vector<1x128x128xf32>
    %206 = vector.shape_cast %205 : vector<1x128x128xf32> to vector<128x128xf32>
    %cst_214 = arith.constant dense<0.000000e+00> : vector<64x128xf32>
    %207 = tpu.matmul %204, %206, %cst_214 {dimension_numbers = #tpu.dot_dimension_numbers<[1], [0], [0], [1], [0, 0, 1, 1], [], []>} : vector<64x128xf32>, vector<128x128xf32>, vector<64x128xf32> -> vector<64x128xf32>
    %208 = arith.addf %201, %207 : vector<64x128xf32>
    %c0_215 = arith.constant 0 : index
    %c3_216 = arith.constant 3 : index
    %c4_217 = arith.constant 4 : index
    %c0_218 = arith.constant 0 : index
    %209 = vector.load %arg1[%c0_215, %c3_216, %c4_217, %c0_218] : memref<1x12x16x128xf32, #tpu.memory_space<vmem>>, vector<1x8x8x128xf32>
    %210 = vector.shape_cast %209 : vector<1x8x8x128xf32> to vector<8x8x128xf32>
    %211 = vector.shape_cast %210 : vector<8x8x128xf32> to vector<64x128xf32>
    %c19 = arith.constant 19 : index
    %c0_219 = arith.constant 0 : index
    %c0_220 = arith.constant 0 : index
    %212 = vector.load %arg3[%c19, %c0_219, %c0_220] : memref<25x128x128xf32, #tpu.memory_space<vmem>>, vector<1x128x128xf32>
    %213 = vector.shape_cast %212 : vector<1x128x128xf32> to vector<128x128xf32>
    %cst_221 = arith.constant dense<0.000000e+00> : vector<64x128xf32>
    %214 = tpu.matmul %211, %213, %cst_221 {dimension_numbers = #tpu.dot_dimension_numbers<[1], [0], [0], [1], [0, 0, 1, 1], [], []>} : vector<64x128xf32>, vector<128x128xf32>, vector<64x128xf32> -> vector<64x128xf32>
    %215 = arith.addf %208, %214 : vector<64x128xf32>
    %c0_222 = arith.constant 0 : index
    %c4_223 = arith.constant 4 : index
    %c0_224 = arith.constant 0 : index
    %c0_225 = arith.constant 0 : index
    %216 = vector.load %arg1[%c0_222, %c4_223, %c0_224, %c0_225] : memref<1x12x16x128xf32, #tpu.memory_space<vmem>>, vector<1x8x8x128xf32>
    %217 = vector.shape_cast %216 : vector<1x8x8x128xf32> to vector<8x8x128xf32>
    %218 = vector.shape_cast %217 : vector<8x8x128xf32> to vector<64x128xf32>
    %c20 = arith.constant 20 : index
    %c0_226 = arith.constant 0 : index
    %c0_227 = arith.constant 0 : index
    %219 = vector.load %arg3[%c20, %c0_226, %c0_227] : memref<25x128x128xf32, #tpu.memory_space<vmem>>, vector<1x128x128xf32>
    %220 = vector.shape_cast %219 : vector<1x128x128xf32> to vector<128x128xf32>
    %cst_228 = arith.constant dense<0.000000e+00> : vector<64x128xf32>
    %221 = tpu.matmul %218, %220, %cst_228 {dimension_numbers = #tpu.dot_dimension_numbers<[1], [0], [0], [1], [0, 0, 1, 1], [], []>} : vector<64x128xf32>, vector<128x128xf32>, vector<64x128xf32> -> vector<64x128xf32>
    %222 = arith.addf %215, %221 : vector<64x128xf32>
    %c0_229 = arith.constant 0 : index
    %c4_230 = arith.constant 4 : index
    %c1_231 = arith.constant 1 : index
    %c0_232 = arith.constant 0 : index
    %223 = vector.load %arg1[%c0_229, %c4_230, %c1_231, %c0_232] : memref<1x12x16x128xf32, #tpu.memory_space<vmem>>, vector<1x8x8x128xf32>
    %224 = vector.shape_cast %223 : vector<1x8x8x128xf32> to vector<8x8x128xf32>
    %225 = vector.shape_cast %224 : vector<8x8x128xf32> to vector<64x128xf32>
    %c21 = arith.constant 21 : index
    %c0_233 = arith.constant 0 : index
    %c0_234 = arith.constant 0 : index
    %226 = vector.load %arg3[%c21, %c0_233, %c0_234] : memref<25x128x128xf32, #tpu.memory_space<vmem>>, vector<1x128x128xf32>
    %227 = vector.shape_cast %226 : vector<1x128x128xf32> to vector<128x128xf32>
    %cst_235 = arith.constant dense<0.000000e+00> : vector<64x128xf32>
    %228 = tpu.matmul %225, %227, %cst_235 {dimension_numbers = #tpu.dot_dimension_numbers<[1], [0], [0], [1], [0, 0, 1, 1], [], []>} : vector<64x128xf32>, vector<128x128xf32>, vector<64x128xf32> -> vector<64x128xf32>
    %229 = arith.addf %222, %228 : vector<64x128xf32>
    %c0_236 = arith.constant 0 : index
    %c4_237 = arith.constant 4 : index
    %c2_238 = arith.constant 2 : index
    %c0_239 = arith.constant 0 : index
    %230 = vector.load %arg1[%c0_236, %c4_237, %c2_238, %c0_239] : memref<1x12x16x128xf32, #tpu.memory_space<vmem>>, vector<1x8x8x128xf32>
    %231 = vector.shape_cast %230 : vector<1x8x8x128xf32> to vector<8x8x128xf32>
    %232 = vector.shape_cast %231 : vector<8x8x128xf32> to vector<64x128xf32>
    %c22 = arith.constant 22 : index
    %c0_240 = arith.constant 0 : index
    %c0_241 = arith.constant 0 : index
    %233 = vector.load %arg3[%c22, %c0_240, %c0_241] : memref<25x128x128xf32, #tpu.memory_space<vmem>>, vector<1x128x128xf32>
    %234 = vector.shape_cast %233 : vector<1x128x128xf32> to vector<128x128xf32>
    %cst_242 = arith.constant dense<0.000000e+00> : vector<64x128xf32>
    %235 = tpu.matmul %232, %234, %cst_242 {dimension_numbers = #tpu.dot_dimension_numbers<[1], [0], [0], [1], [0, 0, 1, 1], [], []>} : vector<64x128xf32>, vector<128x128xf32>, vector<64x128xf32> -> vector<64x128xf32>
    %236 = arith.addf %229, %235 : vector<64x128xf32>
    %c0_243 = arith.constant 0 : index
    %c4_244 = arith.constant 4 : index
    %c3_245 = arith.constant 3 : index
    %c0_246 = arith.constant 0 : index
    %237 = vector.load %arg1[%c0_243, %c4_244, %c3_245, %c0_246] : memref<1x12x16x128xf32, #tpu.memory_space<vmem>>, vector<1x8x8x128xf32>
    %238 = vector.shape_cast %237 : vector<1x8x8x128xf32> to vector<8x8x128xf32>
    %239 = vector.shape_cast %238 : vector<8x8x128xf32> to vector<64x128xf32>
    %c23 = arith.constant 23 : index
    %c0_247 = arith.constant 0 : index
    %c0_248 = arith.constant 0 : index
    %240 = vector.load %arg3[%c23, %c0_247, %c0_248] : memref<25x128x128xf32, #tpu.memory_space<vmem>>, vector<1x128x128xf32>
    %241 = vector.shape_cast %240 : vector<1x128x128xf32> to vector<128x128xf32>
    %cst_249 = arith.constant dense<0.000000e+00> : vector<64x128xf32>
    %242 = tpu.matmul %239, %241, %cst_249 {dimension_numbers = #tpu.dot_dimension_numbers<[1], [0], [0], [1], [0, 0, 1, 1], [], []>} : vector<64x128xf32>, vector<128x128xf32>, vector<64x128xf32> -> vector<64x128xf32>
    %243 = arith.addf %236, %242 : vector<64x128xf32>
    %c0_250 = arith.constant 0 : index
    %c4_251 = arith.constant 4 : index
    %c4_252 = arith.constant 4 : index
    %c0_253 = arith.constant 0 : index
    %244 = vector.load %arg1[%c0_250, %c4_251, %c4_252, %c0_253] : memref<1x12x16x128xf32, #tpu.memory_space<vmem>>, vector<1x8x8x128xf32>
    %245 = vector.shape_cast %244 : vector<1x8x8x128xf32> to vector<8x8x128xf32>
    %246 = vector.shape_cast %245 : vector<8x8x128xf32> to vector<64x128xf32>
    %c24 = arith.constant 24 : index
    %c0_254 = arith.constant 0 : index
    %c0_255 = arith.constant 0 : index
    %247 = vector.load %arg3[%c24, %c0_254, %c0_255] : memref<25x128x128xf32, #tpu.memory_space<vmem>>, vector<1x128x128xf32>
    %248 = vector.shape_cast %247 : vector<1x128x128xf32> to vector<128x128xf32>
    %cst_256 = arith.constant dense<0.000000e+00> : vector<64x128xf32>
    %249 = tpu.matmul %246, %248, %cst_256 {dimension_numbers = #tpu.dot_dimension_numbers<[1], [0], [0], [1], [0, 0, 1, 1], [], []>} : vector<64x128xf32>, vector<128x128xf32>, vector<64x128xf32> -> vector<64x128xf32>
    %250 = arith.addf %243, %249 : vector<64x128xf32>
    %c0_257 = arith.constant 0 : index
    %c0_258 = arith.constant 0 : index
    %251 = vector.load %arg5[%c0_257, %c0_258] : memref<1x128xf32, #tpu.memory_space<vmem>>, vector<1x128xf32>
    %252 = vector.broadcast %251 : vector<1x128xf32> to vector<64x128xf32>
    %253 = arith.mulf %250, %252 : vector<64x128xf32>
    %c0_259 = arith.constant 0 : index
    %c0_260 = arith.constant 0 : index
    %254 = vector.load %arg7[%c0_259, %c0_260] : memref<1x128xf32, #tpu.memory_space<vmem>>, vector<1x128xf32>
    %255 = vector.broadcast %254 : vector<1x128xf32> to vector<64x128xf32>
    %256 = arith.addf %253, %255 : vector<64x128xf32>
    %cst_261 = arith.constant 0.000000e+00 : f32
    %257 = vector.broadcast %cst_261 : f32 to vector<64x128xf32>
    %258 = arith.maximumf %256, %257 : vector<64x128xf32>
    %259 = arith.addf %74, %258 : vector<64x128xf32>
    %cst_262 = arith.constant dense<0.000000e+00> : vector<128xf32>
    %260 = vector.multi_reduction <add>, %259, %cst_262 [0] : vector<64x128xf32> to vector<128xf32>
    %261 = vector.shape_cast %260 : vector<128xf32> to vector<1x128xf32>
    %cst_263 = arith.constant 6.400000e+01 : f32
    %262 = vector.broadcast %cst_263 : f32 to vector<1x128xf32>
    %263 = arith.divf %261, %262 : vector<1x128xf32>
    %c0_264 = arith.constant 0 : index
    %c0_265 = arith.constant 0 : index
    %264 = vector.load %arg8[%c0_264, %c0_265] : memref<128x4xf32, #tpu.memory_space<vmem>>, vector<128x4xf32>
    %cst_266 = arith.constant dense<0.000000e+00> : vector<1x4xf32>
    %265 = tpu.matmul %263, %264, %cst_266 {dimension_numbers = #tpu.dot_dimension_numbers<[1], [0], [0], [1], [0, 0, 1, 1], [], []>, precision = #tpu.contract_precision<fp32>} : vector<1x128xf32>, vector<128x4xf32>, vector<1x4xf32> -> vector<1x4xf32>
    %c0_267 = arith.constant 0 : index
    %c0_268 = arith.constant 0 : index
    %266 = vector.load %arg9[%c0_267, %c0_268] : memref<1x4xf32, #tpu.memory_space<vmem>>, vector<1x4xf32>
    %267 = arith.addf %265, %266 : vector<1x4xf32>
    %c0_269 = arith.constant 0 : index
    %c0_270 = arith.constant 0 : index
    %268 = vector.load %arg10[%c0_269, %c0_270] : memref<4x16xf32, #tpu.memory_space<vmem>>, vector<4x16xf32>
    %cst_271 = arith.constant dense<0.000000e+00> : vector<1x16xf32>
    %269 = tpu.matmul %267, %268, %cst_271 {dimension_numbers = #tpu.dot_dimension_numbers<[1], [0], [0], [1], [0, 0, 1, 1], [], []>, precision = #tpu.contract_precision<fp32>} : vector<1x4xf32>, vector<4x16xf32>, vector<1x16xf32> -> vector<1x16xf32>
    %c0_272 = arith.constant 0 : index
    %c0_273 = arith.constant 0 : index
    %270 = vector.load %arg11[%c0_272, %c0_273] : memref<1x16xf32, #tpu.memory_space<vmem>>, vector<1x16xf32>
    %271 = arith.addf %269, %270 : vector<1x16xf32>
    %cst_274 = arith.constant dense<0xFF800000> : vector<1xf32>
    %272 = vector.multi_reduction <maximumf>, %271, %cst_274 [1] : vector<1x16xf32> to vector<1xf32>
    %273 = vector.shape_cast %272 : vector<1xf32> to vector<1x1xf32>
    %274 = vector.broadcast %273 : vector<1x1xf32> to vector<1x16xf32>
    %275 = arith.subf %271, %274 : vector<1x16xf32>
    %276 = math.exp %275 : vector<1x16xf32>
    %cst_275 = arith.constant dense<0.000000e+00> : vector<1xf32>
    %277 = vector.multi_reduction <add>, %276, %cst_275 [1] : vector<1x16xf32> to vector<1xf32>
    %278 = vector.shape_cast %277 : vector<1xf32> to vector<1x1xf32>
    %279 = vector.broadcast %278 : vector<1x1xf32> to vector<1x16xf32>
    %280 = arith.divf %276, %279 : vector<1x16xf32>
    %c0_276 = arith.constant 0 : index
    %c0_277 = arith.constant 0 : index
    %281 = vector.load %arg12[%c0_276, %c0_277] : memref<16x128xf32, #tpu.memory_space<vmem>>, vector<16x128xf32>
    %cst_278 = arith.constant dense<0.000000e+00> : vector<1x128xf32>
    %282 = tpu.matmul %280, %281, %cst_278 {dimension_numbers = #tpu.dot_dimension_numbers<[1], [0], [0], [1], [0, 0, 1, 1], [], []>, precision = #tpu.contract_precision<fp32>} : vector<1x16xf32>, vector<16x128xf32>, vector<1x128xf32> -> vector<1x128xf32>
    %283 = vector.broadcast %282 : vector<1x128xf32> to vector<64x128xf32>
    %284 = arith.mulf %283, %74 : vector<64x128xf32>
    %285 = arith.addf %2, %284 : vector<64x128xf32>
    %c0_279 = arith.constant 0 : index
    %c0_280 = arith.constant 0 : index
    %286 = vector.load %arg13[%c0_279, %c0_280] : memref<16x128xf32, #tpu.memory_space<vmem>>, vector<16x128xf32>
    %cst_281 = arith.constant dense<0.000000e+00> : vector<1x128xf32>
    %287 = tpu.matmul %280, %286, %cst_281 {dimension_numbers = #tpu.dot_dimension_numbers<[1], [0], [0], [1], [0, 0, 1, 1], [], []>, precision = #tpu.contract_precision<fp32>} : vector<1x16xf32>, vector<16x128xf32>, vector<1x128xf32> -> vector<1x128xf32>
    %288 = vector.broadcast %287 : vector<1x128xf32> to vector<64x128xf32>
    %289 = arith.mulf %288, %258 : vector<64x128xf32>
    %290 = arith.addf %285, %289 : vector<64x128xf32>
    %cst_282 = arith.constant 0.000000e+00 : f32
    %291 = vector.broadcast %cst_282 : f32 to vector<64x128xf32>
    %292 = arith.maximumf %290, %291 : vector<64x128xf32>
    %c0_283 = arith.constant 0 : index
    %c0_284 = arith.constant 0 : index
    %c0_285 = arith.constant 0 : index
    %293 = vector.load %arg14[%c0_283, %c0_284, %c0_285] : memref<1x64x128xf32, #tpu.memory_space<vmem>>, vector<1x64x128xf32>
    %294 = vector.shape_cast %293 : vector<1x64x128xf32> to vector<64x128xf32>
    %295 = vector.shape_cast %292 : vector<64x128xf32> to vector<1x64x128xf32>
    tpu.vector_store %arg14[%c0_283, %c0_284, %c0_285], %295 {strides = array<i32>} : memref<1x64x128xf32, #tpu.memory_space<vmem>>, vector<1x64x128xf32>,
    return
  }
  func.func @transform_0(%arg0: i32) -> (i32, i32, i32, i32) {
    %c0_i32 = arith.constant 0 : i32
    %c0_i32_0 = arith.constant 0 : i32
    %c0_i32_1 = arith.constant 0 : i32
    %c0_i32_2 = arith.constant 0 : i32
    return %arg0, %c0_i32, %c0_i32_0, %c0_i32_1 : i32, i32, i32, i32
  }
  func.func @transform_1(%arg0: i32) -> (i32, i32, i32) {
    %c0_i32 = arith.constant 0 : i32
    %c0_i32_0 = arith.constant 0 : i32
    %c0_i32_1 = arith.constant 0 : i32
    %c0_i32_2 = arith.constant 0 : i32
    return %c0_i32, %c0_i32_0, %c0_i32_1 : i32, i32, i32
  }
  func.func @transform_2(%arg0: i32) -> (i32, i32, i32) {
    %c0_i32 = arith.constant 0 : i32
    %c0_i32_0 = arith.constant 0 : i32
    %c0_i32_1 = arith.constant 0 : i32
    %c0_i32_2 = arith.constant 0 : i32
    return %c0_i32, %c0_i32_0, %c0_i32_1 : i32, i32, i32
  }
  func.func @transform_3(%arg0: i32) -> (i32, i32) {
    %c0_i32 = arith.constant 0 : i32
    %c0_i32_0 = arith.constant 0 : i32
    %c0_i32_1 = arith.constant 0 : i32
    return %c0_i32, %c0_i32_0 : i32, i32
  }
  func.func @transform_4(%arg0: i32) -> (i32, i32) {
    %c0_i32 = arith.constant 0 : i32
    %c0_i32_0 = arith.constant 0 : i32
    %c0_i32_1 = arith.constant 0 : i32
    return %c0_i32, %c0_i32_0 : i32, i32
  }
  func.func @transform_5(%arg0: i32) -> (i32, i32) {
    %c0_i32 = arith.constant 0 : i32
    %c0_i32_0 = arith.constant 0 : i32
    %c0_i32_1 = arith.constant 0 : i32
    return %c0_i32, %c0_i32_0 : i32, i32
  }
  func.func @transform_6(%arg0: i32) -> (i32, i32) {
    %c0_i32 = arith.constant 0 : i32
    %c0_i32_0 = arith.constant 0 : i32
    %c0_i32_1 = arith.constant 0 : i32
    return %c0_i32, %c0_i32_0 : i32, i32
  }
  func.func @transform_7(%arg0: i32) -> (i32, i32) {
    %c0_i32 = arith.constant 0 : i32
    %c0_i32_0 = arith.constant 0 : i32
    %c0_i32_1 = arith.constant 0 : i32
    return %c0_i32, %c0_i32_0 : i32, i32
  }
  func.func @transform_8(%arg0: i32) -> (i32, i32) {
    %c0_i32 = arith.constant 0 : i32
    %c0_i32_0 = arith.constant 0 : i32
    %c0_i32_1 = arith.constant 0 : i32
    return %c0_i32, %c0_i32_0 : i32, i32
  }
  func.func @transform_9(%arg0: i32) -> (i32, i32) {
    %c0_i32 = arith.constant 0 : i32
    %c0_i32_0 = arith.constant 0 : i32
    %c0_i32_1 = arith.constant 0 : i32
    return %c0_i32, %c0_i32_0 : i32, i32
  }
  func.func @transform_10(%arg0: i32) -> (i32, i32) {
    %c0_i32 = arith.constant 0 : i32
    %c0_i32_0 = arith.constant 0 : i32
    %c0_i32_1 = arith.constant 0 : i32
    return %c0_i32, %c0_i32_0 : i32, i32
  }
  func.func @transform_11(%arg0: i32) -> (i32, i32) {
    %c0_i32 = arith.constant 0 : i32
    %c0_i32_0 = arith.constant 0 : i32
    %c0_i32_1 = arith.constant 0 : i32
    return %c0_i32, %c0_i32_0 : i32, i32
  }
  func.func @transform_12(%arg0: i32) -> (i32, i32) {
    %c0_i32 = arith.constant 0 : i32
    %c0_i32_0 = arith.constant 0 : i32
    %c0_i32_1 = arith.constant 0 : i32
    return %c0_i32, %c0_i32_0 : i32, i32
  }
  func.func @transform_13(%arg0: i32) -> (i32, i32, i32) {
    %c0_i32 = arith.constant 0 : i32
    %c0_i32_0 = arith.constant 0 : i32
    %c0_i32_1 = arith.constant 0 : i32
    return %arg0, %c0_i32, %c0_i32_0 : i32, i32, i32
  }
}

</mosaic_0001>

<bundles_post_ra>
// kernel: tpu_custom_call.1
= control target key start
LH: loop header
LB: loop body
LE: loop exit
PB: predicated region body
PF: predicated region fallthrough
CT: control target
= control target key end

     0   :  { %s13342_s0 = inlined_call_operand.hbm [shape: f32[2,12,16,128], index: 0, kind: input, shape index: {}]   ;;  %s13343_s1 = inlined_call_operand.hbm [shape: f32[9,128,128], index: 1, kind: input, shape index: {}]   ;;  %s13344_s2 = inlined_call_operand.hbm [shape: f32[25,128,128], index: 2, kind: input, shape index: {}]   ;;  %s13345_s3 = inlined_call_operand.hbm [shape: f32[1,128], index: 3, kind: input, shape index: {}]   ;;  %s13346_s4 = inlined_call_operand.hbm [shape: f32[1,128], index: 4, kind: input, shape index: {}]   ;;  %s13347_s5 = inlined_call_operand.hbm [shape: f32[1,128], index: 5, kind: input, shape index: {}]   ;;  %s13348_s6 = inlined_call_operand.hbm [shape: f32[1,128], index: 6, kind: input, shape index: {}]   ;;  %s13349_s7 = inlined_call_operand.vmem [shape: f32[128,4], index: 7, kind: input, shape index: {}]   ;;  %s13350_s8 = inlined_call_operand.hbm [shape: f32[1,4], index: 8, kind: input, shape index: {}]   ;;  %s13351_s9 = inlined_call_operand.hbm [shape: f32[4,16], index: 9, kind: input, shape index: {}]   ;;  %s13352_s10 = inlined_call_operand.hbm [shape: f32[1,16], index: 10, kind: input, shape index: {}]   ;;  %s13353_s11 = inlined_call_operand.hbm [shape: f32[16,128], index: 11, kind: input, shape index: {}]   ;;  %s13354_s12 = inlined_call_operand.hbm [shape: f32[16,128], index: 12, kind: input, shape index: {}]   ;;  %s13355_s13 = inlined_call_operand.hbm [shape: f32[2,64,128], index: 13, kind: output, shape index: {}]  }
   0x1   :  { %13447 = sst [smem:[#allocation114_spill]] %s13343_s1 }
   0x2   :  { %13448 = sst [smem:[#allocation115_spill]] %s13344_s2 }
   0x3   :  { %13449 = sst [smem:[#allocation116_spill]] %s13345_s3 }
   0x4   :  { %13450 = sst [smem:[#allocation117_spill]] %s13346_s4 }
   0x5   :  { %13451 = sst [smem:[#allocation118_spill]] %s13347_s5 }
   0x6   :  { %13452 = sst [smem:[#allocation119_spill]] %s13348_s6 }
   0x7   :  { %13453 = sst [smem:[#allocation120_spill]] %s13349_s7 }
   0x8   :  { %13454 = sst [smem:[#allocation121_spill]] %s13350_s8 }
   0x9   :  { %13455 = sst [smem:[#allocation122_spill]] %s13355_s13 }
   0xa   :  { %18 = vsyncpa [#allocation3], 0 }
   0xb   :  { %20 = vsyncpa [#allocation3 + $0x1], 0 }
   0xc   :  { %21 = vsyncpa [#allocation6], 0 }
   0xd   :  { %22 = vsyncpa [#allocation9], 0 }
   0xe   :  { %23 = vsyncpa [#allocation12], 0 }
   0xf   :  { %24 = vsyncpa [#allocation15], 0 }
  0x10   :  { %25 = vsyncpa [#allocation18], 0 }
  0x11   :  { %26 = vsyncpa [#allocation21], 0 }
  0x12   :  { %27 = vsyncpa [#allocation4], 0 }
  0x13   :  { %29 = vsyncpa [#allocation4 + $0x1], 0  ;;  %s11297_s25 = smov 0   ;;  %s11299_s26 = smov 0  }
  0x14   :  { %s11301_s27 = smov 0   ;;  %s11303_s28 = smov 0  }
  0x15 LB: > { %s11208_s29 = smov [#allocation5]   ;;  %s11318_s14 = sadd.s32 4294967295, %s11206_s28   ;;  %s11206_s28 = sphi %s11303_s28, %s13685_s28   ;;  %s11202_s27 = sphi %s11301_s27, %s13684_s27   ;;  %s11198_s26 = sphi %s11299_s26, %s13683_s26   ;;  %s11194_s25 = sphi %s11297_s25, %s13682_s25  }
  0x16   : > { %s356_s30 = sshll.u32 %s11208_s29, 4  ;;  %p7595_p0 = scmp.ge.s32.totalorder %s11206_s28, 1  ;;  %s357_s30 = int_to_ptr.vmem [resolvable:$true] %s356_s30 }
  0x17   : > { %p13360_p1 = scmp.eq.s32.totalorder %s11318_s14, 0  ;;  %p344_p2 = scmp.lt.s32.totalorder %s11206_s28, 3 }
  0x18   : > { %s11209_s16 = smov [#allocation8]   ;;  %s11210_s19 = smov [#allocation11]  }
  0x19   : > { %p11323_p3 = pnand %p7595_p0, %p344_p2  ;;  %s383_s17 = sshll.u32 %s11209_s16, 4  ;;  %s384_s17 = int_to_ptr.vmem [resolvable:$true] %s383_s17 }
  0x1a   : > { %s405_s20 = sshll.u32 %s11210_s19, 4  ;;  %s10815_s22 = scalar_lea.vmem %s357_s30, 18432  ;;  %s11336_s20 = int_to_ptr.vmem [resolvable:$true] %s405_s20 }
  0x1b   : > { %s13456_s15 = scalar_select %p11323_p3, 1, 0 }
  0x1c   : > { %p10629_p5 = pneg %p11323_p3  ;;  %p10816_p8 = scmp.ne.s32.totalorder %s357_s30, %s10815_s22 }
  0x1d   : > { %p10823_p11 = scmp.lt.s32.totalorder %s357_s30, %s357_s30  ;;  %p10824_p12 = scmp.lt.s32.totalorder %s10815_s22, %s10815_s22 }
  0x1e   : > { %p11332_p6 = pnand %p10629_p5, %p13360_p1 }
  0x1f   : > { %p10825_p13 = por %p10824_p12, %p10823_p11 }
  0x20   : > { %p11340_p7 = pneg %p11332_p6 }
  0x22   : > { %p10818_p9 = pnand %p10816_p8, %p11340_p7 }
  0x24   : > { %p10819_p10 = pneg %p10818_p9 }
  0x26   : > { %p10826_p0 = pnand %p10825_p13, %p10819_p10 }
  0x28   : > { %10829 = shalt.err (!%p10826_p0)
}
  0x29   : > { %s13358_s23 = smov 128   ;;  %s13361_s24 = smov 8  }
  0x2a   : > { %s13459_s1 = sld [smem:[#allocation114_spill]]  ;;  %s10841_s19 = scalar_lea.vmem %s384_s17, 16 }
  0x2b   : > { %p10842_p2 = scmp.ne.s32.totalorder %s384_s17, %s10841_s19  ;;  %s10848_s22 = scalar_lea.vmem %s384_s17, 32 }
  0x2c   : > { %p10849_p9 = scmp.lt.s32.totalorder %s384_s17, %s384_s17  ;;  %p10850_p10 = scmp.lt.s32.totalorder %s10848_s22, %s10841_s19 }
  0x2d   : > { %p10844_p5 = pnand %p10842_p2, %p11340_p7 }
  0x2e   : > { %p10851_p11 = por %p10850_p10, %p10849_p9 }
  0x2f   : > { %p10845_p8 = pneg %p10844_p5 }
  0x30   : > { %10632 = dma.hbm_to_vmem [thread:$0]  (!%p11332_p6), %s13459_s1, 18432, %s357_s30, [#allocation6], %s13358_s23, %s13358_s23, %s13361_s24  }
  0x31   : > { %p10852_p12 = pnand %p10851_p11, %p10845_p8 }
  0x33   : > { %10855 = shalt.err (!%p10852_p12)
}
  0x34   : > { %s13460_s3 = sld [smem:[#allocation116_spill]]  ;;  %s10867_s30 = scalar_lea.vmem %s11336_s20, 16 }
  0x35   : > { %p10868_p13 = scmp.ne.s32.totalorder %s11336_s20, %s10867_s30  ;;  %s10874_s29 = scalar_lea.vmem %s11336_s20, 32 }
  0x36   : > { %p10875_p5 = scmp.lt.s32.totalorder %s11336_s20, %s11336_s20  ;;  %p10876_p8 = scmp.lt.s32.totalorder %s10874_s29, %s10867_s30 }
  0x37   : > { %p10870_p0 = pnand %p10868_p13, %p11340_p7 }
  0x38   : > { %p10877_p9 = por %p10876_p8, %p10875_p5 }
  0x39   : > { %p10871_p2 = pneg %p10870_p0 }
  0x3a   : > { %10638 = dma.hbm_to_vmem [thread:$0]  (!%p11332_p6), %s13460_s3, 16, %s384_s17, [#allocation9]  }
  0x3b   : > { %p10878_p10 = pnand %p10877_p9, %p10871_p2 }
  0x3d   : > { %10881 = shalt.err (!%p10878_p10)
}
  0x3e   : > { %s13461_s5 = sld [smem:[#allocation118_spill]]  ;;  %s11213_s17 = smov [#allocation14]  }
  0x3f   : > { %s430_s16 = sshll.u32 %s11213_s17, 4  ;;  %s11214_s19 = smov [#allocation17]   ;;  %s431_s16 = int_to_ptr.vmem [resolvable:$true] %s430_s16 }
  0x40   : > { %s452_s22 = sshll.u32 %s11214_s19, 4  ;;  %s10893_s23 = scalar_lea.vmem %s431_s16, 16  ;;  %s453_s22 = int_to_ptr.vmem [resolvable:$true] %s452_s22 }
  0x41   : > { %p10894_p11 = scmp.ne.s32.totalorder %s431_s16, %s10893_s23  ;;  %s10900_s30 = scalar_lea.vmem %s431_s16, 32 }
  0x42   : > { %p10901_p0 = scmp.lt.s32.totalorder %s431_s16, %s431_s16  ;;  %p10902_p2 = scmp.lt.s32.totalorder %s10900_s30, %s10893_s23 }
  0x43   : > { %p10896_p12 = pnand %p10894_p11, %p11340_p7 }
  0x44   : > { %10644 = dma.hbm_to_vmem [thread:$0]  (!%p11332_p6), %s13461_s5, 16, %s11336_s20, [#allocation12]  }
  0x45   : > { %p10897_p13 = pneg %p10896_p12  ;;  %p10903_p5 = por %p10902_p2, %p10901_p0 }
  0x47   : > { %p10904_p8 = pnand %p10903_p5, %p10897_p13 }
  0x49   : > { %10907 = shalt.err (!%p10904_p8)
}
  0x4a   : > { %s13462_s8 = sld [smem:[#allocation121_spill]]  ;;  %s10919_s7 = scalar_lea.vmem %s453_s22, 16 }
  0x4b   : > { %p10920_p9 = scmp.ne.s32.totalorder %s453_s22, %s10919_s7  ;;  %s10926_s13 = scalar_lea.vmem %s453_s22, 32 }
  0x4c   : > { %p10927_p12 = scmp.lt.s32.totalorder %s453_s22, %s453_s22  ;;  %p10928_p4 = scmp.lt.s32.totalorder %s10926_s13, %s10919_s7 }
  0x4d   : > { %p10922_p10 = pnand %p10920_p9, %p11340_p7 }
  0x4e   : > { %p10929_p1 = por %p10928_p4, %p10927_p12 }
  0x4f   : > { %p10923_p11 = pneg %p10922_p10 }
  0x50   : > { %10650 = dma.hbm_to_vmem [thread:$0]  (!%p11332_p6), %s13462_s8, 16, %s431_s16, [#allocation15]  }
  0x51   : > { %p10930_p0 = pnand %p10929_p1, %p10923_p11 }
  0x53   : > { %10933 = shalt.err (!%p10930_p0)
}
  0x54   : > { %10656 = dma.hbm_to_vmem [thread:$0]  (!%p11332_p6), %s13352_s10, 16, %s453_s22, [#allocation18]  }
  0x55   : > { %s11215_s16 = smov [#allocation7]   ;;  %s11216_s30 = smov [#allocation10]  }
  0x56   : > { %s369_s19 = sshll.u32 %s11215_s16, 4  ;;  %s394_s29 = sshll.u32 %s11216_s30, 4  ;;  %s370_s19 = int_to_ptr.vmem [resolvable:$true] %s369_s19  ;;  %s395_s29 = int_to_ptr.vmem [resolvable:$true] %s394_s29 }
  0x57   : > { %s10945_s20 = scalar_lea.vmem %s370_s19, 51200  ;;  %p10953_p4 = scmp.lt.s32.totalorder %s370_s19, %s370_s19 }
  0x58   : > { %p10946_p13 = scmp.ne.s32.totalorder %s370_s19, %s10945_s20  ;;  %p10954_p1 = scmp.lt.s32.totalorder %s10945_s20, %s10945_s20 }
  0x5a   : > { %p10948_p2 = pnand %p10946_p13, %p11340_p7  ;;  %p10955_p8 = por %p10954_p1, %p10953_p4 }
  0x5c   : > { %p10949_p5 = pneg %p10948_p2 }
  0x5e   : > { %p10956_p9 = pnand %p10955_p8, %p10949_p5 }
  0x60   : > { %10959 = shalt.err (!%p10956_p9)
}
  0x61   : > { %s13463_s7 = smov 128   ;;  %s13464_s2 = sld [smem:[#allocation115_spill]] }
  0x62   : > { %s10971_s23 = scalar_lea.vmem %s395_s29, 16  ;;  %s10978_s17 = scalar_lea.vmem %s395_s29, 32 }
  0x63   : > { %p10972_p10 = scmp.ne.s32.totalorder %s395_s29, %s10971_s23  ;;  %p10979_p0 = scmp.lt.s32.totalorder %s395_s29, %s395_s29 }
  0x64   : > { %p10980_p13 = scmp.lt.s32.totalorder %s10978_s17, %s10971_s23 }
  0x65   : > { %p10974_p11 = pnand %p10972_p10, %p11340_p7 }
  0x66   : > { %p10981_p2 = por %p10980_p13, %p10979_p0 }
  0x67   : > { %10635 = dma.hbm_to_vmem [thread:$0]  (!%p11332_p6), %s13464_s2, 51200, %s370_s19, [#allocation6], %s13463_s7, %s13463_s7, %s13361_s24  }
  0x68   : > { %p10975_p12 = pneg %p10974_p11 }
  0x6a   : > { %p10982_p5 = pnand %p10981_p2, %p10975_p12 }
  0x6c   : > { %10985 = shalt.err (!%p10982_p5)
}
  0x6d   : > { %s13465_s4 = sld [smem:[#allocation117_spill]]  ;;  %s11217_s19 = smov [#allocation13]  }
  0x6e   : > { %s416_s20 = sshll.u32 %s11217_s19, 4  ;;  %s11218_s22 = smov [#allocation16]   ;;  %s417_s20 = int_to_ptr.vmem [resolvable:$true] %s416_s20 }
  0x6f   : > { %s441_s13 = sshll.u32 %s11218_s22, 4  ;;  %s10997_s24 = scalar_lea.vmem %s417_s20, 16  ;;  %s442_s13 = int_to_ptr.vmem [resolvable:$true] %s441_s13 }
  0x70   : > { %p10998_p4 = scmp.ne.s32.totalorder %s417_s20, %s10997_s24  ;;  %s11004_s23 = scalar_lea.vmem %s417_s20, 32 }
  0x71   : > { %p11005_p9 = scmp.lt.s32.totalorder %s417_s20, %s417_s20  ;;  %p11006_p10 = scmp.lt.s32.totalorder %s11004_s23, %s10997_s24 }
  0x72   : > { %p11000_p1 = pnand %p10998_p4, %p11340_p7 }
  0x73   : > { %10641 = dma.hbm_to_vmem [thread:$0]  (!%p11332_p6), %s13465_s4, 16, %s395_s29, [#allocation9]  }
  0x74   : > { %p11001_p8 = pneg %p11000_p1  ;;  %p11007_p11 = por %p11006_p10, %p11005_p9 }
  0x76   : > { %p11008_p12 = pnand %p11007_p11, %p11001_p8 }
  0x78   : > { %11011 = shalt.err (!%p11008_p12)
}
  0x79   : > { %s13466_s6 = sld [smem:[#allocation119_spill]]  ;;  %s11023_s16 = scalar_lea.vmem %s442_s13, 64 }
  0x7a   : > { %p11024_p0 = scmp.ne.s32.totalorder %s442_s13, %s11023_s16  ;;  %p11031_p5 = scmp.lt.s32.totalorder %s442_s13, %s442_s13 }
  0x7b   : > { %p11032_p4 = scmp.lt.s32.totalorder %s11023_s16, %s11023_s16 }
  0x7c   : > { %p11026_p13 = pnand %p11024_p0, %p11340_p7 }
  0x7d   : > { %p11033_p1 = por %p11032_p4, %p11031_p5 }
  0x7e   : > { %p11027_p2 = pneg %p11026_p13 }
  0x7f   : > { %10647 = dma.hbm_to_vmem [thread:$0]  (!%p11332_p6), %s13466_s6, 16, %s417_s20, [#allocation12]  }
  0x80   : > { %p11034_p3 = pnand %p11033_p1, %p11027_p2 }
  0x82   : > { %11037 = shalt.err (!%p11034_p3)
}
  0x83   : > { %10653 = dma.hbm_to_vmem [thread:$0]  (!%p11332_p6), %s13351_s9, 64, %s442_s13, [#allocation15]  }
  0x84   : > { %s11219_s19 = smov [#allocation19]   ;;  %s11220_s22 = smov [#allocation20]  }
  0x85   : > { %s462_s20 = sshll.u32 %s11219_s19, 4  ;;  %s475_s23 = sshll.u32 %s11220_s22, 4  ;;  %s463_s20 = int_to_ptr.vmem [resolvable:$true] %s462_s20  ;;  %s476_s23 = int_to_ptr.vmem [resolvable:$true] %s475_s23 }
  0x86   : > { %s11049_s17 = scalar_lea.vmem %s463_s20, 256  ;;  %p11057_p11 = scmp.lt.s32.totalorder %s463_s20, %s463_s20 }
  0x87   : > { %p11050_p8 = scmp.ne.s32.totalorder %s463_s20, %s11049_s17  ;;  %p11058_p12 = scmp.lt.s32.totalorder %s11049_s17, %s11049_s17 }
  0x89   : > { %p11052_p9 = pnand %p11050_p8, %p11340_p7  ;;  %p11059_p3 = por %p11058_p12, %p11057_p11 }
  0x8b   : > { %p11053_p10 = pneg %p11052_p9 }
  0x8d   : > { %p11060_p0 = pnand %p11059_p3, %p11053_p10 }
  0x8f   : > { %11063 = shalt.err (!%p11060_p0)
}
  0x90   : > { %s13467_s29 = smov 8   ;;  %s11075_s24 = scalar_lea.vmem %s476_s23, 256 }
  0x91   : > { %10659 = dma.hbm_to_vmem [thread:$0]  (!%p11332_p6), %s13353_s11, 256, %s463_s20, [#allocation18], %s13463_s7, %s13463_s7, %s13467_s29  }
  0x92   : > { %p11076_p13 = scmp.ne.s32.totalorder %s476_s23, %s11075_s24  ;;  %p11083_p4 = scmp.lt.s32.totalorder %s476_s23, %s476_s23 }
  0x93   : > { %p11084_p1 = scmp.lt.s32.totalorder %s11075_s24, %s11075_s24 }
  0x94   : > { %p11078_p2 = pnand %p11076_p13, %p11340_p7 }
  0x95   : > { %p11085_p8 = por %p11084_p1, %p11083_p4 }
  0x96   : > { %p11079_p5 = pneg %p11078_p2 }
  0x98   : > { %p11086_p9 = pnand %p11085_p8, %p11079_p5 }
  0x9a   : > { %11089 = shalt.err (!%p11086_p9)
}
  0x9b   : > { %10662 = dma.hbm_to_vmem [thread:$0]  (!%p11332_p6), %s13354_s12, 256, %s476_s23, [#allocation21], %s13463_s7, %s13463_s7, %s13467_s29  }
  0x9c   : > { %s7594_s18 = sadd.s32 4294967294, %s11206_s28   ;;  %s11441_s21 = sadd.s32 1, %s11206_s28  }
  0x9d   : > { %s42_s20 = sadd.s32 1, %s11202_s27  ;;  %s39_s22 = ssub.s32 %s11206_s28, %s11441_s21 }
  0x9e   : > { %p49_p7 = scmp.ne.s32.totalorder %s11202_s27, %s11198_s26  ;;  %p40_p10 = scmp.eq.s32.totalorder %s39_s22, 0 }
  0x9f   : > { %p50_p11 = scmp.eq.s32.totalorder %s11206_s28, 0  ;;  %p55_p12 = scmp.ne.s32.totalorder %s11198_s26, %s11194_s25 }
  0xa0   : > { %p331_p3 = scmp.eq.s32.totalorder %s11318_s14, 1  ;;  %p13468_p13 = scmp.eq.s32.totalorder %s11318_s14, 0 }
  0xa1   : > { %s11453_s17 = scalar_select %p40_p10, %s11202_s27, %s42_s20  }
  0xa2   : > { %p51_p0 = por %p50_p11, %p49_p7  ;;  %p11457_p2 = por %p13468_p13, %p55_p12 }
  0xa3   : > { %p11461_p6 = por %p331_p3, %p49_p7  ;;  %p337_p5 = scmp.eq.s32.totalorder %s7594_s18, 1 }
  0xa4   : > { %s13469_s13 = scalar_select %p11457_p2, 1, 0 }
  0xa5   : > { %s13470_s23 = scalar_select %p11461_p6, 1, 0 }
  0xa6   : > { %p10682_p4 = scmp.lt.s32.totalorder %s11206_s28, 2  ;;  %s489_s16 = sand.u32 1, %s11202_s27  }
  0xa7   : > { %p11467_p1 = por %p337_p5, %p55_p12  ;;  %s10578_s30 = smul.u32 192, %s489_s16 }
  0xa8   : > { %p11471_p8 = pnand %p10682_p4, %p51_p0  ;;  %s10579_s20 = smul.u32 3072, %s11206_s28 }
  0xa9   : > { %s13471_s24 = scalar_select %p11467_p1, 1, 0 }
  0xaa   : > { %s11479_s2 = scalar_lea.hbm %s13342_s0, %s10579_s20  ;;  %s493_s18 = scalar_lea.vmem [#allocation2], %s10578_s30 }
  0xab   : > { %s500_s3 = sshll.u32 %s493_s18, 4  ;;  %s11483_s4 = scalar_lea.sflag [#allocation3], %s489_s16  ;;  %s11481_s3 = int_to_ptr.vmem [resolvable:$true] %s500_s3 }
  0xac   : > { %s11090_s5 = scalar_lea.hbm %s11479_s2, 3072  ;;  %p11092_p7 = pneg %p11471_p8 }
  0xad   : > { %p11091_p9 = scmp.ne.s32.totalorder %s11479_s2, %s11090_s5  ;;  %s11095_s1 = scalar_lea.hbm %s13342_s0, 6144 }
  0xae   : > { %p11096_p12 = scmp.lt.s32.totalorder %s11479_s2, %s13342_s0  ;;  %p11097_p3 = scmp.lt.s32.totalorder %s11095_s1, %s11090_s5 }
  0xaf   : > { %p11093_p10 = pnand %p11092_p7, %p11091_p9 }
  0xb0   : > { %p11098_p0 = por %p11097_p3, %p11096_p12 }
  0xb1   : > { %p11094_p11 = pneg %p11093_p10 }
  0xb3   : > { %p11099_p13 = pnand %p11098_p0, %p11094_p11 }
  0xb5   : > { %11102 = shalt.err (!%p11099_p13)
}
  0xb6   : > { %s11103_s16 = scalar_lea.vmem %s11481_s3, 3072  ;;  %s11221_s30 = smov [#allocation2]  }
  0xb7   : > { %p11104_p5 = scmp.ne.s32.totalorder %s11481_s3, %s11103_s16  ;;  %s11108_s18 = sshll.u32 %s11221_s30, 4  ;;  %s11109_s18 = int_to_ptr.vmem [resolvable:$false] %s11108_s18 }
  0xb8   : > { %s11110_s6 = scalar_lea.vmem %s11109_s18, 6144  ;;  %p11111_p10 = scmp.lt.s32.totalorder %s11481_s3, %s11109_s18 }
  0xb9   : > { %p11106_p4 = pnand %p11104_p5, %p11092_p7  ;;  %p11112_p1 = scmp.lt.s32.totalorder %s11110_s6, %s11103_s16 }
  0xbb   : > { %p11107_p9 = pneg %p11106_p4  ;;  %p11113_p6 = por %p11112_p1, %p11111_p10 }
  0xbd   : > { %p11114_p2 = pnand %p11113_p6, %p11107_p9 }
  0xbf   : > { %11117 = shalt.err (!%p11114_p2)
}
  0xc0   : > { %10666 = dma.hbm_to_vmem [thread:$0]  (!%p11471_p8), %s11479_s2, 3072, %s11481_s3, %s11483_s4, %s13463_s7, %s13463_s7, %s13467_s29  }
  0xc1   : > { %p13473_p7 = scmp.ne.s32.totalorder %s13456_s15, 0 }
  0xc3   : > { %512 = sbr.rel (%p13473_p7) target bundleno = 2196 (0x894), region = 72 }
  0xc8   : > { %s11510_s5 = sand.u32 1, %s11198_s26   ;;  %p13474_p2 = scmp.ne.s32.totalorder %s13469_s13, 0 }
  0xc9   : > { %s10580_s8 = smul.u32 192, %s11510_s5  ;;  %s515_s1 = scalar_lea.sflag [#allocation3], %s11510_s5 }
  0xcb   : > { %s11514_s20 = scalar_lea.vmem [#allocation2], %s10580_s8 }
  0xcc   : > { %11161 = dma.done.wait (%p13474_p2), %s515_s1, 3072  }
  0xcd   : > { %11163 = vsyncadd (%p13474_p2), %s515_s1, 4294964224  ;;  %p13475_p6 = scmp.eq.s32.totalorder %s11318_s14, 0 }
  0xcf   : > { %11165 = dma.done.wait (%p13475_p6), [#allocation6], 69632   ;;  %p13476_p1 = pmov %p13475_p6 }
  0xd1   : > { %11167 = vsyncadd (%p13476_p1), [#allocation6], 4294897664  ;;  %p13477_p8 = pmov %p13476_p1 }
  0xd2   : > { %p13478_p11 = pmov %p13476_p1 }
  0xd3   : > { %11169 = dma.done.wait (%p13477_p8), [#allocation9], 32  }
  0xd4   : > { %11171 = vsyncadd (%p13478_p11), [#allocation9], 4294967264  ;;  %p13479_p12 = pmov %p13476_p1 }
  0xd5   : > { %p13480_p3 = pmov %p13476_p1 }
  0xd6   : > { %11173 = dma.done.wait (%p13479_p12), [#allocation12], 32  }
  0xd7   : > { %11175 = vsyncadd (%p13480_p3), [#allocation12], 4294967264  ;;  %p13481_p0 = pmov %p13476_p1 }
  0xd9   : > { %11177 = dma.done.wait (%p13481_p0), [#allocation15], 80   ;;  %p13482_p13 = pmov %p13481_p0 }
  0xda   : > { %p13483_p5 = pmov %p13481_p0 }
  0xdb   : > { %11179 = vsyncadd (%p13482_p13), [#allocation15], 4294967216 }
  0xdc   : > { %11181 = dma.done.wait (%p13483_p5), [#allocation18], 272   ;;  %p13484_p4 = pmov %p13481_p0 }
  0xdd   : > { %p13485_p9 = pmov %p13481_p0 }
  0xde   : > { %11183 = vsyncadd (%p13484_p4), [#allocation18], 4294967024 }
  0xdf   : > { %11185 = dma.done.wait (%p13485_p9), [#allocation21], 256   ;;  %p13486_p10 = pmov %p13481_p0 }
  0xe0   : > { %v663_v0 = vld [vmem:[#allocation5 + $0xf8] sm:$0xff]  ;;  %v662_v2 = vld [vmem:[#allocation5 + $0xf0] sm:$0xff]  ;;  %v661_v4 = vld [vmem:[#allocation5 + $0xe8] sm:$0xff]  ;;  %s13512_s4 = sld [smem:[#allocation120_spill]]  ;;  %vm11223_vm0 = vmmov 0   ;;  %vm5958_vm1 = vcmask 1043456  }
  0xe1   : > { %11187 = vsyncadd (%p13486_p10), [#allocation21], 4294967040  ;;  %v638_v1 = vld [vmem:[#allocation5 + $0x78] sm:$0xff]  ;;  %8758 = vmatprep.subr.mxu0 %v663_v0  ;;  %v637_v3 = vld [vmem:[#allocation5 + $0x70] sm:$0xff]  ;;  %vm5954_vm2 = vcmask 31744   ;;  %vm6408_vm3 = vcmask 122880  }
  0xe2   : > { %8802 = vmatprep.subr.mxu1 %v638_v1  ;;  %8759 = vmatpush3.msra.mxu0 %v663_v0  ;;  %v636_v5 = vld [vmem:[#allocation5 + $0x68] sm:$0xff]  ;;  %v660_v6 = vld [vmem:[#allocation5 + $0xe0] sm:$0xff]  ;;  %v659_v8 = vld [vmem:[#allocation5 + $0xd8] sm:$0xff]  ;;  %vm6422_vm4 = vcmask 130048   ;;  %s7621_s29 = sshll.u32 %s11510_s5, 6  ;;  %s13678_s30 = sld [smem:[#allocation122_spill]] }
  0xe3   : > { %8803 = vmatpush3.msra.mxu1 %v638_v1  ;;  %8760 = vmatprep.subr.mxu0 %v662_v2  ;;  %v635_v7 = vld [vmem:[#allocation5 + $0x60] sm:$0xff]  ;;  %v634_v9 = vld [vmem:[#allocation5 + $0x58] sm:$0xff]  ;;  %v658_v10 = vld [vmem:[#allocation5 + $0xd0] sm:$0xff]  ;;  %s604_s13 = scalar_lea.vmem [#allocation22], %s7621_s29  ;;  %p13679_p2 = scmp.ne.s32.totalorder %s13470_s23, 0 }
  0xe4   : > { %8804 = vmatprep.subr.mxu1 %v637_v3  ;;  %8761 = vmatpush3.msra.mxu0 %v662_v2  ;;  %v633_v11 = vld [vmem:[#allocation5 + $0x50] sm:$0xff]  ;;  %v657_v12 = vld [vmem:[#allocation5 + $0xc8] sm:$0xff]  ;;  %v656_v14 = vld [vmem:[#allocation5 + $0xc0] sm:$0xff]  ;;  %s7416_s19 = sshll.u32 %s604_s13, 4  ;;  %s11224_s8 = smov [#allocation22]   ;;  %s13299_s19 = int_to_ptr.vmem [resolvable:$true] %s7416_s19 }
  0xe5   : > { %8805 = vmatpush3.msra.mxu1 %v637_v3  ;;  %8762 = vmatprep.subr.mxu0 %v661_v4  ;;  %v632_v13 = vld [vmem:[#allocation5 + $0x48] sm:$0xff]  ;;  %v631_v15 = vld [vmem:[#allocation5 + $0x40] sm:$0xff]  ;;  %v655_v16 = vld [vmem:[#allocation5 + $0xb8] sm:$0xff]  ;;  %s11118_s6 = scalar_lea.vmem %s13299_s19, 1024  ;;  %s11122_s1 = sshll.u32 %s11224_s8, 4  ;;  %s11123_s1 = int_to_ptr.vmem [resolvable:$false] %s11122_s1 }
  0xe6   : > { %8806 = vmatprep.subr.mxu1 %v636_v5  ;;  %8763 = vmatpush3.msra.mxu0 %v661_v4  ;;  %v630_v17 = vld [vmem:[#allocation5 + $0x38] sm:$0xff]  ;;  %v654_v18 = vld [vmem:[#allocation5 + $0xb0] sm:$0xff]  ;;  %v653_v20 = vld [vmem:[#allocation5 + $0xa8] sm:$0xff]  ;;  %p11119_p7 = scmp.ne.s32.totalorder %s13299_s19, %s11118_s6  ;;  %s11124_s2 = scalar_lea.vmem %s11123_s1, 2048 }
  0xe7   : > { %8807 = vmatpush3.msra.mxu1 %v636_v5  ;;  %8764 = vmatprep.subr.mxu0 %v660_v6  ;;  %v629_v19 = vld [vmem:[#allocation5 + $0x30] sm:$0xff]  ;;  %v628_v21 = vld [vmem:[#allocation5 + $0x28] sm:$0xff]  ;;  %v652_v22 = vld [vmem:[#allocation5 + $0xa0] sm:$0xff]  ;;  %p11125_p8 = scmp.lt.s32.totalorder %s13299_s19, %s11123_s1  ;;  %p11126_p11 = scmp.lt.s32.totalorder %s11124_s2, %s11118_s6 }
  0xe8   : > { %8808 = vmatprep.subr.mxu1 %v635_v7  ;;  %8765 = vmatpush3.msra.mxu0 %v660_v6  ;;  %v627_v23 = vld [vmem:[#allocation5 + $0x20] sm:$0xff]  ;;  %v651_v24 = vld [vmem:[#allocation5 + $0x98] sm:$0xff]  ;;  %v650_v26 = vld [vmem:[#allocation5 + $0x90] sm:$0xff]  ;;  %p11120_p6 = pnand %p11119_p7, %p13679_p2 }
  0xe9   : > { %8809 = vmatpush3.msra.mxu1 %v635_v7  ;;  %8766 = vmatprep.subr.mxu0 %v659_v8  ;;  %v626_v25 = vld [vmem:[#allocation5 + $0x18] sm:$0xff]  ;;  %v625_v27 = vld [vmem:[#allocation5 + $0x10] sm:$0xff]  ;;  %v649_v28 = vld [vmem:[#allocation5 + $0x88] sm:$0xff]  ;;  %p11127_p12 = por %p11126_p11, %p11125_p8 }
  0xea   : > { %8810 = vmatprep.subr.mxu1 %v634_v9  ;;  %8767 = vmatpush3.msra.mxu0 %v659_v8  ;;  %v624_v29 = vld [vmem:[#allocation5 + $0x8] sm:$0xff]  ;;  %v648_v30 = vld [vmem:[#allocation5 + $0x80] sm:$0xff]  ;;  %v7638_v32 = vld [vmem:[%s11514_s20 + $0x12] sm:$0xff]  ;;  %p11121_p1 = pneg %p11120_p6 }
  0xeb   : > { %8811 = vmatpush3.msra.mxu1 %v634_v9  ;;  %8768 = vmatprep.subr.mxu0 %v658_v10  ;;  %v623_v31 = vld [vmem:[#allocation5] sm:$0xff]  ;;  %v7630_v33 = vld [vmem:[%s11514_s20 + $0x11] sm:$0xff]  ;;  %v896_v40 = vld [vmem:[#allocation5 + $0x168] sm:$0xff] }
  0xec   : > { %8812 = vmatprep.subr.mxu1 %v633_v11  ;;  %8769 = vmatpush3.msra.mxu0 %v658_v10  ;;  %v11547_v34 = vld [vmem:[%s11514_s20 + $0x22] sm:$0xff]  ;;  %v898_v36 = vld [vmem:[#allocation5 + $0x178] sm:$0xff]  ;;  %v897_v38 = vld [vmem:[#allocation5 + $0x170] sm:$0xff]  ;;  %p11128_p3 = pnand %p11127_p12, %p11121_p1 }
  0xed   : > { %8813 = vmatpush3.msra.mxu1 %v633_v11  ;;  %8770 = vmatprep.subr.mxu0 %v657_v12  ;;  %v11550_v35 = vld [vmem:[%s11514_s20 + $0x21] sm:$0xff]  ;;  %v1036_v37 = vld [vmem:[#allocation5 + $0x1f8] sm:$0xff]  ;;  %v1035_v39 = vld [vmem:[#allocation5 + $0x1f0] sm:$0xff] }
  0xee   : > { %8814 = vmatprep.subr.mxu1 %v632_v13  ;;  %8771 = vmatpush3.msra.mxu0 %v657_v12  ;;  %v1034_v41 = vld [vmem:[#allocation5 + $0x1e8] sm:$0xff]  ;;  %v895_v42 = vld [vmem:[#allocation5 + $0x160] sm:$0xff]  ;;  %v894_v44 = vld [vmem:[#allocation5 + $0x158] sm:$0xff] }
  0xef   : > { %8815 = vmatpush3.msra.mxu1 %v632_v13  ;;  %8772 = vmatprep.subr.mxu0 %v656_v14  ;;  %v1033_v43 = vld [vmem:[#allocation5 + $0x1e0] sm:$0xff]  ;;  %v1032_v45 = vld [vmem:[#allocation5 + $0x1d8] sm:$0xff]  ;;  %v893_v46 = vld [vmem:[#allocation5 + $0x150] sm:$0xff] }
  0xf0   : > { %8816 = vmatprep.subr.mxu1 %v631_v15  ;;  %8773 = vmatpush3.msra.mxu0 %v656_v14  ;;  %v1031_v47 = vld [vmem:[#allocation5 + $0x1d0] sm:$0xff]  ;;  %v892_v48 = vld [vmem:[#allocation5 + $0x148] sm:$0xff]  ;;  %v891_v50 = vld [vmem:[#allocation5 + $0x140] sm:$0xff] }
  0xf1   : > { %8817 = vmatpush3.msra.mxu1 %v631_v15  ;;  %8774 = vmatprep.subr.mxu0 %v655_v16  ;;  %v1030_v49 = vld [vmem:[#allocation5 + $0x1c8] sm:$0xff]  ;;  %v1029_v51 = vld [vmem:[#allocation5 + $0x1c0] sm:$0xff]  ;;  %v890_v52 = vld [vmem:[#allocation5 + $0x138] sm:$0xff] }
  0xf2   : > { %8818 = vmatprep.subr.mxu1 %v630_v17  ;;  %8775 = vmatpush3.msra.mxu0 %v655_v16  ;;  %v1028_v53 = vld [vmem:[#allocation5 + $0x1b8] sm:$0xff]  ;;  %v889_v56 = vld [vmem:[#allocation5 + $0x130] sm:$0xff]  ;;  %v11561_v58 = vld [vmem:[%s11514_s20 + $0x42] sm:$0xff] }
  0xf3   : > { %8819 = vmatpush3.msra.mxu1 %v630_v17  ;;  %8776 = vmatprep.subr.mxu0 %v654_v18  ;;  %v11555_v54 = vld [vmem:[%s11514_s20 + $0x32] sm:$0xff]  ;;  %v11564_v59 = vld [vmem:[%s11514_s20 + $0x41] sm:$0xff] }
  0xf4   : > { %8820 = vmatprep.subr.mxu1 %v629_v19  ;;  %8777 = vmatpush3.msra.mxu0 %v654_v18  ;;  %v11558_v55 = vld [vmem:[%s11514_s20 + $0x31] sm:$0xff]  ;;  %v888_v60 = vld [vmem:[#allocation5 + $0x128] sm:$0xff]  ;;  %v887_v0 = vld [vmem:[#allocation5 + $0x120] sm:$0xff] }
  0xf5   : > { %8821 = vmatpush3.msra.mxu1 %v629_v19  ;;  %8778 = vmatprep.subr.mxu0 %v653_v20  ;;  %v1027_v57 = vld [vmem:[#allocation5 + $0x1b0] sm:$0xff]  ;;  %v1026_v61 = vld [vmem:[#allocation5 + $0x1a8] sm:$0xff]  ;;  %v1025_v1 = vld [vmem:[#allocation5 + $0x1a0] sm:$0xff] }
  0xf6   : > { %8822 = vmatprep.subr.mxu1 %v628_v21  ;;  %8779 = vmatpush3.msra.mxu0 %v653_v20  ;;  %v11571_v62 = vld [vmem:[%s11514_s20 + $0x52] sm:$0xff]  ;;  %v11577_v2 = vld [vmem:[%s11514_s20 + $0x62] sm:$0xff] }
  0xf7   : > { %8823 = vmatpush3.msra.mxu1 %v628_v21  ;;  %8780 = vmatprep.subr.mxu0 %v652_v22  ;;  %v11574_v63 = vld [vmem:[%s11514_s20 + $0x51] sm:$0xff]  ;;  %v11580_v3 = vld [vmem:[%s11514_s20 + $0x61] sm:$0xff] }
  0xf8   : > { %8824 = vmatprep.subr.mxu1 %v627_v23  ;;  %8781 = vmatpush3.msra.mxu0 %v652_v22  ;;  %v886_v4 = vld [vmem:[#allocation5 + $0x118] sm:$0xff]  ;;  %v885_v8 = vld [vmem:[#allocation5 + $0x110] sm:$0xff]  ;;  %v11593_v10 = vld [vmem:[%s11514_s20 + $0x82] sm:$0xff] }
  0xf9   : > { %8825 = vmatpush3.msra.mxu1 %v627_v23  ;;  %8782 = vmatprep.subr.mxu0 %v651_v24  ;;  %v1024_v5 = vld [vmem:[#allocation5 + $0x198] sm:$0xff]  ;;  %v1023_v9 = vld [vmem:[#allocation5 + $0x190] sm:$0xff]  ;;  %v11596_v11 = vld [vmem:[%s11514_s20 + $0x81] sm:$0xff] }
  0xfa   : > { %8826 = vmatprep.subr.mxu1 %v626_v25  ;;  %8783 = vmatpush3.msra.mxu0 %v651_v24  ;;  %v11587_v6 = vld [vmem:[%s11514_s20 + $0x72] sm:$0xff]  ;;  %v884_v12 = vld [vmem:[#allocation5 + $0x108] sm:$0xff]  ;;  %v883_v14 = vld [vmem:[#allocation5 + $0x100] sm:$0xff] }
  0xfb   : > { %8827 = vmatpush3.msra.mxu1 %v626_v25  ;;  %8784 = vmatprep.subr.mxu0 %v650_v26  ;;  %v11590_v7 = vld [vmem:[%s11514_s20 + $0x71] sm:$0xff]  ;;  %v1022_v13 = vld [vmem:[#allocation5 + $0x188] sm:$0xff]  ;;  %v1021_v15 = vld [vmem:[#allocation5 + $0x180] sm:$0xff] }
  0xfc   : > { %8828 = vmatprep.subr.mxu1 %v625_v27  ;;  %8785 = vmatpush3.msra.mxu0 %v650_v26  ;;  %v7646_v16 = vld [vmem:[%s11514_s20 + $0x13] sm:$0xff]  ;;  %v11604_v17 = vld [vmem:[%s11514_s20 + $0x23] sm:$0xff] }
  0xfd   : > { %8829 = vmatpush3.msra.mxu1 %v625_v27  ;;  %8786 = vmatprep.subr.mxu0 %v649_v28  ;;  %v1166_v18 = vld [vmem:[#allocation5 + $0x278] sm:$0xff]  ;;  %v1165_v20 = vld [vmem:[#allocation5 + $0x270] sm:$0xff]  ;;  %v11613_v23 = vld [vmem:[%s11514_s20 + $0x43] sm:$0xff] }
  0xfe   : > { %8830 = vmatprep.subr.mxu1 %v624_v29  ;;  %8787 = vmatpush3.msra.mxu0 %v649_v28  ;;  %v1304_v19 = vld [vmem:[#allocation5 + $0x2f8] sm:$0xff]  ;;  %v1303_v21 = vld [vmem:[#allocation5 + $0x2f0] sm:$0xff]  ;;  %v1164_v24 = vld [vmem:[#allocation5 + $0x268] sm:$0xff] }
  0xff   : > { %8831 = vmatpush3.msra.mxu1 %v624_v29  ;;  %8788 = vmatprep.subr.mxu0 %v648_v30  ;;  %v11610_v22 = vld [vmem:[%s11514_s20 + $0x33] sm:$0xff]  ;;  %v1302_v25 = vld [vmem:[#allocation5 + $0x2e8] sm:$0xff]  ;;  %v1163_v26 = vld [vmem:[#allocation5 + $0x260] sm:$0xff] }
 0x100   : > { %8832 = vmatprep.subr.mxu1 %v623_v31  ;;  %8789 = vmatpush3.msra.mxu0 %v648_v30  ;;  %v1301_v27 = vld [vmem:[#allocation5 + $0x2e0] sm:$0xff]  ;;  %v11619_v28 = vld [vmem:[%s11514_s20 + $0x53] sm:$0xff] }
 0x101   : > { %8790 = vmatprep.mubr.f32.mxu0 %v7638_v32  ;;  %8833 = vmatpush3.msra.mxu1 %v623_v31  ;;  %v11622_v29 = vld [vmem:[%s11514_s20 + $0x63] sm:$0xff]  ;;  %v1162_v30 = vld [vmem:[#allocation5 + $0x258] sm:$0xff]  ;;  %v1161_v32 = vld [vmem:[#allocation5 + $0x250] sm:$0xff] }
 0x102   : > { %8834 = vmatprep.mubr.f32.mxu1 %v7630_v33  ;;  %8791 = vmatmul.mubr.f32.vlgmr.msra.gmra.mxu0 %v11547_v34  ;;  %v1300_v31 = vld [vmem:[#allocation5 + $0x2d8] sm:$0xff]  ;;  %v1299_v33 = vld [vmem:[#allocation5 + $0x2d0] sm:$0xff] }
 0x103   : > { %8835 = vmatmul.mubr.f32.vlgmr.msra.gmra.mxu1 %v11550_v35  ;;  %8846 = vmatprep.subr.mxu0 %v898_v36 }
 0x104   : > { %8890 = vmatprep.subr.mxu1 %v1036_v37  ;;  %8847 = vmatpush3.msra.mxu0 %v898_v36  ;;  %v11632_v36 = vld [vmem:[%s11514_s20 + $0x83] sm:$0xff] }
 0x105   : > { %8891 = vmatpush3.msra.mxu1 %v1036_v37  ;;  %8848 = vmatprep.subr.mxu0 %v897_v38  ;;  %v1160_v37 = vld [vmem:[#allocation5 + $0x248] sm:$0xff] }
 0x106   : > { %8892 = vmatprep.subr.mxu1 %v1035_v39  ;;  %8849 = vmatpush3.msra.mxu0 %v897_v38  ;;  %v1298_v38 = vld [vmem:[#allocation5 + $0x2c8] sm:$0xff] }
 0x107   : > { %8893 = vmatpush3.msra.mxu1 %v1035_v39  ;;  %8850 = vmatprep.subr.mxu0 %v896_v40  ;;  %v1159_v39 = vld [vmem:[#allocation5 + $0x240] sm:$0xff] }
 0x108   : > { %8894 = vmatprep.subr.mxu1 %v1034_v41  ;;  %8851 = vmatpush3.msra.mxu0 %v896_v40  ;;  %v11638_v40 = vld [vmem:[%s11514_s20 + $0x91] sm:$0xff] }
 0x109   : > { %8895 = vmatpush3.msra.mxu1 %v1034_v41  ;;  %8852 = vmatprep.subr.mxu0 %v895_v42  ;;  %v1297_v41 = vld [vmem:[#allocation5 + $0x2c0] sm:$0xff] }
 0x10a   : > { %8896 = vmatprep.subr.mxu1 %v1033_v43  ;;  %8853 = vmatpush3.msra.mxu0 %v895_v42  ;;  %v1158_v42 = vld [vmem:[#allocation5 + $0x238] sm:$0xff] }
 0x10b   : > { %8897 = vmatpush3.msra.mxu1 %v1033_v43  ;;  %8854 = vmatprep.subr.mxu0 %v894_v44  ;;  %v1296_v43 = vld [vmem:[#allocation5 + $0x2b8] sm:$0xff] }
 0x10c   : > { %8898 = vmatprep.subr.mxu1 %v1032_v45  ;;  %8855 = vmatpush3.msra.mxu0 %v894_v44  ;;  %v1157_v44 = vld [vmem:[#allocation5 + $0x230] sm:$0xff] }
 0x10d   : > { %8899 = vmatpush3.msra.mxu1 %v1032_v45  ;;  %8856 = vmatprep.subr.mxu0 %v893_v46  ;;  %v1295_v45 = vld [vmem:[#allocation5 + $0x2b0] sm:$0xff] }
 0x10e   : > { %8900 = vmatprep.subr.mxu1 %v1031_v47  ;;  %8857 = vmatpush3.msra.mxu0 %v893_v46  ;;  %v1156_v46 = vld [vmem:[#allocation5 + $0x228] sm:$0xff] }
 0x10f   : > { %8901 = vmatpush3.msra.mxu1 %v1031_v47  ;;  %8858 = vmatprep.subr.mxu0 %v892_v48  ;;  %v1294_v47 = vld [vmem:[#allocation5 + $0x2a8] sm:$0xff] }
 0x110   : > { %8902 = vmatprep.subr.mxu1 %v1030_v49  ;;  %8859 = vmatpush3.msra.mxu0 %v892_v48  ;;  %v1155_v48 = vld [vmem:[#allocation5 + $0x220] sm:$0xff] }
 0x111   : > { %8903 = vmatpush3.msra.mxu1 %v1030_v49  ;;  %8860 = vmatprep.subr.mxu0 %v891_v50  ;;  %v1293_v49 = vld [vmem:[#allocation5 + $0x2a0] sm:$0xff] }
 0x112   : > { %8904 = vmatprep.subr.mxu1 %v1029_v51  ;;  %8861 = vmatpush3.msra.mxu0 %v891_v50  ;;  %v1154_v50 = vld [vmem:[#allocation5 + $0x218] sm:$0xff] }
 0x113   : > { %8905 = vmatpush3.msra.mxu1 %v1029_v51  ;;  %8862 = vmatprep.subr.mxu0 %v890_v52  ;;  %v1292_v51 = vld [vmem:[#allocation5 + $0x298] sm:$0xff] }
 0x114   : > { %8906 = vmatprep.subr.mxu1 %v1028_v53  ;;  %8863 = vmatpush3.msra.mxu0 %v890_v52  ;;  %v1153_v52 = vld [vmem:[#allocation5 + $0x210] sm:$0xff] }
 0x115   : > { %8907 = vmatpush3.msra.mxu1 %v1028_v53  ;;  %8793 = vmatprep.mubr.f32.mxu0 %v11555_v54  ;;  %v1291_v53 = vld [vmem:[#allocation5 + $0x290] sm:$0xff] }
 0x116   : > { %8837 = vmatprep.mubr.f32.mxu1 %v11558_v55  ;;  %8864 = vmatprep.subr.mxu0 %v889_v56 }
 0x117   : > { %8908 = vmatprep.subr.mxu1 %v1027_v57  ;;  %8794 = vmatmul.mubr.f32.gmra.mxu0 %v11561_v58 }
 0x118   : > { %8838 = vmatmul.mubr.f32.gmra.mxu1 %v11564_v59  ;;  %8865 = vmatpush3.msra.mxu0 %v889_v56  ;;  %v1152_v56 = vld [vmem:[#allocation5 + $0x208] sm:$0xff] }
 0x119   : > { %8909 = vmatpush3.msra.mxu1 %v1027_v57  ;;  %8866 = vmatprep.subr.mxu0 %v888_v60  ;;  %v1290_v57 = vld [vmem:[#allocation5 + $0x288] sm:$0xff] }
 0x11a   : > { %8910 = vmatprep.subr.mxu1 %v1026_v61  ;;  %8867 = vmatpush3.msra.mxu0 %v888_v60  ;;  %v1151_v60 = vld [vmem:[#allocation5 + $0x200] sm:$0xff] }
 0x11b   : > { %8911 = vmatpush3.msra.mxu1 %v1026_v61  ;;  %8796 = vmatprep.mubr.f32.mxu0 %v11571_v62  ;;  %v1289_v61 = vld [vmem:[#allocation5 + $0x280] sm:$0xff] }
 0x11c   : > { %8840 = vmatprep.mubr.f32.mxu1 %v11574_v63  ;;  %8868 = vmatprep.subr.mxu0 %v887_v0 }
 0x11d   : > { %8912 = vmatprep.subr.mxu1 %v1025_v1  ;;  %8797 = vmatmul.mubr.f32.gmra.mxu0 %v11577_v2 }
 0x11e   : > { %8841 = vmatmul.mubr.f32.gmra.mxu1 %v11580_v3  ;;  %8869 = vmatpush3.msra.mxu0 %v887_v0  ;;  %v1443_v0 = vld [vmem:[#allocation5 + $0x378] sm:$0xff] }
 0x11f   : > { %8913 = vmatpush3.msra.mxu1 %v1025_v1  ;;  %8870 = vmatprep.subr.mxu0 %v886_v4  ;;  %v1581_v1 = vld [vmem:[#allocation5 + $0x3f8] sm:$0xff] }
 0x120   : > { %8914 = vmatprep.subr.mxu1 %v1024_v5  ;;  %8871 = vmatpush3.msra.mxu0 %v886_v4  ;;  %v1442_v4 = vld [vmem:[#allocation5 + $0x370] sm:$0xff] }
 0x121   : > { %8915 = vmatpush3.msra.mxu1 %v1024_v5  ;;  %8799 = vmatprep.mubr.f32.mxu0 %v11587_v6  ;;  %v1580_v5 = vld [vmem:[#allocation5 + $0x3f0] sm:$0xff] }
 0x122   : > { %8843 = vmatprep.mubr.f32.mxu1 %v11590_v7  ;;  %8872 = vmatprep.subr.mxu0 %v885_v8 }
 0x123   : > { %8916 = vmatprep.subr.mxu1 %v1023_v9  ;;  %8800 = vmatmul.mubr.f32.gmra.mxu0 %v11593_v10 }
 0x124   : > { %8844 = vmatmul.mubr.f32.gmra.mxu1 %v11596_v11  ;;  %8873 = vmatpush3.msra.mxu0 %v885_v8  ;;  %v1441_v8 = vld [vmem:[#allocation5 + $0x368] sm:$0xff] }
 0x125   : > { %8917 = vmatpush3.msra.mxu1 %v1023_v9  ;;  %8874 = vmatprep.subr.mxu0 %v884_v12  ;;  %v1579_v9 = vld [vmem:[#allocation5 + $0x3e8] sm:$0xff] }
 0x126   : > { %8918 = vmatprep.subr.mxu1 %v1022_v13  ;;  %8875 = vmatpush3.msra.mxu0 %v884_v12  ;;  %v1578_v12 = vld [vmem:[#allocation5 + $0x3e0] sm:$0xff] }
 0x127   : > { %8919 = vmatpush3.msra.mxu1 %v1022_v13  ;;  %8876 = vmatprep.subr.mxu0 %v883_v14  ;;  %v1439_v13 = vld [vmem:[#allocation5 + $0x358] sm:$0xff] }
 0x128   : > { %8920 = vmatprep.subr.mxu1 %v1021_v15  ;;  %8877 = vmatpush3.msra.mxu0 %v883_v14  ;;  %v1577_v14 = vld [vmem:[#allocation5 + $0x3d8] sm:$0xff] }
 0x129   : > { %8878 = vmatprep.mubr.f32.mxu0 %v7646_v16  ;;  %8921 = vmatpush3.msra.mxu1 %v1021_v15  ;;  %v1438_v15 = vld [vmem:[#allocation5 + $0x350] sm:$0xff] }
 0x12a   : > { %8879 = vmatmul.mubr.f32.vlgmr.msra.gmra.mxu0 %v11604_v17  ;;  %8922 = vmatprep.mubr.f32.mxu1 %v11550_v35  ;;  %v11629_v35 = vld [vmem:[%s11514_s20 + $0x73] sm:$0xff] }
 0x12b   : > { %8934 = vmatprep.subr.mxu0 %v1166_v18  ;;  %8978 = vmatprep.subr.mxu1 %v1304_v19  ;;  %v1576_v16 = vld [vmem:[#allocation5 + $0x3d0] sm:$0xff] }
 0x12c   : > { %8923 = vmatmul.mubr.f32.vlgmr.msra.gmra.mxu1 %v11558_v55  ;;  %8935 = vmatpush3.msra.mxu0 %v1166_v18  ;;  %v1437_v18 = vld [vmem:[#allocation5 + $0x348] sm:$0xff] }
 0x12d   : > { %8979 = vmatpush3.msra.mxu1 %v1304_v19  ;;  %8936 = vmatprep.subr.mxu0 %v1165_v20  ;;  %v1575_v19 = vld [vmem:[#allocation5 + $0x3c8] sm:$0xff] }
 0x12e   : > { %8980 = vmatprep.subr.mxu1 %v1303_v21  ;;  %8881 = vmatprep.mubr.f32.mxu0 %v11610_v22 }
 0x12f   : > { %8937 = vmatpush3.msra.mxu0 %v1165_v20  ;;  %8981 = vmatpush3.msra.mxu1 %v1303_v21  ;;  %v1436_v20 = vld [vmem:[#allocation5 + $0x340] sm:$0xff]  ;;  %v11660_v21 = vld [vmem:[%s11514_s20 + $0x93] sm:$0xff] }
 0x130   : > { %8882 = vmatmul.mubr.f32.gmra.mxu0 %v11613_v23  ;;  %8938 = vmatprep.subr.mxu0 %v1164_v24 }
 0x131   : > { %8982 = vmatprep.subr.mxu1 %v1302_v25  ;;  %8925 = vmatprep.mubr.f32.mxu1 %v11564_v59 }
 0x132   : > { %8939 = vmatpush3.msra.mxu0 %v1164_v24  ;;  %8983 = vmatpush3.msra.mxu1 %v1302_v25  ;;  %v1574_v24 = vld [vmem:[#allocation5 + $0x3c0] sm:$0xff]  ;;  %v1435_v25 = vld [vmem:[#allocation5 + $0x338] sm:$0xff] }
 0x133   : > { %8940 = vmatprep.subr.mxu0 %v1163_v26  ;;  %8926 = vmatmul.mubr.f32.gmra.mxu1 %v11574_v63 }
 0x134   : > { %8984 = vmatprep.subr.mxu1 %v1301_v27  ;;  %8884 = vmatprep.mubr.f32.mxu0 %v11619_v28 }
 0x135   : > { %8941 = vmatpush3.msra.mxu0 %v1163_v26  ;;  %8985 = vmatpush3.msra.mxu1 %v1301_v27  ;;  %v1573_v26 = vld [vmem:[#allocation5 + $0x3b8] sm:$0xff]  ;;  %v1434_v27 = vld [vmem:[#allocation5 + $0x330] sm:$0xff] }
 0x136   : > { %8885 = vmatmul.mubr.f32.gmra.mxu0 %v11622_v29  ;;  %8942 = vmatprep.subr.mxu0 %v1162_v30 }
 0x137   : > { %8986 = vmatprep.subr.mxu1 %v1300_v31  ;;  %8928 = vmatprep.mubr.f32.mxu1 %v11580_v3 }
 0x138   : > { %8943 = vmatpush3.msra.mxu0 %v1162_v30  ;;  %8987 = vmatpush3.msra.mxu1 %v1300_v31  ;;  %v1572_v30 = vld [vmem:[#allocation5 + $0x3b0] sm:$0xff]  ;;  %v1433_v31 = vld [vmem:[#allocation5 + $0x328] sm:$0xff] }
 0x139   : > { %8944 = vmatprep.subr.mxu0 %v1161_v32  ;;  %8929 = vmatmul.mubr.f32.gmra.mxu1 %v11590_v7 }
 0x13a   : > { %8988 = vmatprep.subr.mxu1 %v1299_v33  ;;  %8887 = vmatprep.mubr.f32.mxu0 %v11629_v35 }
 0x13b   : > { %8945 = vmatpush3.msra.mxu0 %v1161_v32  ;;  %8989 = vmatpush3.msra.mxu1 %v1299_v33  ;;  %v1571_v32 = vld [vmem:[#allocation5 + $0x3a8] sm:$0xff]  ;;  %v1432_v33 = vld [vmem:[#allocation5 + $0x320] sm:$0xff] }
 0x13c   : > { %8888 = vmatmul.mubr.f32.gmra.mxu0 %v11632_v36  ;;  %8946 = vmatprep.subr.mxu0 %v1160_v37 }
 0x13d   : > { %8990 = vmatprep.subr.mxu1 %v1298_v38  ;;  %8931 = vmatprep.mubr.f32.mxu1 %v11596_v11 }
 0x13e   : > { %8947 = vmatpush3.msra.mxu0 %v1160_v37  ;;  %8991 = vmatpush3.msra.mxu1 %v1298_v38  ;;  %v1570_v37 = vld [vmem:[#allocation5 + $0x3a0] sm:$0xff]  ;;  %v1431_v38 = vld [vmem:[#allocation5 + $0x318] sm:$0xff] }
 0x13f   : > { %8948 = vmatprep.subr.mxu0 %v1159_v39  ;;  %8932 = vmatmul.mubr.f32.gmra.mxu1 %v11638_v40 }
 0x140   : > { %8992 = vmatprep.subr.mxu1 %v1297_v41  ;;  %8949 = vmatpush3.msra.mxu0 %v1159_v39  ;;  %v1569_v39 = vld [vmem:[#allocation5 + $0x398] sm:$0xff] }
 0x141   : > { %8993 = vmatpush3.msra.mxu1 %v1297_v41  ;;  %8950 = vmatprep.subr.mxu0 %v1158_v42  ;;  %v1430_v41 = vld [vmem:[#allocation5 + $0x310] sm:$0xff] }
 0x142   : > { %8994 = vmatprep.subr.mxu1 %v1296_v43  ;;  %8951 = vmatpush3.msra.mxu0 %v1158_v42  ;;  %v1568_v42 = vld [vmem:[#allocation5 + $0x390] sm:$0xff] }
 0x143   : > { %8995 = vmatpush3.msra.mxu1 %v1296_v43  ;;  %8952 = vmatprep.subr.mxu0 %v1157_v44  ;;  %v1429_v43 = vld [vmem:[#allocation5 + $0x308] sm:$0xff] }
 0x144   : > { %8996 = vmatprep.subr.mxu1 %v1295_v45  ;;  %8953 = vmatpush3.msra.mxu0 %v1157_v44  ;;  %v1567_v44 = vld [vmem:[#allocation5 + $0x388] sm:$0xff] }
 0x145   : > { %8997 = vmatpush3.msra.mxu1 %v1295_v45  ;;  %8954 = vmatprep.subr.mxu0 %v1156_v46  ;;  %v1428_v45 = vld [vmem:[#allocation5 + $0x300] sm:$0xff] }
 0x146   : > { %8998 = vmatprep.subr.mxu1 %v1294_v47  ;;  %8955 = vmatpush3.msra.mxu0 %v1156_v46  ;;  %v1566_v46 = vld [vmem:[#allocation5 + $0x380] sm:$0xff] }
 0x147   : > { %8999 = vmatpush3.msra.mxu1 %v1294_v47  ;;  %8956 = vmatprep.subr.mxu0 %v1155_v48  ;;  %v1719_v47 = vld [vmem:[#allocation5 + $0x478] sm:$0xff] }
 0x148   : > { %9000 = vmatprep.subr.mxu1 %v1293_v49  ;;  %8957 = vmatpush3.msra.mxu0 %v1155_v48  ;;  %v1919_v48 = vld [vmem:[#allocation7 + $0xf8] sm:$0xff] }
 0x149   : > { %9001 = vmatpush3.msra.mxu1 %v1293_v49  ;;  %8958 = vmatprep.subr.mxu0 %v1154_v50  ;;  %v1718_v49 = vld [vmem:[#allocation5 + $0x470] sm:$0xff] }
 0x14a   : > { %9002 = vmatprep.subr.mxu1 %v1292_v51  ;;  %8959 = vmatpush3.msra.mxu0 %v1154_v50  ;;  %v1918_v50 = vld [vmem:[#allocation7 + $0xf0] sm:$0xff] }
 0x14b   : > { %9003 = vmatpush3.msra.mxu1 %v1292_v51  ;;  %8960 = vmatprep.subr.mxu0 %v1153_v52  ;;  %v1717_v51 = vld [vmem:[#allocation5 + $0x468] sm:$0xff] }
 0x14c   : > { %9004 = vmatprep.subr.mxu1 %v1291_v53  ;;  %8961 = vmatpush3.msra.mxu0 %v1153_v52  ;;  %v1917_v52 = vld [vmem:[#allocation7 + $0xe8] sm:$0xff] }
 0x14d   : > { %9005 = vmatpush3.msra.mxu1 %v1291_v53  ;;  %8962 = vmatprep.subr.mxu0 %v1152_v56  ;;  %v7685_v53 = vld [vmem:[%s11514_s20 + $0xa2] sm:$0xff] }
 0x14e   : > { %9006 = vmatprep.subr.mxu1 %v1290_v57  ;;  %8963 = vmatpush3.msra.mxu0 %v1152_v56  ;;  %v1711_v56 = vld [vmem:[#allocation5 + $0x438] sm:$0xff] }
 0x14f   : > { %9007 = vmatpush3.msra.mxu1 %v1290_v57  ;;  %8964 = vmatprep.subr.mxu0 %v1151_v60  ;;  %v1910_v57 = vld [vmem:[#allocation7 + $0xb0] sm:$0xff] }
 0x150   : > { %9008 = vmatprep.subr.mxu1 %v1289_v61  ;;  %8965 = vmatpush3.msra.mxu0 %v1151_v60  ;;  %v1709_v60 = vld [vmem:[#allocation5 + $0x428] sm:$0xff] }
 0x151   : > { %8966 = vmatprep.mubr.f32.mxu0 %v11547_v34  ;;  %9009 = vmatpush3.msra.mxu1 %v1289_v61  ;;  %v1440_v34 = vld [vmem:[#allocation5 + $0x360] sm:$0xff]  ;;  %v1909_v61 = vld [vmem:[#allocation7 + $0xa8] sm:$0xff] }
 0x152   : > { %8967 = vmatmul.mubr.f32.vlgmr.msra.gmra.mxu0 %v11555_v54  ;;  %9010 = vmatprep.mubr.f32.mxu1 %v11604_v17  ;;  %v11654_v17 = vld [vmem:[%s11514_s20 + $0x92] sm:$0xff] }
 0x153   : > { %9022 = vmatprep.subr.mxu0 %v1443_v0  ;;  %9066 = vmatprep.subr.mxu1 %v1581_v1 }
 0x154   : > { %9011 = vmatmul.mubr.f32.vlgmr.msra.gmra.mxu1 %v11610_v22  ;;  %9023 = vmatpush3.msra.mxu0 %v1443_v0  ;;  %v1708_v0 = vld [vmem:[#allocation5 + $0x420] sm:$0xff] }
 0x155   : > { %9067 = vmatpush3.msra.mxu1 %v1581_v1  ;;  %9024 = vmatprep.subr.mxu0 %v1442_v4  ;;  %v1908_v1 = vld [vmem:[#allocation7 + $0xa0] sm:$0xff] }
 0x156   : > { %9068 = vmatprep.subr.mxu1 %v1580_v5  ;;  %8969 = vmatprep.mubr.f32.mxu0 %v11561_v58 }
 0x157   : > { %9025 = vmatpush3.msra.mxu0 %v1442_v4  ;;  %9069 = vmatpush3.msra.mxu1 %v1580_v5  ;;  %v1707_v4 = vld [vmem:[#allocation5 + $0x418] sm:$0xff] }
 0x158   : > { %8970 = vmatmul.mubr.f32.gmra.mxu0 %v11571_v62  ;;  %9026 = vmatprep.subr.mxu0 %v1441_v8  ;;  %v1907_v5 = vld [vmem:[#allocation7 + $0x98] sm:$0xff] }
 0x159   : > { %9070 = vmatprep.subr.mxu1 %v1579_v9  ;;  %9013 = vmatprep.mubr.f32.mxu1 %v11613_v23 }
 0x15a   : > { %9027 = vmatpush3.msra.mxu0 %v1441_v8  ;;  %9071 = vmatpush3.msra.mxu1 %v1579_v9  ;;  %v1706_v8 = vld [vmem:[#allocation5 + $0x410] sm:$0xff] }
 0x15b   : > { %9028 = vmatprep.subr.mxu0 %v1440_v34  ;;  %9014 = vmatmul.mubr.f32.gmra.mxu1 %v11619_v28  ;;  %v1906_v9 = vld [vmem:[#allocation7 + $0x90] sm:$0xff] }
 0x15c   : > { %9072 = vmatprep.subr.mxu1 %v1578_v12  ;;  %8972 = vmatprep.mubr.f32.mxu0 %v11577_v2 }
 0x15d   : > { %9029 = vmatpush3.msra.mxu0 %v1440_v34  ;;  %9073 = vmatpush3.msra.mxu1 %v1578_v12  ;;  %v1705_v34 = vld [vmem:[#allocation5 + $0x408] sm:$0xff] }
 0x15e   : > { %8973 = vmatmul.mubr.f32.gmra.mxu0 %v11587_v6  ;;  %9030 = vmatprep.subr.mxu0 %v1439_v13  ;;  %v1905_v12 = vld [vmem:[#allocation7 + $0x88] sm:$0xff] }
 0x15f   : > { %9074 = vmatprep.subr.mxu1 %v1577_v14  ;;  %9016 = vmatprep.mubr.f32.mxu1 %v11622_v29 }
 0x160   : > { %9031 = vmatpush3.msra.mxu0 %v1439_v13  ;;  %9075 = vmatpush3.msra.mxu1 %v1577_v14  ;;  %v1704_v13 = vld [vmem:[#allocation5 + $0x400] sm:$0xff] }
 0x161   : > { %9032 = vmatprep.subr.mxu0 %v1438_v15  ;;  %9017 = vmatmul.mubr.f32.gmra.mxu1 %v11629_v35  ;;  %v1904_v14 = vld [vmem:[#allocation7 + $0x80] sm:$0xff] }
 0x162   : > { %9076 = vmatprep.subr.mxu1 %v1576_v16  ;;  %8975 = vmatprep.mubr.f32.mxu0 %v11593_v10 }
 0x163   : > { %9033 = vmatpush3.msra.mxu0 %v1438_v15  ;;  %9077 = vmatpush3.msra.mxu1 %v1576_v16  ;;  %v1895_v15 = vld [vmem:[%s11514_s20 + $0x1] sm:$0xff]  ;;  %v1894_v16 = vld [vmem:[#allocation7 + $0x78] sm:$0xff] }
 0x164   : > { %8976 = vmatmul.mubr.f32.gmra.mxu0 %v11654_v17  ;;  %9034 = vmatprep.subr.mxu0 %v1437_v18 }
 0x165   : > { %9078 = vmatprep.subr.mxu1 %v1575_v19  ;;  %9019 = vmatprep.mubr.f32.mxu1 %v11632_v36 }
 0x166   : > { %9035 = vmatpush3.msra.mxu0 %v1437_v18  ;;  %9079 = vmatpush3.msra.mxu1 %v1575_v19  ;;  %v1896_v18 = vld [vmem:[%s11514_s20 + $0x11] sm:$0xff] }
 0x167   : > { %9036 = vmatprep.subr.mxu0 %v1436_v20  ;;  %9020 = vmatmul.mubr.f32.gmra.mxu1 %v11660_v21  ;;  %v1893_v19 = vld [vmem:[#allocation7 + $0x70] sm:$0xff] }
 0x168   : > { %9080 = vmatprep.subr.mxu1 %v1574_v24  ;;  %9037 = vmatpush3.msra.mxu0 %v1436_v20  ;;  %v2153_v20 = vld [vmem:[#allocation7 + $0x170] sm:$0xff] }
 0x169   : > { %9081 = vmatpush3.msra.mxu1 %v1574_v24  ;;  %9038 = vmatprep.subr.mxu0 %v1435_v25  ;;  %v1892_v24 = vld [vmem:[#allocation7 + $0x68] sm:$0xff] }
 0x16a   : > { %9082 = vmatprep.subr.mxu1 %v1573_v26  ;;  %9039 = vmatpush3.msra.mxu0 %v1435_v25  ;;  %v2152_v25 = vld [vmem:[#allocation7 + $0x168] sm:$0xff] }
 0x16b   : > { %9083 = vmatpush3.msra.mxu1 %v1573_v26  ;;  %9040 = vmatprep.subr.mxu0 %v1434_v27  ;;  %v1890_v26 = vld [vmem:[#allocation7 + $0x58] sm:$0xff] }
 0x16c   : > { %9084 = vmatprep.subr.mxu1 %v1572_v30  ;;  %9041 = vmatpush3.msra.mxu0 %v1434_v27  ;;  %v2150_v27 = vld [vmem:[#allocation7 + $0x158] sm:$0xff] }
 0x16d   : > { %9085 = vmatpush3.msra.mxu1 %v1572_v30  ;;  %9042 = vmatprep.subr.mxu0 %v1433_v31  ;;  %v2149_v30 = vld [vmem:[#allocation7 + $0x150] sm:$0xff] }
 0x16e   : > { %9086 = vmatprep.subr.mxu1 %v1571_v32  ;;  %9043 = vmatpush3.msra.mxu0 %v1433_v31  ;;  %v1888_v31 = vld [vmem:[#allocation7 + $0x48] sm:$0xff] }
 0x16f   : > { %9087 = vmatpush3.msra.mxu1 %v1571_v32  ;;  %9044 = vmatprep.subr.mxu0 %v1432_v33  ;;  %v2148_v32 = vld [vmem:[#allocation7 + $0x148] sm:$0xff] }
 0x170   : > { %9088 = vmatprep.subr.mxu1 %v1570_v37  ;;  %9045 = vmatpush3.msra.mxu0 %v1432_v33  ;;  %v2147_v33 = vld [vmem:[#allocation7 + $0x140] sm:$0xff] }
 0x171   : > { %9089 = vmatpush3.msra.mxu1 %v1570_v37  ;;  %9046 = vmatprep.subr.mxu0 %v1431_v38  ;;  %v2146_v37 = vld [vmem:[#allocation7 + $0x138] sm:$0xff] }
 0x172   : > { %9090 = vmatprep.subr.mxu1 %v1569_v39  ;;  %9047 = vmatpush3.msra.mxu0 %v1431_v38  ;;  %v1885_v38 = vld [vmem:[#allocation7 + $0x30] sm:$0xff] }
 0x173   : > { %9091 = vmatpush3.msra.mxu1 %v1569_v39  ;;  %9048 = vmatprep.subr.mxu0 %v1430_v41  ;;  %v2145_v39 = vld [vmem:[#allocation7 + $0x130] sm:$0xff] }
 0x174   : > { %9092 = vmatprep.subr.mxu1 %v1568_v42  ;;  %9049 = vmatpush3.msra.mxu0 %v1430_v41  ;;  %v1884_v41 = vld [vmem:[#allocation7 + $0x28] sm:$0xff] }
 0x175   : > { %9093 = vmatpush3.msra.mxu1 %v1568_v42  ;;  %9050 = vmatprep.subr.mxu0 %v1429_v43  ;;  %v2144_v42 = vld [vmem:[#allocation7 + $0x128] sm:$0xff] }
 0x176   : > { %9094 = vmatprep.subr.mxu1 %v1567_v44  ;;  %9051 = vmatpush3.msra.mxu0 %v1429_v43  ;;  %v1898_v43 = vld [vmem:[%s11514_s20 + $0x31] sm:$0xff] }
 0x177   : > { %9095 = vmatpush3.msra.mxu1 %v1567_v44  ;;  %9052 = vmatprep.subr.mxu0 %v1428_v45  ;;  %v1883_v44 = vld [vmem:[#allocation7 + $0x20] sm:$0xff] }
 0x178   : > { %9096 = vmatprep.subr.mxu1 %v1566_v46  ;;  %9053 = vmatpush3.msra.mxu0 %v1428_v45  ;;  %v2143_v45 = vld [vmem:[#allocation7 + $0x120] sm:$0xff] }
 0x179   : > { %9054 = vmatprep.mubr.f32.mxu0 %v11558_v55  ;;  %9097 = vmatpush3.msra.mxu1 %v1566_v46  ;;  %v1716_v55 = vld [vmem:[#allocation5 + $0x460] sm:$0xff] }
 0x17a   : > { %9055 = vmatmul.mubr.f32.vlgmr.msra.gmra.mxu0 %v11564_v59  ;;  %9098 = vmatprep.mubr.f32.mxu1 %v11555_v54  ;;  %v1916_v54 = vld [vmem:[#allocation7 + $0xe0] sm:$0xff]  ;;  %v1915_v59 = vld [vmem:[#allocation7 + $0xd8] sm:$0xff] }
 0x17b   : > { %9110 = vmatprep.subr.mxu0 %v1719_v47  ;;  %9154 = vmatprep.subr.mxu1 %v1919_v48  ;;  %v1899_v46 = vld [vmem:[%s11514_s20 + $0x41] sm:$0xff] }
 0x17c   : > { %9099 = vmatmul.mubr.f32.vlgmr.msra.gmra.mxu1 %v11561_v58  ;;  %9111 = vmatpush3.msra.mxu0 %v1719_v47  ;;  %v1715_v58 = vld [vmem:[#allocation5 + $0x458] sm:$0xff] }
 0x17d   : > { %9155 = vmatpush3.msra.mxu1 %v1919_v48  ;;  %9112 = vmatprep.subr.mxu0 %v1718_v49  ;;  %v1882_v47 = vld [vmem:[#allocation7 + $0x18] sm:$0xff] }
 0x17e   : > { %9156 = vmatprep.subr.mxu1 %v1918_v50  ;;  %9057 = vmatprep.mubr.f32.mxu0 %v11574_v63  ;;  %v1714_v63 = vld [vmem:[#allocation5 + $0x450] sm:$0xff]  ;;  %v2142_v48 = vld [vmem:[#allocation7 + $0x118] sm:$0xff] }
 0x17f   : > { %9113 = vmatpush3.msra.mxu0 %v1718_v49  ;;  %9157 = vmatpush3.msra.mxu1 %v1918_v50  ;;  %v1900_v49 = vld [vmem:[%s11514_s20 + $0x51] sm:$0xff] }
 0x180   : > { %9058 = vmatmul.mubr.f32.gmra.mxu0 %v11580_v3  ;;  %9114 = vmatprep.subr.mxu0 %v1717_v51  ;;  %v1914_v3 = vld [vmem:[#allocation7 + $0xd0] sm:$0xff] }
 0x181   : > { %9158 = vmatprep.subr.mxu1 %v1917_v52  ;;  %9101 = vmatprep.mubr.f32.mxu1 %v11571_v62  ;;  %v7677_v62 = vld [vmem:[%s11514_s20 + $0xa1] sm:$0xff]  ;;  %v1881_v50 = vld [vmem:[#allocation7 + $0x10] sm:$0xff] }
 0x182   : > { %9115 = vmatpush3.msra.mxu0 %v1717_v51  ;;  %9159 = vmatpush3.msra.mxu1 %v1917_v52  ;;  %v2141_v51 = vld [vmem:[#allocation7 + $0x110] sm:$0xff]  ;;  %v1901_v52 = vld [vmem:[%s11514_s20 + $0x61] sm:$0xff] }
 0x183   : > { %9116 = vmatprep.subr.mxu0 %v1716_v55  ;;  %9102 = vmatmul.mubr.f32.gmra.mxu1 %v11577_v2  ;;  %v1713_v2 = vld [vmem:[#allocation5 + $0x448] sm:$0xff] }
 0x184   : > { %9160 = vmatprep.subr.mxu1 %v1916_v54  ;;  %9060 = vmatprep.mubr.f32.mxu0 %v11590_v7  ;;  %v1913_v7 = vld [vmem:[#allocation7 + $0xc8] sm:$0xff] }
 0x185   : > { %9117 = vmatpush3.msra.mxu0 %v1716_v55  ;;  %9161 = vmatpush3.msra.mxu1 %v1916_v54  ;;  %v1880_v55 = vld [vmem:[#allocation7 + $0x8] sm:$0xff] }
 0x186   : > { %9061 = vmatmul.mubr.f32.gmra.mxu0 %v11596_v11  ;;  %9118 = vmatprep.subr.mxu0 %v1715_v58  ;;  %v1712_v11 = vld [vmem:[#allocation5 + $0x440] sm:$0xff]  ;;  %v2140_v54 = vld [vmem:[#allocation7 + $0x108] sm:$0xff] }
 0x187   : > { %9162 = vmatprep.subr.mxu1 %v1915_v59  ;;  %9104 = vmatprep.mubr.f32.mxu1 %v11587_v6  ;;  %v1912_v6 = vld [vmem:[#allocation7 + $0xc0] sm:$0xff] }
 0x188   : > { %9119 = vmatpush3.msra.mxu0 %v1715_v58  ;;  %9163 = vmatpush3.msra.mxu1 %v1915_v59  ;;  %v1902_v58 = vld [vmem:[%s11514_s20 + $0x71] sm:$0xff] }
 0x189   : > { %9120 = vmatprep.subr.mxu0 %v1714_v63  ;;  %9105 = vmatmul.mubr.f32.gmra.mxu1 %v11593_v10  ;;  %v1911_v10 = vld [vmem:[#allocation7 + $0xb8] sm:$0xff] }
 0x18a   : > { %9164 = vmatprep.subr.mxu1 %v1914_v3  ;;  %9063 = vmatprep.mubr.f32.mxu0 %v11638_v40  ;;  %v1710_v40 = vld [vmem:[#allocation5 + $0x430] sm:$0xff] }
 0x18b   : > { %9121 = vmatpush3.msra.mxu0 %v1714_v63  ;;  %9165 = vmatpush3.msra.mxu1 %v1914_v3 }
 0x18c   : > { %9064 = vmatmul.mubr.f32.gmra.mxu0 %v7677_v62  ;;  %9122 = vmatprep.subr.mxu0 %v1713_v2  ;;  %v1879_v62 = vld [vmem:[#allocation7] sm:$0xff] }
 0x18d   : > { %9166 = vmatprep.subr.mxu1 %v1913_v7  ;;  %9107 = vmatprep.mubr.f32.mxu1 %v11654_v17  ;;  %v2154_v17 = vld [vmem:[#allocation7 + $0x178] sm:$0xff] }
 0x18e   : > { %9123 = vmatpush3.msra.mxu0 %v1713_v2  ;;  %9167 = vmatpush3.msra.mxu1 %v1913_v7  ;;  %v2139_v2 = vld [vmem:[#allocation7 + $0x100] sm:$0xff] }
 0x18f   : > { %9124 = vmatprep.subr.mxu0 %v1712_v11  ;;  %9108 = vmatmul.mubr.f32.gmra.mxu1 %v7685_v53  ;;  %v1871_v7 = vld [vmem:[%s11514_s20] sm:$0xff] }
 0x190   : > { %9168 = vmatprep.subr.mxu1 %v1912_v6  ;;  %9125 = vmatpush3.msra.mxu0 %v1712_v11  ;;  %v11700_v11 = vld [vmem:[%s11514_s20 + $0x10] sm:$0xff]  ;;  %v2130_v53 = vld [vmem:[%s11514_s20 + $0x2] sm:$0xff] }
 0x191   : > { %9169 = vmatpush3.msra.mxu1 %v1912_v6  ;;  %9126 = vmatprep.subr.mxu0 %v1711_v56  ;;  %v2292_v6 = vld [vmem:[#allocation7 + $0x1f8] sm:$0xff] }
 0x192   : > { %9170 = vmatprep.subr.mxu1 %v1911_v10  ;;  %9127 = vmatpush3.msra.mxu0 %v1711_v56  ;;  %v2430_v56 = vld [vmem:[#allocation7 + $0x278] sm:$0xff] }
 0x193   : > { %9171 = vmatpush3.msra.mxu1 %v1911_v10  ;;  %9128 = vmatprep.subr.mxu0 %v1710_v40  ;;  %v2131_v10 = vld [vmem:[%s11514_s20 + $0x12] sm:$0xff] }
 0x194   : > { %9172 = vmatprep.subr.mxu1 %v1910_v57  ;;  %9129 = vmatpush3.msra.mxu0 %v1710_v40  ;;  %v2291_v40 = vld [vmem:[#allocation7 + $0x1f0] sm:$0xff] }
 0x195   : > { %9173 = vmatpush3.msra.mxu1 %v1910_v57  ;;  %9130 = vmatprep.subr.mxu0 %v1709_v60  ;;  %v2429_v57 = vld [vmem:[#allocation7 + $0x270] sm:$0xff] }
 0x196   : > { %9174 = vmatprep.subr.mxu1 %v1909_v61  ;;  %9131 = vmatpush3.msra.mxu0 %v1709_v60  ;;  %v11706_v60 = vld [vmem:[%s11514_s20 + $0x20] sm:$0xff] }
 0x197   : > { %9175 = vmatpush3.msra.mxu1 %v1909_v61  ;;  %9132 = vmatprep.subr.mxu0 %v1708_v0  ;;  %v11709_v61 = vld [vmem:[%s11514_s20 + $0x30] sm:$0xff] }
 0x198   : > { %9176 = vmatprep.subr.mxu1 %v1908_v1  ;;  %9133 = vmatpush3.msra.mxu0 %v1708_v0  ;;  %v2290_v0 = vld [vmem:[#allocation7 + $0x1e8] sm:$0xff] }
 0x199   : > { %9177 = vmatpush3.msra.mxu1 %v1908_v1  ;;  %9134 = vmatprep.subr.mxu0 %v1707_v4  ;;  %v2428_v1 = vld [vmem:[#allocation7 + $0x268] sm:$0xff] }
 0x19a   : > { %9178 = vmatprep.subr.mxu1 %v1907_v5  ;;  %9135 = vmatpush3.msra.mxu0 %v1707_v4  ;;  %v2132_v4 = vld [vmem:[%s11514_s20 + $0x22] sm:$0xff] }
 0x19b   : > { %9179 = vmatpush3.msra.mxu1 %v1907_v5  ;;  %9136 = vmatprep.subr.mxu0 %v1706_v8  ;;  %v2289_v5 = vld [vmem:[#allocation7 + $0x1e0] sm:$0xff] }
 0x19c   : > { %9180 = vmatprep.subr.mxu1 %v1906_v9  ;;  %9137 = vmatpush3.msra.mxu0 %v1706_v8  ;;  %v2133_v8 = vld [vmem:[%s11514_s20 + $0x32] sm:$0xff] }
 0x19d   : > { %9181 = vmatpush3.msra.mxu1 %v1906_v9  ;;  %9138 = vmatprep.subr.mxu0 %v1705_v34  ;;  %v2427_v9 = vld [vmem:[#allocation7 + $0x260] sm:$0xff] }
 0x19e   : > { %9182 = vmatprep.subr.mxu1 %v1905_v12  ;;  %9139 = vmatpush3.msra.mxu0 %v1705_v34  ;;  %v11716_v34 = vld [vmem:[%s11514_s20 + $0x40] sm:$0xff] }
 0x19f   : > { %9183 = vmatpush3.msra.mxu1 %v1905_v12  ;;  %9140 = vmatprep.subr.mxu0 %v1704_v13  ;;  %v11719_v12 = vld [vmem:[%s11514_s20 + $0x50] sm:$0xff] }
 0x1a0   : > { %9184 = vmatprep.subr.mxu1 %v1904_v14  ;;  %9141 = vmatpush3.msra.mxu0 %v1704_v13  ;;  %v2288_v13 = vld [vmem:[#allocation7 + $0x1d8] sm:$0xff] }
 0x1a1   : > { %9142 = vmatprep.mubr.f32.mxu0 %v11610_v22  ;;  %9185 = vmatpush3.msra.mxu1 %v1904_v14  ;;  %v1891_v22 = vld [vmem:[#allocation7 + $0x60] sm:$0xff]  ;;  %v2426_v14 = vld [vmem:[#allocation7 + $0x258] sm:$0xff] }
 0x1a2   : > { %9143 = vmatmul.mubr.f32.vlgmr.msra.gmra.mxu0 %v11613_v23  ;;  %9186 = vmatprep.mubr.f32.mxu1 %v1895_v15  ;;  %v2151_v23 = vld [vmem:[#allocation7 + $0x160] sm:$0xff] }
 0x1a3   : > { %9198 = vmatprep.subr.mxu0 %v1894_v16  ;;  %9242 = vmatprep.subr.mxu1 %v2154_v17  ;;  %v2134_v15 = vld [vmem:[%s11514_s20 + $0x42] sm:$0xff] }
 0x1a4   : > { %9187 = vmatmul.mubr.f32.vlgmr.msra.gmra.mxu1 %v1896_v18  ;;  %9199 = vmatpush3.msra.mxu0 %v1894_v16  ;;  %v2287_v16 = vld [vmem:[#allocation7 + $0x1d0] sm:$0xff] }
 0x1a5   : > { %9243 = vmatpush3.msra.mxu1 %v2154_v17  ;;  %9200 = vmatprep.subr.mxu0 %v1893_v19 }
 0x1a6   : > { %9244 = vmatprep.subr.mxu1 %v2153_v20  ;;  %9145 = vmatprep.mubr.f32.mxu0 %v11619_v28  ;;  %v1889_v28 = vld [vmem:[#allocation7 + $0x50] sm:$0xff] }
 0x1a7   : > { %9201 = vmatpush3.msra.mxu0 %v1893_v19  ;;  %9245 = vmatpush3.msra.mxu1 %v2153_v20  ;;  %v2135_v19 = vld [vmem:[%s11514_s20 + $0x52] sm:$0xff] }
 0x1a8   : > { %9146 = vmatmul.mubr.f32.gmra.mxu0 %v11622_v29  ;;  %9202 = vmatprep.subr.mxu0 %v1892_v24  ;;  %v7693_v29 = vld [vmem:[%s11514_s20 + $0xa3] sm:$0xff]  ;;  %v2425_v20 = vld [vmem:[#allocation7 + $0x250] sm:$0xff] }
 0x1a9   : > { %9246 = vmatprep.subr.mxu1 %v2152_v25  ;;  %9203 = vmatpush3.msra.mxu0 %v1892_v24  ;;  %v11730_v24 = vld [vmem:[%s11514_s20 + $0x60] sm:$0xff] }
 0x1aa   : > { %9247 = vmatpush3.msra.mxu1 %v2152_v25  ;;  %9204 = vmatprep.subr.mxu0 %v1891_v22 }
 0x1ab   : > { %9248 = vmatprep.subr.mxu1 %v2151_v23  ;;  %9148 = vmatprep.mubr.f32.mxu0 %v11629_v35  ;;  %v1887_v35 = vld [vmem:[#allocation7 + $0x40] sm:$0xff] }
 0x1ac   : > { %9205 = vmatpush3.msra.mxu0 %v1891_v22  ;;  %9249 = vmatpush3.msra.mxu1 %v2151_v23  ;;  %v11733_v23 = vld [vmem:[%s11514_s20 + $0x70] sm:$0xff] }
 0x1ad   : > { %9149 = vmatmul.mubr.f32.gmra.mxu0 %v11632_v36  ;;  %9206 = vmatprep.subr.mxu0 %v1890_v26  ;;  %v1886_v36 = vld [vmem:[#allocation7 + $0x38] sm:$0xff] }
 0x1ae   : > { %9250 = vmatprep.subr.mxu1 %v2150_v27  ;;  %9207 = vmatpush3.msra.mxu0 %v1890_v26 }
 0x1af   : > { %9251 = vmatpush3.msra.mxu1 %v2150_v27  ;;  %9208 = vmatprep.subr.mxu0 %v1889_v28  ;;  %v2286_v27 = vld [vmem:[#allocation7 + $0x1c8] sm:$0xff] }
 0x1b0   : > { %9252 = vmatprep.subr.mxu1 %v2149_v30  ;;  %9151 = vmatprep.mubr.f32.mxu0 %v11660_v21  ;;  %v1897_v21 = vld [vmem:[%s11514_s20 + $0x21] sm:$0xff] }
 0x1b1   : > { %9209 = vmatpush3.msra.mxu0 %v1889_v28  ;;  %9253 = vmatpush3.msra.mxu1 %v2149_v30  ;;  %v2424_v28 = vld [vmem:[#allocation7 + $0x248] sm:$0xff] }
 0x1b2   : > { %9152 = vmatmul.mubr.f32.gmra.mxu0 %v7693_v29  ;;  %9210 = vmatprep.subr.mxu0 %v1888_v31 }
 0x1b3   : > { %9254 = vmatprep.subr.mxu1 %v2148_v32  ;;  %9211 = vmatpush3.msra.mxu0 %v1888_v31  ;;  %v2136_v31 = vld [vmem:[%s11514_s20 + $0x62] sm:$0xff] }
 0x1b4   : > { %9255 = vmatpush3.msra.mxu1 %v2148_v32  ;;  %9212 = vmatprep.subr.mxu0 %v1887_v35  ;;  %v2285_v32 = vld [vmem:[#allocation7 + $0x1c0] sm:$0xff] }
 0x1b5   : > { %9256 = vmatprep.subr.mxu1 %v2147_v33  ;;  %9213 = vmatpush3.msra.mxu0 %v1887_v35  ;;  %v2137_v35 = vld [vmem:[%s11514_s20 + $0x72] sm:$0xff] }
 0x1b6   : > { %9257 = vmatpush3.msra.mxu1 %v2147_v33  ;;  %9214 = vmatprep.subr.mxu0 %v1886_v36  ;;  %v2423_v33 = vld [vmem:[#allocation7 + $0x240] sm:$0xff] }
 0x1b7   : > { %9258 = vmatprep.subr.mxu1 %v2146_v37  ;;  %9215 = vmatpush3.msra.mxu0 %v1886_v36 }
 0x1b8   : > { %9259 = vmatpush3.msra.mxu1 %v2146_v37  ;;  %9216 = vmatprep.subr.mxu0 %v1885_v38 }
 0x1b9   : > { %9260 = vmatprep.subr.mxu1 %v2145_v39  ;;  %9217 = vmatpush3.msra.mxu0 %v1885_v38  ;;  %v2284_v38 = vld [vmem:[#allocation7 + $0x1b8] sm:$0xff] }
 0x1ba   : > { %9261 = vmatpush3.msra.mxu1 %v2145_v39  ;;  %9189 = vmatprep.mubr.f32.mxu1 %v1897_v21  ;;  %v2422_v39 = vld [vmem:[#allocation7 + $0x238] sm:$0xff] }
 0x1bb   : > { %9218 = vmatprep.subr.mxu0 %v1884_v41  ;;  %9262 = vmatprep.subr.mxu1 %v2144_v42 }
 0x1bc   : > { %9190 = vmatmul.mubr.f32.gmra.mxu1 %v1898_v43  ;;  %9219 = vmatpush3.msra.mxu0 %v1884_v41  ;;  %v2283_v43 = vld [vmem:[#allocation7 + $0x1b0] sm:$0xff] }
 0x1bd   : > { %9263 = vmatpush3.msra.mxu1 %v2144_v42  ;;  %9220 = vmatprep.subr.mxu0 %v1883_v44 }
 0x1be   : > { %9264 = vmatprep.subr.mxu1 %v2143_v45  ;;  %9221 = vmatpush3.msra.mxu0 %v1883_v44  ;;  %v2421_v44 = vld [vmem:[#allocation7 + $0x230] sm:$0xff] }
 0x1bf   : > { %9265 = vmatpush3.msra.mxu1 %v2143_v45  ;;  %9192 = vmatprep.mubr.f32.mxu1 %v1899_v46  ;;  %v2282_v45 = vld [vmem:[#allocation7 + $0x1a8] sm:$0xff] }
 0x1c0   : > { %9222 = vmatprep.subr.mxu0 %v1882_v47  ;;  %9266 = vmatprep.subr.mxu1 %v2142_v48  ;;  %v2420_v46 = vld [vmem:[#allocation7 + $0x228] sm:$0xff] }
 0x1c1   : > { %9193 = vmatmul.mubr.f32.gmra.mxu1 %v1900_v49  ;;  %9223 = vmatpush3.msra.mxu0 %v1882_v47  ;;  %v2281_v49 = vld [vmem:[#allocation7 + $0x1a0] sm:$0xff] }
 0x1c2   : > { %9267 = vmatpush3.msra.mxu1 %v2142_v48  ;;  %9224 = vmatprep.subr.mxu0 %v1881_v50  ;;  %v8792_v59 = vpop.f32.mrf.mxu0 }
 0x1c3   : > { %9268 = vmatprep.subr.mxu1 %v2141_v51  ;;  %v8836_v63 = vpop.f32.mrf.mxu1  ;;  %9225 = vmatpush3.msra.mxu0 %v1881_v50  ;;  %v2419_v50 = vld [vmem:[#allocation7 + $0x220] sm:$0xff] }
 0x1c4   : > { %9269 = vmatpush3.msra.mxu1 %v2141_v51  ;;  %v11696_v3 = vadd.f32 %v8836_v63, %v8792_v59  ;;  %9195 = vmatprep.mubr.f32.mxu1 %v1901_v52  ;;  %v11724_v17 = vpop.f32.mrf.mxu0  ;;  %v2417_v59 = vld [vmem:[#allocation7 + $0x210] sm:$0xff] }
 0x1c5   : > { %9226 = vmatprep.subr.mxu0 %v1880_v55  ;;  %9270 = vmatprep.subr.mxu1 %v2140_v54  ;;  %v11726_v18 = vpop.f32.mrf.mxu1 }
 0x1c6   : > { %9196 = vmatmul.mubr.f32.gmra.mxu1 %v1902_v58  ;;  %9227 = vmatpush3.msra.mxu0 %v1880_v55  ;;  %v2280_v55 = vld [vmem:[#allocation7 + $0x198] sm:$0xff]  ;;  %v2279_v58 = vld [vmem:[#allocation7 + $0x190] sm:$0xff] }
 0x1c7   : > { %9271 = vmatpush3.msra.mxu1 %v2140_v54  ;;  %9228 = vmatprep.subr.mxu0 %v1879_v62  ;;  %v2418_v54 = vld [vmem:[#allocation7 + $0x218] sm:$0xff] }
 0x1c8   : > { %9272 = vmatprep.subr.mxu1 %v2139_v2  ;;  %9229 = vmatpush3.msra.mxu0 %v1879_v62 }
 0x1c9   : > { %9230 = vmatprep.mubr.f32.mxu0 %v1871_v7  ;;  %9273 = vmatpush3.msra.mxu1 %v2139_v2  ;;  %v2278_v2 = vld [vmem:[#allocation7 + $0x188] sm:$0xff] }
 0x1ca   : > { %9231 = vmatmul.mubr.f32.vlgmr.msra.gmra.mxu0 %v11700_v11  ;;  %9274 = vmatprep.mubr.f32.mxu1 %v2130_v53  ;;  %v2416_v7 = vld [vmem:[#allocation7 + $0x208] sm:$0xff] }
 0x1cb   : > { %9286 = vmatprep.subr.mxu0 %v2292_v6  ;;  %9330 = vmatprep.subr.mxu1 %v2430_v56 }
 0x1cc   : > { %9275 = vmatmul.mubr.f32.vlgmr.msra.gmra.mxu1 %v2131_v10  ;;  %9287 = vmatpush3.msra.mxu0 %v2292_v6  ;;  %v2277_v10 = vld [vmem:[#allocation7 + $0x180] sm:$0xff] }
 0x1cd   : > { %9331 = vmatpush3.msra.mxu1 %v2430_v56  ;;  %9288 = vmatprep.subr.mxu0 %v2291_v40 }
 0x1ce   : > { %9332 = vmatprep.subr.mxu1 %v2429_v57  ;;  %9233 = vmatprep.mubr.f32.mxu0 %v11706_v60 }
 0x1cf   : > { %9289 = vmatpush3.msra.mxu0 %v2291_v40  ;;  %9333 = vmatpush3.msra.mxu1 %v2429_v57  ;;  %v2415_v40 = vld [vmem:[#allocation7 + $0x200] sm:$0xff] }
 0x1d0   : > { %9234 = vmatmul.mubr.f32.gmra.mxu0 %v11709_v61  ;;  %9290 = vmatprep.subr.mxu0 %v2290_v0 }
 0x1d1   : > { %9334 = vmatprep.subr.mxu1 %v2428_v1  ;;  %9277 = vmatprep.mubr.f32.mxu1 %v2132_v4  ;;  %v2568_v4 = vld [vmem:[#allocation7 + $0x2f8] sm:$0xff] }
 0x1d2   : > { %9291 = vmatpush3.msra.mxu0 %v2290_v0  ;;  %9335 = vmatpush3.msra.mxu1 %v2428_v1  ;;  %v2268_v0 = vld [vmem:[%s11514_s20 + $0x3] sm:$0xff]  ;;  %v2269_v1 = vld [vmem:[%s11514_s20 + $0x13] sm:$0xff] }
 0x1d3   : > { %9292 = vmatprep.subr.mxu0 %v2289_v5  ;;  %9278 = vmatmul.mubr.f32.gmra.mxu1 %v2133_v8 }
 0x1d4   : > { %9336 = vmatprep.subr.mxu1 %v2427_v9  ;;  %9236 = vmatprep.mubr.f32.mxu0 %v11716_v34 }
 0x1d5   : > { %9293 = vmatpush3.msra.mxu0 %v2289_v5  ;;  %9337 = vmatpush3.msra.mxu1 %v2427_v9  ;;  %v2698_v9 = vld [vmem:[#allocation7 + $0x378] sm:$0xff] }
 0x1d6   : > { %9237 = vmatmul.mubr.f32.gmra.mxu0 %v11719_v12  ;;  %9294 = vmatprep.subr.mxu0 %v2288_v13 }
 0x1d7   : > { %9338 = vmatprep.subr.mxu1 %v2426_v14  ;;  %9280 = vmatprep.mubr.f32.mxu1 %v2134_v15  ;;  %v8795_v25 = vpop.f32.mrf.mxu0 }
 0x1d8   : > { %9295 = vmatpush3.msra.mxu0 %v2288_v13  ;;  %v8839_v22 = vpop.f32.mrf.mxu1  ;;  %9339 = vmatpush3.msra.mxu1 %v2426_v14  ;;  %v11768_v13 = vld [vmem:[%s11514_s20 + $0x14] sm:$0xff] }
 0x1d9   : > { %9296 = vmatprep.subr.mxu0 %v2287_v16  ;;  %v11735_v26 = vadd.f32 %v8839_v22, %v8795_v25  ;;  %9281 = vmatmul.mubr.f32.gmra.mxu1 %v2135_v19  ;;  %v11737_v30 = vpop.f32.mrf.mxu0  ;;  %v2697_v19 = vld [vmem:[#allocation7 + $0x370] sm:$0xff] }
 0x1da   : > { %9340 = vmatprep.subr.mxu1 %v2425_v20  ;;  %v11739_v29 = vpop.f32.mrf.mxu1  ;;  %9239 = vmatprep.mubr.f32.mxu0 %v11730_v24  ;;  %v2271_v22 = vld [vmem:[%s11514_s20 + $0x33] sm:$0xff] }
 0x1db   : > { %9297 = vmatpush3.msra.mxu0 %v2287_v16  ;;  %9341 = vmatpush3.msra.mxu1 %v2425_v20  ;;  %v2567_v16 = vld [vmem:[#allocation7 + $0x2f0] sm:$0xff]  ;;  %v2270_v20 = vld [vmem:[%s11514_s20 + $0x23] sm:$0xff] }
 0x1dc   : > { %9240 = vmatmul.mubr.f32.gmra.mxu0 %v11733_v23  ;;  %9298 = vmatprep.subr.mxu0 %v2286_v27 }
 0x1dd   : > { %9342 = vmatprep.subr.mxu1 %v2424_v28  ;;  %9283 = vmatprep.mubr.f32.mxu1 %v2136_v31  ;;  %v8798_v36 = vpop.f32.mrf.mxu0 }
 0x1de   : > { %9299 = vmatpush3.msra.mxu0 %v2286_v27  ;;  %v8842_v37 = vpop.f32.mrf.mxu1  ;;  %9343 = vmatpush3.msra.mxu1 %v2424_v28  ;;  %v2696_v28 = vld [vmem:[#allocation7 + $0x368] sm:$0xff] }
 0x1df   : > { %9300 = vmatprep.subr.mxu0 %v2285_v32  ;;  %v11745_v21 = vadd.f32 %v8842_v37, %v8798_v36  ;;  %9284 = vmatmul.mubr.f32.gmra.mxu1 %v2137_v35  ;;  %v11747_v41 = vpop.f32.mrf.mxu0  ;;  %v11781_v35 = vld [vmem:[%s11514_s20 + $0x24] sm:$0xff] }
 0x1e0   : > { %9344 = vmatprep.subr.mxu1 %v2423_v33  ;;  %v11749_v42 = vpop.f32.mrf.mxu1  ;;  %9301 = vmatpush3.msra.mxu0 %v2285_v32  ;;  %v2565_v36 = vld [vmem:[#allocation7 + $0x2e0] sm:$0xff] }
 0x1e1   : > { %9345 = vmatpush3.msra.mxu1 %v2423_v33  ;;  %9302 = vmatprep.subr.mxu0 %v2284_v38 }
 0x1e2   : > { %9346 = vmatprep.subr.mxu1 %v2422_v39  ;;  %9303 = vmatpush3.msra.mxu0 %v2284_v38  ;;  %v11787_v38 = vld [vmem:[%s11514_s20 + $0x34] sm:$0xff] }
 0x1e3   : > { %9347 = vmatpush3.msra.mxu1 %v2422_v39  ;;  %9304 = vmatprep.subr.mxu0 %v2283_v43  ;;  %v8801_v47 = vpop.f32.mrf.mxu0  ;;  %v2695_v39 = vld [vmem:[#allocation7 + $0x360] sm:$0xff] }
 0x1e4   : > { %9348 = vmatprep.subr.mxu1 %v2421_v44  ;;  %v8845_v48 = vpop.f32.mrf.mxu1  ;;  %9305 = vmatpush3.msra.mxu0 %v2283_v43  ;;  %v2272_v43 = vld [vmem:[%s11514_s20 + $0x43] sm:$0xff] }
 0x1e5   : > { %9349 = vmatpush3.msra.mxu1 %v2421_v44  ;;  %v11751_v51 = vadd.f32 %v8845_v48, %v8801_v47  ;;  %9306 = vmatprep.subr.mxu0 %v2282_v45  ;;  %v11753_v52 = vpop.f32.mrf.mxu0  ;;  %v2694_v47 = vld [vmem:[#allocation7 + $0x358] sm:$0xff] }
 0x1e6   : > { %9350 = vmatprep.subr.mxu1 %v2420_v46  ;;  %9307 = vmatpush3.msra.mxu0 %v2282_v45  ;;  %v11755_v63 = vpop.f32.mrf.mxu1  ;;  %v2273_v45 = vld [vmem:[%s11514_s20 + $0x53] sm:$0xff] }
 0x1e7   : > { %9351 = vmatpush3.msra.mxu1 %v2420_v46  ;;  %9308 = vmatprep.subr.mxu0 %v2281_v49  ;;  %v2564_v46 = vld [vmem:[#allocation7 + $0x2d8] sm:$0xff] }
 0x1e8   : > { %9352 = vmatprep.subr.mxu1 %v2419_v50  ;;  %9309 = vmatpush3.msra.mxu0 %v2281_v49 }
 0x1e9   : > { %9353 = vmatpush3.msra.mxu1 %v2419_v50  ;;  %9310 = vmatprep.subr.mxu0 %v2280_v55  ;;  %v11798_v50 = vld [vmem:[%s11514_s20 + $0x44] sm:$0xff] }
 0x1ea   : > { %9354 = vmatprep.subr.mxu1 %v2418_v54  ;;  %v8880_v62 = vpop.f32.mrf.mxu0  ;;  %9311 = vmatpush3.msra.mxu0 %v2280_v55 }
 0x1eb   : > { %9355 = vmatpush3.msra.mxu1 %v2418_v54  ;;  %v1005_v53 = vadd.f32 %v8880_v62, %v11696_v3  ;;  %9312 = vmatprep.subr.mxu0 %v2279_v58  ;;  %v2406_v3 = vld [vmem:[%s11514_s20 + $0x4] sm:$0xff]  ;;  %v2563_v54 = vld [vmem:[#allocation7 + $0x2d0] sm:$0xff] }
 0x1ec   : > { %9356 = vmatprep.subr.mxu1 %v2417_v59  ;;  %v8924_v6 = vpop.f32.mrf.mxu1  ;;  %v11758_v56 = vpop.f32.mrf.mxu0  ;;  %9313 = vmatpush3.msra.mxu0 %v2279_v58  ;;  %v11802_v58 = vld [vmem:[%s11514_s20 + $0x54] sm:$0xff]  ;;  %v2274_v62 = vld [vmem:[%s11514_s20 + $0x63] sm:$0xff] }
 0x1ed   : > { %9357 = vmatpush3.msra.mxu1 %v2417_v59  ;;  %v11760_v57 = vadd.f32 %v8924_v6, %v1005_v53  ;;  %9314 = vmatprep.subr.mxu0 %v2278_v2  ;;  %v2693_v59 = vld [vmem:[#allocation7 + $0x350] sm:$0xff]  ;;  %v2692_v6 = vld [vmem:[#allocation7 + $0x348] sm:$0xff] }
 0x1ee   : > { %9358 = vmatprep.subr.mxu1 %v2416_v7  ;;  %9315 = vmatpush3.msra.mxu0 %v2278_v2  ;;  %v11765_v5 = vpop.f32.mrf.mxu1 }
 0x1ef   : > { %9359 = vmatpush3.msra.mxu1 %v2416_v7  ;;  %9316 = vmatprep.subr.mxu0 %v2277_v10  ;;  %v2275_v7 = vld [vmem:[%s11514_s20 + $0x73] sm:$0xff] }
 0x1f0   : > { %9360 = vmatprep.subr.mxu1 %v2415_v40  ;;  %v8883_v8 = vpop.f32.mrf.mxu0  ;;  %9317 = vmatpush3.msra.mxu0 %v2277_v10  ;;  %v11811_v10 = vld [vmem:[%s11514_s20 + $0x64] sm:$0xff] }
 0x1f1   : > { %9318 = vmatprep.mubr.f32.mxu0 %v2268_v0  ;;  %v1007_v14 = vadd.f32 %v8883_v8, %v11735_v26  ;;  %9361 = vmatpush3.msra.mxu1 %v2415_v40  ;;  %v2566_v26 = vld [vmem:[#allocation7 + $0x2e8] sm:$0xff]  ;;  %v2561_v40 = vld [vmem:[#allocation7 + $0x2c0] sm:$0xff]  ;;  %v11814_v0 = vld [vmem:[%s11514_s20 + $0x74] sm:$0xff] }
 0x1f2   : > { %9319 = vmatmul.mubr.f32.vlgmr.msra.gmra.mxu0 %v2269_v1  ;;  %v11771_v15 = vpop.f32.mrf.mxu0  ;;  %9362 = vmatprep.mubr.f32.mxu1 %v2406_v3  ;;  %v2691_v1 = vld [vmem:[#allocation7 + $0x340] sm:$0xff]  ;;  %v2560_v3 = vld [vmem:[#allocation7 + $0x2b8] sm:$0xff]  ;;  %v2559_v8 = vld [vmem:[#allocation7 + $0x2b0] sm:$0xff] }
 0x1f3   : > { %9374 = vmatprep.subr.mxu0 %v2568_v4  ;;  %9418 = vmatprep.subr.mxu1 %v2698_v9  ;;  %v8927_v25 = vpop.f32.mrf.mxu1 }
 0x1f4   : > { %9363 = vmatmul.mubr.f32.vlgmr.msra.gmra.mxu1 %v11768_v13  ;;  %9375 = vmatpush3.msra.mxu0 %v2568_v4  ;;  %v11776_v27 = vadd.f32 %v8927_v25, %v1007_v14  ;;  %v2690_v4 = vld [vmem:[#allocation7 + $0x338] sm:$0xff]  ;;  %v2558_v14 = vld [vmem:[#allocation7 + $0x2a8] sm:$0xff] }
 0x1f5   : > { %9419 = vmatpush3.msra.mxu1 %v2698_v9  ;;  %9376 = vmatprep.subr.mxu0 %v2567_v16  ;;  %v11778_v32 = vpop.f32.mrf.mxu1  ;;  %v2689_v9 = vld [vmem:[#allocation7 + $0x330] sm:$0xff]  ;;  %v2556_v25 = vld [vmem:[#allocation7 + $0x298] sm:$0xff] }
 0x1f6   : > { %9420 = vmatprep.subr.mxu1 %v2697_v19  ;;  %v8886_v31 = vpop.f32.mrf.mxu0  ;;  %9321 = vmatprep.mubr.f32.mxu0 %v2270_v20  ;;  %v2687_v20 = vld [vmem:[#allocation7 + $0x320] sm:$0xff] }
 0x1f7   : > { %9377 = vmatpush3.msra.mxu0 %v2567_v16  ;;  %v1009_v33 = vadd.f32 %v8886_v31, %v11745_v21  ;;  %9421 = vmatpush3.msra.mxu1 %v2697_v19  ;;  %v2688_v16 = vld [vmem:[#allocation7 + $0x328] sm:$0xff]  ;;  %v2557_v19 = vld [vmem:[#allocation7 + $0x2a0] sm:$0xff]  ;;  %v2685_v31 = vld [vmem:[#allocation7 + $0x310] sm:$0xff] }
 0x1f8   : > { %9322 = vmatmul.mubr.f32.gmra.mxu0 %v2271_v22  ;;  %v11784_v37 = vpop.f32.mrf.mxu0  ;;  %9378 = vmatprep.subr.mxu0 %v2566_v26  ;;  %v2686_v22 = vld [vmem:[#allocation7 + $0x318] sm:$0xff] }
 0x1f9   : > { %9422 = vmatprep.subr.mxu1 %v2696_v28  ;;  %9365 = vmatprep.mubr.f32.mxu1 %v11781_v35  ;;  %v8930_v44 = vpop.f32.mrf.mxu1 }
 0x1fa   : > { %9379 = vmatpush3.msra.mxu0 %v2566_v26  ;;  %9423 = vmatpush3.msra.mxu1 %v2696_v28  ;;  %v11792_v21 = vadd.f32 %v8930_v44, %v1009_v33  ;;  %v2555_v28 = vld [vmem:[#allocation7 + $0x290] sm:$0xff] }
 0x1fb   : > { %9380 = vmatprep.subr.mxu0 %v2565_v36  ;;  %9366 = vmatmul.mubr.f32.gmra.mxu1 %v11787_v38  ;;  %v11795_v49 = vpop.f32.mrf.mxu1 }
 0x1fc   : > { %9424 = vmatprep.subr.mxu1 %v2695_v39  ;;  %v8889_v48 = vpop.f32.mrf.mxu0  ;;  %9324 = vmatprep.mubr.f32.mxu0 %v2272_v43  ;;  %v2684_v43 = vld [vmem:[#allocation7 + $0x308] sm:$0xff] }
 0x1fd   : > { %9381 = vmatpush3.msra.mxu0 %v2565_v36  ;;  %v1011_v55 = vadd.f32 %v8889_v48, %v11751_v51  ;;  %9425 = vmatpush3.msra.mxu1 %v2695_v39  ;;  %v2562_v51 = vld [vmem:[#allocation7 + $0x2c8] sm:$0xff]  ;;  %v2683_v48 = vld [vmem:[#allocation7 + $0x300] sm:$0xff] }
 0x1fe   : > { %9325 = vmatmul.mubr.f32.gmra.mxu0 %v2273_v45  ;;  %9382 = vmatprep.subr.mxu0 %v2564_v46  ;;  %v11818_v26 = vpop.f32.mrf.mxu0  ;;  %v2554_v39 = vld [vmem:[#allocation7 + $0x288] sm:$0xff] }
 0x1ff   : > { %9426 = vmatprep.subr.mxu1 %v2694_v47  ;;  %9368 = vmatprep.mubr.f32.mxu1 %v11798_v50  ;;  %v8933_v2 = vpop.f32.mrf.mxu1  ;;  %13487 = vst [vmem:[#allocation31_spill] sm:$0xff] %v11818_v26 }
 0x200   : > { %9383 = vmatpush3.msra.mxu0 %v2564_v46  ;;  %9427 = vmatpush3.msra.mxu1 %v2694_v47  ;;  %v11807_v53 = vadd.f32 %v8933_v2, %v1011_v55  ;;  %v2553_v47 = vld [vmem:[#allocation7 + $0x280] sm:$0xff] }
 0x201   : > { %9384 = vmatprep.subr.mxu0 %v2563_v54  ;;  %9369 = vmatmul.mubr.f32.gmra.mxu1 %v11802_v58  ;;  %v11820_v33 = vpop.f32.mrf.mxu1 }
 0x202   : > { %9428 = vmatprep.subr.mxu1 %v2693_v59  ;;  %9327 = vmatprep.mubr.f32.mxu0 %v2274_v62  ;;  %13488 = vst [vmem:[#allocation32_spill] sm:$0xff] %v11820_v33  ;;  %v2958_v62 = vld [vmem:[#allocation7 + $0x478] sm:$0xff] }
 0x203   : > { %9385 = vmatpush3.msra.mxu0 %v2563_v54  ;;  %9429 = vmatpush3.msra.mxu1 %v2693_v59  ;;  %v2828_v54 = vld [vmem:[#allocation7 + $0x3f8] sm:$0xff] }
 0x204   : > { %9328 = vmatmul.mubr.f32.gmra.mxu0 %v2275_v7  ;;  %9386 = vmatprep.subr.mxu0 %v2562_v51 }
 0x205   : > { %9430 = vmatprep.subr.mxu1 %v2692_v6  ;;  %9371 = vmatprep.mubr.f32.mxu1 %v11811_v10 }
 0x206   : > { %9387 = vmatpush3.msra.mxu0 %v2562_v51  ;;  %9431 = vmatpush3.msra.mxu1 %v2692_v6  ;;  %v10748_v51 = vld [vmem:[%s11514_s20 + $0x11] sm:$0xff] }
 0x207   : > { %9388 = vmatprep.subr.mxu0 %v2561_v40  ;;  %9372 = vmatmul.mubr.f32.gmra.mxu1 %v11814_v0  ;;  %v2827_v6 = vld [vmem:[#allocation7 + $0x3f0] sm:$0xff] }
 0x208   : > { %9432 = vmatprep.subr.mxu1 %v2691_v1  ;;  %9389 = vmatpush3.msra.mxu0 %v2561_v40  ;;  %v2957_v40 = vld [vmem:[#allocation7 + $0x470] sm:$0xff] }
 0x209   : > { %9433 = vmatpush3.msra.mxu1 %v2691_v1  ;;  %9390 = vmatprep.subr.mxu0 %v2560_v3  ;;  %v11836_v1 = vld [vmem:[%s11514_s20 + $0x21] sm:$0xff] }
 0x20a   : > { %9434 = vmatprep.subr.mxu1 %v2690_v4  ;;  %9391 = vmatpush3.msra.mxu0 %v2560_v3 }
 0x20b   : > { %9435 = vmatpush3.msra.mxu1 %v2690_v4  ;;  %9392 = vmatprep.subr.mxu0 %v2559_v8 }
 0x20c   : > { %9436 = vmatprep.subr.mxu1 %v2689_v9  ;;  %9393 = vmatpush3.msra.mxu0 %v2559_v8 }
 0x20d   : > { %9437 = vmatpush3.msra.mxu1 %v2689_v9  ;;  %9394 = vmatprep.subr.mxu0 %v2558_v14 }
 0x20e   : > { %9438 = vmatprep.subr.mxu1 %v2688_v16  ;;  %9395 = vmatpush3.msra.mxu0 %v2558_v14  ;;  %v2825_v14 = vld [vmem:[#allocation7 + $0x3e0] sm:$0xff] }
 0x20f   : > { %9439 = vmatpush3.msra.mxu1 %v2688_v16  ;;  %9396 = vmatprep.subr.mxu0 %v2557_v19 }
 0x210   : > { %9440 = vmatprep.subr.mxu1 %v2687_v20  ;;  %9397 = vmatpush3.msra.mxu0 %v2557_v19  ;;  %v2955_v19 = vld [vmem:[#allocation7 + $0x460] sm:$0xff] }
 0x211   : > { %9441 = vmatpush3.msra.mxu1 %v2687_v20  ;;  %9398 = vmatprep.subr.mxu0 %v2556_v25  ;;  %v11849_v20 = vld [vmem:[%s11514_s20 + $0x31] sm:$0xff] }
 0x212   : > { %9442 = vmatprep.subr.mxu1 %v2686_v22  ;;  %v8968_v36 = vpop.f32.mrf.mxu0  ;;  %9399 = vmatpush3.msra.mxu0 %v2556_v25 }
 0x213   : > { %9443 = vmatpush3.msra.mxu1 %v2686_v22  ;;  %v1273_v44 = vadd.f32 %v8968_v36, %v11760_v57  ;;  %9400 = vmatprep.subr.mxu0 %v2555_v28  ;;  %v2954_v22 = vld [vmem:[#allocation7 + $0x458] sm:$0xff] }
 0x214   : > { %9444 = vmatprep.subr.mxu1 %v2685_v31  ;;  %v9012_v45 = vpop.f32.mrf.mxu1  ;;  %v11823_v46 = vpop.f32.mrf.mxu0  ;;  %9401 = vmatpush3.msra.mxu0 %v2555_v28 }
 0x215   : > { %9445 = vmatpush3.msra.mxu1 %v2685_v31  ;;  %v11825_v55 = vadd.f32 %v9012_v45, %v1273_v44  ;;  %9402 = vmatprep.subr.mxu0 %v2554_v39  ;;  %v11864_v44 = vld [vmem:[%s11514_s20 + $0x51] sm:$0xff] }
 0x216   : > { %9446 = vmatprep.subr.mxu1 %v2684_v43  ;;  %9403 = vmatpush3.msra.mxu0 %v2554_v39  ;;  %v11827_v57 = vpop.f32.mrf.mxu1  ;;  %v2823_v39 = vld [vmem:[#allocation7 + $0x3d0] sm:$0xff] }
 0x217   : > { %9447 = vmatpush3.msra.mxu1 %v2684_v43  ;;  %9404 = vmatprep.subr.mxu0 %v2553_v47  ;;  %13489 = vst [vmem:[#allocation33_spill] sm:$0xff] %v11827_v57  ;;  %v2953_v43 = vld [vmem:[#allocation7 + $0x450] sm:$0xff]  ;;  %v3350_v57 = vld [vmem:[#allocation7 + $0x588] sm:$0xff] }
 0x218   : > { %9448 = vmatprep.subr.mxu1 %v2683_v48  ;;  %v8971_v59 = vpop.f32.mrf.mxu0  ;;  %9405 = vmatpush3.msra.mxu0 %v2553_v47 }
 0x219   : > { %9406 = vmatprep.mubr.f32.mxu0 %v11700_v11  ;;  %v1275_v2 = vadd.f32 %v8971_v59, %v11776_v27  ;;  %9449 = vmatpush3.msra.mxu1 %v2683_v48  ;;  %v2956_v27 = vld [vmem:[#allocation7 + $0x468] sm:$0xff]  ;;  %v2951_v59 = vld [vmem:[#allocation7 + $0x440] sm:$0xff] }
 0x21a   : > { %9407 = vmatmul.mubr.f32.vlgmr.msra.gmra.mxu0 %v11706_v60  ;;  %v11832_v7 = vpop.f32.mrf.mxu0  ;;  %9450 = vmatprep.mubr.f32.mxu1 %v10748_v51  ;;  %v2826_v60 = vld [vmem:[#allocation7 + $0x3e8] sm:$0xff]  ;;  %v2950_v51 = vld [vmem:[#allocation7 + $0x438] sm:$0xff] }
 0x21b   : > { %13490 = vst [vmem:[#allocation34_spill] sm:$0xff] %v11832_v7  ;;  %9462 = vmatprep.subr.mxu0 %v2828_v54  ;;  %9506 = vmatprep.subr.mxu1 %v2958_v62  ;;  %v9015_v3 = vpop.f32.mrf.mxu1  ;;  %v2952_v48 = vld [vmem:[#allocation7 + $0x448] sm:$0xff] }
 0x21c   : > { %9451 = vmatmul.mubr.f32.vlgmr.msra.gmra.mxu1 %v11836_v1  ;;  %9463 = vmatpush3.msra.mxu0 %v2828_v54  ;;  %v11839_v11 = vadd.f32 %v9015_v3, %v1275_v2  ;;  %v2821_v54 = vld [vmem:[#allocation7 + $0x3c0] sm:$0xff]  ;;  %v2820_v2 = vld [vmem:[#allocation7 + $0x3b8] sm:$0xff]  ;;  %v2818_v3 = vld [vmem:[#allocation7 + $0x3a8] sm:$0xff] }
 0x21d   : > { %9507 = vmatpush3.msra.mxu1 %v2958_v62  ;;  %9464 = vmatprep.subr.mxu0 %v2827_v6  ;;  %v11841_v8 = vpop.f32.mrf.mxu1  ;;  %v11879_v62 = vld [vmem:[%s11514_s20 + $0x71] sm:$0xff] }
 0x21e   : > { %9508 = vmatprep.subr.mxu1 %v2957_v40  ;;  %v8974_v4 = vpop.f32.mrf.mxu0  ;;  %13491 = vst [vmem:[#allocation35_spill] sm:$0xff] %v11841_v8  ;;  %9409 = vmatprep.mubr.f32.mxu0 %v11709_v61  ;;  %v3224_v8 = vld [vmem:[#allocation7 + $0x528] sm:$0xff] }
 0x21f   : > { %9465 = vmatpush3.msra.mxu0 %v2827_v6  ;;  %v1277_v9 = vadd.f32 %v8974_v4, %v11792_v21  ;;  %9509 = vmatpush3.msra.mxu1 %v2957_v40  ;;  %v11855_v21 = vld [vmem:[%s11514_s20 + $0x41] sm:$0xff]  ;;  %v2949_v40 = vld [vmem:[#allocation7 + $0x430] sm:$0xff] }
 0x220   : > { %9410 = vmatmul.mubr.f32.gmra.mxu0 %v11716_v34  ;;  %v11846_v16 = vpop.f32.mrf.mxu0  ;;  %9466 = vmatprep.subr.mxu0 %v2826_v60  ;;  %v2824_v34 = vld [vmem:[#allocation7 + $0x3d8] sm:$0xff]  ;;  %v11883_v6 = vld [vmem:[%s11514_s20 + $0x81] sm:$0xff] }
 0x221   : > { %13492 = vst [vmem:[#allocation36_spill] sm:$0xff] %v11846_v16  ;;  %9510 = vmatprep.subr.mxu1 %v2956_v27  ;;  %9453 = vmatprep.mubr.f32.mxu1 %v11849_v20  ;;  %v9018_v25 = vpop.f32.mrf.mxu1  ;;  %v2947_v4 = vld [vmem:[#allocation7 + $0x420] sm:$0xff] }
 0x222   : > { %9467 = vmatpush3.msra.mxu0 %v2826_v60  ;;  %9511 = vmatpush3.msra.mxu1 %v2956_v27  ;;  %v11852_v61 = vadd.f32 %v9018_v25, %v1277_v9  ;;  %v2948_v60 = vld [vmem:[#allocation7 + $0x428] sm:$0xff]  ;;  %v2817_v27 = vld [vmem:[#allocation7 + $0x3a0] sm:$0xff]  ;;  %v2816_v9 = vld [vmem:[#allocation7 + $0x398] sm:$0xff] }
 0x223   : > { %9468 = vmatprep.subr.mxu0 %v2825_v14  ;;  %9454 = vmatmul.mubr.f32.gmra.mxu1 %v11855_v21  ;;  %v11858_v31 = vpop.f32.mrf.mxu1  ;;  %v2815_v25 = vld [vmem:[#allocation7 + $0x390] sm:$0xff] }
 0x224   : > { %9512 = vmatprep.subr.mxu1 %v2955_v19  ;;  %v8977_v28 = vpop.f32.mrf.mxu0  ;;  %13493 = vst [vmem:[#allocation37_spill] sm:$0xff] %v11858_v31  ;;  %9412 = vmatprep.mubr.f32.mxu0 %v11719_v12  ;;  %v11868_v12 = vld [vmem:[%s11514_s20 + $0x80] sm:$0xff]  ;;  %v3086_v31 = vld [vmem:[#allocation7 + $0x4a8] sm:$0xff] }
 0x225   : > { %9469 = vmatpush3.msra.mxu0 %v2825_v14  ;;  %v1279_v36 = vadd.f32 %v8977_v28, %v11807_v53  ;;  %9513 = vmatpush3.msra.mxu1 %v2955_v19  ;;  %v11873_v53 = vld [vmem:[%s11514_s20 + $0x61] sm:$0xff]  ;;  %v2946_v14 = vld [vmem:[#allocation7 + $0x418] sm:$0xff] }
 0x226   : > { %9413 = vmatmul.mubr.f32.gmra.mxu0 %v11730_v24  ;;  %9470 = vmatprep.subr.mxu0 %v2824_v34  ;;  %v2822_v24 = vld [vmem:[#allocation7 + $0x3c8] sm:$0xff]  ;;  %v11886_v19 = vpop.f32.mrf.mxu0 }
 0x227   : > { %9514 = vmatprep.subr.mxu1 %v2954_v22  ;;  %9456 = vmatprep.mubr.f32.mxu1 %v11864_v44  ;;  %v9021_v45 = vpop.f32.mrf.mxu1  ;;  %13494 = vst [vmem:[#allocation38_spill] sm:$0xff] %v11886_v19  ;;  %v11969_v19 = vld [vmem:[%s11514_s20 + $0x83] sm:$0xff] }
 0x228   : > { %9471 = vmatpush3.msra.mxu0 %v2824_v34  ;;  %9515 = vmatpush3.msra.mxu1 %v2954_v22  ;;  %v11870_v47 = vadd.f32 %v9021_v45, %v1279_v36  ;;  %v2945_v34 = vld [vmem:[#allocation7 + $0x410] sm:$0xff]  ;;  %v2814_v36 = vld [vmem:[#allocation7 + $0x388] sm:$0xff] }
 0x229   : > { %9472 = vmatprep.subr.mxu0 %v2823_v39  ;;  %9457 = vmatmul.mubr.f32.gmra.mxu1 %v11873_v53  ;;  %v11888_v22 = vpop.f32.mrf.mxu1 }
 0x22a   : > { %9516 = vmatprep.subr.mxu1 %v2953_v43  ;;  %9415 = vmatprep.mubr.f32.mxu0 %v11733_v23  ;;  %v2819_v23 = vld [vmem:[#allocation7 + $0x3b0] sm:$0xff]  ;;  %13495 = vst [vmem:[#allocation39_spill] sm:$0xff] %v11888_v22 }
 0x22b   : > { %9473 = vmatpush3.msra.mxu0 %v2823_v39  ;;  %9517 = vmatpush3.msra.mxu1 %v2953_v43  ;;  %v2944_v39 = vld [vmem:[#allocation7 + $0x408] sm:$0xff]  ;;  %v11957_v22 = vld [vmem:[%s11514_s20 + $0x72] sm:$0xff] }
 0x22c   : > { %9416 = vmatmul.mubr.f32.gmra.mxu0 %v11868_v12  ;;  %9474 = vmatprep.subr.mxu0 %v2822_v24 }
 0x22d   : > { %9518 = vmatprep.subr.mxu1 %v2952_v48  ;;  %9459 = vmatprep.mubr.f32.mxu1 %v11879_v62 }
 0x22e   : > { %9475 = vmatpush3.msra.mxu0 %v2822_v24  ;;  %9519 = vmatpush3.msra.mxu1 %v2952_v48  ;;  %v2813_v48 = vld [vmem:[#allocation7 + $0x380] sm:$0xff] }
 0x22f   : > { %9476 = vmatprep.subr.mxu0 %v2821_v54  ;;  %9460 = vmatmul.mubr.f32.gmra.mxu1 %v11883_v6 }
 0x230   : > { %9520 = vmatprep.subr.mxu1 %v2951_v59  ;;  %9477 = vmatpush3.msra.mxu0 %v2821_v54  ;;  %v2943_v54 = vld [vmem:[#allocation7 + $0x400] sm:$0xff] }
 0x231   : > { %9521 = vmatpush3.msra.mxu1 %v2951_v59  ;;  %9478 = vmatprep.subr.mxu0 %v2820_v2 }
 0x232   : > { %9522 = vmatprep.subr.mxu1 %v2950_v51  ;;  %9479 = vmatpush3.msra.mxu0 %v2820_v2 }
 0x233   : > { %9523 = vmatpush3.msra.mxu1 %v2950_v51  ;;  %9480 = vmatprep.subr.mxu0 %v2819_v23 }
 0x234   : > { %9524 = vmatprep.subr.mxu1 %v2949_v40  ;;  %9481 = vmatpush3.msra.mxu0 %v2819_v23  ;;  %v10756_v23 = vld [vmem:[%s11514_s20 + $0x12] sm:$0xff] }
 0x235   : > { %9525 = vmatpush3.msra.mxu1 %v2949_v40  ;;  %9482 = vmatprep.subr.mxu0 %v2818_v3  ;;  %v3234_v40 = vld [vmem:[#allocation7 + $0x578] sm:$0xff] }
 0x236   : > { %9526 = vmatprep.subr.mxu1 %v2948_v60  ;;  %9483 = vmatpush3.msra.mxu0 %v2818_v3 }
 0x237   : > { %9527 = vmatpush3.msra.mxu1 %v2948_v60  ;;  %9484 = vmatprep.subr.mxu0 %v2817_v27  ;;  %v11900_v60 = vld [vmem:[%s11514_s20 + $0x22] sm:$0xff] }
 0x238   : > { %9528 = vmatprep.subr.mxu1 %v2947_v4  ;;  %9485 = vmatpush3.msra.mxu0 %v2817_v27 }
 0x239   : > { %9529 = vmatpush3.msra.mxu1 %v2947_v4  ;;  %9486 = vmatprep.subr.mxu0 %v2816_v9  ;;  %v10758_v4 = vld [vmem:[%s11514_s20 + $0x13] sm:$0xff] }
 0x23a   : > { %9530 = vmatprep.subr.mxu1 %v2946_v14  ;;  %v9056_v28 = vpop.f32.mrf.mxu0  ;;  %9487 = vmatpush3.msra.mxu0 %v2816_v9  ;;  %v3095_v9 = vld [vmem:[#allocation7 + $0x4f0] sm:$0xff] }
 0x23b   : > { %9531 = vmatpush3.msra.mxu1 %v2946_v14  ;;  %v1550_v43 = vadd.f32 %v9056_v28, %v11825_v55  ;;  %9488 = vmatprep.subr.mxu0 %v2815_v25  ;;  %v3096_v55 = vld [vmem:[#allocation7 + $0x4f8] sm:$0xff]  ;;  %v3233_v14 = vld [vmem:[#allocation7 + $0x570] sm:$0xff]  ;;  %v3094_v28 = vld [vmem:[#allocation7 + $0x4e8] sm:$0xff] }
 0x23c   : > { %9532 = vmatprep.subr.mxu1 %v2945_v34  ;;  %v9100_v45 = vpop.f32.mrf.mxu1  ;;  %v11891_v24 = vpop.f32.mrf.mxu0  ;;  %9489 = vmatpush3.msra.mxu0 %v2815_v25  ;;  %v11907_v25 = vld [vmem:[%s11514_s20 + $0x23] sm:$0xff] }
 0x23d   : > { %13496 = vst [vmem:[#allocation40_spill] sm:$0xff] %v11891_v24  ;;  %9533 = vmatpush3.msra.mxu1 %v2945_v34  ;;  %v11893_v59 = vadd.f32 %v9100_v45, %v1550_v43  ;;  %9490 = vmatprep.subr.mxu0 %v2814_v36  ;;  %v11915_v45 = vld [vmem:[%s11514_s20 + $0x32] sm:$0xff]  ;;  %v3220_v24 = vld [vmem:[#allocation7 + $0x508] sm:$0xff] }
 0x23e   : > { %9534 = vmatprep.subr.mxu1 %v2944_v39  ;;  %9491 = vmatpush3.msra.mxu0 %v2814_v36  ;;  %v11895_v2 = vpop.f32.mrf.mxu1  ;;  %v3232_v36 = vld [vmem:[#allocation7 + $0x568] sm:$0xff] }
 0x23f   : > { %9535 = vmatpush3.msra.mxu1 %v2944_v39  ;;  %9492 = vmatprep.subr.mxu0 %v2813_v48  ;;  %13497 = vst [vmem:[#allocation41_spill] sm:$0xff] %v11895_v2  ;;  %v3088_v2 = vld [vmem:[#allocation7 + $0x4b8] sm:$0xff] }
 0x240   : > { %9536 = vmatprep.subr.mxu1 %v2943_v54  ;;  %v9059_v51 = vpop.f32.mrf.mxu0  ;;  %9493 = vmatpush3.msra.mxu0 %v2813_v48 }
 0x241   : > { %9494 = vmatprep.mubr.f32.mxu0 %v10756_v23  ;;  %v1552_v3 = vadd.f32 %v9059_v51, %v11839_v11  ;;  %9537 = vmatpush3.msra.mxu1 %v2943_v54  ;;  %v11920_v54 = vld [vmem:[%s11514_s20 + $0x42] sm:$0xff] }
 0x242   : > { %9495 = vmatmul.mubr.f32.vlgmr.msra.gmra.mxu0 %v11900_v60  ;;  %v11903_v27 = vpop.f32.mrf.mxu0  ;;  %9538 = vmatprep.mubr.f32.mxu1 %v10758_v4  ;;  %v3231_v23 = vld [vmem:[#allocation7 + $0x560] sm:$0xff] }
 0x243   : > { %13498 = vst [vmem:[#allocation42_spill] sm:$0xff] %v11903_v27  ;;  %9550 = vmatprep.subr.mxu0 %v3096_v55  ;;  %9594 = vmatprep.subr.mxu1 %v3234_v40  ;;  %v9103_v11 = vpop.f32.mrf.mxu1  ;;  %v11932_v4 = vld [vmem:[%s11514_s20 + $0x43] sm:$0xff]  ;;  %v3226_v27 = vld [vmem:[#allocation7 + $0x538] sm:$0xff] }
 0x244   : > { %9539 = vmatmul.mubr.f32.vlgmr.msra.gmra.mxu1 %v11907_v25  ;;  %9551 = vmatpush3.msra.mxu0 %v3096_v55  ;;  %v11910_v34 = vadd.f32 %v9103_v11, %v1552_v3  ;;  %v3093_v55 = vld [vmem:[#allocation7 + $0x4e0] sm:$0xff] }
 0x245   : > { %9595 = vmatpush3.msra.mxu1 %v3234_v40  ;;  %9552 = vmatprep.subr.mxu0 %v3095_v9  ;;  %v11912_v43 = vpop.f32.mrf.mxu1  ;;  %v11926_v40 = vld [vmem:[%s11514_s20 + $0x33] sm:$0xff] }
 0x246   : > { %9596 = vmatprep.subr.mxu1 %v3233_v14  ;;  %v9062_v39 = vpop.f32.mrf.mxu0  ;;  %13499 = vst [vmem:[#allocation43_spill] sm:$0xff] %v11912_v43  ;;  %9497 = vmatprep.mubr.f32.mxu0 %v11915_v45  ;;  %v11947_v43 = vld [vmem:[%s11514_s20 + $0x53] sm:$0xff] }
 0x247   : > { %9553 = vmatpush3.msra.mxu0 %v3095_v9  ;;  %v1554_v48 = vadd.f32 %v9062_v39, %v11852_v61  ;;  %9597 = vmatpush3.msra.mxu1 %v3233_v14  ;;  %v3092_v9 = vld [vmem:[#allocation7 + $0x4d8] sm:$0xff] }
 0x248   : > { %9498 = vmatmul.mubr.f32.gmra.mxu0 %v11920_v54  ;;  %v11923_v51 = vpop.f32.mrf.mxu0  ;;  %9554 = vmatprep.subr.mxu0 %v3094_v28  ;;  %v3230_v14 = vld [vmem:[#allocation7 + $0x558] sm:$0xff] }
 0x249   : > { %13500 = vst [vmem:[#allocation44_spill] sm:$0xff] %v11923_v51  ;;  %9598 = vmatprep.subr.mxu1 %v3232_v36  ;;  %9541 = vmatprep.mubr.f32.mxu1 %v11926_v40  ;;  %v9106_v3 = vpop.f32.mrf.mxu1  ;;  %v11938_v51 = vld [vmem:[%s11514_s20 + $0x52] sm:$0xff] }
 0x24a   : > { %9555 = vmatpush3.msra.mxu0 %v3094_v28  ;;  %9599 = vmatpush3.msra.mxu1 %v3232_v36  ;;  %v11929_v61 = vadd.f32 %v9106_v3, %v1554_v48  ;;  %v11943_v36 = vld [vmem:[%s11514_s20 + $0x62] sm:$0xff]  ;;  %v3091_v48 = vld [vmem:[#allocation7 + $0x4d0] sm:$0xff] }
 0x24b   : > { %9556 = vmatprep.subr.mxu0 %v3093_v55  ;;  %9542 = vmatmul.mubr.f32.gmra.mxu1 %v11932_v4  ;;  %v11935_v39 = vpop.f32.mrf.mxu1  ;;  %v3229_v3 = vld [vmem:[#allocation7 + $0x550] sm:$0xff] }
 0x24c   : > { %9600 = vmatprep.subr.mxu1 %v3231_v23  ;;  %v9065_v11 = vpop.f32.mrf.mxu0  ;;  %13501 = vst [vmem:[#allocation45_spill] sm:$0xff] %v11935_v39  ;;  %9500 = vmatprep.mubr.f32.mxu0 %v11938_v51  ;;  %v3228_v39 = vld [vmem:[#allocation7 + $0x548] sm:$0xff] }
 0x24d   : > { %9557 = vmatpush3.msra.mxu0 %v3093_v55  ;;  %v1556_v28 = vadd.f32 %v9065_v11, %v11870_v47  ;;  %9601 = vmatpush3.msra.mxu1 %v3231_v23  ;;  %v11953_v23 = vld [vmem:[%s11514_s20 + $0x63] sm:$0xff] }
 0x24e   : > { %9501 = vmatmul.mubr.f32.gmra.mxu0 %v11943_v36  ;;  %9558 = vmatprep.subr.mxu0 %v3092_v9  ;;  %v3090_v11 = vld [vmem:[#allocation7 + $0x4c8] sm:$0xff]  ;;  %v11972_v33 = vpop.f32.mrf.mxu0 }
 0x24f   : > { %9602 = vmatprep.subr.mxu1 %v3230_v14  ;;  %9544 = vmatprep.mubr.f32.mxu1 %v11947_v43  ;;  %v9109_v55 = vpop.f32.mrf.mxu1  ;;  %13502 = vst [vmem:[#allocation46_spill] sm:$0xff] %v11972_v33 }
 0x250   : > { %9559 = vmatpush3.msra.mxu0 %v3092_v9  ;;  %9603 = vmatpush3.msra.mxu1 %v3230_v14  ;;  %v11950_v47 = vadd.f32 %v9109_v55, %v1556_v28  ;;  %v11961_v9 = vld [vmem:[%s11514_s20 + $0x82] sm:$0xff]  ;;  %v11965_v55 = vld [vmem:[%s11514_s20 + $0x73] sm:$0xff] }
 0x251   : > { %9560 = vmatprep.subr.mxu0 %v3091_v48  ;;  %9545 = vmatmul.mubr.f32.gmra.mxu1 %v11953_v23  ;;  %v3089_v14 = vld [vmem:[#allocation7 + $0x4c0] sm:$0xff] }
 0x252   : > { %9604 = vmatprep.subr.mxu1 %v3229_v3  ;;  %9503 = vmatprep.mubr.f32.mxu0 %v11957_v22  ;;  %v3227_v28 = vld [vmem:[#allocation7 + $0x540] sm:$0xff] }
 0x253   : > { %9561 = vmatpush3.msra.mxu0 %v3091_v48  ;;  %9605 = vmatpush3.msra.mxu1 %v3229_v3  ;;  %v3087_v48 = vld [vmem:[#allocation7 + $0x4b0] sm:$0xff] }
 0x254   : > { %9504 = vmatmul.mubr.f32.gmra.mxu0 %v11961_v9  ;;  %9562 = vmatprep.subr.mxu0 %v3090_v11  ;;  %v3225_v3 = vld [vmem:[#allocation7 + $0x530] sm:$0xff] }
 0x255   : > { %9606 = vmatprep.subr.mxu1 %v3228_v39  ;;  %9547 = vmatprep.mubr.f32.mxu1 %v11965_v55 }
 0x256   : > { %9563 = vmatpush3.msra.mxu0 %v3090_v11  ;;  %9607 = vmatpush3.msra.mxu1 %v3228_v39  ;;  %v3085_v39 = vld [vmem:[#allocation7 + $0x4a0] sm:$0xff] }
 0x257   : > { %9564 = vmatprep.subr.mxu0 %v3089_v14  ;;  %9548 = vmatmul.mubr.f32.gmra.mxu1 %v11969_v19  ;;  %v3223_v11 = vld [vmem:[#allocation7 + $0x520] sm:$0xff] }
 0x258   : > { %9608 = vmatprep.subr.mxu1 %v3227_v28  ;;  %9565 = vmatpush3.msra.mxu0 %v3089_v14  ;;  %v3084_v14 = vld [vmem:[#allocation7 + $0x498] sm:$0xff] }
 0x259   : > { %9609 = vmatpush3.msra.mxu1 %v3227_v28  ;;  %9566 = vmatprep.subr.mxu0 %v3088_v2  ;;  %v3222_v28 = vld [vmem:[#allocation7 + $0x518] sm:$0xff] }
 0x25a   : > { %9610 = vmatprep.subr.mxu1 %v3226_v27  ;;  %9567 = vmatpush3.msra.mxu0 %v3088_v2  ;;  %v3083_v2 = vld [vmem:[#allocation7 + $0x490] sm:$0xff] }
 0x25b   : > { %9611 = vmatpush3.msra.mxu1 %v3226_v27  ;;  %9568 = vmatprep.subr.mxu0 %v3087_v48  ;;  %v3221_v27 = vld [vmem:[#allocation7 + $0x510] sm:$0xff] }
 0x25c   : > { %9612 = vmatprep.subr.mxu1 %v3225_v3  ;;  %9569 = vmatpush3.msra.mxu0 %v3087_v48 }
 0x25d   : > { %9613 = vmatpush3.msra.mxu1 %v3225_v3  ;;  %9570 = vmatprep.subr.mxu0 %v3086_v31  ;;  %v3082_v3 = vld [vmem:[#allocation7 + $0x488] sm:$0xff] }
 0x25e   : > { %9614 = vmatprep.subr.mxu1 %v3224_v8  ;;  %9571 = vmatpush3.msra.mxu0 %v3086_v31 }
 0x25f   : > { %9615 = vmatpush3.msra.mxu1 %v3224_v8  ;;  %9572 = vmatprep.subr.mxu0 %v3085_v39 }
 0x260   : > { %9616 = vmatprep.subr.mxu1 %v3223_v11  ;;  %9573 = vmatpush3.msra.mxu0 %v3085_v39  ;;  %v3081_v39 = vld [vmem:[#allocation7 + $0x480] sm:$0xff] }
 0x261   : > { %9617 = vmatpush3.msra.mxu1 %v3223_v11  ;;  %9574 = vmatprep.subr.mxu0 %v3084_v14  ;;  %v3219_v11 = vld [vmem:[#allocation7 + $0x500] sm:$0xff] }
 0x262   : > { %9618 = vmatprep.subr.mxu1 %v3222_v28  ;;  %v9144_v48 = vpop.f32.mrf.mxu0  ;;  %9575 = vmatpush3.msra.mxu0 %v3084_v14  ;;  %v7712_v14 = vld [vmem:[%s11514_s20 + $0x20] sm:$0xff] }
 0x263   : > { %9619 = vmatpush3.msra.mxu1 %v3222_v28  ;;  %v11975_v8 = vadd.f32 %v9144_v48, %v11893_v59  ;;  %9576 = vmatprep.subr.mxu0 %v3083_v2  ;;  %v3364_v28 = vld [vmem:[#allocation7 + $0x5f8] sm:$0xff]  ;;  %v11982_v48 = vld [vmem:[%s11514_s20 + $0x30] sm:$0xff] }
 0x264   : > { %9620 = vmatprep.subr.mxu1 %v3221_v27  ;;  %v11977_v31 = vpop.f32.mrf.mxu0  ;;  %9577 = vmatpush3.msra.mxu0 %v3083_v2  ;;  %v3494_v59 = vld [vmem:[#allocation7 + $0x678] sm:$0xff] }
 0x265   : > { %13503 = vst [vmem:[#allocation47_spill] sm:$0xff] %v11975_v8  ;;  %13504 = vst [vmem:[#allocation48_spill] sm:$0xff] %v11977_v31  ;;  %9621 = vmatpush3.msra.mxu1 %v3221_v27  ;;  %9578 = vmatprep.subr.mxu0 %v3082_v3  ;;  %v3483_v31 = vld [vmem:[#allocation7 + $0x620] sm:$0xff]  ;;  %v3482_v8 = vld [vmem:[#allocation7 + $0x618] sm:$0xff] }
 0x266   : > { %9622 = vmatprep.subr.mxu1 %v3220_v24  ;;  %9579 = vmatpush3.msra.mxu0 %v3082_v3  ;;  %v3493_v3 = vld [vmem:[#allocation7 + $0x670] sm:$0xff] }
 0x267   : > { %9623 = vmatpush3.msra.mxu1 %v3220_v24  ;;  %9580 = vmatprep.subr.mxu0 %v3081_v39  ;;  %v3363_v24 = vld [vmem:[#allocation7 + $0x5f0] sm:$0xff] }
 0x268   : > { %9624 = vmatprep.subr.mxu1 %v3219_v11  ;;  %v9147_v33 = vpop.f32.mrf.mxu0  ;;  %9581 = vmatpush3.msra.mxu0 %v3081_v39  ;;  %v11996_v39 = vld [vmem:[%s11514_s20 + $0x40] sm:$0xff] }
 0x269   : > { %9582 = vmatprep.mubr.f32.mxu0 %v11768_v13  ;;  %v11985_v2 = vadd.f32 %v9147_v33, %v11910_v34  ;;  %9625 = vmatpush3.msra.mxu1 %v3219_v11  ;;  %v3362_v33 = vld [vmem:[#allocation7 + $0x5e8] sm:$0xff] }
 0x26a   : > { %9583 = vmatmul.mubr.f32.vlgmr.msra.gmra.mxu0 %v11781_v35  ;;  %v11988_v27 = vpop.f32.mrf.mxu0  ;;  %9626 = vmatprep.mubr.f32.mxu1 %v7712_v14  ;;  %v3492_v34 = vld [vmem:[#allocation7 + $0x668] sm:$0xff]  ;;  %v3361_v14 = vld [vmem:[#allocation7 + $0x5e0] sm:$0xff] }
 0x26b   : > { %13505 = vst [vmem:[#allocation49_spill] sm:$0xff] %v11985_v2  ;;  %13506 = vst [vmem:[#allocation50_spill] sm:$0xff] %v11988_v27  ;;  %9638 = vmatprep.subr.mxu0 %v3364_v28  ;;  %9682 = vmatprep.subr.mxu1 %v3494_v59  ;;  %v3485_v2 = vld [vmem:[#allocation7 + $0x630] sm:$0xff] }
 0x26c   : > { %9627 = vmatmul.mubr.f32.vlgmr.msra.gmra.mxu1 %v11982_v48  ;;  %9639 = vmatpush3.msra.mxu0 %v3364_v28  ;;  %v12002_v28 = vld [vmem:[%s11514_s20 + $0x50] sm:$0xff] }
 0x26d   : > { %9683 = vmatpush3.msra.mxu1 %v3494_v59  ;;  %v9150_v13 = vpop.f32.mrf.mxu0  ;;  %9640 = vmatprep.subr.mxu0 %v3363_v24  ;;  %v3491_v59 = vld [vmem:[#allocation7 + $0x660] sm:$0xff] }
 0x26e   : > { %9684 = vmatprep.subr.mxu1 %v3493_v3  ;;  %v11992_v35 = vadd.f32 %v9150_v13, %v11929_v61  ;;  %9585 = vmatprep.mubr.f32.mxu0 %v11787_v38  ;;  %v12013_v13 = vld [vmem:[%s11514_s20 + $0x60] sm:$0xff] }
 0x26f   : > { %9641 = vmatpush3.msra.mxu0 %v3363_v24  ;;  %v11998_v11 = vpop.f32.mrf.mxu0  ;;  %9685 = vmatpush3.msra.mxu1 %v3493_v3  ;;  %v3490_v24 = vld [vmem:[#allocation7 + $0x658] sm:$0xff]  ;;  %v12009_v3 = vpop.f32.mrf.mxu1 }
 0x270   : > { %13507 = vst [vmem:[#allocation51_spill] sm:$0xff] %v11992_v35  ;;  %13508 = vst [vmem:[#allocation52_spill] sm:$0xff] %v11998_v11  ;;  %9586 = vmatmul.mubr.f32.gmra.mxu0 %v11798_v50  ;;  %9642 = vmatprep.subr.mxu0 %v3362_v33  ;;  %v3360_v50 = vld [vmem:[#allocation7 + $0x5d8] sm:$0xff]  ;;  %v3487_v35 = vld [vmem:[#allocation7 + $0x640] sm:$0xff] }
 0x271   : > { %9686 = vmatprep.subr.mxu1 %v3492_v34  ;;  %9629 = vmatprep.mubr.f32.mxu1 %v11996_v39  ;;  %13510 = vst [vmem:[#allocation54_spill] sm:$0xff] %v12009_v3 }
 0x272   : > { %9643 = vmatpush3.msra.mxu0 %v3362_v33  ;;  %v9153_v61 = vpop.f32.mrf.mxu0  ;;  %9687 = vmatpush3.msra.mxu1 %v3492_v34  ;;  %v3359_v33 = vld [vmem:[#allocation7 + $0x5d0] sm:$0xff]  ;;  %v12016_v34 = vpop.f32.mrf.mxu1 }
 0x273   : > { %9644 = vmatprep.subr.mxu0 %v3361_v14  ;;  %v12006_v38 = vadd.f32 %v9153_v61, %v11950_v47  ;;  %9630 = vmatmul.mubr.f32.gmra.mxu1 %v12002_v28  ;;  %v12019_v47 = vld [vmem:[%s11514_s20 + $0x70] sm:$0xff] }
 0x274   : > { %9688 = vmatprep.subr.mxu1 %v3491_v59  ;;  %9588 = vmatprep.mubr.f32.mxu0 %v11802_v58  ;;  %v3489_v61 = vld [vmem:[#allocation7 + $0x650] sm:$0xff]  ;;  %v12023_v58 = vld [vmem:[%s11514_s20 + $0x84] sm:$0xff] }
 0x275   : > { %13509 = vst [vmem:[#allocation53_spill] sm:$0xff] %v12006_v38  ;;  %9645 = vmatpush3.msra.mxu0 %v3361_v14  ;;  %9689 = vmatpush3.msra.mxu1 %v3491_v59  ;;  %v3488_v14 = vld [vmem:[#allocation7 + $0x648] sm:$0xff]  ;;  %v12026_v59 = vpop.f32.mrf.mxu1  ;;  %v3357_v38 = vld [vmem:[#allocation7 + $0x5c0] sm:$0xff] }
 0x276   : > { %9589 = vmatmul.mubr.f32.gmra.mxu0 %v11811_v10  ;;  %9646 = vmatprep.subr.mxu0 %v3360_v50  ;;  %v3358_v10 = vld [vmem:[#allocation7 + $0x5c8] sm:$0xff] }
 0x277   : > { %9690 = vmatprep.subr.mxu1 %v3490_v24  ;;  %9632 = vmatprep.mubr.f32.mxu1 %v12013_v13 }
 0x278   : > { %9647 = vmatpush3.msra.mxu0 %v3360_v50  ;;  %9691 = vmatpush3.msra.mxu1 %v3490_v24  ;;  %v12033_v24 = vld [vmem:[%s11514_s20 + $0x90] sm:$0xff] }
 0x279   : > { %9648 = vmatprep.subr.mxu0 %v3359_v33  ;;  %9633 = vmatmul.mubr.f32.gmra.mxu1 %v12019_v47 }
 0x27a   : > { %9692 = vmatprep.subr.mxu1 %v3489_v61  ;;  %9591 = vmatprep.mubr.f32.mxu0 %v11814_v0  ;;  %v3356_v0 = vld [vmem:[#allocation7 + $0x5b8] sm:$0xff] }
 0x27b   : > { %9649 = vmatpush3.msra.mxu0 %v3359_v33  ;;  %9693 = vmatpush3.msra.mxu1 %v3489_v61  ;;  %v3486_v33 = vld [vmem:[#allocation7 + $0x638] sm:$0xff]  ;;  %v3355_v61 = vld [vmem:[#allocation7 + $0x5b0] sm:$0xff] }
 0x27c   : > { %9592 = vmatmul.mubr.f32.gmra.mxu0 %v12023_v58  ;;  %v12030_v50 = vpop.f32.mrf.mxu1  ;;  %9650 = vmatprep.subr.mxu0 %v3358_v10 }
 0x27d   : > { %9694 = vmatprep.subr.mxu1 %v3488_v14  ;;  %9635 = vmatprep.mubr.f32.mxu1 %v11868_v12  ;;  %v3354_v12 = vld [vmem:[#allocation7 + $0x5a8] sm:$0xff] }
 0x27e   : > { %9651 = vmatpush3.msra.mxu0 %v3358_v10  ;;  %v12036_v11 = vpop.f32.mrf.mxu1  ;;  %9695 = vmatpush3.msra.mxu1 %v3488_v14  ;;  %v3484_v10 = vld [vmem:[#allocation7 + $0x628] sm:$0xff]  ;;  %v3353_v14 = vld [vmem:[#allocation7 + $0x5a0] sm:$0xff] }
 0x27f   : > { %9652 = vmatprep.subr.mxu0 %v3357_v38  ;;  %9636 = vmatmul.mubr.f32.gmra.mxu1 %v12033_v24 }
 0x280   : > { %9696 = vmatprep.subr.mxu1 %v3487_v35  ;;  %9653 = vmatpush3.msra.mxu0 %v3357_v38  ;;  %v3352_v38 = vld [vmem:[#allocation7 + $0x598] sm:$0xff] }
 0x281   : > { %9697 = vmatpush3.msra.mxu1 %v3487_v35  ;;  %v12039_v3 = vpop.f32.mrf.mxu1  ;;  %9654 = vmatprep.subr.mxu0 %v3356_v0 }
 0x282   : > { %9698 = vmatprep.subr.mxu1 %v3486_v33  ;;  %9655 = vmatpush3.msra.mxu0 %v3356_v0  ;;  %v12045_v0 = vpop.f32.mrf.mxu0 }
 0x283   : > { %9699 = vmatpush3.msra.mxu1 %v3486_v33  ;;  %v12041_v27 = vpop.f32.mrf.mxu1  ;;  %9656 = vmatprep.subr.mxu0 %v3355_v61  ;;  %13511 = vst [vmem:[#allocation55_spill] sm:$0xff] %v12045_v0 }
 0x284   : > { %9700 = vmatprep.subr.mxu1 %v3485_v2  ;;  %9657 = vmatpush3.msra.mxu0 %v3355_v61  ;;  %v3351_v61 = vld [vmem:[#allocation7 + $0x590] sm:$0xff] }
 0x285   : > { %9701 = vmatpush3.msra.mxu1 %v3485_v2  ;;  %9658 = vmatprep.subr.mxu0 %v3354_v12  ;;  %v3481_v2 = vld [vmem:[#allocation7 + $0x610] sm:$0xff] }
 0x286   : > { %9702 = vmatprep.subr.mxu1 %v3484_v10  ;;  %v12043_v35 = vpop.f32.mrf.mxu1  ;;  %9659 = vmatpush3.msra.mxu0 %v3354_v12  ;;  %v3480_v12 = vld [vmem:[#allocation7 + $0x608] sm:$0xff] }
 0x287   : > { %9703 = vmatpush3.msra.mxu1 %v3484_v10  ;;  %9660 = vmatprep.subr.mxu0 %v3353_v14 }
 0x288   : > { %9704 = vmatprep.subr.mxu1 %v3483_v31  ;;  %v12047_v33 = vpop.f32.mrf.mxu1  ;;  %9661 = vmatpush3.msra.mxu0 %v3353_v14  ;;  %v3349_v14 = vld [vmem:[#allocation7 + $0x580] sm:$0xff] }
 0x289   : > { %9705 = vmatpush3.msra.mxu1 %v3483_v31  ;;  %9662 = vmatprep.subr.mxu0 %v3352_v38  ;;  %v3479_v31 = vld [vmem:[#allocation7 + $0x600] sm:$0xff] }
 0x28a   : > { %9706 = vmatprep.subr.mxu1 %v3482_v8  ;;  %v9232_v16 = vpop.f32.mrf.mxu0  ;;  %9663 = vmatpush3.msra.mxu0 %v3352_v38 }
 0x28b   : > { %9707 = vmatpush3.msra.mxu1 %v3482_v8  ;;  %v2097_v10 = vadd.f32 %v9232_v16, %v12016_v34  ;;  %9664 = vmatprep.subr.mxu0 %v3351_v61  ;;  %v3624_v8 = vld [vmem:[#allocation7 + $0x6f8] sm:$0xff] }
 0x28c   : > { %9708 = vmatprep.subr.mxu1 %v3481_v2  ;;  %v9276_v7 = vpop.f32.mrf.mxu1  ;;  %v12050_v26 = vpop.f32.mrf.mxu0  ;;  %9665 = vmatpush3.msra.mxu0 %v3351_v61  ;;  %v3762_v34 = vld [vmem:[#allocation7 + $0x778] sm:$0xff] }
 0x28d   : > { %9709 = vmatpush3.msra.mxu1 %v3481_v2  ;;  %v12052_v0 = vadd.f32 %v9276_v7, %v2097_v10  ;;  %9666 = vmatprep.subr.mxu0 %v3350_v57  ;;  %v3761_v2 = vld [vmem:[#allocation7 + $0x770] sm:$0xff]  ;;  %v3760_v10 = vld [vmem:[#allocation7 + $0x768] sm:$0xff] }
 0x28e   : > { %9710 = vmatprep.subr.mxu1 %v3480_v12  ;;  %9667 = vmatpush3.msra.mxu0 %v3350_v57  ;;  %v12054_v38 = vpop.f32.mrf.mxu1  ;;  %v3623_v57 = vld [vmem:[#allocation7 + $0x6f0] sm:$0xff] }
 0x28f   : > { %9711 = vmatpush3.msra.mxu1 %v3480_v12  ;;  %9668 = vmatprep.subr.mxu0 %v3349_v14 }
 0x290   : > { %9712 = vmatprep.subr.mxu1 %v3479_v31  ;;  %v9235_v16 = vpop.f32.mrf.mxu0  ;;  %9669 = vmatpush3.msra.mxu0 %v3349_v14 }
 0x291   : > { %9670 = vmatprep.mubr.f32.mxu0 %v11836_v1  ;;  %v2107_v61 = vadd.f32 %v9235_v16, %v12030_v50  ;;  %9713 = vmatpush3.msra.mxu1 %v3479_v31  ;;  %v3622_v50 = vld [vmem:[#allocation7 + $0x6e8] sm:$0xff] }
 0x292   : > { %9671 = vmatmul.mubr.f32.vlgmr.msra.gmra.mxu0 %v11849_v20  ;;  %v12059_v7 = vpop.f32.mrf.mxu0  ;;  %9714 = vmatprep.mubr.f32.mxu1 %v11900_v60 }
 0x293   : > { %9726 = vmatprep.subr.mxu0 %v3624_v8  ;;  %9770 = vmatprep.subr.mxu1 %v3762_v34  ;;  %v9279_v12 = vpop.f32.mrf.mxu1 }
 0x294   : > { %9715 = vmatmul.mubr.f32.vlgmr.msra.gmra.mxu1 %v11915_v45  ;;  %9727 = vmatpush3.msra.mxu0 %v3624_v8  ;;  %v12063_v1 = vadd.f32 %v9279_v12, %v2107_v61  ;;  %v3621_v45 = vld [vmem:[#allocation7 + $0x6e0] sm:$0xff] }
 0x295   : > { %9771 = vmatpush3.msra.mxu1 %v3762_v34  ;;  %9728 = vmatprep.subr.mxu0 %v3623_v57  ;;  %v12065_v14 = vpop.f32.mrf.mxu1  ;;  %v3759_v8 = vld [vmem:[#allocation7 + $0x760] sm:$0xff] }
 0x296   : > { %9772 = vmatprep.subr.mxu1 %v3761_v2  ;;  %v9238_v20 = vpop.f32.mrf.mxu0  ;;  %9673 = vmatprep.mubr.f32.mxu0 %v11855_v21  ;;  %v3620_v21 = vld [vmem:[#allocation7 + $0x6d8] sm:$0xff] }
 0x297   : > { %9729 = vmatpush3.msra.mxu0 %v3623_v57  ;;  %v2117_v60 = vadd.f32 %v9238_v20, %v12039_v3  ;;  %9773 = vmatpush3.msra.mxu1 %v3761_v2  ;;  %v3758_v3 = vld [vmem:[#allocation7 + $0x758] sm:$0xff]  ;;  %v3757_v2 = vld [vmem:[#allocation7 + $0x750] sm:$0xff] }
 0x298   : > { %9674 = vmatmul.mubr.f32.gmra.mxu0 %v11864_v44  ;;  %v12070_v31 = vpop.f32.mrf.mxu0  ;;  %9730 = vmatprep.subr.mxu0 %v3622_v50  ;;  %v12092_v20 = vld [vmem:[%s11514_s20 + $0x92] sm:$0xff] }
 0x299   : > { %9774 = vmatprep.subr.mxu1 %v3760_v10  ;;  %9717 = vmatprep.mubr.f32.mxu1 %v11920_v54  ;;  %v9282_v16 = vpop.f32.mrf.mxu1  ;;  %v3619_v54 = vld [vmem:[#allocation7 + $0x6d0] sm:$0xff] }
 0x29a   : > { %9731 = vmatpush3.msra.mxu0 %v3622_v50  ;;  %9775 = vmatpush3.msra.mxu1 %v3760_v10  ;;  %v12073_v34 = vadd.f32 %v9282_v16, %v2117_v60  ;;  %v3755_v50 = vld [vmem:[#allocation7 + $0x740] sm:$0xff]  ;;  %v3754_v10 = vld [vmem:[#allocation7 + $0x738] sm:$0xff]  ;;  %v3753_v60 = vld [vmem:[#allocation7 + $0x730] sm:$0xff] }
 0x29b   : > { %9732 = vmatprep.subr.mxu0 %v3621_v45  ;;  %9718 = vmatmul.mubr.f32.gmra.mxu1 %v11938_v51  ;;  %v12076_v61 = vpop.f32.mrf.mxu1  ;;  %v3751_v16 = vld [vmem:[#allocation7 + $0x720] sm:$0xff] }
 0x29c   : > { %9776 = vmatprep.subr.mxu1 %v3759_v8  ;;  %v9241_v44 = vpop.f32.mrf.mxu0  ;;  %9676 = vmatprep.mubr.f32.mxu0 %v11873_v53  ;;  %v3618_v53 = vld [vmem:[#allocation7 + $0x6c8] sm:$0xff] }
 0x29d   : > { %9733 = vmatpush3.msra.mxu0 %v3621_v45  ;;  %v2127_v57 = vadd.f32 %v9241_v44, %v12043_v35  ;;  %9777 = vmatpush3.msra.mxu1 %v3759_v8  ;;  %v3756_v35 = vld [vmem:[#allocation7 + $0x748] sm:$0xff]  ;;  %v3613_v8 = vld [vmem:[#allocation7 + $0x6a0] sm:$0xff]  ;;  %v2092_v44 = vadd.f32 %v12050_v26, %v12026_v59 }
 0x29e   : > { %9677 = vmatmul.mubr.f32.gmra.mxu0 %v11879_v62  ;;  %9734 = vmatprep.subr.mxu0 %v3620_v21  ;;  %v12087_v62 = vld [vmem:[%s11514_s20 + $0x91] sm:$0xff]  ;;  %v3614_v45 = vld [vmem:[#allocation7 + $0x6a8] sm:$0xff] }
 0x29f   : > { %9778 = vmatprep.subr.mxu1 %v3758_v3  ;;  %9720 = vmatprep.mubr.f32.mxu1 %v11943_v36  ;;  %v9285_v51 = vpop.f32.mrf.mxu1  ;;  %v3617_v36 = vld [vmem:[#allocation7 + $0x6c0] sm:$0xff] }
 0x2a0   : > { %9735 = vmatpush3.msra.mxu0 %v3620_v21  ;;  %9779 = vmatpush3.msra.mxu1 %v3758_v3  ;;  %v12082_v12 = vadd.f32 %v9285_v51, %v2127_v57  ;;  %v3612_v21 = vld [vmem:[#allocation7 + $0x698] sm:$0xff]  ;;  %v12097_v57 = vpop.f32.mrf.mxu0 }
 0x2a1   : > { %9736 = vmatprep.subr.mxu0 %v3619_v54  ;;  %9721 = vmatmul.mubr.f32.gmra.mxu1 %v11957_v22  ;;  %v3616_v22 = vld [vmem:[#allocation7 + $0x6b8] sm:$0xff]  ;;  %v12099_v51 = vpop.f32.mrf.mxu1 }
 0x2a2   : > { %9780 = vmatprep.subr.mxu1 %v3757_v2  ;;  %9679 = vmatprep.mubr.f32.mxu0 %v11883_v6  ;;  %v3615_v6 = vld [vmem:[#allocation7 + $0x6b0] sm:$0xff]  ;;  %v3750_v3 = vld [vmem:[#allocation7 + $0x718] sm:$0xff] }
 0x2a3   : > { %9737 = vmatpush3.msra.mxu0 %v3619_v54  ;;  %9781 = vmatpush3.msra.mxu1 %v3757_v2  ;;  %v3611_v54 = vld [vmem:[#allocation7 + $0x690] sm:$0xff] }
 0x2a4   : > { %9680 = vmatmul.mubr.f32.gmra.mxu0 %v12087_v62  ;;  %9738 = vmatprep.subr.mxu0 %v3618_v53  ;;  %v3749_v2 = vld [vmem:[#allocation7 + $0x710] sm:$0xff] }
 0x2a5   : > { %9782 = vmatprep.subr.mxu1 %v3756_v35  ;;  %9723 = vmatprep.mubr.f32.mxu1 %v11961_v9  ;;  %v3752_v9 = vld [vmem:[#allocation7 + $0x728] sm:$0xff] }
 0x2a6   : > { %9739 = vmatpush3.msra.mxu0 %v3618_v53  ;;  %9783 = vmatpush3.msra.mxu1 %v3756_v35  ;;  %v3610_v35 = vld [vmem:[#allocation7 + $0x688] sm:$0xff] }
 0x2a7   : > { %9740 = vmatprep.subr.mxu0 %v3617_v36  ;;  %9724 = vmatmul.mubr.f32.gmra.mxu1 %v12092_v20 }
 0x2a8   : > { %9784 = vmatprep.subr.mxu1 %v3755_v50  ;;  %9741 = vmatpush3.msra.mxu0 %v3617_v36  ;;  %v3748_v36 = vld [vmem:[#allocation7 + $0x708] sm:$0xff] }
 0x2a9   : > { %9785 = vmatpush3.msra.mxu1 %v3755_v50  ;;  %9742 = vmatprep.subr.mxu0 %v3616_v22  ;;  %v2260_v50 = vadd.f32 %v12054_v38, %v2092_v44 }
 0x2aa   : > { %9786 = vmatprep.subr.mxu1 %v3754_v10  ;;  %9743 = vmatpush3.msra.mxu0 %v3616_v22 }
 0x2ab   : > { %9787 = vmatpush3.msra.mxu1 %v3754_v10  ;;  %9744 = vmatprep.subr.mxu0 %v3615_v6  ;;  %v3609_v10 = vld [vmem:[#allocation7 + $0x680] sm:$0xff] }
 0x2ac   : > { %9788 = vmatprep.subr.mxu1 %v3753_v60  ;;  %9745 = vmatpush3.msra.mxu0 %v3615_v6  ;;  %v3747_v6 = vld [vmem:[#allocation7 + $0x700] sm:$0xff] }
 0x2ad   : > { %9789 = vmatpush3.msra.mxu1 %v3753_v60  ;;  %9746 = vmatprep.subr.mxu0 %v3614_v45  ;;  %v2102_v60 = vadd.f32 %v12059_v7, %v12036_v11  ;;  %v4030_v11 = vld [vmem:[#allocation7 + $0x878] sm:$0xff] }
 0x2ae   : > { %9790 = vmatprep.subr.mxu1 %v3752_v9  ;;  %9747 = vmatpush3.msra.mxu0 %v3614_v45  ;;  %v12112_v7 = vld [vmem:[%s11514_s20 + $0x34] sm:$0xff] }
 0x2af   : > { %9791 = vmatpush3.msra.mxu1 %v3752_v9  ;;  %9748 = vmatprep.subr.mxu0 %v3613_v8 }
 0x2b0   : > { %9792 = vmatprep.subr.mxu1 %v3751_v16  ;;  %9749 = vmatpush3.msra.mxu0 %v3613_v8  ;;  %v7720_v8 = vld [vmem:[%s11514_s20 + $0x24] sm:$0xff] }
 0x2b1   : > { %9793 = vmatpush3.msra.mxu1 %v3751_v16  ;;  %9750 = vmatprep.subr.mxu0 %v3612_v21  ;;  %v3900_v16 = vld [vmem:[#allocation7 + $0x7f8] sm:$0xff] }
 0x2b2   : > { %9794 = vmatprep.subr.mxu1 %v3750_v3  ;;  %v9320_v53 = vpop.f32.mrf.mxu0  ;;  %9751 = vmatpush3.msra.mxu0 %v3612_v21 }
 0x2b3   : > { %9795 = vmatpush3.msra.mxu1 %v3750_v3  ;;  %v2399_v26 = vadd.f32 %v9320_v53, %v12052_v0  ;;  %9752 = vmatprep.subr.mxu0 %v3611_v54  ;;  %v2262_v3 = vadd.f32 %v12065_v14, %v2102_v60  ;;  %v4029_v53 = vld [vmem:[#allocation7 + $0x870] sm:$0xff]  ;;  %v4028_v14 = vld [vmem:[#allocation7 + $0x868] sm:$0xff] }
 0x2b4   : > { %9796 = vmatprep.subr.mxu1 %v3749_v2  ;;  %v9364_v59 = vpop.f32.mrf.mxu1  ;;  %v2359_v22 = vpop.f32.mrf.mxu0  ;;  %9753 = vmatpush3.msra.mxu0 %v3611_v54  ;;  %v12132_v60 = vld [vmem:[%s11514_s20 + $0x54] sm:$0xff] }
 0x2b5   : > { %9797 = vmatpush3.msra.mxu1 %v3749_v2  ;;  %v12105_v45 = vadd.f32 %v9364_v59, %v2399_v26  ;;  %v2398_v9 = vadd.f32 %v2359_v22, %v2260_v50  ;;  %9754 = vmatprep.subr.mxu0 %v3610_v35  ;;  %v3899_v2 = vld [vmem:[#allocation7 + $0x7f0] sm:$0xff] }
 0x2b6   : > { %9798 = vmatprep.subr.mxu1 %v3748_v36  ;;  %v2497_v38 = vpop.f32.mrf.mxu1  ;;  %9755 = vmatpush3.msra.mxu0 %v3610_v35  ;;  %v2112_v35 = vadd.f32 %v12070_v31, %v12041_v27  ;;  %v12124_v27 = vld [vmem:[%s11514_s20 + $0x44] sm:$0xff] }
 0x2b7   : > { %9799 = vmatpush3.msra.mxu1 %v3748_v36  ;;  %v12107_v0 = vadd.f32 %v2497_v38, %v2398_v9  ;;  %9756 = vmatprep.subr.mxu0 %v3609_v10  ;;  %v4027_v9 = vld [vmem:[#allocation7 + $0x860] sm:$0xff] }
 0x2b8   : > { %9800 = vmatprep.subr.mxu1 %v3747_v6  ;;  %v9323_v21 = vpop.f32.mrf.mxu0  ;;  %9757 = vmatpush3.msra.mxu0 %v3609_v10  ;;  %v2264_v31 = vadd.f32 %v12076_v61, %v2112_v35  ;;  %v3897_v10 = vld [vmem:[#allocation7 + $0x7e0] sm:$0xff]  ;;  %v4024_v35 = vld [vmem:[#allocation7 + $0x848] sm:$0xff] }
 0x2b9   : > { %9758 = vmatprep.mubr.f32.mxu0 %v11907_v25  ;;  %v2401_v44 = vadd.f32 %v9323_v21, %v12063_v1  ;;  %9801 = vmatpush3.msra.mxu1 %v3747_v6 }
 0x2ba   : > { %9759 = vmatmul.mubr.f32.vlgmr.msra.gmra.mxu0 %v11926_v40  ;;  %v2369_v54 = vpop.f32.mrf.mxu0  ;;  %9802 = vmatprep.mubr.f32.mxu1 %v7720_v8  ;;  %v3898_v40 = vld [vmem:[#allocation7 + $0x7e8] sm:$0xff]  ;;  %v4026_v8 = vld [vmem:[#allocation7 + $0x858] sm:$0xff] }
 0x2bb   : > { %9814 = vmatprep.subr.mxu0 %v3900_v16  ;;  %v2400_v25 = vadd.f32 %v2369_v54, %v2262_v3  ;;  %9858 = vmatprep.subr.mxu1 %v4030_v11  ;;  %v9367_v36 = vpop.f32.mrf.mxu1 }
 0x2bc   : > { %9803 = vmatmul.mubr.f32.vlgmr.msra.gmra.mxu1 %v12112_v7  ;;  %9815 = vmatpush3.msra.mxu0 %v3900_v16  ;;  %v12120_v1 = vadd.f32 %v9367_v36, %v2401_v44  ;;  %v3895_v44 = vld [vmem:[#allocation7 + $0x7d0] sm:$0xff] }
 0x2bd   : > { %9859 = vmatpush3.msra.mxu1 %v4030_v11  ;;  %9816 = vmatprep.subr.mxu0 %v3899_v2  ;;  %v2507_v26 = vpop.f32.mrf.mxu1 }
 0x2be   : > { %9860 = vmatprep.subr.mxu1 %v4029_v53  ;;  %v9326_v50 = vpop.f32.mrf.mxu0  ;;  %9761 = vmatprep.mubr.f32.mxu0 %v11932_v4  ;;  %v12128_v22 = vadd.f32 %v2507_v26, %v2400_v25  ;;  %v2122_v4 = vadd.f32 %v12097_v57, %v12047_v33  ;;  %v12142_v33 = vld [vmem:[%s11514_s20 + $0x64] sm:$0xff] }
 0x2bf   : > { %9817 = vmatpush3.msra.mxu0 %v3899_v2  ;;  %v2403_v59 = vadd.f32 %v9326_v50, %v12073_v34  ;;  %9861 = vmatpush3.msra.mxu1 %v4029_v53  ;;  %v12150_v2 = vld [vmem:[%s11514_s20 + $0x74] sm:$0xff]  ;;  %v4023_v26 = vld [vmem:[#allocation7 + $0x840] sm:$0xff] }
 0x2c0   : > { %9762 = vmatmul.mubr.f32.gmra.mxu0 %v11947_v43  ;;  %v2379_v6 = vpop.f32.mrf.mxu0  ;;  %9818 = vmatprep.subr.mxu0 %v3898_v40  ;;  %v3896_v43 = vld [vmem:[#allocation7 + $0x7d8] sm:$0xff]  ;;  %v2266_v57 = vadd.f32 %v12099_v51, %v2122_v4  ;;  %v4025_v53 = vld [vmem:[#allocation7 + $0x850] sm:$0xff]  ;;  %v4019_v4 = vld [vmem:[#allocation7 + $0x820] sm:$0xff] }
 0x2c1   : > { %9862 = vmatprep.subr.mxu1 %v4028_v14  ;;  %v2402_v38 = vadd.f32 %v2379_v6, %v2264_v31  ;;  %9805 = vmatprep.mubr.f32.mxu1 %v12124_v27  ;;  %v9370_v34 = vpop.f32.mrf.mxu1  ;;  %v12164_v50 = vld [vmem:[%s11514_s20 + $0x94] sm:$0xff]  ;;  %v3890_v6 = vld [vmem:[#allocation7 + $0x7a8] sm:$0xff] }
 0x2c2   : > { %9819 = vmatpush3.msra.mxu0 %v3898_v40  ;;  %9863 = vmatpush3.msra.mxu1 %v4028_v14  ;;  %v12137_v61 = vadd.f32 %v9370_v34, %v2403_v59  ;;  %v12160_v40 = vld [vmem:[%s11514_s20 + $0x93] sm:$0xff]  ;;  %v3893_v14 = vld [vmem:[#allocation7 + $0x7c0] sm:$0xff] }
 0x2c3   : > { %9820 = vmatprep.subr.mxu0 %v3897_v10  ;;  %9806 = vmatmul.mubr.f32.gmra.mxu1 %v12132_v60  ;;  %v2517_v21 = vpop.f32.mrf.mxu1  ;;  %v4022_v31 = vld [vmem:[#allocation7 + $0x838] sm:$0xff]  ;;  %v3891_v59 = vld [vmem:[#allocation7 + $0x7b0] sm:$0xff] }
 0x2c4   : > { %9864 = vmatprep.subr.mxu1 %v4027_v9  ;;  %v9329_v16 = vpop.f32.mrf.mxu0  ;;  %9764 = vmatprep.mubr.f32.mxu0 %v11953_v23  ;;  %v12146_v3 = vadd.f32 %v2517_v21, %v2402_v38  ;;  %v3888_v38 = vld [vmem:[#allocation7 + $0x798] sm:$0xff]  ;;  %v3886_v21 = vld [vmem:[#allocation7 + $0x788] sm:$0xff] }
 0x2c5   : > { %9821 = vmatpush3.msra.mxu0 %v3897_v10  ;;  %v2405_v11 = vadd.f32 %v9329_v16, %v12082_v12  ;;  %9865 = vmatpush3.msra.mxu1 %v4027_v9  ;;  %v4021_v10 = vld [vmem:[#allocation7 + $0x830] sm:$0xff]  ;;  %v4020_v9 = vld [vmem:[#allocation7 + $0x828] sm:$0xff]  ;;  %v4018_v34 = vld [vmem:[#allocation7 + $0x818] sm:$0xff] }
 0x2c6   : > { %9765 = vmatmul.mubr.f32.gmra.mxu0 %v11965_v55  ;;  %v2389_v54 = vpop.f32.mrf.mxu0  ;;  %9822 = vmatprep.subr.mxu0 %v3896_v43  ;;  %v3894_v55 = vld [vmem:[#allocation7 + $0x7c8] sm:$0xff] }
 0x2c7   : > { %9866 = vmatprep.subr.mxu1 %v4026_v8  ;;  %v2404_v23 = vadd.f32 %v2389_v54, %v2266_v57  ;;  %9808 = vmatprep.mubr.f32.mxu1 %v12142_v33  ;;  %v9373_v51 = vpop.f32.mrf.mxu1  ;;  %v4016_v57 = vld [vmem:[#allocation7 + $0x808] sm:$0xff] }
 0x2c8   : > { %9823 = vmatpush3.msra.mxu0 %v3896_v43  ;;  %9867 = vmatpush3.msra.mxu1 %v4026_v8  ;;  %v12153_v12 = vadd.f32 %v9373_v51, %v2405_v11  ;;  %v3887_v43 = vld [vmem:[#allocation7 + $0x790] sm:$0xff] }
 0x2c9   : > { %9824 = vmatprep.subr.mxu0 %v3895_v44  ;;  %9809 = vmatmul.mubr.f32.gmra.mxu1 %v12150_v2  ;;  %v2527_v25 = vpop.f32.mrf.mxu1  ;;  %v4017_v8 = vld [vmem:[#allocation7 + $0x810] sm:$0xff] }
 0x2ca   : > { %9868 = vmatprep.subr.mxu1 %v4025_v53  ;;  %9767 = vmatprep.mubr.f32.mxu0 %v11969_v19  ;;  %v12157_v36 = vadd.f32 %v2527_v25, %v2404_v23  ;;  %v3892_v19 = vld [vmem:[#allocation7 + $0x7b8] sm:$0xff]  ;;  %v4015_v23 = vld [vmem:[#allocation7 + $0x800] sm:$0xff] }
 0x2cb   : > { %9825 = vmatpush3.msra.mxu0 %v3895_v44  ;;  %9869 = vmatpush3.msra.mxu1 %v4025_v53  ;;  %v3885_v53 = vld [vmem:[#allocation7 + $0x780] sm:$0xff] }
 0x2cc   : > { %9768 = vmatmul.mubr.f32.gmra.mxu0 %v12160_v40  ;;  %9826 = vmatprep.subr.mxu0 %v3894_v55 }
 0x2cd   : > { %9870 = vmatprep.subr.mxu1 %v4024_v35  ;;  %9811 = vmatprep.mubr.f32.mxu1 %v12023_v58  ;;  %v3889_v58 = vld [vmem:[#allocation7 + $0x7a0] sm:$0xff] }
 0x2ce   : > { %9827 = vmatpush3.msra.mxu0 %v3894_v55  ;;  %9871 = vmatpush3.msra.mxu1 %v4024_v35 }
 0x2cf   : > { %9828 = vmatprep.subr.mxu0 %v3893_v14  ;;  %9812 = vmatmul.mubr.f32.gmra.mxu1 %v12164_v50 }
 0x2d0   : > { %9872 = vmatprep.subr.mxu1 %v4023_v26  ;;  %9829 = vmatpush3.msra.mxu0 %v3893_v14 }
 0x2d1   : > { %9873 = vmatpush3.msra.mxu1 %v4023_v26  ;;  %9830 = vmatprep.subr.mxu0 %v3892_v19  ;;  %v4290_v26 = vld [vmem:[#allocation7 + $0x978] sm:$0xff] }
 0x2d2   : > { %9874 = vmatprep.subr.mxu1 %v4022_v31  ;;  %9831 = vmatpush3.msra.mxu0 %v3892_v19 }
 0x2d3   : > { %9875 = vmatpush3.msra.mxu1 %v4022_v31  ;;  %9832 = vmatprep.subr.mxu0 %v3891_v59  ;;  %v10775_v31 = vld [vmem:[%s11514_s20 + $0x31] sm:$0xff] }
 0x2d4   : > { %9876 = vmatprep.subr.mxu1 %v4021_v10  ;;  %9833 = vmatpush3.msra.mxu0 %v3891_v59  ;;  %v4159_v59 = vld [vmem:[#allocation7 + $0x8f0] sm:$0xff] }
 0x2d5   : > { %9877 = vmatpush3.msra.mxu1 %v4021_v10  ;;  %9834 = vmatprep.subr.mxu0 %v3890_v6  ;;  %v4289_v10 = vld [vmem:[#allocation7 + $0x970] sm:$0xff] }
 0x2d6   : > { %9878 = vmatprep.subr.mxu1 %v4020_v9  ;;  %9835 = vmatpush3.msra.mxu0 %v3890_v6 }
 0x2d7   : > { %9879 = vmatpush3.msra.mxu1 %v4020_v9  ;;  %9836 = vmatprep.subr.mxu0 %v3889_v58  ;;  %v10776_v9 = vld [vmem:[%s11514_s20 + $0x41] sm:$0xff] }
 0x2d8   : > { %9880 = vmatprep.subr.mxu1 %v4019_v4  ;;  %9837 = vmatpush3.msra.mxu0 %v3889_v58 }
 0x2d9   : > { %9881 = vmatpush3.msra.mxu1 %v4019_v4  ;;  %9838 = vmatprep.subr.mxu0 %v3888_v38 }
 0x2da   : > { %9882 = vmatprep.subr.mxu1 %v4018_v34  ;;  %v9408_v16 = vpop.f32.mrf.mxu0  ;;  %9839 = vmatpush3.msra.mxu0 %v3888_v38 }
 0x2db   : > { %9883 = vmatpush3.msra.mxu1 %v4018_v34  ;;  %v2675_v11 = vadd.f32 %v9408_v16, %v12105_v45  ;;  %9840 = vmatprep.subr.mxu0 %v3887_v43  ;;  %v4160_v45 = vld [vmem:[#allocation7 + $0x8f8] sm:$0xff]  ;;  %v4287_v16 = vld [vmem:[#allocation7 + $0x960] sm:$0xff] }
 0x2dc   : > { %9884 = vmatprep.subr.mxu1 %v4017_v8  ;;  %v9452_v44 = vpop.f32.mrf.mxu1  ;;  %v2635_v54 = vpop.f32.mrf.mxu0  ;;  %9841 = vmatpush3.msra.mxu0 %v3887_v43  ;;  %v4157_v43 = vld [vmem:[#allocation7 + $0x8e0] sm:$0xff] }
 0x2dd   : > { %9885 = vmatpush3.msra.mxu1 %v4017_v8  ;;  %v12169_v51 = vadd.f32 %v9452_v44, %v2675_v11  ;;  %v2674_v55 = vadd.f32 %v2635_v54, %v12107_v0  ;;  %9842 = vmatprep.subr.mxu0 %v3886_v21  ;;  %v10778_v44 = vld [vmem:[%s11514_s20 + $0x61] sm:$0xff]  ;;  %v4286_v54 = vld [vmem:[#allocation7 + $0x958] sm:$0xff] }
 0x2de   : > { %9886 = vmatprep.subr.mxu1 %v4016_v57  ;;  %v2765_v35 = vpop.f32.mrf.mxu1  ;;  %9843 = vmatpush3.msra.mxu0 %v3886_v21 }
 0x2df   : > { %9887 = vmatpush3.msra.mxu1 %v4016_v57  ;;  %v12172_v25 = vadd.f32 %v2765_v35, %v2674_v55  ;;  %9844 = vmatprep.subr.mxu0 %v3885_v53  ;;  %v10777_v57 = vld [vmem:[%s11514_s20 + $0x51] sm:$0xff] }
 0x2e0   : > { %9888 = vmatprep.subr.mxu1 %v4015_v23  ;;  %v9411_v14 = vpop.f32.mrf.mxu0  ;;  %9845 = vmatpush3.msra.mxu0 %v3885_v53  ;;  %v4155_v35 = vld [vmem:[#allocation7 + $0x8d0] sm:$0xff] }
 0x2e1   : > { %9846 = vmatprep.mubr.f32.mxu0 %v11982_v48  ;;  %v2677_v19 = vadd.f32 %v9411_v14, %v12120_v1  ;;  %9889 = vmatpush3.msra.mxu1 %v4015_v23  ;;  %v4158_v1 = vld [vmem:[#allocation7 + $0x8e8] sm:$0xff]  ;;  %v4285_v14 = vld [vmem:[#allocation7 + $0x950] sm:$0xff] }
 0x2e2   : > { %9847 = vmatmul.mubr.f32.vlgmr.msra.gmra.mxu0 %v11996_v39  ;;  %v2645_v0 = vpop.f32.mrf.mxu0  ;;  %9890 = vmatprep.mubr.f32.mxu1 %v10775_v31  ;;  %v4288_v39 = vld [vmem:[#allocation7 + $0x968] sm:$0xff] }
 0x2e3   : > { %9902 = vmatprep.subr.mxu0 %v4160_v45  ;;  %v2676_v6 = vadd.f32 %v2645_v0, %v12128_v22  ;;  %9946 = vmatprep.subr.mxu1 %v4290_v26  ;;  %v9455_v58 = vpop.f32.mrf.mxu1  ;;  %v10780_v31 = vld [vmem:[%s11514_s20 + $0x81] sm:$0xff] }
 0x2e4   : > { %9891 = vmatmul.mubr.f32.vlgmr.msra.gmra.mxu1 %v10776_v9  ;;  %9903 = vmatpush3.msra.mxu0 %v4160_v45  ;;  %v12180_v48 = vadd.f32 %v9455_v58, %v2677_v19  ;;  %v10779_v19 = vld [vmem:[%s11514_s20 + $0x71] sm:$0xff]  ;;  %v4153_v9 = vld [vmem:[#allocation7 + $0x8c0] sm:$0xff] }
 0x2e5   : > { %9947 = vmatpush3.msra.mxu1 %v4290_v26  ;;  %9904 = vmatprep.subr.mxu0 %v4159_v59  ;;  %v2775_v38 = vpop.f32.mrf.mxu1  ;;  %v4283_v58 = vld [vmem:[#allocation7 + $0x940] sm:$0xff] }
 0x2e6   : > { %9948 = vmatprep.subr.mxu1 %v4289_v10  ;;  %v9414_v4 = vpop.f32.mrf.mxu0  ;;  %9849 = vmatprep.mubr.f32.mxu0 %v12002_v28  ;;  %v12184_v34 = vadd.f32 %v2775_v38, %v2676_v6  ;;  %v4281_v38 = vld [vmem:[#allocation7 + $0x930] sm:$0xff] }
 0x2e7   : > { %9905 = vmatpush3.msra.mxu0 %v4159_v59  ;;  %v2679_v22 = vadd.f32 %v9414_v4, %v12137_v61  ;;  %9949 = vmatpush3.msra.mxu1 %v4289_v10  ;;  %v12190_v61 = vld [vmem:[%s11514_s20 + $0x80] sm:$0xff]  ;;  %v4154_v59 = vld [vmem:[#allocation7 + $0x8c8] sm:$0xff] }
 0x2e8   : > { %9850 = vmatmul.mubr.f32.gmra.mxu0 %v12013_v13  ;;  %v2655_v8 = vpop.f32.mrf.mxu0  ;;  %9906 = vmatprep.subr.mxu0 %v4158_v1  ;;  %v4156_v13 = vld [vmem:[#allocation7 + $0x8d8] sm:$0xff]  ;;  %v4284_v10 = vld [vmem:[#allocation7 + $0x948] sm:$0xff] }
 0x2e9   : > { %9950 = vmatprep.subr.mxu1 %v4288_v39  ;;  %v2678_v21 = vadd.f32 %v2655_v8, %v12146_v3  ;;  %9893 = vmatprep.mubr.f32.mxu1 %v10777_v57  ;;  %v9458_v28 = vpop.f32.mrf.mxu1  ;;  %v10781_v4 = vld [vmem:[%s11514_s20 + $0xa1] sm:$0xff]  ;;  %v4147_v57 = vld [vmem:[#allocation7 + $0x890] sm:$0xff] }
 0x2ea   : > { %9907 = vmatpush3.msra.mxu0 %v4158_v1  ;;  %9951 = vmatpush3.msra.mxu1 %v4288_v39  ;;  %v12192_v11 = vadd.f32 %v9458_v28, %v2679_v22  ;;  %v4152_v1 = vld [vmem:[#allocation7 + $0x8b8] sm:$0xff]  ;;  %v4150_v22 = vld [vmem:[#allocation7 + $0x8a8] sm:$0xff]  ;;  %v4279_v8 = vld [vmem:[#allocation7 + $0x920] sm:$0xff] }
 0x2eb   : > { %9908 = vmatprep.subr.mxu0 %v4157_v43  ;;  %9894 = vmatmul.mubr.f32.gmra.mxu1 %v10778_v44  ;;  %v2785_v23 = vpop.f32.mrf.mxu1  ;;  %v4282_v39 = vld [vmem:[#allocation7 + $0x938] sm:$0xff]  ;;  %v4277_v28 = vld [vmem:[#allocation7 + $0x910] sm:$0xff] }
 0x2ec   : > { %9952 = vmatprep.subr.mxu1 %v4287_v16  ;;  %v9417_v53 = vpop.f32.mrf.mxu0  ;;  %9852 = vmatprep.mubr.f32.mxu0 %v12019_v47  ;;  %v12197_v55 = vadd.f32 %v2785_v23, %v2678_v21  ;;  %v4278_v21 = vld [vmem:[#allocation7 + $0x918] sm:$0xff] }
 0x2ed   : > { %9909 = vmatpush3.msra.mxu0 %v4157_v43  ;;  %v2681_v3 = vadd.f32 %v9417_v53, %v12153_v12  ;;  %9953 = vmatpush3.msra.mxu1 %v4287_v16  ;;  %v12203_v12 = vld [vmem:[%s11514_s20 + $0xa0] sm:$0xff]  ;;  %v4280_v43 = vld [vmem:[#allocation7 + $0x928] sm:$0xff]  ;;  %v4148_v16 = vld [vmem:[#allocation7 + $0x898] sm:$0xff] }
 0x2ee   : > { %9853 = vmatmul.mubr.f32.gmra.mxu0 %v12190_v61  ;;  %v2665_v45 = vpop.f32.mrf.mxu0  ;;  %9910 = vmatprep.subr.mxu0 %v4156_v13 }
 0x2ef   : > { %9954 = vmatprep.subr.mxu1 %v4286_v54  ;;  %v2680_v26 = vadd.f32 %v2665_v45, %v12157_v36  ;;  %9896 = vmatprep.mubr.f32.mxu1 %v10779_v19  ;;  %v9461_v47 = vpop.f32.mrf.mxu1  ;;  %v4275_v45 = vld [vmem:[#allocation7 + $0x900] sm:$0xff] }
 0x2f0   : > { %9911 = vmatpush3.msra.mxu0 %v4156_v13  ;;  %9955 = vmatpush3.msra.mxu1 %v4286_v54  ;;  %v12205_v0 = vadd.f32 %v9461_v47, %v2681_v3  ;;  %v4146_v13 = vld [vmem:[#allocation7 + $0x888] sm:$0xff]  ;;  %v4428_v47 = vld [vmem:[#allocation7 + $0x9f8] sm:$0xff] }
 0x2f1   : > { %9912 = vmatprep.subr.mxu0 %v4155_v35  ;;  %9897 = vmatmul.mubr.f32.gmra.mxu1 %v10780_v31  ;;  %v2795_v6 = vpop.f32.mrf.mxu1  ;;  %v4276_v54 = vld [vmem:[#allocation7 + $0x908] sm:$0xff] }
 0x2f2   : > { %9956 = vmatprep.subr.mxu1 %v4285_v14  ;;  %9855 = vmatprep.mubr.f32.mxu0 %v12033_v24  ;;  %v12209_v36 = vadd.f32 %v2795_v6, %v2680_v26  ;;  %v4151_v24 = vld [vmem:[#allocation7 + $0x8b0] sm:$0xff]  ;;  %v10783_v6 = vld [vmem:[%s11514_s20 + $0x42] sm:$0xff] }
 0x2f3   : > { %9913 = vmatpush3.msra.mxu0 %v4155_v35  ;;  %9957 = vmatpush3.msra.mxu1 %v4285_v14  ;;  %v4145_v35 = vld [vmem:[#allocation7 + $0x880] sm:$0xff] }
 0x2f4   : > { %9856 = vmatmul.mubr.f32.gmra.mxu0 %v12203_v12  ;;  %9914 = vmatprep.subr.mxu0 %v4154_v59 }
 0x2f5   : > { %9958 = vmatprep.subr.mxu1 %v4284_v10  ;;  %9899 = vmatprep.mubr.f32.mxu1 %v12087_v62  ;;  %v4149_v62 = vld [vmem:[#allocation7 + $0x8a0] sm:$0xff] }
 0x2f6   : > { %9915 = vmatpush3.msra.mxu0 %v4154_v59  ;;  %9959 = vmatpush3.msra.mxu1 %v4284_v10  ;;  %v10782_v59 = vld [vmem:[%s11514_s20 + $0x32] sm:$0xff] }
 0x2f7   : > { %9916 = vmatprep.subr.mxu0 %v4153_v9  ;;  %9900 = vmatmul.mubr.f32.gmra.mxu1 %v10781_v4  ;;  %v4567_v10 = vld [vmem:[#allocation7 + $0xa78] sm:$0xff] }
 0x2f8   : > { %9960 = vmatprep.subr.mxu1 %v4283_v58  ;;  %9917 = vmatpush3.msra.mxu0 %v4153_v9 }
 0x2f9   : > { %9961 = vmatpush3.msra.mxu1 %v4283_v58  ;;  %9918 = vmatprep.subr.mxu0 %v4152_v1  ;;  %v10784_v58 = vld [vmem:[%s11514_s20 + $0x33] sm:$0xff] }
 0x2fa   : > { %9962 = vmatprep.subr.mxu1 %v4282_v39  ;;  %9919 = vmatpush3.msra.mxu0 %v4152_v1  ;;  %v4427_v1 = vld [vmem:[#allocation7 + $0x9f0] sm:$0xff] }
 0x2fb   : > { %9963 = vmatpush3.msra.mxu1 %v4282_v39  ;;  %9920 = vmatprep.subr.mxu0 %v4151_v24  ;;  %v4566_v39 = vld [vmem:[#allocation7 + $0xa70] sm:$0xff] }
 0x2fc   : > { %9964 = vmatprep.subr.mxu1 %v4281_v38  ;;  %9921 = vmatpush3.msra.mxu0 %v4151_v24  ;;  %v10785_v24 = vld [vmem:[%s11514_s20 + $0x43] sm:$0xff] }
 0x2fd   : > { %9965 = vmatpush3.msra.mxu1 %v4281_v38  ;;  %9922 = vmatprep.subr.mxu0 %v4150_v22 }
 0x2fe   : > { %9966 = vmatprep.subr.mxu1 %v4280_v43  ;;  %9923 = vmatpush3.msra.mxu0 %v4150_v22  ;;  %v4426_v22 = vld [vmem:[#allocation7 + $0x9e8] sm:$0xff] }
 0x2ff   : > { %9967 = vmatpush3.msra.mxu1 %v4280_v43  ;;  %9924 = vmatprep.subr.mxu0 %v4149_v62  ;;  %v4565_v43 = vld [vmem:[#allocation7 + $0xa68] sm:$0xff] }
 0x300   : > { %9968 = vmatprep.subr.mxu1 %v4279_v8  ;;  %9925 = vmatpush3.msra.mxu0 %v4149_v62 }
 0x301   : > { %9969 = vmatpush3.msra.mxu1 %v4279_v8  ;;  %9926 = vmatprep.subr.mxu0 %v4148_v16 }
 0x302   : > { %9970 = vmatprep.subr.mxu1 %v4278_v21  ;;  %v9496_v44 = vpop.f32.mrf.mxu0  ;;  %9927 = vmatpush3.msra.mxu0 %v4148_v16  ;;  %v10786_v16 = vld [vmem:[%s11514_s20 + $0x52] sm:$0xff] }
 0x303   : > { %9971 = vmatpush3.msra.mxu1 %v4278_v21  ;;  %v2935_v53 = vadd.f32 %v9496_v44, %v12169_v51  ;;  %9928 = vmatprep.subr.mxu0 %v4147_v57 }
 0x304   : > { %9972 = vmatprep.subr.mxu1 %v4277_v28  ;;  %v9540_v23 = vpop.f32.mrf.mxu1  ;;  %v2895_v3 = vpop.f32.mrf.mxu0  ;;  %9929 = vmatpush3.msra.mxu0 %v4147_v57  ;;  %v10787_v57 = vld [vmem:[%s11514_s20 + $0x62] sm:$0xff] }
 0x305   : > { %9973 = vmatpush3.msra.mxu1 %v4277_v28  ;;  %v12215_v14 = vadd.f32 %v9540_v23, %v2935_v53  ;;  %v2934_v26 = vadd.f32 %v2895_v3, %v12172_v25  ;;  %9930 = vmatprep.subr.mxu0 %v4146_v13  ;;  %v4425_v28 = vld [vmem:[#allocation7 + $0x9e0] sm:$0xff]  ;;  %v10788_v53 = vld [vmem:[%s11514_s20 + $0x53] sm:$0xff] }
 0x306   : > { %9974 = vmatprep.subr.mxu1 %v4276_v54  ;;  %v3025_v19 = vpop.f32.mrf.mxu1  ;;  %9931 = vmatpush3.msra.mxu0 %v4146_v13  ;;  %v4564_v13 = vld [vmem:[#allocation7 + $0xa60] sm:$0xff] }
 0x307   : > { %9975 = vmatpush3.msra.mxu1 %v4276_v54  ;;  %v12218_v51 = vadd.f32 %v3025_v19, %v2934_v26  ;;  %9932 = vmatprep.subr.mxu0 %v4145_v35  ;;  %v10789_v3 = vld [vmem:[%s11514_s20 + $0x63] sm:$0xff] }
 0x308   : > { %9976 = vmatprep.subr.mxu1 %v4275_v45  ;;  %v9499_v31 = vpop.f32.mrf.mxu0  ;;  %9933 = vmatpush3.msra.mxu0 %v4145_v35  ;;  %v4424_v35 = vld [vmem:[#allocation7 + $0x9d8] sm:$0xff] }
 0x309   : > { %9934 = vmatprep.mubr.f32.mxu0 %v10782_v59  ;;  %v2937_v25 = vadd.f32 %v9499_v31, %v12180_v48  ;;  %9977 = vmatpush3.msra.mxu1 %v4275_v45  ;;  %v4563_v45 = vld [vmem:[#allocation7 + $0xa58] sm:$0xff]  ;;  %v10791_v59 = vld [vmem:[%s11514_s20 + $0x82] sm:$0xff] }
 0x30a   : > { %9935 = vmatmul.mubr.f32.vlgmr.msra.gmra.mxu0 %v10783_v6  ;;  %v2905_v9 = vpop.f32.mrf.mxu0  ;;  %9978 = vmatprep.mubr.f32.mxu1 %v10784_v58  ;;  %v4562_v6 = vld [vmem:[#allocation7 + $0xa50] sm:$0xff] }
 0x30b   : > { %9990 = vmatprep.subr.mxu0 %v4428_v47  ;;  %v2936_v4 = vadd.f32 %v2905_v9, %v12184_v34  ;;  %10034 = vmatprep.subr.mxu1 %v4567_v10  ;;  %v9543_v38 = vpop.f32.mrf.mxu1  ;;  %v10792_v58 = vld [vmem:[%s11514_s20 + $0x73] sm:$0xff] }
 0x30c   : > { %9979 = vmatmul.mubr.f32.vlgmr.msra.gmra.mxu1 %v10785_v24  ;;  %9991 = vmatpush3.msra.mxu0 %v4428_v47  ;;  %v12226_v48 = vadd.f32 %v9543_v38, %v2937_v25  ;;  %v10790_v47 = vld [vmem:[%s11514_s20 + $0x72] sm:$0xff]  ;;  %v4561_v24 = vld [vmem:[#allocation7 + $0xa48] sm:$0xff] }
 0x30d   : > { %10035 = vmatpush3.msra.mxu1 %v4567_v10  ;;  %9992 = vmatprep.subr.mxu0 %v4427_v1  ;;  %v3035_v8 = vpop.f32.mrf.mxu1  ;;  %v4423_v10 = vld [vmem:[#allocation7 + $0x9d0] sm:$0xff] }
 0x30e   : > { %10036 = vmatprep.subr.mxu1 %v4566_v39  ;;  %v9502_v62 = vpop.f32.mrf.mxu0  ;;  %9937 = vmatprep.mubr.f32.mxu0 %v10786_v16  ;;  %v12230_v21 = vadd.f32 %v3035_v8, %v2936_v4  ;;  %v4422_v4 = vld [vmem:[#allocation7 + $0x9c8] sm:$0xff]  ;;  %v4420_v8 = vld [vmem:[#allocation7 + $0x9b8] sm:$0xff] }
 0x30f   : > { %9993 = vmatpush3.msra.mxu0 %v4427_v1  ;;  %v2939_v34 = vadd.f32 %v9502_v62, %v12192_v11  ;;  %10037 = vmatpush3.msra.mxu1 %v4566_v39  ;;  %v10793_v39 = vld [vmem:[%s11514_s20 + $0x83] sm:$0xff]  ;;  %v4559_v16 = vld [vmem:[#allocation7 + $0xa38] sm:$0xff] }
 0x310   : > { %9938 = vmatmul.mubr.f32.gmra.mxu0 %v10787_v57  ;;  %v2915_v44 = vpop.f32.mrf.mxu0  ;;  %9994 = vmatprep.subr.mxu0 %v4426_v22  ;;  %v4560_v62 = vld [vmem:[#allocation7 + $0xa40] sm:$0xff]  ;;  %v4558_v57 = vld [vmem:[#allocation7 + $0xa30] sm:$0xff] }
 0x311   : > { %10038 = vmatprep.subr.mxu1 %v4565_v43  ;;  %v2938_v54 = vadd.f32 %v2915_v44, %v12197_v55  ;;  %9981 = vmatprep.mubr.f32.mxu1 %v10788_v53  ;;  %v9546_v23 = vpop.f32.mrf.mxu1  ;;  %v4557_v44 = vld [vmem:[#allocation7 + $0xa28] sm:$0xff]  ;;  %v4555_v53 = vld [vmem:[#allocation7 + $0xa18] sm:$0xff] }
 0x312   : > { %9995 = vmatpush3.msra.mxu0 %v4426_v22  ;;  %10039 = vmatpush3.msra.mxu1 %v4565_v43  ;;  %v12235_v11 = vadd.f32 %v9546_v23, %v2939_v34  ;;  %v10794_v22 = vld [vmem:[%s11514_s20 + $0xa2] sm:$0xff]  ;;  %v4415_v23 = vld [vmem:[#allocation7 + $0x990] sm:$0xff] }
 0x313   : > { %9996 = vmatprep.subr.mxu0 %v4425_v28  ;;  %9982 = vmatmul.mubr.f32.gmra.mxu1 %v10789_v3  ;;  %v3045_v19 = vpop.f32.mrf.mxu1  ;;  %v4421_v43 = vld [vmem:[#allocation7 + $0x9c0] sm:$0xff]  ;;  %v4554_v3 = vld [vmem:[#allocation7 + $0xa10] sm:$0xff] }
 0x314   : > { %10040 = vmatprep.subr.mxu1 %v4564_v13  ;;  %v9505_v26 = vpop.f32.mrf.mxu0  ;;  %9940 = vmatprep.mubr.f32.mxu0 %v10790_v47  ;;  %v12240_v31 = vadd.f32 %v3045_v19, %v2938_v54  ;;  %v10795_v34 = vld [vmem:[%s11514_s20 + $0xa3] sm:$0xff]  ;;  %v4416_v54 = vld [vmem:[#allocation7 + $0x998] sm:$0xff] }
 0x315   : > { %9997 = vmatpush3.msra.mxu0 %v4425_v28  ;;  %v2941_v55 = vadd.f32 %v9505_v26, %v12205_v0  ;;  %10041 = vmatpush3.msra.mxu1 %v4564_v13  ;;  %v4418_v28 = vld [vmem:[#allocation7 + $0x9a8] sm:$0xff]  ;;  %v4556_v13 = vld [vmem:[#allocation7 + $0xa20] sm:$0xff] }
 0x316   : > { %9941 = vmatmul.mubr.f32.gmra.mxu0 %v10791_v59  ;;  %v2925_v25 = vpop.f32.mrf.mxu0  ;;  %9998 = vmatprep.subr.mxu0 %v4424_v35  ;;  %v4553_v26 = vld [vmem:[#allocation7 + $0xa08] sm:$0xff]  ;;  %v4413_v59 = vld [vmem:[#allocation7 + $0x980] sm:$0xff] }
 0x317   : > { %10042 = vmatprep.subr.mxu1 %v4563_v45  ;;  %v2940_v9 = vadd.f32 %v2925_v25, %v12209_v36  ;;  %9984 = vmatprep.mubr.f32.mxu1 %v10792_v58  ;;  %v9549_v1 = vpop.f32.mrf.mxu1  ;;  %v7744_v58 = vld [vmem:[%s11514_s20 + $0x40] sm:$0xff] }
 0x318   : > { %9999 = vmatpush3.msra.mxu0 %v4424_v35  ;;  %10043 = vmatpush3.msra.mxu1 %v4563_v45  ;;  %v12245_v0 = vadd.f32 %v9549_v1, %v2941_v55  ;;  %v4414_v45 = vld [vmem:[#allocation7 + $0x988] sm:$0xff]  ;;  %v4705_v1 = vld [vmem:[#allocation7 + $0xaf8] sm:$0xff] }
 0x319   : > { %10000 = vmatprep.subr.mxu0 %v4423_v10  ;;  %9985 = vmatmul.mubr.f32.gmra.mxu1 %v10793_v39  ;;  %v3055_v38 = vpop.f32.mrf.mxu1 }
 0x31a   : > { %10044 = vmatprep.subr.mxu1 %v4562_v6  ;;  %9943 = vmatprep.mubr.f32.mxu0 %v12092_v20  ;;  %v12249_v36 = vadd.f32 %v3055_v38, %v2940_v9  ;;  %v4419_v20 = vld [vmem:[#allocation7 + $0x9b0] sm:$0xff] }
 0x31b   : > { %10001 = vmatpush3.msra.mxu0 %v4423_v10  ;;  %10045 = vmatpush3.msra.mxu1 %v4562_v6  ;;  %v4552_v10 = vld [vmem:[#allocation7 + $0xa00] sm:$0xff] }
 0x31c   : > { %9944 = vmatmul.mubr.f32.gmra.mxu0 %v10794_v22  ;;  %10002 = vmatprep.subr.mxu0 %v4422_v4  ;;  %v4704_v22 = vld [vmem:[#allocation7 + $0xaf0] sm:$0xff] }
 0x31d   : > { %10046 = vmatprep.subr.mxu1 %v4561_v24  ;;  %9987 = vmatprep.mubr.f32.mxu1 %v12160_v40  ;;  %v4417_v40 = vld [vmem:[#allocation7 + $0x9a0] sm:$0xff] }
 0x31e   : > { %10003 = vmatpush3.msra.mxu0 %v4422_v4  ;;  %10047 = vmatpush3.msra.mxu1 %v4561_v24  ;;  %v4843_v4 = vld [vmem:[#allocation7 + $0xb78] sm:$0xff]  ;;  %v7745_v24 = vld [vmem:[%s11514_s20 + $0x50] sm:$0xff] }
 0x31f   : > { %10004 = vmatprep.subr.mxu0 %v4421_v43  ;;  %9988 = vmatmul.mubr.f32.gmra.mxu1 %v10795_v34 }
 0x320   : > { %10048 = vmatprep.subr.mxu1 %v4560_v62  ;;  %10005 = vmatpush3.msra.mxu0 %v4421_v43  ;;  %v4842_v43 = vld [vmem:[#allocation7 + $0xb70] sm:$0xff] }
 0x321   : > { %10049 = vmatpush3.msra.mxu1 %v4560_v62  ;;  %10006 = vmatprep.subr.mxu0 %v4420_v8 }
 0x322   : > { %10050 = vmatprep.subr.mxu1 %v4559_v16  ;;  %10007 = vmatpush3.msra.mxu0 %v4420_v8 }
 0x323   : > { %10051 = vmatpush3.msra.mxu1 %v4559_v16  ;;  %10008 = vmatprep.subr.mxu0 %v4419_v20 }
 0x324   : > { %10052 = vmatprep.subr.mxu1 %v4558_v57  ;;  %10009 = vmatpush3.msra.mxu0 %v4419_v20  ;;  %v7746_v20 = vld [vmem:[%s11514_s20 + $0x60] sm:$0xff] }
 0x325   : > { %10053 = vmatpush3.msra.mxu1 %v4558_v57  ;;  %10010 = vmatprep.subr.mxu0 %v4418_v28 }
 0x326   : > { %10054 = vmatprep.subr.mxu1 %v4557_v44  ;;  %10011 = vmatpush3.msra.mxu0 %v4418_v28  ;;  %v4702_v28 = vld [vmem:[#allocation7 + $0xae0] sm:$0xff] }
 0x327   : > { %10055 = vmatpush3.msra.mxu1 %v4557_v44  ;;  %10012 = vmatprep.subr.mxu0 %v4417_v40 }
 0x328   : > { %10056 = vmatprep.subr.mxu1 %v4556_v13  ;;  %10013 = vmatpush3.msra.mxu0 %v4417_v40  ;;  %v7747_v40 = vld [vmem:[%s11514_s20 + $0x70] sm:$0xff] }
 0x329   : > { %10057 = vmatpush3.msra.mxu1 %v4556_v13  ;;  %10014 = vmatprep.subr.mxu0 %v4416_v54  ;;  %v4840_v13 = vld [vmem:[#allocation7 + $0xb60] sm:$0xff] }
 0x32a   : > { %10058 = vmatprep.subr.mxu1 %v4555_v53  ;;  %v9584_v35 = vpop.f32.mrf.mxu0  ;;  %10015 = vmatpush3.msra.mxu0 %v4416_v54 }
 0x32b   : > { %10059 = vmatpush3.msra.mxu1 %v4555_v53  ;;  %v3203_v19 = vadd.f32 %v9584_v35, %v12215_v14  ;;  %10016 = vmatprep.subr.mxu0 %v4415_v23 }
 0x32c   : > { %10060 = vmatprep.subr.mxu1 %v4554_v3  ;;  %v9628_v47 = vpop.f32.mrf.mxu1  ;;  %v3163_v55 = vpop.f32.mrf.mxu0  ;;  %10017 = vmatpush3.msra.mxu0 %v4415_v23  ;;  %v4839_v23 = vld [vmem:[#allocation7 + $0xb58] sm:$0xff] }
 0x32d   : > { %10061 = vmatpush3.msra.mxu1 %v4554_v3  ;;  %v12255_v25 = vadd.f32 %v9628_v47, %v3203_v19  ;;  %v3202_v6 = vadd.f32 %v3163_v55, %v12218_v51  ;;  %10018 = vmatprep.subr.mxu0 %v4414_v45  ;;  %v7749_v47 = vld [vmem:[%s11514_s20 + $0x90] sm:$0xff] }
 0x32e   : > { %10062 = vmatprep.subr.mxu1 %v4553_v26  ;;  %v3301_v9 = vpop.f32.mrf.mxu1  ;;  %10019 = vmatpush3.msra.mxu0 %v4414_v45  ;;  %v4838_v55 = vld [vmem:[#allocation7 + $0xb50] sm:$0xff] }
 0x32f   : > { %10063 = vmatpush3.msra.mxu1 %v4553_v26  ;;  %v12258_v14 = vadd.f32 %v3301_v9, %v3202_v6  ;;  %10020 = vmatprep.subr.mxu0 %v4413_v59  ;;  %v4700_v26 = vld [vmem:[#allocation7 + $0xad0] sm:$0xff]  ;;  %v4699_v6 = vld [vmem:[#allocation7 + $0xac8] sm:$0xff] }
 0x330   : > { %10064 = vmatprep.subr.mxu1 %v4552_v10  ;;  %v9587_v39 = vpop.f32.mrf.mxu0  ;;  %10021 = vmatpush3.msra.mxu0 %v4413_v59  ;;  %v4837_v9 = vld [vmem:[#allocation7 + $0xb48] sm:$0xff] }
 0x331   : > { %10022 = vmatprep.mubr.f32.mxu0 %v12112_v7  ;;  %v3205_v38 = vadd.f32 %v9587_v39, %v12226_v48  ;;  %10065 = vmatpush3.msra.mxu1 %v4552_v10  ;;  %v4703_v48 = vld [vmem:[#allocation7 + $0xae8] sm:$0xff]  ;;  %v4836_v39 = vld [vmem:[#allocation7 + $0xb40] sm:$0xff] }
 0x332   : > { %10023 = vmatmul.mubr.f32.vlgmr.msra.gmra.mxu0 %v12124_v27  ;;  %v3173_v51 = vpop.f32.mrf.mxu0  ;;  %10066 = vmatprep.mubr.f32.mxu1 %v7744_v58  ;;  %v4841_v27 = vld [vmem:[#allocation7 + $0xb68] sm:$0xff] }
 0x333   : > { %10078 = vmatprep.subr.mxu0 %v4705_v1  ;;  %v3204_v62 = vadd.f32 %v3173_v51, %v12230_v21  ;;  %10122 = vmatprep.subr.mxu1 %v4843_v4  ;;  %v9631_v8 = vpop.f32.mrf.mxu1  ;;  %v4695_v51 = vld [vmem:[#allocation7 + $0xaa8] sm:$0xff] }
 0x334   : > { %10067 = vmatmul.mubr.f32.vlgmr.msra.gmra.mxu1 %v7745_v24  ;;  %10079 = vmatpush3.msra.mxu0 %v4705_v1  ;;  %v12266_v7 = vadd.f32 %v9631_v8, %v3205_v38  ;;  %v7751_v1 = vld [vmem:[%s11514_s20 + $0xb0] sm:$0xff]  ;;  %v4835_v24 = vld [vmem:[#allocation7 + $0xb38] sm:$0xff] }
 0x335   : > { %10123 = vmatpush3.msra.mxu1 %v4843_v4  ;;  %10080 = vmatprep.subr.mxu0 %v4704_v22  ;;  %v3311_v34 = vpop.f32.mrf.mxu1  ;;  %v4697_v4 = vld [vmem:[#allocation7 + $0xab8] sm:$0xff]  ;;  %v4834_v38 = vld [vmem:[#allocation7 + $0xb30] sm:$0xff] }
 0x336   : > { %10124 = vmatprep.subr.mxu1 %v4842_v43  ;;  %v9590_v16 = vpop.f32.mrf.mxu0  ;;  %10025 = vmatprep.mubr.f32.mxu0 %v12132_v60  ;;  %v12271_v57 = vadd.f32 %v3311_v34, %v3204_v62  ;;  %v4693_v62 = vld [vmem:[#allocation7 + $0xa98] sm:$0xff]  ;;  %v4691_v34 = vld [vmem:[#allocation7 + $0xa88] sm:$0xff] }
 0x337   : > { %10081 = vmatpush3.msra.mxu0 %v4704_v22  ;;  %v3207_v21 = vadd.f32 %v9590_v16, %v12235_v11  ;;  %10125 = vmatpush3.msra.mxu1 %v4842_v43  ;;  %v12277_v11 = vld [vmem:[%s11514_s20 + $0x84] sm:$0xff]  ;;  %v4831_v8 = vld [vmem:[#allocation7 + $0xb18] sm:$0xff] }
 0x338   : > { %10026 = vmatmul.mubr.f32.gmra.mxu0 %v12142_v33  ;;  %v3183_v44 = vpop.f32.mrf.mxu0  ;;  %10082 = vmatprep.subr.mxu0 %v4703_v48  ;;  %v4701_v33 = vld [vmem:[#allocation7 + $0xad8] sm:$0xff]  ;;  %v4833_v22 = vld [vmem:[#allocation7 + $0xb28] sm:$0xff]  ;;  %v4832_v43 = vld [vmem:[#allocation7 + $0xb20] sm:$0xff] }
 0x339   : > { %10126 = vmatprep.subr.mxu1 %v4841_v27  ;;  %v3206_v54 = vadd.f32 %v3183_v44, %v12240_v31  ;;  %10069 = vmatprep.mubr.f32.mxu1 %v7746_v20  ;;  %v9634_v60 = vpop.f32.mrf.mxu1  ;;  %v4829_v20 = vld [vmem:[#allocation7 + $0xb08] sm:$0xff] }
 0x33a   : > { %10083 = vmatpush3.msra.mxu0 %v4703_v48  ;;  %10127 = vmatpush3.msra.mxu1 %v4841_v27  ;;  %v12279_v53 = vadd.f32 %v9634_v60, %v3207_v21  ;;  %v4692_v48 = vld [vmem:[#allocation7 + $0xa90] sm:$0xff] }
 0x33b   : > { %10084 = vmatprep.subr.mxu0 %v4702_v28  ;;  %10070 = vmatmul.mubr.f32.gmra.mxu1 %v7747_v40  ;;  %v3321_v35 = vpop.f32.mrf.mxu1  ;;  %v4830_v27 = vld [vmem:[#allocation7 + $0xb10] sm:$0xff]  ;;  %v4690_v40 = vld [vmem:[#allocation7 + $0xa80] sm:$0xff] }
 0x33c   : > { %10128 = vmatprep.subr.mxu1 %v4840_v13  ;;  %v9593_v3 = vpop.f32.mrf.mxu0  ;;  %10028 = vmatprep.mubr.f32.mxu0 %v12150_v2  ;;  %v12283_v45 = vadd.f32 %v3321_v35, %v3206_v54  ;;  %v7760_v35 = vld [vmem:[%s11514_s20 + $0x42] sm:$0xff] }
 0x33d   : > { %10085 = vmatpush3.msra.mxu0 %v4702_v28  ;;  %v3209_v31 = vadd.f32 %v9593_v3, %v12245_v0  ;;  %10129 = vmatpush3.msra.mxu1 %v4840_v13  ;;  %v12290_v0 = vld [vmem:[%s11514_s20 + $0xa4] sm:$0xff] }
 0x33e   : > { %10029 = vmatmul.mubr.f32.gmra.mxu0 %v12277_v11  ;;  %v3193_v19 = vpop.f32.mrf.mxu0  ;;  %10086 = vmatprep.subr.mxu0 %v4701_v33  ;;  %v4828_v13 = vld [vmem:[#allocation7 + $0xb00] sm:$0xff] }
 0x33f   : > { %10130 = vmatprep.subr.mxu1 %v4839_v23  ;;  %v3208_v59 = vadd.f32 %v3193_v19, %v12249_v36  ;;  %10072 = vmatprep.mubr.f32.mxu1 %v12190_v61  ;;  %v9637_v2 = vpop.f32.mrf.mxu1  ;;  %v4698_v61 = vld [vmem:[#allocation7 + $0xac0] sm:$0xff]  ;;  %v5119_v19 = vld [vmem:[#allocation7 + $0xc78] sm:$0xff] }
 0x340   : > { %10087 = vmatpush3.msra.mxu0 %v4701_v33  ;;  %10131 = vmatpush3.msra.mxu1 %v4839_v23  ;;  %v12292_v10 = vadd.f32 %v9637_v2, %v3209_v31  ;;  %v7752_v33 = vld [vmem:[%s11514_s20 + $0x41] sm:$0xff]  ;;  %v4981_v31 = vld [vmem:[#allocation7 + $0xbf8] sm:$0xff]  ;;  %v5118_v2 = vld [vmem:[#allocation7 + $0xc70] sm:$0xff] }
 0x341   : > { %10088 = vmatprep.subr.mxu0 %v4700_v26  ;;  %10073 = vmatmul.mubr.f32.gmra.mxu1 %v7749_v47  ;;  %v3331_v58 = vpop.f32.mrf.mxu1 }
 0x342   : > { %10132 = vmatprep.subr.mxu1 %v4838_v55  ;;  %10031 = vmatprep.mubr.f32.mxu0 %v12164_v50  ;;  %v12295_v36 = vadd.f32 %v3331_v58, %v3208_v59  ;;  %v4696_v50 = vld [vmem:[#allocation7 + $0xab0] sm:$0xff] }
 0x343   : > { %10089 = vmatpush3.msra.mxu0 %v4700_v26  ;;  %10133 = vmatpush3.msra.mxu1 %v4838_v55  ;;  %v4980_v59 = vld [vmem:[#allocation7 + $0xbf0] sm:$0xff] }
 0x344   : > { %10032 = vmatmul.mubr.f32.gmra.mxu0 %v12290_v0  ;;  %10090 = vmatprep.subr.mxu0 %v4699_v6 }
 0x345   : > { %10134 = vmatprep.subr.mxu1 %v4837_v9  ;;  %10075 = vmatprep.mubr.f32.mxu1 %v12203_v12  ;;  %v4694_v12 = vld [vmem:[#allocation7 + $0xaa0] sm:$0xff] }
 0x346   : > { %10091 = vmatpush3.msra.mxu0 %v4699_v6  ;;  %10135 = vmatpush3.msra.mxu1 %v4837_v9  ;;  %v7754_v9 = vld [vmem:[%s11514_s20 + $0x61] sm:$0xff] }
 0x347   : > { %10092 = vmatprep.subr.mxu0 %v4698_v61  ;;  %10076 = vmatmul.mubr.f32.gmra.mxu1 %v7751_v1 }
 0x348   : > { %10136 = vmatprep.subr.mxu1 %v4836_v39  ;;  %10093 = vmatpush3.msra.mxu0 %v4698_v61  ;;  %v7755_v61 = vld [vmem:[%s11514_s20 + $0x71] sm:$0xff] }
 0x349   : > { %10137 = vmatpush3.msra.mxu1 %v4836_v39  ;;  %10094 = vmatprep.subr.mxu0 %v4697_v4  ;;  %v5117_v39 = vld [vmem:[#allocation7 + $0xc68] sm:$0xff] }
 0x34a   : > { %10138 = vmatprep.subr.mxu1 %v4835_v24  ;;  %10095 = vmatpush3.msra.mxu0 %v4697_v4 }
 0x34b   : > { %10139 = vmatpush3.msra.mxu1 %v4835_v24  ;;  %10096 = vmatprep.subr.mxu0 %v4696_v50 }
 0x34c   : > { %10140 = vmatprep.subr.mxu1 %v4834_v38  ;;  %10097 = vmatpush3.msra.mxu0 %v4696_v50 }
 0x34d   : > { %10141 = vmatpush3.msra.mxu1 %v4834_v38  ;;  %10098 = vmatprep.subr.mxu0 %v4695_v51 }
 0x34e   : > { %10142 = vmatprep.subr.mxu1 %v4833_v22  ;;  %10099 = vmatpush3.msra.mxu0 %v4695_v51  ;;  %v4978_v51 = vld [vmem:[#allocation7 + $0xbe0] sm:$0xff] }
 0x34f   : > { %10143 = vmatpush3.msra.mxu1 %v4833_v22  ;;  %10100 = vmatprep.subr.mxu0 %v4694_v12 }
 0x350   : > { %10144 = vmatprep.subr.mxu1 %v4832_v43  ;;  %10101 = vmatpush3.msra.mxu0 %v4694_v12  ;;  %v7763_v12 = vld [vmem:[%s11514_s20 + $0x72] sm:$0xff] }
 0x351   : > { %10145 = vmatpush3.msra.mxu1 %v4832_v43  ;;  %10102 = vmatprep.subr.mxu0 %v4693_v62  ;;  %v5116_v43 = vld [vmem:[#allocation7 + $0xc60] sm:$0xff] }
 0x352   : > { %10146 = vmatprep.subr.mxu1 %v4831_v8  ;;  %v9672_v16 = vpop.f32.mrf.mxu0  ;;  %10103 = vmatpush3.msra.mxu0 %v4693_v62 }
 0x353   : > { %10147 = vmatpush3.msra.mxu1 %v4831_v8  ;;  %v3471_v21 = vadd.f32 %v9672_v16, %v12255_v25  ;;  %10104 = vmatprep.subr.mxu0 %v4692_v48  ;;  %v7753_v25 = vld [vmem:[%s11514_s20 + $0x51] sm:$0xff]  ;;  %v7756_v8 = vld [vmem:[%s11514_s20 + $0x81] sm:$0xff] }
 0x354   : > { %10148 = vmatprep.subr.mxu1 %v4830_v27  ;;  %v9716_v28 = vpop.f32.mrf.mxu1  ;;  %v3431_v44 = vpop.f32.mrf.mxu0  ;;  %10105 = vmatpush3.msra.mxu0 %v4692_v48  ;;  %v4977_v16 = vld [vmem:[#allocation7 + $0xbd8] sm:$0xff] }
 0x355   : > { %10149 = vmatpush3.msra.mxu1 %v4830_v27  ;;  %v12301_v54 = vadd.f32 %v9716_v28, %v3471_v21  ;;  %v3470_v60 = vadd.f32 %v3431_v44, %v12258_v14  ;;  %10106 = vmatprep.subr.mxu0 %v4691_v34  ;;  %v7761_v14 = vld [vmem:[%s11514_s20 + $0x52] sm:$0xff] }
 0x356   : > { %10150 = vmatprep.subr.mxu1 %v4829_v20  ;;  %v3561_v23 = vpop.f32.mrf.mxu1  ;;  %10107 = vmatpush3.msra.mxu0 %v4691_v34  ;;  %v5115_v34 = vld [vmem:[#allocation7 + $0xc58] sm:$0xff] }
 0x357   : > { %10151 = vmatpush3.msra.mxu1 %v4829_v20  ;;  %v12306_v3 = vadd.f32 %v3561_v23, %v3470_v60  ;;  %10108 = vmatprep.subr.mxu0 %v4690_v40  ;;  %v7765_v60 = vld [vmem:[%s11514_s20 + $0x92] sm:$0xff] }
 0x358   : > { %10152 = vmatprep.subr.mxu1 %v4828_v13  ;;  %v9675_v26 = vpop.f32.mrf.mxu0  ;;  %10109 = vmatpush3.msra.mxu0 %v4690_v40  ;;  %v4976_v40 = vld [vmem:[#allocation7 + $0xbd0] sm:$0xff] }
 0x359   : > { %10110 = vmatprep.mubr.f32.mxu0 %v7752_v33  ;;  %v3473_v47 = vadd.f32 %v9675_v26, %v12266_v7  ;;  %10153 = vmatpush3.msra.mxu1 %v4828_v13  ;;  %v4979_v7 = vld [vmem:[#allocation7 + $0xbe8] sm:$0xff]  ;;  %v5114_v33 = vld [vmem:[#allocation7 + $0xc50] sm:$0xff] }
 0x35a   : > { %10111 = vmatmul.mubr.f32.vlgmr.msra.gmra.mxu0 %v7753_v25  ;;  %v3441_v55 = vpop.f32.mrf.mxu0  ;;  %10154 = vmatprep.mubr.f32.mxu1 %v7760_v35  ;;  %v7758_v25 = vld [vmem:[%s11514_s20 + $0xa1] sm:$0xff] }
 0x35b   : > { %10166 = vmatprep.subr.mxu0 %v4981_v31  ;;  %v3472_v6 = vadd.f32 %v3441_v55, %v12271_v57  ;;  %10210 = vmatprep.subr.mxu1 %v5119_v19  ;;  %v9719_v58 = vpop.f32.mrf.mxu1  ;;  %v7762_v57 = vld [vmem:[%s11514_s20 + $0x62] sm:$0xff] }
 0x35c   : > { %10155 = vmatmul.mubr.f32.vlgmr.msra.gmra.mxu1 %v7761_v14  ;;  %10167 = vmatpush3.msra.mxu0 %v4981_v31  ;;  %v12314_v1 = vadd.f32 %v9719_v58, %v3473_v47  ;;  %v4975_v26 = vld [vmem:[#allocation7 + $0xbc8] sm:$0xff]  ;;  %v4974_v55 = vld [vmem:[#allocation7 + $0xbc0] sm:$0xff]  ;;  %v4972_v58 = vld [vmem:[#allocation7 + $0xbb0] sm:$0xff] }
 0x35d   : > { %10211 = vmatpush3.msra.mxu1 %v5119_v19  ;;  %10168 = vmatprep.subr.mxu0 %v4980_v59  ;;  %v3571_v24 = vpop.f32.mrf.mxu1  ;;  %v5113_v19 = vld [vmem:[#allocation7 + $0xc48] sm:$0xff] }
 0x35e   : > { %10212 = vmatprep.subr.mxu1 %v5118_v2  ;;  %v9678_v4 = vpop.f32.mrf.mxu0  ;;  %10113 = vmatprep.mubr.f32.mxu0 %v7754_v9  ;;  %v12318_v38 = vadd.f32 %v3571_v24, %v3472_v6  ;;  %v7766_v47 = vld [vmem:[%s11514_s20 + $0xa2] sm:$0xff]  ;;  %v4973_v6 = vld [vmem:[#allocation7 + $0xbb8] sm:$0xff] }
 0x35f   : > { %10169 = vmatpush3.msra.mxu0 %v4980_v59  ;;  %v3475_v50 = vadd.f32 %v9678_v4, %v12279_v53  ;;  %10213 = vmatpush3.msra.mxu1 %v5118_v2  ;;  %v7757_v53 = vld [vmem:[%s11514_s20 + $0x91] sm:$0xff]  ;;  %v5112_v2 = vld [vmem:[#allocation7 + $0xc40] sm:$0xff] }
 0x360   : > { %10114 = vmatmul.mubr.f32.gmra.mxu0 %v7755_v61  ;;  %v3451_v22 = vpop.f32.mrf.mxu0  ;;  %10170 = vmatprep.subr.mxu0 %v4979_v7  ;;  %v7767_v59 = vld [vmem:[%s11514_s20 + $0xb2] sm:$0xff]  ;;  %v4970_v4 = vld [vmem:[#allocation7 + $0xba0] sm:$0xff] }
 0x361   : > { %10214 = vmatprep.subr.mxu1 %v5117_v39  ;;  %v3474_v62 = vadd.f32 %v3451_v22, %v12283_v45  ;;  %10157 = vmatprep.mubr.f32.mxu1 %v7762_v57  ;;  %v9722_v48 = vpop.f32.mrf.mxu1  ;;  %v7764_v45 = vld [vmem:[%s11514_s20 + $0x82] sm:$0xff]  ;;  %v5111_v9 = vld [vmem:[#allocation7 + $0xc38] sm:$0xff]  ;;  %v5110_v61 = vld [vmem:[#allocation7 + $0xc30] sm:$0xff] }
 0x362   : > { %10171 = vmatpush3.msra.mxu0 %v4979_v7  ;;  %10215 = vmatpush3.msra.mxu1 %v5117_v39  ;;  %v12324_v27 = vadd.f32 %v9722_v48, %v3475_v50  ;;  %v4971_v7 = vld [vmem:[#allocation7 + $0xba8] sm:$0xff]  ;;  %v5108_v24 = vld [vmem:[#allocation7 + $0xc20] sm:$0xff]  ;;  %v4969_v57 = vld [vmem:[#allocation7 + $0xb98] sm:$0xff] }
 0x363   : > { %10172 = vmatprep.subr.mxu0 %v4978_v51  ;;  %10158 = vmatmul.mubr.f32.gmra.mxu1 %v7763_v12  ;;  %v3581_v21 = vpop.f32.mrf.mxu1  ;;  %v5109_v39 = vld [vmem:[#allocation7 + $0xc28] sm:$0xff]  ;;  %v5107_v50 = vld [vmem:[#allocation7 + $0xc18] sm:$0xff]  ;;  %v5106_v22 = vld [vmem:[#allocation7 + $0xc10] sm:$0xff] }
 0x364   : > { %10216 = vmatprep.subr.mxu1 %v5116_v43  ;;  %v9681_v20 = vpop.f32.mrf.mxu0  ;;  %10116 = vmatprep.mubr.f32.mxu0 %v7756_v8  ;;  %v12328_v44 = vadd.f32 %v3581_v21, %v3474_v62  ;;  %v5105_v62 = vld [vmem:[#allocation7 + $0xc08] sm:$0xff] }
 0x365   : > { %10173 = vmatpush3.msra.mxu0 %v4978_v51  ;;  %v3477_v28 = vadd.f32 %v9681_v20, %v12292_v10  ;;  %10217 = vmatpush3.msra.mxu1 %v5116_v43  ;;  %v7759_v10 = vld [vmem:[%s11514_s20 + $0xb1] sm:$0xff]  ;;  %v4967_v43 = vld [vmem:[#allocation7 + $0xb88] sm:$0xff] }
 0x366   : > { %10117 = vmatmul.mubr.f32.gmra.mxu0 %v7757_v53  ;;  %v3461_v13 = vpop.f32.mrf.mxu0  ;;  %10174 = vmatprep.subr.mxu0 %v4977_v16  ;;  %v4968_v51 = vld [vmem:[#allocation7 + $0xb90] sm:$0xff]  ;;  %v7768_v21 = vld [vmem:[%s11514_s20 + $0x43] sm:$0xff] }
 0x367   : > { %10218 = vmatprep.subr.mxu1 %v5115_v34  ;;  %v3476_v23 = vadd.f32 %v3461_v13, %v12295_v36  ;;  %10160 = vmatprep.mubr.f32.mxu1 %v7764_v45  ;;  %v9725_v35 = vpop.f32.mrf.mxu1  ;;  %v7769_v45 = vld [vmem:[%s11514_s20 + $0x53] sm:$0xff] }
 0x368   : > { %10175 = vmatpush3.msra.mxu0 %v4977_v16  ;;  %10219 = vmatpush3.msra.mxu1 %v5115_v34  ;;  %v12334_v31 = vadd.f32 %v9725_v35, %v3477_v28  ;;  %v4966_v16 = vld [vmem:[#allocation7 + $0xb80] sm:$0xff]  ;;  %v7777_v28 = vld [vmem:[%s11514_s20 + $0x54] sm:$0xff] }
 0x369   : > { %10176 = vmatprep.subr.mxu0 %v4976_v40  ;;  %10161 = vmatmul.mubr.f32.gmra.mxu1 %v7765_v60  ;;  %v3591_v14 = vpop.f32.mrf.mxu1  ;;  %v5104_v34 = vld [vmem:[#allocation7 + $0xc00] sm:$0xff]  ;;  %v7771_v35 = vld [vmem:[%s11514_s20 + $0x73] sm:$0xff] }
 0x36a   : > { %10220 = vmatprep.subr.mxu1 %v5114_v33  ;;  %10119 = vmatprep.mubr.f32.mxu0 %v7758_v25  ;;  %v12337_v36 = vadd.f32 %v3591_v14, %v3476_v23  ;;  %v7770_v60 = vld [vmem:[%s11514_s20 + $0x63] sm:$0xff] }
 0x36b   : > { %10177 = vmatpush3.msra.mxu0 %v4976_v40  ;;  %10221 = vmatpush3.msra.mxu1 %v5114_v33  ;;  %v7778_v33 = vld [vmem:[%s11514_s20 + $0x64] sm:$0xff] }
 0x36c   : > { %10120 = vmatmul.mubr.f32.gmra.mxu0 %v7759_v10  ;;  %10178 = vmatprep.subr.mxu0 %v4975_v26  ;;  %v7779_v10 = vld [vmem:[%s11514_s20 + $0x74] sm:$0xff] }
 0x36d   : > { %10222 = vmatprep.subr.mxu1 %v5113_v19  ;;  %10163 = vmatprep.mubr.f32.mxu1 %v7766_v47 }
 0x36e   : > { %10179 = vmatpush3.msra.mxu0 %v4975_v26  ;;  %10223 = vmatpush3.msra.mxu1 %v5113_v19  ;;  %v7772_v19 = vld [vmem:[%s11514_s20 + $0x83] sm:$0xff] }
 0x36f   : > { %10180 = vmatprep.subr.mxu0 %v4974_v55  ;;  %10164 = vmatmul.mubr.f32.gmra.mxu1 %v7767_v59  ;;  %v7773_v59 = vld [vmem:[%s11514_s20 + $0x93] sm:$0xff] }
 0x370   : > { %10224 = vmatprep.subr.mxu1 %v5112_v2  ;;  %10181 = vmatpush3.msra.mxu0 %v4974_v55 }
 0x371   : > { %10225 = vmatpush3.msra.mxu1 %v5112_v2  ;;  %10182 = vmatprep.subr.mxu0 %v4973_v6  ;;  %v7781_v2 = vld [vmem:[%s11514_s20 + $0x94] sm:$0xff] }
 0x372   : > { %10226 = vmatprep.subr.mxu1 %v5111_v9  ;;  %10183 = vmatpush3.msra.mxu0 %v4973_v6 }
 0x373   : > { %10227 = vmatpush3.msra.mxu1 %v5111_v9  ;;  %10184 = vmatprep.subr.mxu0 %v4972_v58  ;;  %v7774_v9 = vld [vmem:[%s11514_s20 + $0xa3] sm:$0xff] }
 0x374   : > { %10228 = vmatprep.subr.mxu1 %v5110_v61  ;;  %10185 = vmatpush3.msra.mxu0 %v4972_v58 }
 0x375   : > { %10229 = vmatpush3.msra.mxu1 %v5110_v61  ;;  %10186 = vmatprep.subr.mxu0 %v4971_v7 }
 0x376   : > { %10230 = vmatprep.subr.mxu1 %v5109_v39  ;;  %10187 = vmatpush3.msra.mxu0 %v4971_v7  ;;  %v7775_v7 = vld [vmem:[%s11514_s20 + $0xb3] sm:$0xff] }
 0x377   : > { %10231 = vmatpush3.msra.mxu1 %v5109_v39  ;;  %10188 = vmatprep.subr.mxu0 %v4970_v4  ;;  %v7783_v39 = vld [vmem:[%s11514_s20 + $0xb4] sm:$0xff] }
 0x378   : > { %10232 = vmatprep.subr.mxu1 %v5108_v24  ;;  %10189 = vmatpush3.msra.mxu0 %v4970_v4 }
 0x379   : > { %10233 = vmatpush3.msra.mxu1 %v5108_v24  ;;  %10190 = vmatprep.subr.mxu0 %v4969_v57 }
 0x37a   : > { %10234 = vmatprep.subr.mxu1 %v5107_v50  ;;  %v9760_v12 = vpop.f32.mrf.mxu0  ;;  %10191 = vmatpush3.msra.mxu0 %v4969_v57 }
 0x37b   : > { %10235 = vmatpush3.msra.mxu1 %v5107_v50  ;;  %v3731_v8 = vadd.f32 %v9760_v12, %v12301_v54  ;;  %10192 = vmatprep.subr.mxu0 %v4968_v51  ;;  %v7776_v54 = vld [vmem:[%s11514_s20 + $0x44] sm:$0xff]  ;;  %v5309_v50 = vld [vmem:[%s13512_s4 + $0x78] sm:$0xff]  ;;  %v5308_v12 = vld [vmem:[%s13512_s4 + $0x70] sm:$0xff] }
 0x37c   : > { %10236 = vmatprep.subr.mxu1 %v5106_v22  ;;  %v9804_v48 = vpop.f32.mrf.mxu1  ;;  %v12341_v53 = vpop.f32.mrf.mxu0  ;;  %10193 = vmatpush3.msra.mxu0 %v4968_v51 }
 0x37d   : > { %10237 = vmatpush3.msra.mxu1 %v5106_v22  ;;  %v12343_v20 = vadd.f32 %v9804_v48, %v3731_v8  ;;  %10194 = vmatprep.subr.mxu0 %v4967_v43  ;;  %v12399_v8 = vand.u32 4294901760, %v5308_v12  ;;  %v5307_v48 = vld [vmem:[%s13512_s4 + $0x68] sm:$0xff] }
 0x37e   : > { %10238 = vmatprep.subr.mxu1 %v5105_v62  ;;  %10195 = vmatpush3.msra.mxu0 %v4967_v43  ;;  %v12349_v40 = vpop.f32.mrf.mxu1 }
 0x37f   : > { %10239 = vmatpush3.msra.mxu1 %v5105_v62  ;;  %10196 = vmatprep.subr.mxu0 %v4966_v16  ;;  %13515 = vst [vmem:[#allocation58_spill] sm:$0xff] %v12399_v8 }
 0x380   : > { %10240 = vmatprep.subr.mxu1 %v5104_v34  ;;  %v9763_v13 = vpop.f32.mrf.mxu0  ;;  %10197 = vmatpush3.msra.mxu0 %v4966_v16 }
 0x381   : > { %10198 = vmatprep.mubr.f32.mxu0 %v7768_v21  ;;  %v3733_v23 = vadd.f32 %v9763_v13, %v12314_v1  ;;  %10241 = vmatpush3.msra.mxu1 %v5104_v34  ;;  %v12406_v34 = vsub.f32 %v5308_v12, %v12399_v8  ;;  %v12408_v21 = vand.u32 4294901760, %v5307_v48 }
 0x382   : > { %10242 = vmatprep.mubr.f32.mxu1 %v7776_v54  ;;  %v12354_v25 = vpop.f32.mrf.mxu0  ;;  %10199 = vmatmul.mubr.f32.vlgmr.msra.gmra.mxu0 %v7769_v45  ;;  %v5306_v54 = vld [vmem:[%s13512_s4 + $0x60] sm:$0xff] }
 0x383   : > { %10243 = vmatmul.mubr.f32.vlgmr.msra.gmra.mxu1 %v7777_v28  ;;  %10201 = vmatprep.mubr.f32.mxu0 %v7770_v60  ;;  %v9807_v26 = vpop.f32.mrf.mxu1  ;;  %13516 = vst [vmem:[#allocation59_spill] sm:$0xff] %v12406_v34  ;;  %13517 = vst [vmem:[#allocation60_spill] sm:$0xff] %v12408_v21  ;;  %v13368_v60 = vand.u32 4294901760, %v12406_v34 }
 0x384   : > { %10245 = vmatprep.mubr.f32.mxu1 %v7778_v33  ;;  %v12359_v14 = vadd.f32 %v9807_v26, %v3733_v23  ;;  %v12421_v33 = vand.u32 4294901760, %v5306_v54  ;;  %v12424_v23 = vsub.f32 %v5307_v48, %v12408_v21 }
 0x385   : > { %v12361_v55 = vpop.f32.mrf.mxu1  ;;  %v5413_v26 = vsub.f32 %v12406_v34, %v13368_v60 }
 0x386   : > { %v9766_v47 = vpop.f32.mrf.mxu0  ;;  %10202 = vmatmul.mubr.f32.gmra.mxu0 %v7771_v35  ;;  %13518 = vst [vmem:[#allocation61_spill] sm:$0xff] %v12421_v33  ;;  %13519 = vst [vmem:[#allocation62_spill] sm:$0xff] %v12424_v23  ;;  %v5305_v35 = vld [vmem:[%s13512_s4 + $0x58] sm:$0xff] }
 0x387   : > { %10246 = vmatmul.mubr.f32.gmra.mxu1 %v7779_v10  ;;  %v3735_v1 = vadd.f32 %v9766_v47, %v12324_v27  ;;  %10204 = vmatprep.mubr.f32.mxu0 %v7772_v19  ;;  %v13436_v19 = vmov 0.0   ;;  %v13367_v47 = vand.u32 4294901760, %v12424_v23 }
 0x388   : > { %10248 = vmatprep.mubr.f32.mxu1 %v12277_v11  ;;  %v12367_v6 = vpop.f32.mrf.mxu0  ;;  %10289 = vmatprep.subr.mxu1 %v13436_v19 }
 0x389   : > { %v9810_v58 = vpop.f32.mrf.mxu1  ;;  %10254 = vmatprep.subr.mxu0 %v13436_v19 }
 0x38a   : > { %10205 = vmatmul.mubr.f32.gmra.mxu0 %v7773_v59  ;;  %v12370_v61 = vadd.f32 %v9810_v58, %v3735_v1  ;;  %v12435_v1 = vsub.f32 %v5306_v54, %v12421_v33  ;;  %v12438_v59 = vand.u32 4294901760, %v5305_v35 }
 0x38b   : > { %10249 = vmatmul.mubr.f32.gmra.mxu1 %v7781_v2  ;;  %10207 = vmatprep.mubr.f32.mxu0 %v7774_v9  ;;  %v12375_v27 = vpop.f32.mrf.mxu1  ;;  %v5304_v2 = vld [vmem:[%s13512_s4 + $0x50] sm:$0xff] }
 0x38c   : > { %10251 = vmatprep.mubr.f32.mxu1 %v12290_v0  ;;  %v9769_v4 = vpop.f32.mrf.mxu0  ;;  %v12387_v0 = vand.u32 4294901760, %v5309_v50  ;;  %13520 = vst [vmem:[#allocation63_spill] sm:$0xff] %v12435_v1  ;;  %13521 = vst [vmem:[#allocation64_spill] sm:$0xff] %v12438_v59 }
 0x38d   : > { %v3737_v11 = vadd.f32 %v9769_v4, %v12334_v31  ;;  %v5420_v4 = vsub.f32 %v12424_v23, %v13367_v47 }
 0x38e   : > { %10208 = vmatmul.mubr.f32.gmra.mxu0 %v7775_v7  ;;  %v12383_v51 = vpop.f32.mrf.mxu0  ;;  %13513 = vst [vmem:[#allocation56_spill] sm:$0xff] %v12387_v0  ;;  %v12397_v62 = vsub.f32 %v5309_v50, %v12387_v0  ;;  %v5414_v7 = vand.u32 4294901760, %v5413_v26  ;;  %v5303_v50 = vld [vmem:[%s13512_s4 + $0x48] sm:$0xff] }
 0x38f   : > { %10252 = vmatmul.mubr.f32.gmra.mxu1 %v7783_v39  ;;  %v9813_v24 = vpop.f32.mrf.mxu1  ;;  %10255 = vmatpush3.msra.mxu0 %v12387_v0  ;;  %v12448_v39 = vand.u32 4294901760, %v5304_v2  ;;  %v12466_v48 = vand.u32 4294901760, %v5303_v50  ;;  %v5421_v54 = vand.u32 4294901760, %v5420_v4  ;;  %v5295_v0 = vld [vmem:[%s13512_s4 + $0x8] sm:$0xff] }
 0x390   : > { %v12378_v57 = vadd.f32 %v9813_v24, %v3737_v11  ;;  %13514 = vst [vmem:[#allocation57_spill] sm:$0xff] %v12397_v62  ;;  %v13369_v16 = vand.u32 4294901760, %v12397_v62  ;;  %v13366_v11 = vand.u32 4294901760, %v12435_v1  ;;  %v12456_v24 = vsub.f32 %v5305_v35, %v12438_v59  ;;  %10256 = vmatprep.subr.mxu0 %v13436_v19  ;;  %10321 = vmatprep.mubr.msk.f32.mxu1 %vm11223_vm0, %v13436_v19 }
 0x391   : > { %v12385_v22 = vpop.f32.mrf.mxu1  ;;  %13522 = vst [vmem:[#allocation65_spill] sm:$0xff] %v12448_v39  ;;  %10257 = vmatpush3.msra.mxu0 %v12399_v8  ;;  %v12464_v12 = vsub.f32 %v5304_v2, %v12448_v39  ;;  %13525 = vst [vmem:[#allocation68_spill] sm:$0xff] %v12466_v48  ;;  %v12484_v4 = vsub.f32 %v5303_v50, %v12466_v48  ;;  %10286 = vmatprep.mubr.msk.f32.mxu0 %vm11223_vm0, %v13436_v19 }
 0x392   : > { %v5406_v13 = vsub.f32 %v12397_v62, %v13369_v16  ;;  %13523 = vst [vmem:[#allocation66_spill] sm:$0xff] %v12456_v24  ;;  %v13370_v35 = vand.u32 4294901760, %v12456_v24  ;;  %10258 = vmatprep.subr.mxu0 %v13436_v19  ;;  %v5301_v16 = vld [vmem:[%s13512_s4 + $0x38] sm:$0xff] }
 0x393   : > { %13524 = vst [vmem:[#allocation67_spill] sm:$0xff] %v12464_v12  ;;  %10259 = vmatpush3.msra.mxu0 %v12408_v21  ;;  %13526 = vst [vmem:[#allocation69_spill] sm:$0xff] %v12484_v4  ;;  %v5297_v21 = vld [vmem:[%s13512_s4 + $0x18] sm:$0xff] }
 0x394   : > { %v5407_v10 = vand.u32 4294901760, %v5406_v13  ;;  %v5427_v13 = vsub.f32 %v12435_v1, %v13366_v11  ;;  %v5434_v47 = vsub.f32 %v12456_v24, %v13370_v35  ;;  %10260 = vmatprep.subr.mxu0 %v13436_v19  ;;  %v5300_v1 = vld [vmem:[%s13512_s4 + $0x30] sm:$0xff] }
 0x395   : > { %10261 = vmatpush3.msra.mxu0 %v12421_v33  ;;  %v12524_v34 = vand.u32 4294901760, %v5300_v1 }
 0x396   : > { %10290 = vmatpush3.msra.mxu1 %v5407_v10  ;;  %v5302_v10 = vld [vmem:[%s13512_s4 + $0x40] sm:$0xff]  ;;  %v5428_v11 = vand.u32 4294901760, %v5427_v13  ;;  %v12501_v13 = vand.u32 4294901760, %v5301_v16  ;;  %v5435_v35 = vand.u32 4294901760, %v5434_v47  ;;  %10262 = vmatprep.subr.mxu0 %v13436_v19 }
 0x397   : > { %10291 = vmatprep.subr.mxu1 %v13436_v19  ;;  %v12490_v60 = vand.u32 4294901760, %v5302_v10  ;;  %10263 = vmatpush3.msra.mxu0 %v12438_v59  ;;  %13532 = vst [vmem:[#allocation74_spill] sm:$0xff] %v12524_v34 }
 0x398   : > { %10292 = vmatpush3.msra.mxu1 %v5414_v7  ;;  %v13377_v7 = vand.u32 4294901760, %v12464_v12  ;;  %13528 = vst [vmem:[#allocation71_spill] sm:$0xff] %v12501_v13  ;;  %10264 = vmatprep.subr.mxu0 %v13436_v19 }
 0x399   : > { %10293 = vmatprep.subr.mxu1 %v13436_v19  ;;  %13527 = vst [vmem:[#allocation70_spill] sm:$0xff] %v12490_v60  ;;  %v12504_v24 = vsub.f32 %v5302_v10, %v12490_v60  ;;  %10265 = vmatpush3.msra.mxu0 %v12448_v39 }
 0x39a   : > { %10294 = vmatpush3.msra.mxu1 %v5421_v54  ;;  %v5441_v50 = vsub.f32 %v12464_v12, %v13377_v7  ;;  %v13530_v12 = vand.u32 4294901760, %v12484_v4  ;;  %10266 = vmatprep.subr.mxu0 %v13436_v19 }
 0x39b   : > { %10295 = vmatprep.subr.mxu1 %v13436_v19  ;;  %13529 = vst [vmem:[#allocation72_spill] sm:$0xff] %v12504_v24  ;;  %v13388_v10 = vand.u32 4294901760, %v12504_v24  ;;  %10267 = vmatpush3.msra.mxu0 %v12466_v48 }
 0x39c   : > { %10296 = vmatpush3.msra.mxu1 %v5428_v11  ;;  %v5442_v54 = vand.u32 4294901760, %v5441_v50  ;;  %v5448_v47 = vsub.f32 %v12484_v4, %v13530_v12  ;;  %v12520_v11 = vsub.f32 %v5301_v16, %v12501_v13  ;;  %v5299_v50 = vld [vmem:[%s13512_s4 + $0x28] sm:$0xff]  ;;  %10268 = vmatprep.subr.mxu0 %v13436_v19 }
 0x39d   : > { %10297 = vmatprep.subr.mxu1 %v13436_v19  ;;  %v5455_v16 = vsub.f32 %v12504_v24, %v13388_v10  ;;  %v12539_v4 = vand.u32 4294901760, %v5299_v50  ;;  %10269 = vmatpush3.msra.mxu0 %v12490_v60 }
 0x39e   : > { %13531 = vst [vmem:[#allocation73_spill] sm:$0xff] %v12520_v11  ;;  %10298 = vmatpush3.msra.mxu1 %v5435_v35  ;;  %v5449_v62 = vand.u32 4294901760, %v5448_v47  ;;  %v12536_v35 = vsub.f32 %v5300_v1, %v12524_v34  ;;  %v5298_v47 = vld [vmem:[%s13512_s4 + $0x20] sm:$0xff]  ;;  %10270 = vmatprep.subr.mxu0 %v13436_v19 }
 0x39f   : > { %10299 = vmatprep.subr.mxu1 %v13436_v19  ;;  %13534 = vst [vmem:[#allocation76_spill] sm:$0xff] %v12539_v4  ;;  %v12553_v1 = vand.u32 4294901760, %v5298_v47  ;;  %v5456_v24 = vand.u32 4294901760, %v5455_v16  ;;  %v12557_v33 = vsub.f32 %v5299_v50, %v12539_v4  ;;  %10271 = vmatpush3.msra.mxu0 %v12501_v13 }
 0x3a0   : > { %10300 = vmatpush3.msra.mxu1 %v5442_v54  ;;  %13533 = vst [vmem:[#allocation75_spill] sm:$0xff] %v12536_v35  ;;  %v13535_v54 = vand.u32 4294901760, %v12520_v11  ;;  %v13403_v39 = vand.u32 4294901760, %v12536_v35  ;;  %10272 = vmatprep.subr.mxu0 %v13436_v19 }
 0x3a1   : > { %10301 = vmatprep.subr.mxu1 %v13436_v19  ;;  %13536 = vst [vmem:[#allocation77_spill] sm:$0xff] %v12553_v1  ;;  %13537 = vst [vmem:[#allocation78_spill] sm:$0xff] %v12557_v33  ;;  %10273 = vmatpush3.msra.mxu0 %v12524_v34 }
 0x3a2   : > { %v12392_v31 = vpop.f32.mrf.mxu0  ;;  %v5462_v10 = vsub.f32 %v12520_v11, %v13535_v54  ;;  %10302 = vmatpush3.msra.mxu1 %v5449_v62  ;;  %v12566_v11 = vsub.f32 %v5298_v47, %v12553_v1  ;;  %v12568_v62 = vand.u32 4294901760, %v5297_v21  ;;  %v5469_v50 = vsub.f32 %v12536_v35, %v13403_v39  ;;  %10274 = vmatprep.subr.mxu0 %v13436_v19 }
 0x3a3   : > { %10303 = vmatprep.subr.mxu1 %v13436_v19  ;;  %v13543_v35 = vand.u32 4294901760, %v12557_v33  ;;  %10275 = vmatpush3.msra.mxu0 %v12539_v4 }
 0x3a4   : > { %v12394_v43 = vpop.f32.mrf.mxu1  ;;  %v12413_v45 = vpop.f32.mrf.mxu0  ;;  %v5463_v54 = vand.u32 4294901760, %v5462_v10  ;;  %13538 = vst [vmem:[#allocation79_spill] sm:$0xff] %v12566_v11  ;;  %13539 = vst [vmem:[#allocation80_spill] sm:$0xff] %v12568_v62  ;;  %10304 = vmatpush3.msra.mxu1 %v5456_v24  ;;  %v5296_v10 = vld [vmem:[%s13512_s4 + $0x10] sm:$0xff]  ;;  %v13414_v24 = vand.u32 4294901760, %v12566_v11  ;;  %v12586_v47 = vsub.f32 %v5297_v21, %v12568_v62  ;;  %v5470_v16 = vand.u32 4294901760, %v5469_v50  ;;  %10276 = vmatprep.subr.mxu0 %v13436_v19 }
 0x3a5   : > { %10305 = vmatprep.subr.mxu1 %v13436_v19  ;;  %v12588_v39 = vand.u32 4294901760, %v5296_v10  ;;  %v5476_v8 = vsub.f32 %v12557_v33, %v13543_v35  ;;  %v12606_v35 = vand.u32 4294901760, %v5295_v0  ;;  %v5294_v33 = vld [vmem:[%s13512_s4] sm:$0xff]  ;;  %10277 = vmatpush3.msra.mxu0 %v12553_v1 }
 0x3a6   : > { %v12415_v28 = vpop.f32.mrf.mxu1  ;;  %13541 = vst [vmem:[#allocation82_spill] sm:$0xff] %v12586_v47  ;;  %10306 = vmatpush3.msra.mxu1 %v5463_v54  ;;  %v5483_v21 = vsub.f32 %v12566_v11, %v13414_v24  ;;  %v12626_v34 = vand.u32 4294901760, %v5294_v33  ;;  %10278 = vmatprep.subr.mxu0 %v13436_v19 }
 0x3a7   : > { %13542 = vst [vmem:[#allocation83_spill] sm:$0xff] %v12588_v39  ;;  %10307 = vmatprep.subr.mxu1 %v13436_v19  ;;  %v12604_v54 = vsub.f32 %v5296_v10, %v12588_v39  ;;  %13545 = vst [vmem:[#allocation85_spill] sm:$0xff] %v12606_v35  ;;  %v5477_v50 = vand.u32 4294901760, %v5476_v8  ;;  %v13548_v10 = vand.u32 4294901760, %v12586_v47  ;;  %v12623_v8 = vsub.f32 %v5295_v0, %v12606_v35 }
 0x3a8   : > { %v12443_v9 = vpop.f32.mrf.mxu0  ;;  %10308 = vmatpush3.msra.mxu1 %v5470_v16  ;;  %v5484_v13 = vand.u32 4294901760, %v5483_v21  ;;  %13550 = vst [vmem:[#allocation89_spill] sm:$0xff] %v12626_v34  ;;  %v12639_v0 = vsub.f32 %v5294_v33, %v12626_v34  ;;  %10279 = vmatpush3.msra.mxu0 %v12568_v62 }
 0x3a9   : > { %13544 = vst [vmem:[#allocation84_spill] sm:$0xff] %v12604_v54  ;;  %10309 = vmatprep.subr.mxu1 %v13436_v19  ;;  %v5490_v11 = vsub.f32 %v12586_v47, %v13548_v10  ;;  %v13421_v16 = vand.u32 4294901760, %v12604_v54  ;;  %13549 = vst [vmem:[#allocation88_spill] sm:$0xff] %v12623_v8  ;;  %v13424_v47 = vand.u32 4294901760, %v12623_v8  ;;  %10280 = vmatprep.subr.mxu0 %v13436_v19 }
 0x3aa   : > { %v12477_v26 = vpop.f32.mrf.mxu0  ;;  %10310 = vmatpush3.msra.mxu1 %v5477_v50  ;;  %13551 = vst [vmem:[#allocation90_spill] sm:$0xff] %v12639_v0  ;;  %10281 = vmatpush3.msra.mxu0 %v12588_v39 }
 0x3ab   : > { %v12445_v58 = vpop.f32.mrf.mxu1  ;;  %10311 = vmatprep.subr.mxu1 %v13436_v19  ;;  %v5491_v21 = vand.u32 4294901760, %v5490_v11  ;;  %v5497_v10 = vsub.f32 %v12604_v54, %v13421_v16  ;;  %v5504_v11 = vsub.f32 %v12623_v8, %v13424_v47  ;;  %v13425_v16 = vand.u32 4294901760, %v12639_v0  ;;  %10282 = vmatprep.subr.mxu0 %v13436_v19 }
 0x3ac   : > { %10312 = vmatpush3.msra.mxu1 %v5484_v13  ;;  %10283 = vmatpush3.msra.mxu0 %v12606_v35 }
 0x3ad   : > { %v12479_v2 = vpop.f32.mrf.mxu1  ;;  %10313 = vmatprep.subr.mxu1 %v13436_v19  ;;  %v5498_v50 = vand.u32 4294901760, %v5497_v10  ;;  %v5505_v54 = vand.u32 4294901760, %v5504_v11  ;;  %v5511_v10 = vsub.f32 %v12639_v0, %v13425_v16  ;;  %10284 = vmatprep.subr.mxu0 %v13436_v19 }
 0x3ae   : > { %v12510_v23 = vpop.f32.mrf.mxu0  ;;  %10314 = vmatpush3.msra.mxu1 %v5491_v21  ;;  %10285 = vmatpush3.msra.mxu0 %v12626_v34 }
 0x3af   : > { %10315 = vmatprep.subr.mxu1 %v13436_v19  ;;  %v5512_v21 = vand.u32 4294901760, %v5511_v10  ;;  %10324 = vmatprep.subr.mxu0 %v13436_v19 }
 0x3b0   : > { %v12544_v59 = vpop.f32.mrf.mxu0  ;;  %10316 = vmatpush3.msra.mxu1 %v5498_v50 }
 0x3b1   : > { %v12512_v7 = vpop.f32.mrf.mxu1  ;;  %10317 = vmatprep.subr.mxu1 %v13436_v19 }
 0x3b2   : > { %10318 = vmatpush3.msra.mxu1 %v5505_v54 }
 0x3b3   : > { %v12546_v12 = vpop.f32.mrf.mxu1  ;;  %10319 = vmatprep.subr.mxu1 %v13436_v19 }
 0x3b4   : > { %v12578_v48 = vpop.f32.mrf.mxu0  ;;  %10320 = vmatpush3.msra.mxu1 %v5512_v21 }
 0x3b5   : > { %10359 = vmatprep.subr.mxu1 %v13436_v19 }
 0x3b7   : > { %v12580_v60 = vpop.f32.mrf.mxu1 }
 0x3b8   : > { %13540 = vst [vmem:[#allocation81_spill] sm:$0xff] %v12580_v60  ;;  %v12612_v60 = vpop.f32.mrf.mxu0 }
 0x3b9   : > { %13546 = vst [vmem:[#allocation86_spill] sm:$0xff] %v12612_v60  ;;  %v12614_v24 = vpop.f32.mrf.mxu1 }
 0x3ba   : > { %13547 = vst [vmem:[#allocation87_spill] sm:$0xff] %v12614_v24 }
 0x3ca   : > { %v12628_v24 = vpop.f32.mrf.mxu0 }
 0x3cc   : > { %v12630_v60 = vpop.f32.mrf.mxu1  ;;  %v12649_v13 = vpop.f32.mrf.mxu0 }
 0x3ce   : > { %v12651_v33 = vpop.f32.mrf.mxu1 }
 0x3d0   : > { %v12663_v11 = vpop.f32.mrf.mxu0 }
 0x3d2   : > { %v12674_v54 = vpop.f32.mrf.mxu0 }
 0x3d3   : > { %v12665_v47 = vpop.f32.mrf.mxu1 }
 0x3d5   : > { %v12676_v50 = vpop.f32.mrf.mxu1 }
 0x3d6   : > { %13552 = vst [vmem:[#allocation91_spill] sm:$0xff] %v12676_v50  ;;  %v12678_v10 = vpop.f32.mrf.mxu0 }
 0x3d7   : > { %13553 = vst [vmem:[#allocation92_spill] sm:$0xff] %v12678_v10 }
 0x3d8   : > { %v12682_v0 = vpop.f32.mrf.mxu0 }
 0x3d9   : > { %v12680_v16 = vpop.f32.mrf.mxu1  ;;  %13555 = vst [vmem:[#allocation94_spill] sm:$0xff] %v12682_v0 }
 0x3da   : > { %13554 = vst [vmem:[#allocation93_spill] sm:$0xff] %v12680_v16 }
 0x3db   : > { %v12684_v21 = vpop.f32.mrf.mxu1 }
 0x3dc   : > { %13556 = vst [vmem:[#allocation95_spill] sm:$0xff] %v12684_v21  ;;  %v12686_v8 = vpop.f32.mrf.mxu0 }
 0x3dd   : > { %13557 = vst [vmem:[#allocation96_spill] sm:$0xff] %v12686_v8 }
 0x3de   : > { %v12690_v35 = vpop.f32.mrf.mxu0 }
 0x3df   : > { %v12688_v34 = vpop.f32.mrf.mxu1  ;;  %13559 = vst [vmem:[#allocation98_spill] sm:$0xff] %v12690_v35 }
 0x3e0   : > { %13558 = vst [vmem:[#allocation97_spill] sm:$0xff] %v12688_v34 }
 0x3e1   : > { %v12692_v39 = vpop.f32.mrf.mxu1 }
 0x3e2   : > { %13560 = vst [vmem:[#allocation99_spill] sm:$0xff] %v12692_v39 }
 0x3f2   : > { %v12694_v19 = vpop.f32.mrf.mxu0 }
 0x3f4   : > { %v12696_v62 = vpop.f32.mrf.mxu1  ;;  %v12698_v1 = vpop.f32.mrf.mxu0 }
 0x3f5   : > { %13561 = vst [vmem:[#allocation100_spill] sm:$0xff] %v12696_v62 }
 0x3f6   : > { %v12700_v4 = vpop.f32.mrf.mxu1 }
 0x3f7   : > { %13562 = vst [vmem:[#allocation101_spill] sm:$0xff] %v12700_v4 }
 0x3f8   : > { %v12702_v16 = vpop.f32.mrf.mxu0 }
 0x3f9   : > { %13563 = vst [vmem:[#allocation102_spill] sm:$0xff] %v12702_v16 }
 0x3fa   : > { %v12706_v21 = vpop.f32.mrf.mxu0 }
 0x3fb   : > { %v12704_v0 = vpop.f32.mrf.mxu1  ;;  %13565 = vst [vmem:[#allocation104_spill] sm:$0xff] %v12706_v21 }
 0x3fc   : > { %13564 = vst [vmem:[#allocation103_spill] sm:$0xff] %v12704_v0 }
 0x3fd   : > { %v12708_v8 = vpop.f32.mrf.mxu1 }
 0x3fe   : > { %13566 = vst [vmem:[#allocation105_spill] sm:$0xff] %v12708_v8  ;;  %v12710_v34 = vpop.f32.mrf.mxu0  ;;  %v836_v8 = vadd.f32 %v11726_v18, %v11724_v17  ;;  %v3732_v17 = vadd.f32 %v12354_v25, %v12318_v38  ;;  %v4007_v18 = vadd.f32 %v12392_v31, %v12343_v20  ;;  %v4009_v20 = vadd.f32 %v12443_v9, %v12359_v14 }
 0x400   : > { %v12714_v39 = vpop.f32.mrf.mxu0  ;;  %v4137_v38 = vadd.f32 %v12394_v43, %v4007_v18  ;;  %v13575_v43 = vld [vmem:[#allocation31_spill] sm:$0xff] }
 0x401   : > { %v12712_v35 = vpop.f32.mrf.mxu1  ;;  %13568 = vst [vmem:[#allocation107_spill] sm:$0xff] %v12714_v39  ;;  %v13581_v18 = vld [vmem:[#allocation35_spill] sm:$0xff] }
 0x402   : > { %13567 = vst [vmem:[#allocation106_spill] sm:$0xff] %v12712_v35  ;;  %v3730_v35 = vadd.f32 %v12341_v53, %v12306_v3  ;;  %v4267_v14 = vadd.f32 %v12628_v24, %v4137_v38 }
 0x403   : > { %v12716_v50 = vpop.f32.mrf.mxu1 }
 0x404   : > { %13569 = vst [vmem:[#allocation108_spill] sm:$0xff] %v12716_v50  ;;  %v12718_v62 = vpop.f32.mrf.mxu0 }
 0x405   : > { %13570 = vst [vmem:[#allocation109_spill] sm:$0xff] %v12718_v62  ;;  %v3868_v62 = vadd.f32 %v12349_v40, %v3730_v35 }
 0x406   : > { %v12722_v4 = vpop.f32.mrf.mxu0 }
 0x407   : > { %v12720_v10 = vpop.f32.mrf.mxu1  ;;  %13572 = vst [vmem:[#allocation111_spill] sm:$0xff] %v12722_v4  ;;  %v846_v4 = vadd.f32 %v11739_v29, %v11737_v30  ;;  %v4006_v29 = vadd.f32 %v12413_v45, %v3868_v62 }
 0x408   : > { %13571 = vst [vmem:[#allocation110_spill] sm:$0xff] %v12720_v10  ;;  %v1004_v10 = vadd.f32 %v11758_v56, %v836_v8 }
 0x409   : > { %v12724_v16 = vpop.f32.mrf.mxu1  ;;  %v1006_v3 = vadd.f32 %v11771_v15, %v846_v4  ;;  %v866_v15 = vadd.f32 %v11755_v63, %v11753_v52  ;;  %v13576_v52 = vld [vmem:[#allocation34_spill] sm:$0xff]  ;;  %v13578_v4 = vld [vmem:[#allocation36_spill] sm:$0xff] }
 0x40a   : > { %13573 = vst [vmem:[#allocation112_spill] sm:$0xff] %v12724_v16  ;;  %v856_v16 = vadd.f32 %v11749_v42, %v11747_v41  ;;  %v1142_v56 = vadd.f32 %v11765_v5, %v1004_v10  ;;  %v3870_v42 = vadd.f32 %v12361_v55, %v3732_v17  ;;  %v3734_v5 = vadd.f32 %v12367_v6, %v12328_v44  ;;  %v13580_v17 = vld [vmem:[#allocation32_spill] sm:$0xff] }
 0x40b   : > { %v1144_v40 = vadd.f32 %v11778_v32, %v1006_v3  ;;  %v4136_v55 = vadd.f32 %v12415_v28, %v4006_v29  ;;  %v1010_v45 = vadd.f32 %v13575_v43, %v866_v15  ;;  %v13577_v32 = vld [vmem:[#allocation33_spill] sm:$0xff]  ;;  %v4139_v6 = vadd.f32 %v12445_v58, %v4009_v20 }
 0x40c   : > { %v1008_v30 = vadd.f32 %v11784_v37, %v856_v16  ;;  %v1272_v41 = vadd.f32 %v11823_v46, %v1142_v56  ;;  %v4008_v31 = vadd.f32 %v12477_v26, %v3870_v42  ;;  %v3736_v28 = vadd.f32 %v12383_v51, %v12337_v36  ;;  %v13579_v16 = vld [vmem:[#allocation40_spill] sm:$0xff]  ;;  %v12795_v36 = vld [vmem:[#allocation8] ss:$0 sm:$0xff]  ;;  %v12821_v43 = vld [vmem:[#allocation11] ss:$0 sm:$0xff] }
 0x40d   : > { %v1274_v63 = vadd.f32 %v13576_v52, %v1144_v40  ;;  %v4266_v62 = vadd.f32 %v12649_v13, %v4136_v55  ;;  %v4011_v26 = vadd.f32 %v12510_v23, %v12370_v61  ;;  %v4397_v58 = vadd.f32 %v12630_v60, %v4267_v14  ;;  %v13582_v23 = vld [vmem:[#allocation37_spill] sm:$0xff]  ;;  %v13586_v40 = vld [vmem:[#allocation47_spill] sm:$0xff] }
 0x40e   : > { %v1146_v46 = vadd.f32 %v11795_v49, %v1008_v30  ;;  %v1410_v9 = vadd.f32 %v13577_v32, %v1272_v41  ;;  %v3872_v49 = vadd.f32 %v12375_v27, %v3734_v5  ;;  %v4138_v10 = vadd.f32 %v12479_v2, %v4008_v31  ;;  %v13584_v41 = vld [vmem:[#allocation42_spill] sm:$0xff] }
 0x40f   : > { %v4269_v13 = vadd.f32 %v12663_v11, %v4139_v6  ;;  %v1148_v27 = vadd.f32 %v13580_v17, %v1010_v45  ;;  %v1412_v3 = vadd.f32 %v13581_v18, %v1274_v63  ;;  %v4013_v51 = vadd.f32 %v12578_v48, %v12378_v57  ;;  %v13583_v11 = vld [vmem:[#allocation38_spill] sm:$0xff]  ;;  %v13585_v57 = vld [vmem:[#allocation41_spill] sm:$0xff]  ;;  %v13590_v45 = vld [vmem:[#allocation48_spill] sm:$0xff] }
 0x410   : > { %v1276_v44 = vadd.f32 %v13578_v4, %v1146_v46  ;;  %v1549_v8 = vadd.f32 %v13579_v16, %v1410_v9  ;;  %v4010_v61 = vadd.f32 %v12544_v59, %v3872_v49  ;;  %v4396_v30 = vadd.f32 %v12651_v33, %v4266_v62  ;;  %v13587_v46 = vld [vmem:[#allocation86_spill] sm:$0xff]  ;;  %v13591_v63 = vld [vmem:[#allocation91_spill] sm:$0xff]  ;;  %v13592_v9 = vld [vmem:[#allocation100_spill] sm:$0xff] }
 0x411   : > { %v4268_v2 = vadd.f32 %v12674_v54, %v4138_v10  ;;  %v4535_v60 = vadd.f32 %v12694_v19, %v4397_v58  ;;  %v1278_v29 = vadd.f32 %v13583_v11, %v1148_v27  ;;  %v1551_v42 = vadd.f32 %v13584_v41, %v1412_v3  ;;  %v13594_v6 = vld [vmem:[#allocation39_spill] sm:$0xff]  ;;  %v13596_v49 = vld [vmem:[#allocation94_spill] sm:$0xff]  ;;  %v13598_v58 = vld [vmem:[#allocation44_spill] sm:$0xff] }
 0x412   : > { %v1414_v56 = vadd.f32 %v13582_v23, %v1276_v44  ;;  %v3874_v38 = vadd.f32 %v12385_v22, %v3736_v28  ;;  %v4141_v20 = vadd.f32 %v12512_v7, %v4011_v26  ;;  %v1687_v48 = vadd.f32 %v13585_v57, %v1549_v8  ;;  %v13588_v22 = vld [vmem:[#allocation81_spill] sm:$0xff]  ;;  %v13589_v7 = vld [vmem:[#allocation92_spill] sm:$0xff]  ;;  %v13593_v44 = vld [vmem:[#allocation102_spill] sm:$0xff] }
 0x413   : > { %v1841_v33 = vmul.f32 %v12795_v36, %v13586_v40  ;;  %v4399_v54 = vadd.f32 %v12665_v47, %v4269_v13  ;;  %v4534_v19 = vadd.f32 %v12698_v1, %v4396_v30  ;;  %v4140_v5 = vadd.f32 %v12546_v12, %v4010_v61  ;;  %v13595_v62 = vld [vmem:[#allocation43_spill] sm:$0xff]  ;;  %v13597_v26 = vld [vmem:[#allocation96_spill] sm:$0xff]  ;;  %v13599_v17 = vld [vmem:[#allocation101_spill] sm:$0xff] }
 0x414   : > { %v4012_v55 = vadd.f32 %v13587_v46, %v3874_v38  ;;  %v4143_v31 = vadd.f32 %v13588_v22, %v4013_v51  ;;  %v4271_v14 = vadd.f32 %v13589_v7, %v4141_v20  ;;  %v1825_v52 = vadd.f32 %v13590_v45, %v1687_v48  ;;  %v13600_v18 = vld [vmem:[#allocation104_spill] sm:$0xff]  ;;  %v13601_v51 = vld [vmem:[#allocation46_spill] sm:$0xff]  ;;  %v13603_v11 = vld [vmem:[#allocation93_spill] sm:$0xff] }
 0x415   : > { %v4398_v32 = vadd.f32 %v13591_v63, %v4268_v2  ;;  %v4674_v4 = vadd.f32 %v13592_v9, %v4535_v60  ;;  %v4537_v47 = vadd.f32 %v13593_v44, %v4399_v54  ;;  %v1416_v1 = vadd.f32 %v13594_v6, %v1278_v29  ;;  %v13602_v2 = vld [vmem:[#allocation87_spill] sm:$0xff]  ;;  %v13609_v22 = vld [vmem:[#allocation45_spill] sm:$0xff] }
 0x416   : > { %v1689_v12 = vadd.f32 %v13595_v62, %v1551_v42  ;;  %v4270_v28 = vadd.f32 %v13596_v49, %v4140_v5  ;;  %v4273_v16 = vadd.f32 %v13597_v26, %v4143_v31  ;;  %v1553_v13 = vadd.f32 %v13598_v58, %v1414_v56  ;;  %v13604_v42 = vld [vmem:[#allocation50_spill] sm:$0xff]  ;;  %v13605_v56 = vld [vmem:[#allocation103_spill] sm:$0xff]  ;;  %v13610_v7 = vld [vmem:[#allocation105_spill] sm:$0xff] }
 0x417   : > { %v4673_v27 = vadd.f32 %v13599_v17, %v4534_v19  ;;  %v4536_v3 = vadd.f32 %v13600_v18, %v4398_v32  ;;  %v1555_v23 = vadd.f32 %v13601_v51, %v1416_v1  ;;  %v12839_v30 = vadd.f32 %v12821_v43, %v1841_v33  ;;  %v13606_v48 = vld [vmem:[#allocation95_spill] sm:$0xff]  ;;  %v13608_v19 = vld [vmem:[#allocation97_spill] sm:$0xff] }
 0x418   : > { %v4142_v60 = vadd.f32 %v13602_v2, %v4012_v55  ;;  %v4401_v29 = vadd.f32 %v13603_v11, %v4271_v14  ;;  %v1840_v41 = vmul.f32 %v12795_v36, %v1825_v52  ;;  %v1827_v38 = vadd.f32 %v13604_v42, %v1689_v12  ;;  %v13612_v9 = vld [vmem:[#allocation107_spill] sm:$0xff]  ;;  %v13613_v44 = vld [vmem:[#allocation109_spill] sm:$0xff]  ;;  %v13621_v42 = vld [vmem:[#allocation110_spill] sm:$0xff] }
 0x419   : > { %v4676_v20 = vadd.f32 %v13605_v56, %v4537_v47  ;;  %v4400_v40 = vadd.f32 %v13606_v48, %v4270_v28  ;;  %v4403_v5 = vadd.f32 %v13608_v19, %v4273_v16  ;;  %v1691_v31 = vadd.f32 %v13609_v22, %v1553_v13  ;;  %v13615_v28 = vld [vmem:[#allocation49_spill] sm:$0xff]  ;;  %v13616_v16 = vld [vmem:[#allocation99_spill] sm:$0xff]  ;;  %v13617_v13 = vld [vmem:[#allocation106_spill] sm:$0xff] }
 0x41a   : > { %v12726_v0 = vpop.f32.mrf.mxu0  ;;  %v4539_v33 = vadd.f32 %v12710_v34, %v4401_v29  ;;  %v4675_v14 = vadd.f32 %v13610_v7, %v4536_v3  ;;  %v1864_v32 = vmax.f32 %v12839_v30, 0.0  ;;  %v12862_v1 = vadd.f32 %v12821_v43, %v1840_v41  ;;  %v13620_v29 = vld [vmem:[#allocation111_spill] sm:$0xff] }
 0x41b   : > { %v4812_v61 = vadd.f32 %v12726_v0, %v4674_v4  ;;  %v13607_v0 = vld [vmem:[#allocation98_spill] sm:$0xff]  ;;  %v4538_v4 = vadd.f32 %v13612_v9, %v4400_v40  ;;  %v4541_v47 = vadd.f32 %v13613_v44, %v4403_v5  ;;  %v1842_v26 = vmul.f32 %v12795_v36, %v1827_v38  ;;  %v13622_v9 = vld [vmem:[#allocation112_spill] sm:$0xff] }
 0x41c   : > { %v12728_v21 = vpop.f32.mrf.mxu1  ;;  %v12734_v39 = vpop.f32.mrf.mxu0  ;;  %v4272_v54 = vadd.f32 %v13607_v0, %v4142_v60  ;;  %v4678_v17 = vadd.f32 %v13617_v13, %v4539_v33  ;;  %v13619_v60 = vld [vmem:[#allocation108_spill] sm:$0xff]  ;;  %v1863_v19 = vmax.f32 %v12862_v1, 0.0 }
 0x41d   : > { %v4811_v57 = vadd.f32 %v12734_v39, %v4673_v27  ;;  %v4950_v45 = vadd.f32 %v12728_v21, %v4812_v61  ;;  %v13611_v39 = vld [vmem:[#allocation54_spill] sm:$0xff]  ;;  %v12871_v27 = vld [vmem:[#allocation10] ss:$0 sm:$0xff]  ;;  %v13618_v61 = vld [vmem:[#allocation52_spill] sm:$0xff]  ;;  %v4677_v11 = vadd.f32 %v13619_v60, %v4538_v4  ;;  %v4680_v38 = vadd.f32 %v13621_v42, %v4541_v47 }
 0x41e   : > { %v12736_v50 = vpop.f32.mrf.mxu1  ;;  %v1693_v63 = vadd.f32 %v13611_v39, %v1555_v23  ;;  %v4402_v58 = vadd.f32 %v13616_v16, %v4272_v54  ;;  %v1829_v51 = vadd.f32 %v13618_v61, %v1691_v31  ;;  %v13623_v47 = vld [vmem:[#allocation55_spill] sm:$0xff] }
 0x41f   : > { %13574 = vst [vmem:[#allocation113_spill] sm:$0xff] %v12736_v50 }
 0x420   : > { %v12749_v53 = vpop.f32.mrf.mxu0  ;;  %v4540_v41 = vadd.f32 %v13620_v29, %v4402_v58  ;;  %v1844_v39 = vmul.f32 %v12795_v36, %v1829_v51 }
 0x421   : > { %v4814_v52 = vadd.f32 %v12749_v53, %v4676_v20  ;;  %v1843_v53 = vmul.f32 %v12795_v36, %v13615_v28  ;;  %v12879_v20 = vld [vmem:[#allocation13] ss:$0 sm:$0xff] }
 0x422   : > { %v12766_v37 = vpop.f32.mrf.mxu0  ;;  %v4679_v4 = vadd.f32 %v13622_v9, %v4540_v41  ;;  %v12915_v61 = vadd.f32 %v12821_v43, %v1844_v39 }
 0x423   : > { %v12751_v50 = vpop.f32.mrf.mxu1  ;;  %v4813_v49 = vadd.f32 %v12766_v37, %v4675_v14  ;;  %v12885_v5 = vadd.f32 %v12821_v43, %v1843_v53 }
 0x424   : > { %v4952_v23 = vadd.f32 %v12751_v50, %v4814_v52  ;;  %v12893_v52 = vadd.f32 %v12821_v43, %v1842_v26  ;;  %v1867_v9 = vmax.f32 %v12915_v61, 0.0 }
 0x425   : > { %v12768_v25 = vpop.f32.mrf.mxu1 }
 0x426   : > { %v12785_v24 = vpop.f32.mrf.mxu0  ;;  %v13614_v62 = vld [vmem:[#allocation113_spill] sm:$0xff]  ;;  %v4951_v40 = vadd.f32 %v12768_v25, %v4813_v49 }
 0x427   : > { %v4949_v12 = vadd.f32 %v13614_v62, %v4811_v57  ;;  %v4816_v56 = vadd.f32 %v12785_v24, %v4678_v17  ;;  %v1865_v17 = vmax.f32 %v12893_v52, 0.0 }
 0x428   : > { %v12808_v59 = vpop.f32.mrf.mxu0 }
 0x429   : > { %v12787_v35 = vpop.f32.mrf.mxu1  ;;  %v4815_v33 = vadd.f32 %v12808_v59, %v4677_v11 }
 0x42a   : > { %v4954_v44 = vadd.f32 %v12787_v35, %v4816_v56 }
 0x42b   : > { %v12810_v15 = vpop.f32.mrf.mxu1 }
 0x42c   : > { %v10121_v8 = vpop.f32.mrf.mxu0  ;;  %v4953_v49 = vadd.f32 %v12810_v15, %v4815_v33 }
 0x42d   : > { %v4818_v22 = vadd.f32 %v10121_v8, %v4680_v38 }
 0x42e   : > { %v4802_v46 = vpop.f32.mrf.mxu0 }
 0x42f   : > { %v12831_v10 = vpop.f32.mrf.mxu1 }
 0x430   : > { %v4956_v28 = vadd.f32 %v12831_v10, %v4818_v22 }
 0x431   : > { %v12851_v55 = vpop.f32.mrf.mxu1 }
 0x442   : > { %v10200_v34 = vpop.f32.mrf.mxu0 }
 0x443   : > { %v10244_v6 = vpop.f32.mrf.mxu1  ;;  %v5088_v21 = vadd.f32 %v10200_v34, %v4950_v45  ;;  %v1831_v34 = vadd.f32 %v13623_v47, %v1693_v63 }
 0x444   : > { %v5048_v18 = vpop.f32.mrf.mxu0 }
 0x445   : > { %v5186_v3 = vpop.f32.mrf.mxu1  ;;  %v5226_v2 = vadd.f32 %v10244_v6, %v5088_v21  ;;  %v5087_v37 = vadd.f32 %v5048_v18, %v4949_v12  ;;  %v4817_v21 = vadd.f32 %v4802_v46, %v4679_v4  ;;  %v13624_v18 = vld [vmem:[#allocation51_spill] sm:$0xff]  ;;  %v1846_v60 = vmul.f32 %v12795_v36, %v1831_v34 }
 0x446   : > { %v10203_v57 = vpop.f32.mrf.mxu0  ;;  %v1845_v15 = vmul.f32 %v12795_v36, %v13624_v18 }
 0x447   : > { %v10247_v48 = vpop.f32.mrf.mxu1  ;;  %v5241_v0 = vmul.f32 %v12871_v27, %v5226_v2  ;;  %v5225_v54 = vadd.f32 %v5186_v3, %v5087_v37  ;;  %v5090_v50 = vadd.f32 %v10203_v57, %v4952_v23  ;;  %v4955_v11 = vadd.f32 %v12851_v55, %v4817_v21 }
 0x448   : > { %v5058_v31 = vpop.f32.mrf.mxu0  ;;  %v12953_v4 = vadd.f32 %v12821_v43, %v1846_v60 }
 0x449   : > { %v5196_v24 = vpop.f32.mrf.mxu1  ;;  %v12889_v7 = vadd.f32 %v12879_v20, %v5241_v0  ;;  %v5240_v14 = vmul.f32 %v12871_v27, %v5225_v54  ;;  %v5228_v25 = vadd.f32 %v10247_v48, %v5090_v50  ;;  %v5089_v45 = vadd.f32 %v5058_v31, %v4951_v40 }
 0x44a   : > { %v10206_v59 = vpop.f32.mrf.mxu0  ;;  %v1866_v54 = vmax.f32 %v12885_v5, 0.0  ;;  %v10796_v5 = vld [vmem:[%s11514_s20 + $0x22] sm:$0xff] }
 0x44b   : > { %v10250_v8 = vpop.f32.mrf.mxu1  ;;  %v12900_v6 = vadd.f32 %v12879_v20, %v5240_v14  ;;  %v5243_v62 = vmul.f32 %v12871_v27, %v5228_v25  ;;  %v5227_v12 = vadd.f32 %v5196_v24, %v5089_v45  ;;  %v5092_v53 = vadd.f32 %v10206_v59, %v4954_v44  ;;  %v13625_v14 = vld [vmem:[#allocation53_spill] sm:$0xff] }
 0x44c   : > { %v5068_v26 = vpop.f32.mrf.mxu0  ;;  %v5264_v35 = vmax.f32 %v12889_v7, 0.0  ;;  %v12944_v24 = vadd.f32 %v12821_v43, %v1845_v15  ;;  %v1847_v25 = vmul.f32 %v12795_v36, %v13625_v14  ;;  %v13631_v14 = vld [vmem:[#allocation57_spill] sm:$0xff] }
 0x44d   : > { %v5206_v16 = vpop.f32.mrf.mxu1  ;;  %v5263_v58 = vmax.f32 %v12900_v6, 0.0  ;;  %v12908_v63 = vadd.f32 %v12879_v20, %v5243_v62  ;;  %v5242_v13 = vmul.f32 %v12871_v27, %v5227_v12  ;;  %v5230_v46 = vadd.f32 %v10250_v8, %v5092_v53 }
 0x44e   : > { %v5091_v3 = vadd.f32 %v5068_v26, %v4953_v49  ;;  %v10209_v10 = vpop.f32.mrf.mxu0  ;;  %v5272_v38 = vadd.f32 %v5264_v35, %v1864_v32  ;;  %v1868_v12 = vmax.f32 %v12944_v24, 0.0  ;;  %v12967_v49 = vadd.f32 %v12821_v43, %v1847_v25  ;;  %v13632_v25 = vld [vmem:[#allocation64_spill] sm:$0xff] }
 0x44f   : > { %v5271_v51 = vadd.f32 %v5263_v58, %v1863_v19  ;;  %v12922_v23 = vadd.f32 %v12879_v20, %v5242_v13  ;;  %v5094_v2 = vadd.f32 %v10209_v10, %v4956_v28  ;;  %v10253_v37 = vpop.f32.mrf.mxu1  ;;  %v5245_v29 = vmul.f32 %v12871_v27, %v5230_v46 }
 0x450   : > { %v5229_v41 = vadd.f32 %v5206_v16, %v5091_v3  ;;  %v5078_v42 = vpop.f32.mrf.mxu0  ;;  %v5266_v56 = vmax.f32 %v12908_v63, 0.0  ;;  %v1869_v53 = vmax.f32 %v12953_v4, 0.0  ;;  %v1870_v13 = vmax.f32 %v12967_v49, 0.0  ;;  %v10802_v49 = vld [vmem:[%s11514_s20 + $0x82] sm:$0xff] }
 0x451   : > { %v5265_v57 = vmax.f32 %v12922_v23, 0.0  ;;  %v5232_v48 = vadd.f32 %v10253_v37, %v5094_v2  ;;  %v12934_v40 = vadd.f32 %v12879_v20, %v5245_v29  ;;  %v5093_v55 = vadd.f32 %v5078_v42, %v4955_v11  ;;  %v5216_v31 = vpop.f32.mrf.mxu1 }
 0x452   : > { %v5244_v0 = vmul.f32 %v12871_v27, %v5229_v41  ;;  %v5279_v50 = vadd.f32 %v5272_v38, %v5271_v51  ;;  %v5274_v44 = vadd.f32 %v5266_v56, %v1866_v54  ;;  %v13626_v38 = vld [vmem:[#allocation56_spill] sm:$0xff] }
 0x453   : > { %v5273_v33 = vadd.f32 %v5265_v57, %v1865_v17  ;;  %v5247_v22 = vmul.f32 %v12871_v27, %v5232_v48  ;;  %v5231_v39 = vadd.f32 %v5216_v31, %v5093_v55  ;;  %v13446_v8 = vmax.f32 %v12934_v40, 0.0  ;;  %v13628_v55 = vld [vmem:[#allocation58_spill] sm:$0xff]  ;;  %v13630_v31 = vld [vmem:[#allocation61_spill] sm:$0xff] }
 0x454   : > { %v12949_v45 = vadd.f32 %v12879_v20, %v5244_v0  ;;  %v13627_v48 = vmov 0.0  }
 0x455   : > { %v5280_v59 = vadd.f32 %v5279_v50, %v5273_v33  ;;  %v12962_v36 = vadd.f32 %v12879_v20, %v5247_v22  ;;  %v5246_v34 = vmul.f32 %v12871_v27, %v5231_v39  ;;  %v5276_v27 = vadd.f32 %v13446_v8, %v1868_v12  ;;  %v13629_v33 = vld [vmem:[#allocation60_spill] sm:$0xff]  ;;  %v13633_v39 = vld [vmem:[#allocation59_spill] sm:$0xff] }
 0x456   : > { %v5267_v47 = vmax.f32 %v12949_v45, 0.0  ;;  %v13657_v8 = vld [vmem:[#allocation88_spill] sm:$0xff] }
 0x457   : > { %v5281_v62 = vadd.f32 %v5280_v59, %v5274_v44  ;;  %v12974_v28 = vadd.f32 %v12879_v20, %v5246_v34  ;;  %v13444_v16 = vmax.f32 %v12962_v36, 0.0  ;;  %v13634_v44 = vld [vmem:[#allocation65_spill] sm:$0xff]  ;;  %v13635_v59 = vld [vmem:[#allocation62_spill] sm:$0xff]  ;;  %v13636_v34 = vld [vmem:[#allocation68_spill] sm:$0xff]  ;;  %v13677_v6 = vmax.f32 %v12962_v36, 0.0 }
 0x458   : > { %v5275_v21 = vadd.f32 %v5267_v47, %v1867_v9 }
 0x459   : > { %v13445_v43 = vmax.f32 %v12974_v28, 0.0  ;;  %v5278_v15 = vadd.f32 %v13444_v16, %v1870_v13  ;;  %v13655_v16 = vld [vmem:[#allocation82_spill] sm:$0xff] }
 0x45a   : > { %v5282_v26 = vadd.f32 %v5281_v62, %v5275_v21  ;;  %v13637_v62 = vld [vmem:[#allocation63_spill] sm:$0xff]  ;;  %v13638_v21 = vld [vmem:[#allocation70_spill] sm:$0xff] }
 0x45b   : > { %v5277_v20 = vadd.f32 %v13445_v43, %v1869_v53  ;;  %v13656_v43 = vld [vmem:[#allocation84_spill] sm:$0xff] }
 0x45c   : > { %v5283_v18 = vadd.f32 %v5282_v26, %v5276_v27  ;;  %v13639_v27 = vld [vmem:[#allocation66_spill] sm:$0xff]  ;;  %v13640_v26 = vld [vmem:[#allocation71_spill] sm:$0xff] }
 0x45e   : > { %v5284_v46 = vadd.f32 %v5283_v18, %v5277_v20  ;;  %v13641_v20 = vld [vmem:[#allocation67_spill] sm:$0xff]  ;;  %v13642_v18 = vld [vmem:[#allocation74_spill] sm:$0xff] }
 0x460   : > { %v5285_v3 = vadd.f32 %v5284_v46, %v5278_v15  ;;  %v13643_v15 = vld [vmem:[#allocation69_spill] sm:$0xff]  ;;  %v13644_v46 = vld [vmem:[#allocation76_spill] sm:$0xff] }
 0x462   : > { %v5286_v10 = vrot.slane %v5285_v3, 4 }
 0x464   : > { %v5287_v51 = vadd.f32 %v5286_v10, %v5285_v3  ;;  %v13645_v3 = vld [vmem:[#allocation72_spill] sm:$0xff]  ;;  %v13646_v10 = vld [vmem:[#allocation77_spill] sm:$0xff] }
 0x466   : > { %v5288_v2 = vrot.slane %v5287_v51, 2 }
 0x468   : > { %v5289_v37 = vadd.f32 %v5288_v2, %v5287_v51  ;;  %v13647_v51 = vld [vmem:[#allocation73_spill] sm:$0xff]  ;;  %v13648_v2 = vld [vmem:[#allocation80_spill] sm:$0xff] }
 0x46a   : > { %v5290_v60 = vrot.slane %v5289_v37, 1 }
 0x46c   : > { %v5291_v11 = vadd.f32 %v5290_v60, %v5289_v37  ;;  %v13649_v37 = vld [vmem:[#allocation75_spill] sm:$0xff] }
 0x46d   : > { %v13650_v60 = vld [vmem:[#allocation83_spill] sm:$0xff] }
 0x46e   : > { %v5293_v29 = vmul.f32 0.015625, %v5291_v11  ;;  %v13651_v11 = vld [vmem:[#allocation78_spill] sm:$0xff] }
 0x470   : > { %v12992_v41 = vand.u32 4294901760, %v5293_v29 }
 0x472   : > { %10322 = vmatmul.mubr.f32.vlgmr.msra.gmra.mxu1 %v12992_v41  ;;  %v12996_v42 = vsub.f32 %v5293_v29, %v12992_v41  ;;  %v13652_v29 = vld [vmem:[#allocation85_spill] sm:$0xff] }
 0x473   : > { %10360 = vmatpush3.msra.mxu1 %v13626_v38  ;;  %10391 = vmatprep.mubr.msk.f32.mxu1 %vm11223_vm0, %v13627_v48 }
 0x474   : > { %10361 = vmatprep.subr.mxu1 %v13627_v48  ;;  %v5394_v0 = vand.u32 4294901760, %v12996_v42 }
 0x475   : > { %10362 = vmatpush3.msra.mxu1 %v13628_v55 }
 0x476   : > { %10363 = vmatprep.subr.mxu1 %v13627_v48  ;;  %v5395_v50 = vsub.f32 %v12996_v42, %v5394_v0 }
 0x477   : > { %10364 = vmatpush3.msra.mxu1 %v13629_v33 }
 0x478   : > { %10365 = vmatprep.subr.mxu1 %v13627_v48  ;;  %v5396_v22 = vand.u32 4294901760, %v5395_v50  ;;  %v13653_v50 = vld [vmem:[#allocation79_spill] sm:$0xff] }
 0x479   : > { %10366 = vmatpush3.msra.mxu1 %v13630_v31 }
 0x47a   : > { %10367 = vmatprep.subr.mxu1 %v13627_v48  ;;  %10287 = vmatmul.mubr.f32.vlgmr.msra.gmra.mxu0 %v5396_v22  ;;  %v13654_v22 = vld [vmem:[#allocation89_spill] sm:$0xff] }
 0x47b   : > { %10325 = vmatpush3.msra.mxu0 %v13631_v14  ;;  %10368 = vmatpush3.msra.mxu1 %v13632_v25 }
 0x47c   : > { %10326 = vmatprep.subr.mxu0 %v13627_v48  ;;  %10369 = vmatprep.subr.mxu1 %v13627_v48 }
 0x47d   : > { %10327 = vmatpush3.msra.mxu0 %v13633_v39  ;;  %10370 = vmatpush3.msra.mxu1 %v13634_v44 }
 0x47e   : > { %10328 = vmatprep.subr.mxu0 %v13627_v48  ;;  %10371 = vmatprep.subr.mxu1 %v13627_v48 }
 0x47f   : > { %10329 = vmatpush3.msra.mxu0 %v13635_v59  ;;  %10372 = vmatpush3.msra.mxu1 %v13636_v34 }
 0x480   : > { %10330 = vmatprep.subr.mxu0 %v13627_v48  ;;  %10373 = vmatprep.subr.mxu1 %v13627_v48 }
 0x481   : > { %10331 = vmatpush3.msra.mxu0 %v13637_v62  ;;  %10374 = vmatpush3.msra.mxu1 %v13638_v21 }
 0x482   : > { %10332 = vmatprep.subr.mxu0 %v13627_v48  ;;  %10375 = vmatprep.subr.mxu1 %v13627_v48 }
 0x483   : > { %10333 = vmatpush3.msra.mxu0 %v13639_v27  ;;  %10376 = vmatpush3.msra.mxu1 %v13640_v26 }
 0x484   : > { %10334 = vmatprep.subr.mxu0 %v13627_v48  ;;  %10377 = vmatprep.subr.mxu1 %v13627_v48 }
 0x485   : > { %10335 = vmatpush3.msra.mxu0 %v13641_v20  ;;  %10378 = vmatpush3.msra.mxu1 %v13642_v18 }
 0x486   : > { %10336 = vmatprep.subr.mxu0 %v13627_v48  ;;  %10379 = vmatprep.subr.mxu1 %v13627_v48 }
 0x487   : > { %10337 = vmatpush3.msra.mxu0 %v13643_v15  ;;  %10380 = vmatpush3.msra.mxu1 %v13644_v46 }
 0x488   : > { %10338 = vmatprep.subr.mxu0 %v13627_v48  ;;  %10381 = vmatprep.subr.mxu1 %v13627_v48 }
 0x489   : > { %10339 = vmatpush3.msra.mxu0 %v13645_v3  ;;  %10382 = vmatpush3.msra.mxu1 %v13646_v10 }
 0x48a   : > { %10340 = vmatprep.subr.mxu0 %v13627_v48  ;;  %10383 = vmatprep.subr.mxu1 %v13627_v48 }
 0x48b   : > { %10341 = vmatpush3.msra.mxu0 %v13647_v51  ;;  %10384 = vmatpush3.msra.mxu1 %v13648_v2 }
 0x48c   : > { %10342 = vmatprep.subr.mxu0 %v13627_v48  ;;  %10385 = vmatprep.subr.mxu1 %v13627_v48 }
 0x48d   : > { %10343 = vmatpush3.msra.mxu0 %v13649_v37  ;;  %10386 = vmatpush3.msra.mxu1 %v13650_v60 }
 0x48e   : > { %10344 = vmatprep.subr.mxu0 %v13627_v48  ;;  %10387 = vmatprep.subr.mxu1 %v13627_v48 }
 0x48f   : > { %10345 = vmatpush3.msra.mxu0 %v13651_v11  ;;  %10388 = vmatpush3.msra.mxu1 %v13652_v29 }
 0x490   : > { %10346 = vmatprep.subr.mxu0 %v13627_v48  ;;  %10389 = vmatprep.subr.mxu1 %v13627_v48 }
 0x491   : > { %10347 = vmatpush3.msra.mxu0 %v13653_v50  ;;  %10390 = vmatpush3.msra.mxu1 %v13654_v22 }
 0x492   : > { %10348 = vmatprep.subr.mxu0 %v13627_v48  ;;  %10392 = vmatmul.mubr.f32.vlgmr.msra.gmra.mxu1 %v5394_v0  ;;  %v13659_v0 = vand.u32 4294901760, %v13631_v14  ;;  %v13664_v14 = vand.u32 4294901760, %v13641_v20 }
 0x493   : > { %10429 = vmatprep.subr.mxu1 %v13627_v48  ;;  %10349 = vmatpush3.msra.mxu0 %v13655_v16 }
 0x494   : > { %10430 = vmatpush3.msra.mxu1 %v13626_v38  ;;  %10350 = vmatprep.subr.mxu0 %v13627_v48  ;;  %v13658_v38 = vld [vmem:[#allocation90_spill] sm:$0xff] }
 0x495   : > { %10431 = vmatprep.subr.mxu1 %v13627_v48  ;;  %10351 = vmatpush3.msra.mxu0 %v13656_v43 }
 0x496   : > { %10432 = vmatpush3.msra.mxu1 %v13628_v55  ;;  %10352 = vmatprep.subr.mxu0 %v13627_v48  ;;  %v13660_v55 = vand.u32 4294901760, %v13633_v39  ;;  %v13666_v39 = vand.u32 4294901760, %v13645_v3 }
 0x497   : > { %10433 = vmatprep.subr.mxu1 %v13627_v48  ;;  %10353 = vmatpush3.msra.mxu0 %v13657_v8 }
 0x498   : > { %10434 = vmatpush3.msra.mxu1 %v13629_v33  ;;  %10354 = vmatprep.subr.mxu0 %v13627_v48  ;;  %v13662_v33 = vand.u32 4294901760, %v13637_v62  ;;  %v13670_v62 = vand.u32 4294901760, %v13653_v50  ;;  %v5310_v50 = vld [vmem:[#allocation14] sm:$0x1] }
 0x499   : > { %10435 = vmatprep.subr.mxu1 %v13627_v48  ;;  %10355 = vmatpush3.msra.mxu0 %v13658_v38 }
 0x49a   : > { %10356 = vmatprep.mubr.msk.f32.mxu0 %vm11223_vm0, %v13627_v48  ;;  %10436 = vmatpush3.msra.mxu1 %v13630_v31  ;;  %v13663_v31 = vand.u32 4294901760, %v13639_v27  ;;  %v13672_v27 = vand.u32 4294901760, %v13656_v43  ;;  %v5952_v43 = vld [vmem:[#allocation16] sm:$0xf] }
 0x49b   : > { %10357 = vmatmul.mubr.f32.vlgmr.msra.gmra.mxu0 %v12996_v42  ;;  %10394 = vmatprep.subr.mxu0 %v13627_v48  ;;  %v13661_v42 = vand.u32 4294901760, %v13635_v59  ;;  %v13668_v59 = vand.u32 4294901760, %v13649_v37  ;;  %v5960_v20 = vsel %vm5958_vm1, %v5952_v43, 0 }
 0x49c   : > { %10437 = vmatprep.subr.mxu1 %v13627_v48  ;;  %10395 = vmatpush3.msra.mxu0 %v13659_v0 }
 0x49d   : > { %10438 = vmatpush3.msra.mxu1 %v13632_v25  ;;  %10396 = vmatprep.subr.mxu0 %v13627_v48  ;;  %v13665_v25 = vand.u32 4294901760, %v13643_v15 }
 0x49e   : > { %10439 = vmatprep.subr.mxu1 %v13627_v48  ;;  %10397 = vmatpush3.msra.mxu0 %v13660_v55 }
 0x49f   : > { %10440 = vmatpush3.msra.mxu1 %v13634_v44  ;;  %10398 = vmatprep.subr.mxu0 %v13627_v48  ;;  %v13667_v44 = vand.u32 4294901760, %v13647_v51 }
 0x4a0   : > { %10441 = vmatprep.subr.mxu1 %v13627_v48  ;;  %10399 = vmatpush3.msra.mxu0 %v13661_v42 }
 0x4a1   : > { %10442 = vmatpush3.msra.mxu1 %v13636_v34  ;;  %10400 = vmatprep.subr.mxu0 %v13627_v48  ;;  %v13669_v34 = vand.u32 4294901760, %v13651_v11 }
 0x4a2   : > { %10443 = vmatprep.subr.mxu1 %v13627_v48  ;;  %10401 = vmatpush3.msra.mxu0 %v13662_v33 }
 0x4a3   : > { %10444 = vmatpush3.msra.mxu1 %v13638_v21  ;;  %10402 = vmatprep.subr.mxu0 %v13627_v48  ;;  %v13671_v21 = vand.u32 4294901760, %v13655_v16  ;;  %v13674_v16 = vand.u32 4294901760, %v13658_v38 }
 0x4a4   : > { %10445 = vmatprep.subr.mxu1 %v13627_v48  ;;  %10403 = vmatpush3.msra.mxu0 %v13663_v31 }
 0x4a5   : > { %10446 = vmatpush3.msra.mxu1 %v13640_v26  ;;  %10404 = vmatprep.subr.mxu0 %v13627_v48  ;;  %v13673_v26 = vand.u32 4294901760, %v13657_v8 }
 0x4a6   : > { %10447 = vmatprep.subr.mxu1 %v13627_v48  ;;  %10405 = vmatpush3.msra.mxu0 %v13664_v14 }
 0x4a7   : > { %10448 = vmatpush3.msra.mxu1 %v13642_v18  ;;  %10406 = vmatprep.subr.mxu0 %v13627_v48  ;;  %v5993_v18 = vand.u32 4294901760, %v5960_v20 }
 0x4a8   : > { %10449 = vmatprep.subr.mxu1 %v13627_v48  ;;  %10407 = vmatpush3.msra.mxu0 %v13665_v25 }
 0x4a9   : > { %10450 = vmatpush3.msra.mxu1 %v13644_v46  ;;  %10408 = vmatprep.subr.mxu0 %v13627_v48  ;;  %v6070_v15 = vsub.f32 %v5960_v20, %v5993_v18 }
 0x4aa   : > { %10451 = vmatprep.subr.mxu1 %v13627_v48  ;;  %10409 = vmatpush3.msra.mxu0 %v13666_v39 }
 0x4ab   : > { %10452 = vmatpush3.msra.mxu1 %v13646_v10  ;;  %10410 = vmatprep.subr.mxu0 %v13627_v48  ;;  %v6071_v8 = vand.u32 4294901760, %v6070_v15 }
 0x4ac   : > { %10453 = vmatprep.subr.mxu1 %v13627_v48  ;;  %10411 = vmatpush3.msra.mxu0 %v13667_v44 }
 0x4ad   : > { %10454 = vmatpush3.msra.mxu1 %v13648_v2  ;;  %10412 = vmatprep.subr.mxu0 %v13627_v48  ;;  %v6072_v46 = vsub.f32 %v6070_v15, %v6071_v8 }
 0x4ae   : > { %10455 = vmatprep.subr.mxu1 %v13627_v48  ;;  %10413 = vmatpush3.msra.mxu0 %v13668_v59 }
 0x4af   : > { %10456 = vmatpush3.msra.mxu1 %v13650_v60  ;;  %10414 = vmatprep.subr.mxu0 %v13627_v48  ;;  %v6073_v3 = vand.u32 4294901760, %v6072_v46 }
 0x4b0   : > { %10457 = vmatprep.subr.mxu1 %v13627_v48  ;;  %10415 = vmatpush3.msra.mxu0 %v13669_v34 }
 0x4b1   : > { %10458 = vmatpush3.msra.mxu1 %v13652_v29  ;;  %10416 = vmatprep.subr.mxu0 %v13627_v48 }
 0x4b2   : > { %10459 = vmatprep.subr.mxu1 %v13627_v48  ;;  %10417 = vmatpush3.msra.mxu0 %v13670_v62 }
 0x4b3   : > { %10460 = vmatpush3.msra.mxu1 %v13654_v22  ;;  %10461 = vmatprep.mubr.msk.f32.mxu1 %vm11223_vm0, %v13627_v48 }
 0x4b4   : > { %10418 = vmatprep.subr.mxu0 %v13627_v48  ;;  %10462 = vmatmul.mubr.f32.vlgmr.msra.gmra.mxu1 %v12992_v41 }
 0x4b5   : > { %10419 = vmatpush3.msra.mxu0 %v13671_v21  ;;  %10426 = vmatprep.mubr.msk.f32.mxu0 %vm11223_vm0, %v13627_v48 }
 0x4b6   : > { %10420 = vmatprep.subr.mxu0 %v13627_v48  ;;  %10469 = vmatprep.subr.mxu1 %v13627_v48 }
 0x4b7   : > { %10421 = vmatpush3.msra.mxu0 %v13672_v27  ;;  %10471 = vmatprep.mubr.msk.f32.mxu1 %vm11223_vm0, %v13627_v48 }
 0x4b8   : > { %10422 = vmatprep.subr.mxu0 %v13627_v48  ;;  %10470 = vmatpush3.msra.mxu1 %v6073_v3 }
 0x4b9   : > { %10423 = vmatpush3.msra.mxu0 %v13673_v26  ;;  %10479 = vmatprep.subr.mxu1 %v13627_v48 }
 0x4ba   : > { %10424 = vmatprep.subr.mxu0 %v13627_v48 }
 0x4bb   : > { %10425 = vmatpush3.msra.mxu0 %v13674_v16 }
 0x4bc   : > { %10427 = vmatmul.mubr.f32.vlgmr.msra.gmra.mxu0 %v12992_v41  ;;  %10464 = vmatprep.subr.mxu0 %v13627_v48 }
 0x4bd   : > { %10466 = vmatprep.mubr.msk.f32.mxu0 %vm11223_vm0, %v13627_v48  ;;  %10465 = vmatpush3.msra.mxu0 %v5993_v18 }
 0x4be   : > { %10474 = vmatprep.subr.mxu0 %v13627_v48 }
 0x532   : > { %v5549_v41 = vpop.f32.mrf.mxu1 }
 0x534   : > { %v10323_v10 = vpop.f32.mrf.mxu1 }
 0x53a   : > { %v5398_v51 = vpop.f32.mrf.mxu0 }
 0x53b   : > { %v5399_v22 = vadd.f32 %v5398_v51, %v5310_v50 }
 0x53c   : > { %v10288_v2 = vpop.f32.mrf.mxu0 }
 0x53d   : > { %v5550_v0 = vadd.f32 %v5549_v41, %v5399_v22 }
 0x552   : > { %v5742_v37 = vpop.f32.mrf.mxu1 }
 0x554   : > { %v10393_v60 = vpop.f32.mrf.mxu1 }
 0x55b   : > { %v5653_v11 = vpop.f32.mrf.mxu0 }
 0x55c   : > { %v5654_v42 = vadd.f32 %v5653_v11, %v5550_v0 }
 0x55d   : > { %v10358_v29 = vpop.f32.mrf.mxu0 }
 0x55e   : > { %v5743_v33 = vadd.f32 %v5742_v37, %v5654_v42 }
 0x574   : > { %v5948_v38 = vpop.f32.mrf.mxu1 }
 0x576   : > { %v10463_v55 = vpop.f32.mrf.mxu1 }
 0x57c   : > { %v5861_v31 = vpop.f32.mrf.mxu0 }
 0x57d   : > { %v5862_v14 = vadd.f32 %v5861_v31, %v5743_v33 }
 0x57e   : > { %v10428_v25 = vpop.f32.mrf.mxu0 }
 0x57f   : > { %v5949_v39 = vadd.f32 %v5948_v38, %v5862_v14  ;;  %v6421_v14 = vld [vmem:[#allocation19 + $0x8] sm:$0xff] }
 0x580   : > { %v6455_v25 = vand.u32 4294901760, %v6421_v14 }
 0x581   : > { %v5956_v44 = vsel %vm5954_vm2, %v5949_v39, 0  ;;  %v6420_v39 = vld [vmem:[#allocation19] sm:$0xff] }
 0x582   : > { %v6028_v59 = vand.u32 4294901760, %v5956_v44 }
 0x584   : > { %v6029_v34 = vsub.f32 %v5956_v44, %v6028_v59  ;;  %10472 = vmatmul.mubr.f32.vlgmr.msra.gmra.mxu1 %v6028_v59  ;;  %v13177_v44 = vsub.f32 %v6421_v14, %v6455_v25 }
 0x585   : > { %10480 = vmatpush3.msra.mxu1 %v5993_v18  ;;  %10481 = vmatprep.mubr.msk.f32.mxu1 %vm11223_vm0, %v13627_v48 }
 0x586   : > { %v6030_v62 = vand.u32 4294901760, %v6029_v34  ;;  %10489 = vmatprep.subr.mxu1 %v13627_v48 }
 0x588   : > { %v6031_v21 = vsub.f32 %v6029_v34, %v6030_v62  ;;  %10482 = vmatmul.mubr.f32.vlgmr.msra.gmra.mxu1 %v6030_v62 }
 0x589   : > { %10490 = vmatpush3.msra.mxu1 %v5993_v18  ;;  %10491 = vmatprep.mubr.msk.f32.mxu1 %vm11223_vm0, %v13627_v48  ;;  %v5953_v18 = vld [vmem:[#allocation17] sm:$0x1] }
 0x58a   : > { %v6032_v27 = vand.u32 4294901760, %v6031_v21  ;;  %10501 = vmatprep.subr.mxu1 %v13627_v48 }
 0x58c   : > { %10467 = vmatmul.mubr.f32.vlgmr.msra.gmra.mxu0 %v6032_v27  ;;  %10492 = vmatmul.mubr.f32.vlgmr.msra.gmra.mxu1 %v6028_v59 }
 0x58d   : > { %10475 = vmatpush3.msra.mxu0 %v6070_v15  ;;  %10476 = vmatprep.mubr.msk.f32.mxu0 %vm11223_vm0, %v13627_v48 }
 0x58e   : > { %10484 = vmatprep.subr.mxu0 %v13627_v48  ;;  %10505 = vmatprep.mubr.msk.f32.mxu1 %vm11223_vm0, %v13627_v48 }
 0x590   : > { %10477 = vmatmul.mubr.f32.vlgmr.msra.gmra.mxu0 %v6029_v34  ;;  %v6534_v34 = vand.u32 4294901760, %v13177_v44 }
 0x591   : > { %10485 = vmatpush3.msra.mxu0 %v6071_v8  ;;  %10486 = vmatprep.mubr.msk.f32.mxu0 %vm11223_vm0, %v13627_v48 }
 0x592   : > { %10494 = vmatprep.subr.mxu0 %v13627_v48  ;;  %v6535_v21 = vsub.f32 %v13177_v44, %v6534_v34 }
 0x594   : > { %10487 = vmatmul.mubr.f32.vlgmr.msra.gmra.mxu0 %v6028_v59  ;;  %v6458_v59 = vand.u32 4294901760, %v6420_v39 }
 0x595   : > { %10498 = vmatprep.mubr.msk.f32.mxu0 %vm11223_vm0, %v13627_v48  ;;  %10495 = vmatpush3.msra.mxu0 %v6455_v25 }
 0x596   : > { %10496 = vmatprep.subr.mxu0 %v13627_v48  ;;  %v13181_v62 = vsub.f32 %v6420_v39, %v6458_v59 }
 0x597   : > { %10497 = vmatpush3.msra.mxu0 %v6458_v59 }
 0x598   : > { %10508 = vmatprep.subr.mxu0 %v13627_v48  ;;  %v6541_v27 = vand.u32 4294901760, %v13181_v62 }
 0x644   : > { %v6110_v26 = vpop.f32.mrf.mxu1 }
 0x646   : > { %v10473_v16 = vpop.f32.mrf.mxu1 }
 0x647   : > { %v6542_v16 = vsub.f32 %v13181_v62, %v6541_v27 }
 0x648   : > { %v6258_v43 = vpop.f32.mrf.mxu1 }
 0x64a   : > { %v10483_v20 = vpop.f32.mrf.mxu1 }
 0x64c   : > { %v6034_v15 = vpop.f32.mrf.mxu0  ;;  %v6404_v46 = vpop.f32.mrf.mxu1 }
 0x64d   : > { %v6035_v3 = vadd.f32 %v6034_v15, %v5953_v18  ;;  %v6906_v18 = vld [vmem:[#allocation20 + $0x8] sm:$0xff] }
 0x64e   : > { %v10468_v41 = vpop.f32.mrf.mxu0  ;;  %v10493_v10 = vpop.f32.mrf.mxu1  ;;  %v6936_v15 = vand.u32 4294901760, %v6906_v18 }
 0x64f   : > { %v6111_v8 = vadd.f32 %v6110_v26, %v6035_v3  ;;  %v6536_v26 = vand.u32 4294901760, %v6535_v21 }
 0x650   : > { %v6184_v51 = vpop.f32.mrf.mxu0  ;;  %v13189_v10 = vsub.f32 %v6906_v18, %v6936_v15 }
 0x651   : > { %v6185_v2 = vadd.f32 %v6184_v51, %v6111_v8  ;;  %10502 = vmatpush3.msra.mxu1 %v6536_v26 }
 0x652   : > { %v10478_v37 = vpop.f32.mrf.mxu0  ;;  %10503 = vmatprep.subr.mxu1 %v13627_v48 }
 0x653   : > { %v6259_v60 = vadd.f32 %v6258_v43, %v6185_v2  ;;  %v6543_v43 = vand.u32 4294901760, %v6542_v16 }
 0x654   : > { %v6332_v11 = vpop.f32.mrf.mxu0 }
 0x655   : > { %v6333_v29 = vadd.f32 %v6332_v11, %v6259_v60  ;;  %10504 = vmatpush3.msra.mxu1 %v6543_v43  ;;  %v7015_v60 = vand.u32 4294901760, %v13189_v10 }
 0x656   : > { %v10488_v50 = vpop.f32.mrf.mxu0  ;;  %10515 = vmatprep.subr.mxu1 %v13627_v48 }
 0x657   : > { %v6405_v22 = vadd.f32 %v6404_v46, %v6333_v29  ;;  %v6905_v46 = vld [vmem:[#allocation20] sm:$0xff] }
 0x658   : > { %v6939_v3 = vand.u32 4294901760, %v6905_v46 }
 0x659   : > { %v6409_v38 = vsel %vm6408_vm3, %v6405_v22, -inf }
 0x65a   : > { %6410 = vmax.xlane.f32.xlu0 %v6409_v38  ;;  %v13191_v2 = vsub.f32 %v6905_v46, %v6939_v3 }
 0x65c   : > { %v7022_v29 = vand.u32 4294901760, %v13191_v2 }
 0x6e3   : > { %v6411_v0 = vpop.xlane.xlu0 %6410 }
 0x6e4   : > { %v6412_v55 = vsub.f32 %v6405_v22, %v6411_v0  ;;  %v7016_v22 = vsub.f32 %v13189_v10, %v7015_v60  ;;  %v7023_v0 = vsub.f32 %v13191_v2, %v7022_v29 }
 0x6e6   : > { %v6413_v42 = vmul.f32 1.442695, %v6412_v55 }
 0x6e8   : > { %10744 = vpow2.f32 %v6413_v42  ;;  %v7017_v42 = vand.u32 4294901760, %v7016_v22 }
 0x6f5   : > { %v10745_v33 = vpop.eup %10744 }
 0x6f6   : > { %v6415_v31 = vsel %vm6408_vm3, %v10745_v33, 0.0 }
 0x6f7   : > { %6416 = vadd.xlane.f32.xlu0 %v6415_v31 }
 0x780   : > { %v6417_v20 = vpop.xlane.xlu0 %6416 }
 0x781   : > { %10746 = vrcp.f32 %v6417_v20 }
 0x78e   : > { %v10747_v41 = vpop.eup %10746 }
 0x78f   : > { %v6419_v8 = vmul.f32 %v10747_v41, %v10745_v33  ;;  %v7024_v33 = vand.u32 4294901760, %v7023_v0 }
 0x791   : > { %v6424_v51 = vsel %vm6422_vm4, %v6419_v8, 0 }
 0x792   : > { %v13193_v37 = vand.u32 4294901760, %v6424_v51 }
 0x794   : > { %v6494_v11 = vsub.f32 %v6424_v51, %v13193_v37  ;;  %10506 = vmatmul.mubr.f32.vlgmr.msra.gmra.mxu1 %v13193_v37 }
 0x795   : > { %10516 = vmatpush3.msra.mxu1 %v6455_v25  ;;  %10519 = vmatprep.mubr.msk.f32.mxu1 %vm11223_vm0, %v13627_v48 }
 0x796   : > { %10517 = vmatprep.subr.mxu1 %v13627_v48  ;;  %v6495_v50 = vand.u32 4294901760, %v6494_v11 }
 0x797   : > { %10518 = vmatpush3.msra.mxu1 %v6458_v59 }
 0x798   : > { %10520 = vmatmul.mubr.f32.vlgmr.msra.gmra.mxu1 %v6495_v50  ;;  %10529 = vmatprep.subr.mxu1 %v13627_v48  ;;  %v6496_v38 = vsub.f32 %v6494_v11, %v6495_v50 }
 0x799   : > { %10530 = vmatpush3.msra.mxu1 %v6455_v25  ;;  %10533 = vmatprep.mubr.msk.f32.mxu1 %vm11223_vm0, %v13627_v48 }
 0x79a   : > { %10531 = vmatprep.subr.mxu1 %v13627_v48  ;;  %v6497_v55 = vand.u32 4294901760, %v6496_v38 }
 0x79b   : > { %10532 = vmatpush3.msra.mxu1 %v6458_v59 }
 0x79c   : > { %10499 = vmatmul.mubr.f32.vlgmr.msra.gmra.mxu0 %v6497_v55  ;;  %10534 = vmatmul.mubr.f32.vlgmr.msra.gmra.mxu1 %v13193_v37 }
 0x79d   : > { %10509 = vmatpush3.msra.mxu0 %v13177_v44  ;;  %10543 = vmatprep.subr.mxu1 %v13627_v48 }
 0x79e   : > { %10510 = vmatprep.subr.mxu0 %v13627_v48  ;;  %10544 = vmatpush3.msra.mxu1 %v7017_v42 }
 0x79f   : > { %10511 = vmatpush3.msra.mxu0 %v13181_v62  ;;  %10545 = vmatprep.subr.mxu1 %v13627_v48 }
 0x7a0   : > { %10512 = vmatprep.mubr.msk.f32.mxu0 %vm11223_vm0, %v13627_v48  ;;  %10522 = vmatprep.subr.mxu0 %v13627_v48 }
 0x7a1   : > { %10546 = vmatpush3.msra.mxu1 %v7024_v33  ;;  %10547 = vmatprep.mubr.msk.f32.mxu1 %vm11223_vm0, %v13627_v48 }
 0x7a2   : > { %10513 = vmatmul.mubr.f32.vlgmr.msra.gmra.mxu0 %v6494_v11  ;;  %10548 = vmatmul.mubr.f32.vlgmr.msra.gmra.mxu1 %v13193_v37 }
 0x7a3   : > { %10523 = vmatpush3.msra.mxu0 %v6534_v34  ;;  %10557 = vmatprep.subr.mxu1 %v13627_v48 }
 0x7a4   : > { %10524 = vmatprep.subr.mxu0 %v13627_v48  ;;  %10558 = vmatpush3.msra.mxu1 %v6936_v15 }
 0x7a5   : > { %10525 = vmatpush3.msra.mxu0 %v6541_v27  ;;  %10559 = vmatprep.subr.mxu1 %v13627_v48 }
 0x7a6   : > { %10526 = vmatprep.mubr.msk.f32.mxu0 %vm11223_vm0, %v13627_v48  ;;  %10536 = vmatprep.subr.mxu0 %v13627_v48 }
 0x7a7   : > { %10560 = vmatpush3.msra.mxu1 %v6939_v3  ;;  %10561 = vmatprep.mubr.msk.f32.mxu1 %vm11223_vm0, %v13627_v48 }
 0x7a8   : > { %10527 = vmatmul.mubr.f32.vlgmr.msra.gmra.mxu0 %v13193_v37  ;;  %10562 = vmatmul.mubr.f32.vlgmr.msra.gmra.mxu1 %v6495_v50 }
 0x7a9   : > { %10537 = vmatpush3.msra.mxu0 %v6936_v15  ;;  %10571 = vmatprep.subr.mxu1 %v13627_v48 }
 0x7aa   : > { %10538 = vmatprep.subr.mxu0 %v13627_v48  ;;  %10572 = vmatpush3.msra.mxu1 %v6936_v15 }
 0x7ab   : > { %10539 = vmatpush3.msra.mxu0 %v6939_v3  ;;  %10573 = vmatprep.subr.mxu1 %v13627_v48 }
 0x7ac   : > { %10540 = vmatprep.mubr.msk.f32.mxu0 %vm11223_vm0, %v13627_v48  ;;  %10550 = vmatprep.subr.mxu0 %v13627_v48 }
 0x7ad   : > { %10574 = vmatpush3.msra.mxu1 %v6939_v3  ;;  %10575 = vmatprep.mubr.msk.f32.mxu1 %vm11223_vm0, %v13627_v48 }
 0x7ae   : > { %10541 = vmatmul.mubr.f32.vlgmr.msra.gmra.mxu0 %v6497_v55  ;;  %10576 = vmatmul.mubr.f32.vlgmr.msra.gmra.mxu1 %v13193_v37 }
 0x7af   : > { %10551 = vmatpush3.msra.mxu0 %v13189_v10  ;;  %10554 = vmatprep.mubr.msk.f32.mxu0 %vm11223_vm0, %v13627_v48 }
 0x7b0   : > { %10552 = vmatprep.subr.mxu0 %v13627_v48 }
 0x7b1   : > { %10553 = vmatpush3.msra.mxu0 %v13191_v2 }
 0x7b2   : > { %10564 = vmatprep.subr.mxu0 %v13627_v48  ;;  %10555 = vmatmul.mubr.f32.vlgmr.msra.gmra.mxu0 %v6494_v11 }
 0x7b3   : > { %10565 = vmatpush3.msra.mxu0 %v7015_v60  ;;  %10568 = vmatprep.mubr.msk.f32.mxu0 %vm11223_vm0, %v13627_v48 }
 0x7b4   : > { %10566 = vmatprep.subr.mxu0 %v13627_v48  ;;  %v6885_v48 = vlaneseq }
 0x7b5   : > { %10567 = vmatpush3.msra.mxu0 %v7022_v29 }
 0x7b6   : > { %10569 = vmatmul.mubr.f32.vlgmr.msra.gmra.mxu0 %v13193_v37  ;;  %v6886_v8 = vshrl.u32 %v6885_v48, 7 }
 0x7b8   : > { %v6887_v60 = vsub.s32 0, %v6886_v8 }
 0x854   : > { %v6580_v31 = vpop.f32.mrf.mxu1 }
 0x856   : > { %v10507_v14 = vpop.f32.mrf.mxu1 }
 0x858   : > { %v6731_v25 = vpop.f32.mrf.mxu1 }
 0x85a   : > { %v10521_v39 = vpop.f32.mrf.mxu1 }
 0x85c   : > { %v6499_v44 = vpop.f32.mrf.mxu0  ;;  %v6881_v59 = vpop.f32.mrf.mxu1 }
 0x85d   : > { %v6581_v21 = vadd.f32 %v6580_v31, %v6499_v44 }
 0x85e   : > { %v10500_v34 = vpop.f32.mrf.mxu0  ;;  %v10535_v62 = vpop.f32.mrf.mxu1 }
 0x85f   : > { %v10799_v62 = vld [vmem:[%s11514_s20 + $0x52] sm:$0xff] }
 0x862   : > { %v6656_v27 = vpop.f32.mrf.mxu0  ;;  %v7061_v26 = vpop.f32.mrf.mxu1 }
 0x863   : > { %v6657_v16 = vadd.f32 %v6656_v27, %v6581_v21  ;;  %v10800_v21 = vld [vmem:[%s11514_s20 + $0x62] sm:$0xff] }
 0x864   : > { %v10514_v43 = vpop.f32.mrf.mxu0  ;;  %v10549_v20 = vpop.f32.mrf.mxu1 }
 0x865   : > { %v6732_v18 = vadd.f32 %v6731_v25, %v6657_v16 }
 0x868   : > { %v6808_v15 = vpop.f32.mrf.mxu0  ;;  %v7212_v46 = vpop.f32.mrf.mxu1 }
 0x869   : > { %v6809_v10 = vadd.f32 %v6808_v15, %v6732_v18 }
 0x86a   : > { %v10528_v3 = vpop.f32.mrf.mxu0  ;;  %v10563_v41 = vpop.f32.mrf.mxu1 }
 0x86b   : > { %v6882_v37 = vadd.f32 %v6881_v59, %v6809_v10  ;;  %v13676_v41 = vmax.f32 %v12974_v28, 0.0 }
 0x86d   : > { %v6888_v38 = vrot.slane %v6882_v37, %v6887_v60 }
 0x86e   : > { %v6980_v51 = vpop.f32.mrf.mxu0  ;;  %v7362_v2 = vpop.f32.mrf.mxu1 }
 0x86f   : > { %v7062_v22 = vadd.f32 %v7061_v26, %v6980_v51  ;;  %v6889_v31 = vmul.f32 %v6888_v38, %v1863_v19  ;;  %v6890_v25 = vmul.f32 %v6888_v38, %v1864_v32  ;;  %v6891_v39 = vmul.f32 %v6888_v38, %v1865_v17  ;;  %v10797_v17 = vld [vmem:[%s11514_s20 + $0x32] sm:$0xff] }
 0x870   : > { %v10542_v11 = vpop.f32.mrf.mxu0  ;;  %v10577_v29 = vpop.f32.mrf.mxu1  ;;  %v6892_v44 = vmul.f32 %v6888_v38, %v1866_v54  ;;  %v6893_v34 = vmul.f32 %v6888_v38, %v1867_v9  ;;  %v6894_v1 = vmul.f32 %v6888_v38, %v1868_v12  ;;  %v6895_v30 = vmul.f32 %v6888_v38, %v1869_v53  ;;  %v10798_v54 = vld [vmem:[%s11514_s20 + $0x42] sm:$0xff]  ;;  %v10801_v53 = vld [vmem:[%s11514_s20 + $0x72] sm:$0xff] }
 0x871   : > { %v6896_v32 = vmul.f32 %v6888_v38, %v1870_v13  ;;  %v6897_v52 = vadd.f32 %v10796_v5, %v6889_v31  ;;  %v6898_v61 = vadd.f32 %v10797_v17, %v6890_v25  ;;  %v6899_v9 = vadd.f32 %v10798_v54, %v6891_v39  ;;  %v10803_v26 = vld [vmem:[%s11514_s20 + $0x92] sm:$0xff]  ;;  %s7791_s20 = sshll.u32 %s11318_s14, 10  ;;  %s7403_s14 = scalar_lea.sflag [#allocation4], %s11510_s5 }
 0x872   : > { %v7137_v50 = vpop.f32.mrf.mxu0  ;;  %v6900_v24 = vadd.f32 %v10799_v62, %v6892_v44  ;;  %v6901_v4 = vadd.f32 %v10800_v21, %v6893_v34  ;;  %v6902_v27 = vadd.f32 %v10801_v53, %v6894_v1  ;;  %v6903_v13 = vadd.f32 %v10802_v49, %v6895_v30  ;;  %s13297_s18 = scalar_lea.hbm %s13678_s30, %s7791_s20 }
 0x873   : > { %v7138_v55 = vadd.f32 %v7137_v50, %v7062_v22  ;;  %v6904_v16 = vadd.f32 %v10803_v26, %v6896_v32 }
 0x874   : > { %v10556_v0 = vpop.f32.mrf.mxu0 }
 0x875   : > { %v7213_v33 = vadd.f32 %v7212_v46, %v7138_v55  ;;  %v13675_v46 = vmax.f32 %v12934_v40, 0.0 }
 0x876   : > { %v7289_v42 = vpop.f32.mrf.mxu0 }
 0x877   : > { %v7290_v59 = vadd.f32 %v7289_v42, %v7213_v33 }
 0x878   : > { %v10570_v14 = vpop.f32.mrf.mxu0 }
 0x879   : > { %v7363_v19 = vadd.f32 %v7362_v2, %v7290_v59 }
 0x87b   : > { %v7369_v12 = vrot.slane %v7363_v19, %v6887_v60 }
 0x87d   : > { %v7370_v43 = vmul.f32 %v7369_v12, %v5263_v58  ;;  %v7371_v20 = vmul.f32 %v7369_v12, %v5264_v35  ;;  %v7372_v18 = vmul.f32 %v7369_v12, %v5265_v57  ;;  %v7373_v15 = vmul.f32 %v7369_v12, %v5266_v56 }
 0x87e   : > { %v7374_v48 = vmul.f32 %v7369_v12, %v5267_v47  ;;  %v7375_v3 = vmul.f32 %v7369_v12, %v13675_v46  ;;  %v7376_v10 = vmul.f32 %v7369_v12, %v13676_v41  ;;  %v7377_v58 = vmul.f32 %v7369_v12, %v13677_v6 }
 0x87f   : > { %v7378_v7 = vadd.f32 %v7370_v43, %v6897_v52  ;;  %v7379_v35 = vadd.f32 %v7371_v20, %v6898_v61  ;;  %v7380_v23 = vadd.f32 %v7372_v18, %v6899_v9  ;;  %v7381_v63 = vadd.f32 %v7373_v15, %v6900_v24 }
 0x880   : > { %v7382_v56 = vadd.f32 %v7374_v48, %v6901_v4  ;;  %v7383_v57 = vadd.f32 %v7375_v3, %v6902_v27  ;;  %v7384_v45 = vadd.f32 %v7376_v10, %v6903_v13  ;;  %v7385_v47 = vadd.f32 %v7377_v58, %v6904_v16 }
 0x881   : > { %v7386_v8 = vmax.f32 %v7378_v7, 0.0  ;;  %v7387_v40 = vmax.f32 %v7379_v35, 0.0  ;;  %v7388_v51 = vmax.f32 %v7380_v23, 0.0  ;;  %v7389_v28 = vmax.f32 %v7381_v63, 0.0 }
 0x882   : > { %v7390_v36 = vmax.f32 %v7382_v56, 0.0  ;;  %v7391_v2 = vmax.f32 %v7383_v57, 0.0  ;;  %v7392_v37 = vmax.f32 %v7384_v45, 0.0  ;;  %v7393_v60 = vmax.f32 %v7385_v47, 0.0 }
 0x883   : > { %7394 = vst [vmem:[%s604_s13] sm:$0xff] %v7386_v8  ;;  %7395 = vst [vmem:[%s604_s13 + $0x8] sm:$0xff] %v7387_v40 }
 0x884   : > { %7396 = vst [vmem:[%s604_s13 + $0x10] sm:$0xff] %v7388_v51  ;;  %7397 = vst [vmem:[%s604_s13 + $0x18] sm:$0xff] %v7389_v28 }
 0x885   : > { %7398 = vst [vmem:[%s604_s13 + $0x20] sm:$0xff] %v7390_v36  ;;  %7399 = vst [vmem:[%s604_s13 + $0x28] sm:$0xff] %v7391_v2 }
 0x886   : > { %7400 = vst [vmem:[%s604_s13 + $0x30] sm:$0xff] %v7392_v37  ;;  %7401 = vst [vmem:[%s604_s13 + $0x38] sm:$0xff] %v7393_v60 }
 0x887   : > { %11131 = shalt.err (!%p11128_p3)
}
 0x888   : > { %s11132_s3 = scalar_lea.hbm %s13297_s18, 1024  ;;  %s11136_s29 = scalar_lea.hbm %s13678_s30, 2048 }
 0x889   : > { %p11133_p0 = scmp.ne.s32.totalorder %s13297_s18, %s11132_s3  ;;  %p11137_p4 = scmp.lt.s32.totalorder %s13297_s18, %s13678_s30 }
 0x88a   : > { %p11138_p9 = scmp.lt.s32.totalorder %s11136_s29, %s11132_s3 }
 0x88b   : > { %p11134_p13 = pnand %p11133_p0, %p13679_p2 }
 0x88c   : > { %p11139_p10 = por %p11138_p9, %p11137_p4 }
 0x88d   : > { %p11135_p5 = pneg %p11134_p13 }
 0x88f   : > { %p11140_p7 = pnand %p11139_p10, %p11135_p5 }
 0x891   : > { %11143 = shalt.err (!%p11140_p7)
}
 0x892   : > { %s11225_s22 = smov 128   ;;  %s11226_s16 = smov 8  }
 0x893   : > { %10627 = dma.vmem_to_hbm [thread:$0]  (%p13679_p2), %s13299_s19, 1024, %s13297_s18, %s7403_s14, %s11225_s22, %s11225_s22, %s11226_s16  }
 0x894 PF: > { %s7431_s6 = sand.u32 1, %s11194_s25   ;;  %p13680_p6 = scmp.ne.s32.totalorder %s13471_s24, 0 }
 0x895   : > { %p13681_p1 = scmp.ge.s32.totalorder %s11206_s28, 2  ;;  %s7432_s8 = scalar_lea.sflag [#allocation4], %s7431_s6 }
 0x897   : > { %p10668_p8 = pnand %p13681_p1, %p13680_p6 }
 0x899   : > { %p10669_p11 = pneg %p10668_p8 }
 0x89b   : > { %11189 = dma.done.wait (%p10669_p11), %s7432_s8, 1024  }
 0x89c   : > { %11191 = vsyncadd (%p10669_p11), %s7432_s8, 4294966272  ;;  %p32_p12 = scmp.ge.s32.totalorder %s11441_s21, 4   ;;  %s13682_s25 = smov %s11198_s26 }
 0x89d   : > { %s13683_s26 = smov %s11202_s27  ;;  %s13684_s27 = smov %s11453_s17 }
 0x89e   : > { %s13685_s28 = smov %s11441_s21  ;;  %34 = sbr.rel (!%p32_p12) target bundleno = 21 (0x15), region = 197 }
 0x8a3   :  { %7437 = vsyncpa [#allocation3], 1 }
 0x8a4   :  { %7439 = vsyncpa [#allocation3 + $0x1], 1 }
 0x8a5   :  { %7440 = vsyncpa [#allocation6], 1 }
 0x8a6   :  { %7441 = vsyncpa [#allocation9], 1 }
 0x8a7   :  { %7442 = vsyncpa [#allocation12], 1 }
 0x8a8   :  { %7443 = vsyncpa [#allocation15], 1 }
 0x8a9   :  { %7444 = vsyncpa [#allocation18], 1 }
 0x8aa   :  { %7445 = vsyncpa [#allocation21], 1 }
 0x8ab   :  { %7446 = vsyncpa [#allocation4], 1 }
 0x8ac   :  { %7448 = vsyncpa [#allocation4 + $0x1], 1 }

</bundles_post_ra>
